<compile_context>
chip_gen: v7x
topology: tpu7x:2x2x1
jax: 0.10.0
libtpu: 0.0.40
codegen_flags: <defaults>
</compile_context>

<pallas_src>
import functools
import math

import jax
import jax.numpy as jnp
from jax.experimental import pallas as pl
from jax.experimental.pallas import tpu as pltpu

# ---- efficient-KAN defaults (KAN([hidden, 10, num_outputs])) -------------
GRID_SIZE = 5
SPLINE_ORDER = 3
NUM_COEFF = GRID_SIZE + SPLINE_ORDER          # basis functions per input feature
GRID_RANGE = (-1.0, 1.0)
_STEP = (GRID_RANGE[1] - GRID_RANGE[0]) / GRID_SIZE
# Static uniform knot vector (length GRID_SIZE + 2*SPLINE_ORDER + 1 = 12).
KAN_KNOTS = tuple(GRID_RANGE[0] + (i - SPLINE_ORDER) * _STEP
                  for i in range(GRID_SIZE + 2 * SPLINE_ORDER + 1))

# Whole-array-in-VMEM spec (no grid: single fused kernel invocation).
VMEM = pl.BlockSpec(memory_space=pltpu.MemorySpace.VMEM)

WEIGHT_ORDER = ("wt", "bt",
                "w_qkv", "b_qkv", "w_o", "b_o", "ln1_g", "ln1_b",
                "w_ff1", "b_ff1", "w_ff2", "b_ff2", "ln2_g", "ln2_b",
                "kan1_bw", "kan1_sw", "kan2_bw", "kan2_sw")


# --------------------------------------------------------------------------
# In-kernel helpers (operate on values, all 2-D, all f32)
# --------------------------------------------------------------------------
def _layer_norm(x, g, b, eps):
    mu = jnp.mean(x, axis=-1, keepdims=True)
    xc = x - mu
    var = jnp.mean(xc * xc, axis=-1, keepdims=True)
    return xc * jax.lax.rsqrt(var + eps) * g + b


def _kan_layer(x, base_w, spline_w_flat, knots, spline_order):
    """efficient-KAN KANLinear:
         out = silu(x) @ W_base + B(x)_flat @ W_spline_flat
       x:(M,in), base_w:(in,out), spline_w_flat:(NUM_COEFF*in,out) (coeff-major,
       pre-scaled).  Spline bases built with 2-D ops + static knot constants."""
    sig = 1.0 / (1.0 + jnp.exp(-x))
    out = jnp.dot(x * sig, base_w, preferred_element_type=jnp.float32)

    n = len(knots) - 1
    # degree-0 bases: list of (M, in) indicator arrays
    bases = [jnp.logical_and(x >= knots[j], x < knots[j + 1]).astype(jnp.float32)
             for j in range(n)]
    # Cox-de Boor recursion with compile-time reciprocal knot spacings
    for k in range(1, spline_order + 1):
        nxt = []
        for j in range(n - k):
            rl = 1.0 / (knots[j + k] - knots[j])
            rr = 1.0 / (knots[j + k + 1] - knots[j + 1])
            nxt.append((x - knots[j]) * rl * bases[j]
                       + (knots[j + k + 1] - x) * rr * bases[j + 1])
        bases = nxt
    # one flattened matmul: (M, NUM_COEFF*in) @ (NUM_COEFF*in, out)
    basis_mat = jnp.concatenate(bases, axis=1)
    out = out + jnp.dot(basis_mat, spline_w_flat, preferred_element_type=jnp.float32)
    return out


# --------------------------------------------------------------------------
# Fused whole-model kernel
# --------------------------------------------------------------------------
def _model_kernel(x_ref, wt_ref, bt_ref,
                  wqkv_ref, bqkv_ref, wo_ref, bo_ref, ln1g_ref, ln1b_ref,
                  wff1_ref, bff1_ref, wff2_ref, bff2_ref, ln2g_ref, ln2b_ref,
                  k1bw_ref, k1sw_ref, k2bw_ref, k2sw_ref,
                  o_ref, *, batch, seq, num_heads, hidden, eps, knots, spline_order):
    B, S, E, H = batch, seq, hidden, num_heads
    hd = E // H
    scale = 1.0 / math.sqrt(hd)
    L = wqkv_ref.shape[0]
    f32 = jnp.float32

    # transform_layer: Linear(input_dim -> hidden)
    x = x_ref[...].astype(f32)                                              # (B*S, in_dim)
    h = jnp.dot(x, wt_ref[...], preferred_element_type=f32) + bt_ref[...]   # (B*S, E)

    # Transformer encoder (post-LN, relu FFN, dropout = identity in eval)
    for l in range(L):
        qkv = jnp.dot(h, wqkv_ref[l], preferred_element_type=f32) + bqkv_ref[l]  # (B*S, 3E)
        q = qkv[:, :E] * scale                   # scale once (not per head)
        kk = qkv[:, E:2 * E]
        v = qkv[:, 2 * E:]

        attn_rows = []
        for b in range(B):                       # static unrolled loops (B, H small)
            r0, r1 = b * S, (b + 1) * S
            head_outs = []
            for hh in range(H):
                c0, c1 = hh * hd, (hh + 1) * hd
                qh = q[r0:r1, c0:c1]
                kh = kk[r0:r1, c0:c1]
                vh = v[r0:r1, c0:c1]
                s = jax.lax.dot_general(qh, kh, (((1,), (1,)), ((), ())),
                                        preferred_element_type=f32)   # (S, S)
                s = s - jnp.max(s, axis=-1, keepdims=True)
                p = jnp.exp(s)
                p = p * pl.reciprocal(jnp.sum(p, axis=-1, keepdims=True), approx=True)
                head_outs.append(jnp.dot(p, vh, preferred_element_type=f32))
            attn_rows.append(jnp.concatenate(head_outs, axis=1))      # (S, E)
        attn = jnp.concatenate(attn_rows, axis=0)                     # (B*S, E)

        attn = jnp.dot(attn, wo_ref[l], preferred_element_type=f32) + bo_ref[l]
        h = _layer_norm(h + attn, ln1g_ref[l], ln1b_ref[l], eps)      # norm1

        ff = jnp.dot(h, wff1_ref[l], preferred_element_type=f32) + bff1_ref[l]
        ff = jnp.maximum(ff, 0.0)                                     # relu
        ff = jnp.dot(ff, wff2_ref[l], preferred_element_type=f32) + bff2_ref[l]
        h = _layer_norm(h + ff, ln2g_ref[l], ln2b_ref[l], eps)        # norm2

    # x[-1, :, :] in (S, B, E) layout == last sequence position per batch
    last = jnp.concatenate([h[b * S + S - 1: b * S + S, :] for b in range(B)],
                           axis=0)                                    # (B, E)

    # e_kan = KAN([hidden, 10, num_outputs]) — both layers fused, 10-wide stays in VMEM
    y = _kan_layer(last, k1bw_ref[...], k1sw_ref[...], knots, spline_order)
    y = _kan_layer(y, k2bw_ref[...], k2sw_ref[...], knots, spline_order)

    o_ref[...] = y.astype(o_ref.dtype)


# --------------------------------------------------------------------------
# Host wrapper (single pallas_call for the whole forward pass)
# --------------------------------------------------------------------------
def transformer_ekan_forward(x, params):
    B, S, in_dim = x.shape
    E = params["hidden"]
    H = params["num_heads"]
    num_outputs = params["kan2_bw"].shape[1]
    weights = [params[n] for n in WEIGHT_ORDER]

    kernel = functools.partial(
        _model_kernel, batch=B, seq=S, num_heads=H, hidden=E,
        eps=1e-5, knots=KAN_KNOTS, spline_order=SPLINE_ORDER)

    return pl.pallas_call(
        kernel,
        out_shape=jax.ShapeDtypeStruct((B, num_outputs), x.dtype),
        in_specs=[VMEM] * (1 + len(weights)),
        out_specs=VMEM,
        compiler_params=pltpu.CompilerParams(vmem_limit_bytes=64 * 1024 * 1024),
    )(x.reshape(B * S, in_dim), *weights)


# --------------------------------------------------------------------------
# Deterministic parameter init (synthetic; not a checkpoint load).
# Weights are stored pre-stacked per layer (leading L dim) and KAN spline
# weights pre-scaled + pre-flattened (coeff-major K axis) for the fused kernel.
# --------------------------------------------------------------------------
def init_params(key, input_dim, num_heads, num_layers, num_outputs, hidden,
                dim_feedforward=2048, kan_hidden=10):
    keys = iter(jax.random.split(key, 32))

    def w(shape, scale=0.1):
        return jax.random.normal(next(keys), shape, jnp.float32) * scale

    E, L, F = hidden, num_layers, dim_feedforward
    p = {"hidden": hidden, "num_heads": num_heads}

    p["wt"] = w((input_dim, E))
    p["bt"] = w((1, E), 0.01)

    p["w_qkv"] = w((L, E, 3 * E))
    p["b_qkv"] = w((L, 1, 3 * E), 0.01)
    p["w_o"] = w((L, E, E))
    p["b_o"] = w((L, 1, E), 0.01)
    p["ln1_g"] = jnp.ones((L, 1, E), jnp.float32)
    p["ln1_b"] = jnp.zeros((L, 1, E), jnp.float32)
    p["w_ff1"] = w((L, E, F), 0.05)
    p["b_ff1"] = w((L, 1, F), 0.01)
    p["w_ff2"] = w((L, F, E), 0.05)
    p["b_ff2"] = w((L, 1, E), 0.01)
    p["ln2_g"] = jnp.ones((L, 1, E), jnp.float32)
    p["ln2_b"] = jnp.zeros((L, 1, E), jnp.float32)

    # KANLinear 1: hidden -> 10 ; KANLinear 2: 10 -> num_outputs
    p["kan1_bw"] = w((E, kan_hidden))
    p["kan1_sw"] = w((NUM_COEFF, E, kan_hidden)).reshape(NUM_COEFF * E, kan_hidden)
    p["kan2_bw"] = w((kan_hidden, num_outputs))
    p["kan2_sw"] = w((NUM_COEFF, kan_hidden, num_outputs)).reshape(
        NUM_COEFF * kan_hidden, num_outputs)
    return p


# --------------------------------------------------------------------------
if __name__ == "__main__":
    key = jax.random.PRNGKey(0)
    B, S = 2, 8
    input_dim, num_heads, num_layers, num_outputs, hidden = 4, 4, 2, 3, 32

    pkey, xkey = jax.random.split(key)
    params = init_params(pkey, input_dim, num_heads, num_layers, num_outputs, hidden)
    x = jax.random.normal(xkey, (B, S, input_dim), dtype=jnp.float32)

    fwd = jax.jit(lambda inp: transformer_ekan_forward(inp, params))
    y = fwd(x)
    jax.block_until_ready(y)
    assert y.shape == (B, num_outputs), y.shape
    assert bool(jnp.all(jnp.isfinite(y)))
    print("KERNEL_OK")
</pallas_src>

<mosaic_0001>
module attributes {stable_mosaic.version = 11 : i64} {
  func.func @_model_kernel(%arg0: memref<16x4xf32, #tpu.memory_space<vmem>>, %arg1: memref<4x32xf32, #tpu.memory_space<vmem>>, %arg2: memref<1x32xf32, #tpu.memory_space<vmem>>, %arg3: memref<2x32x96xf32, #tpu.memory_space<vmem>>, %arg4: memref<2x1x96xf32, #tpu.memory_space<vmem>>, %arg5: memref<2x32x32xf32, #tpu.memory_space<vmem>>, %arg6: memref<2x1x32xf32, #tpu.memory_space<vmem>>, %arg7: memref<2x1x32xf32, #tpu.memory_space<vmem>>, %arg8: memref<2x1x32xf32, #tpu.memory_space<vmem>>, %arg9: memref<2x32x2048xf32, #tpu.memory_space<vmem>>, %arg10: memref<2x1x2048xf32, #tpu.memory_space<vmem>>, %arg11: memref<2x2048x32xf32, #tpu.memory_space<vmem>>, %arg12: memref<2x1x32xf32, #tpu.memory_space<vmem>>, %arg13: memref<2x1x32xf32, #tpu.memory_space<vmem>>, %arg14: memref<2x1x32xf32, #tpu.memory_space<vmem>>, %arg15: memref<32x10xf32, #tpu.memory_space<vmem>>, %arg16: memref<256x10xf32, #tpu.memory_space<vmem>>, %arg17: memref<10x3xf32, #tpu.memory_space<vmem>>, %arg18: memref<80x3xf32, #tpu.memory_space<vmem>>, %arg19: memref<2x3xf32, #tpu.memory_space<vmem>>) attributes {dimension_semantics = [], scalar_prefetch = 0 : i64, scratch_operands = 0 : i64, tpu.core_type = #tpu.core_type<tc>} {
    %c0 = arith.constant 0 : index
    %c0_0 = arith.constant 0 : index
    %0 = vector.load %arg0[%c0, %c0_0] : memref<16x4xf32, #tpu.memory_space<vmem>>, vector<16x4xf32>
    %c0_1 = arith.constant 0 : index
    %c0_2 = arith.constant 0 : index
    %1 = vector.load %arg1[%c0_1, %c0_2] : memref<4x32xf32, #tpu.memory_space<vmem>>, vector<4x32xf32>
    %cst = arith.constant dense<0.000000e+00> : vector<16x32xf32>
    %2 = tpu.matmul %0, %1, %cst {dimension_numbers = #tpu.dot_dimension_numbers<[1], [0], [0], [1], [0, 0, 1, 1], [], []>} : vector<16x4xf32>, vector<4x32xf32>, vector<16x32xf32> -> vector<16x32xf32>
    %c0_3 = arith.constant 0 : index
    %c0_4 = arith.constant 0 : index
    %3 = vector.load %arg2[%c0_3, %c0_4] : memref<1x32xf32, #tpu.memory_space<vmem>>, vector<1x32xf32>
    %4 = vector.broadcast %3 : vector<1x32xf32> to vector<16x32xf32>
    %5 = arith.addf %2, %4 : vector<16x32xf32>
    %c0_5 = arith.constant 0 : index
    %c0_6 = arith.constant 0 : index
    %c0_7 = arith.constant 0 : index
    %6 = vector.load %arg3[%c0_5, %c0_6, %c0_7] : memref<2x32x96xf32, #tpu.memory_space<vmem>>, vector<1x32x96xf32>
    %7 = vector.shape_cast %6 : vector<1x32x96xf32> to vector<32x96xf32>
    %cst_8 = arith.constant dense<0.000000e+00> : vector<16x96xf32>
    %8 = tpu.matmul %5, %7, %cst_8 {dimension_numbers = #tpu.dot_dimension_numbers<[1], [0], [0], [1], [0, 0, 1, 1], [], []>} : vector<16x32xf32>, vector<32x96xf32>, vector<16x96xf32> -> vector<16x96xf32>
    %c0_9 = arith.constant 0 : index
    %c0_10 = arith.constant 0 : index
    %c0_11 = arith.constant 0 : index
    %9 = vector.load %arg4[%c0_9, %c0_10, %c0_11] : memref<2x1x96xf32, #tpu.memory_space<vmem>>, vector<1x1x96xf32>
    %10 = vector.shape_cast %9 : vector<1x1x96xf32> to vector<1x96xf32>
    %11 = vector.broadcast %10 : vector<1x96xf32> to vector<16x96xf32>
    %12 = arith.addf %8, %11 : vector<16x96xf32>
    %13 = vector.extract_strided_slice %12 {offsets = [0, 0], sizes = [16, 32], strides = [1, 1]} : vector<16x96xf32> to vector<16x32xf32>
    %cst_12 = arith.constant 0.353553385 : f32
    %14 = vector.broadcast %cst_12 : f32 to vector<16x32xf32>
    %15 = arith.mulf %13, %14 : vector<16x32xf32>
    %16 = vector.extract_strided_slice %12 {offsets = [0, 32], sizes = [16, 32], strides = [1, 1]} : vector<16x96xf32> to vector<16x32xf32>
    %17 = vector.extract_strided_slice %12 {offsets = [0, 64], sizes = [16, 32], strides = [1, 1]} : vector<16x96xf32> to vector<16x32xf32>
    %18 = vector.extract_strided_slice %15 {offsets = [0, 0], sizes = [8, 8], strides = [1, 1]} : vector<16x32xf32> to vector<8x8xf32>
    %19 = vector.extract_strided_slice %16 {offsets = [0, 0], sizes = [8, 8], strides = [1, 1]} : vector<16x32xf32> to vector<8x8xf32>
    %20 = vector.extract_strided_slice %17 {offsets = [0, 0], sizes = [8, 8], strides = [1, 1]} : vector<16x32xf32> to vector<8x8xf32>
    %cst_13 = arith.constant dense<0.000000e+00> : vector<8x8xf32>
    %21 = tpu.matmul %18, %19, %cst_13 {dimension_numbers = #tpu.dot_dimension_numbers<[1], [1], [0], [0], [0, 0, 1, 0], [], []>} : vector<8x8xf32>, vector<8x8xf32>, vector<8x8xf32> -> vector<8x8xf32>
    %cst_14 = arith.constant dense<0xFF800000> : vector<8xf32>
    %22 = vector.multi_reduction <maximumf>, %21, %cst_14 [1] : vector<8x8xf32> to vector<8xf32>
    %23 = vector.shape_cast %22 : vector<8xf32> to vector<8x1xf32>
    %24 = vector.broadcast %23 : vector<8x1xf32> to vector<8x8xf32>
    %25 = arith.subf %21, %24 : vector<8x8xf32>
    %26 = math.exp %25 : vector<8x8xf32>
    %cst_15 = arith.constant dense<0.000000e+00> : vector<8xf32>
    %27 = vector.multi_reduction <add>, %26, %cst_15 [1] : vector<8x8xf32> to vector<8xf32>
    %28 = vector.shape_cast %27 : vector<8xf32> to vector<8x1xf32>
    %29 = tpu.reciprocal %28 {approx = true} : vector<8x1xf32> -> vector<8x1xf32>
    %30 = vector.broadcast %29 : vector<8x1xf32> to vector<8x8xf32>
    %31 = arith.mulf %26, %30 : vector<8x8xf32>
    %cst_16 = arith.constant dense<0.000000e+00> : vector<8x8xf32>
    %32 = tpu.matmul %31, %20, %cst_16 {dimension_numbers = #tpu.dot_dimension_numbers<[1], [0], [0], [1], [0, 0, 1, 1], [], []>} : vector<8x8xf32>, vector<8x8xf32>, vector<8x8xf32> -> vector<8x8xf32>
    %33 = vector.extract_strided_slice %15 {offsets = [0, 8], sizes = [8, 8], strides = [1, 1]} : vector<16x32xf32> to vector<8x8xf32>
    %34 = vector.extract_strided_slice %16 {offsets = [0, 8], sizes = [8, 8], strides = [1, 1]} : vector<16x32xf32> to vector<8x8xf32>
    %35 = vector.extract_strided_slice %17 {offsets = [0, 8], sizes = [8, 8], strides = [1, 1]} : vector<16x32xf32> to vector<8x8xf32>
    %cst_17 = arith.constant dense<0.000000e+00> : vector<8x8xf32>
    %36 = tpu.matmul %33, %34, %cst_17 {dimension_numbers = #tpu.dot_dimension_numbers<[1], [1], [0], [0], [0, 0, 1, 0], [], []>} : vector<8x8xf32>, vector<8x8xf32>, vector<8x8xf32> -> vector<8x8xf32>
    %cst_18 = arith.constant dense<0xFF800000> : vector<8xf32>
    %37 = vector.multi_reduction <maximumf>, %36, %cst_18 [1] : vector<8x8xf32> to vector<8xf32>
    %38 = vector.shape_cast %37 : vector<8xf32> to vector<8x1xf32>
    %39 = vector.broadcast %38 : vector<8x1xf32> to vector<8x8xf32>
    %40 = arith.subf %36, %39 : vector<8x8xf32>
    %41 = math.exp %40 : vector<8x8xf32>
    %cst_19 = arith.constant dense<0.000000e+00> : vector<8xf32>
    %42 = vector.multi_reduction <add>, %41, %cst_19 [1] : vector<8x8xf32> to vector<8xf32>
    %43 = vector.shape_cast %42 : vector<8xf32> to vector<8x1xf32>
    %44 = tpu.reciprocal %43 {approx = true} : vector<8x1xf32> -> vector<8x1xf32>
    %45 = vector.broadcast %44 : vector<8x1xf32> to vector<8x8xf32>
    %46 = arith.mulf %41, %45 : vector<8x8xf32>
    %cst_20 = arith.constant dense<0.000000e+00> : vector<8x8xf32>
    %47 = tpu.matmul %46, %35, %cst_20 {dimension_numbers = #tpu.dot_dimension_numbers<[1], [0], [0], [1], [0, 0, 1, 1], [], []>} : vector<8x8xf32>, vector<8x8xf32>, vector<8x8xf32> -> vector<8x8xf32>
    %48 = vector.extract_strided_slice %15 {offsets = [0, 16], sizes = [8, 8], strides = [1, 1]} : vector<16x32xf32> to vector<8x8xf32>
    %49 = vector.extract_strided_slice %16 {offsets = [0, 16], sizes = [8, 8], strides = [1, 1]} : vector<16x32xf32> to vector<8x8xf32>
    %50 = vector.extract_strided_slice %17 {offsets = [0, 16], sizes = [8, 8], strides = [1, 1]} : vector<16x32xf32> to vector<8x8xf32>
    %cst_21 = arith.constant dense<0.000000e+00> : vector<8x8xf32>
    %51 = tpu.matmul %48, %49, %cst_21 {dimension_numbers = #tpu.dot_dimension_numbers<[1], [1], [0], [0], [0, 0, 1, 0], [], []>} : vector<8x8xf32>, vector<8x8xf32>, vector<8x8xf32> -> vector<8x8xf32>
    %cst_22 = arith.constant dense<0xFF800000> : vector<8xf32>
    %52 = vector.multi_reduction <maximumf>, %51, %cst_22 [1] : vector<8x8xf32> to vector<8xf32>
    %53 = vector.shape_cast %52 : vector<8xf32> to vector<8x1xf32>
    %54 = vector.broadcast %53 : vector<8x1xf32> to vector<8x8xf32>
    %55 = arith.subf %51, %54 : vector<8x8xf32>
    %56 = math.exp %55 : vector<8x8xf32>
    %cst_23 = arith.constant dense<0.000000e+00> : vector<8xf32>
    %57 = vector.multi_reduction <add>, %56, %cst_23 [1] : vector<8x8xf32> to vector<8xf32>
    %58 = vector.shape_cast %57 : vector<8xf32> to vector<8x1xf32>
    %59 = tpu.reciprocal %58 {approx = true} : vector<8x1xf32> -> vector<8x1xf32>
    %60 = vector.broadcast %59 : vector<8x1xf32> to vector<8x8xf32>
    %61 = arith.mulf %56, %60 : vector<8x8xf32>
    %cst_24 = arith.constant dense<0.000000e+00> : vector<8x8xf32>
    %62 = tpu.matmul %61, %50, %cst_24 {dimension_numbers = #tpu.dot_dimension_numbers<[1], [0], [0], [1], [0, 0, 1, 1], [], []>} : vector<8x8xf32>, vector<8x8xf32>, vector<8x8xf32> -> vector<8x8xf32>
    %63 = vector.extract_strided_slice %15 {offsets = [0, 24], sizes = [8, 8], strides = [1, 1]} : vector<16x32xf32> to vector<8x8xf32>
    %64 = vector.extract_strided_slice %16 {offsets = [0, 24], sizes = [8, 8], strides = [1, 1]} : vector<16x32xf32> to vector<8x8xf32>
    %65 = vector.extract_strided_slice %17 {offsets = [0, 24], sizes = [8, 8], strides = [1, 1]} : vector<16x32xf32> to vector<8x8xf32>
    %cst_25 = arith.constant dense<0.000000e+00> : vector<8x8xf32>
    %66 = tpu.matmul %63, %64, %cst_25 {dimension_numbers = #tpu.dot_dimension_numbers<[1], [1], [0], [0], [0, 0, 1, 0], [], []>} : vector<8x8xf32>, vector<8x8xf32>, vector<8x8xf32> -> vector<8x8xf32>
    %cst_26 = arith.constant dense<0xFF800000> : vector<8xf32>
    %67 = vector.multi_reduction <maximumf>, %66, %cst_26 [1] : vector<8x8xf32> to vector<8xf32>
    %68 = vector.shape_cast %67 : vector<8xf32> to vector<8x1xf32>
    %69 = vector.broadcast %68 : vector<8x1xf32> to vector<8x8xf32>
    %70 = arith.subf %66, %69 : vector<8x8xf32>
    %71 = math.exp %70 : vector<8x8xf32>
    %cst_27 = arith.constant dense<0.000000e+00> : vector<8xf32>
    %72 = vector.multi_reduction <add>, %71, %cst_27 [1] : vector<8x8xf32> to vector<8xf32>
    %73 = vector.shape_cast %72 : vector<8xf32> to vector<8x1xf32>
    %74 = tpu.reciprocal %73 {approx = true} : vector<8x1xf32> -> vector<8x1xf32>
    %75 = vector.broadcast %74 : vector<8x1xf32> to vector<8x8xf32>
    %76 = arith.mulf %71, %75 : vector<8x8xf32>
    %cst_28 = arith.constant dense<0.000000e+00> : vector<8x8xf32>
    %77 = tpu.matmul %76, %65, %cst_28 {dimension_numbers = #tpu.dot_dimension_numbers<[1], [0], [0], [1], [0, 0, 1, 1], [], []>} : vector<8x8xf32>, vector<8x8xf32>, vector<8x8xf32> -> vector<8x8xf32>
    %78 = tpu.concatenate %32, %47, %62, %77 in 1 : vector<8x8xf32>, vector<8x8xf32>, vector<8x8xf32>, vector<8x8xf32> -> vector<8x32xf32>
    %79 = vector.extract_strided_slice %15 {offsets = [8, 0], sizes = [8, 8], strides = [1, 1]} : vector<16x32xf32> to vector<8x8xf32>
    %80 = vector.extract_strided_slice %16 {offsets = [8, 0], sizes = [8, 8], strides = [1, 1]} : vector<16x32xf32> to vector<8x8xf32>
    %81 = vector.extract_strided_slice %17 {offsets = [8, 0], sizes = [8, 8], strides = [1, 1]} : vector<16x32xf32> to vector<8x8xf32>
    %cst_29 = arith.constant dense<0.000000e+00> : vector<8x8xf32>
    %82 = tpu.matmul %79, %80, %cst_29 {dimension_numbers = #tpu.dot_dimension_numbers<[1], [1], [0], [0], [0, 0, 1, 0], [], []>} : vector<8x8xf32>, vector<8x8xf32>, vector<8x8xf32> -> vector<8x8xf32>
    %cst_30 = arith.constant dense<0xFF800000> : vector<8xf32>
    %83 = vector.multi_reduction <maximumf>, %82, %cst_30 [1] : vector<8x8xf32> to vector<8xf32>
    %84 = vector.shape_cast %83 : vector<8xf32> to vector<8x1xf32>
    %85 = vector.broadcast %84 : vector<8x1xf32> to vector<8x8xf32>
    %86 = arith.subf %82, %85 : vector<8x8xf32>
    %87 = math.exp %86 : vector<8x8xf32>
    %cst_31 = arith.constant dense<0.000000e+00> : vector<8xf32>
    %88 = vector.multi_reduction <add>, %87, %cst_31 [1] : vector<8x8xf32> to vector<8xf32>
    %89 = vector.shape_cast %88 : vector<8xf32> to vector<8x1xf32>
    %90 = tpu.reciprocal %89 {approx = true} : vector<8x1xf32> -> vector<8x1xf32>
    %91 = vector.broadcast %90 : vector<8x1xf32> to vector<8x8xf32>
    %92 = arith.mulf %87, %91 : vector<8x8xf32>
    %cst_32 = arith.constant dense<0.000000e+00> : vector<8x8xf32>
    %93 = tpu.matmul %92, %81, %cst_32 {dimension_numbers = #tpu.dot_dimension_numbers<[1], [0], [0], [1], [0, 0, 1, 1], [], []>} : vector<8x8xf32>, vector<8x8xf32>, vector<8x8xf32> -> vector<8x8xf32>
    %94 = vector.extract_strided_slice %15 {offsets = [8, 8], sizes = [8, 8], strides = [1, 1]} : vector<16x32xf32> to vector<8x8xf32>
    %95 = vector.extract_strided_slice %16 {offsets = [8, 8], sizes = [8, 8], strides = [1, 1]} : vector<16x32xf32> to vector<8x8xf32>
    %96 = vector.extract_strided_slice %17 {offsets = [8, 8], sizes = [8, 8], strides = [1, 1]} : vector<16x32xf32> to vector<8x8xf32>
    %cst_33 = arith.constant dense<0.000000e+00> : vector<8x8xf32>
    %97 = tpu.matmul %94, %95, %cst_33 {dimension_numbers = #tpu.dot_dimension_numbers<[1], [1], [0], [0], [0, 0, 1, 0], [], []>} : vector<8x8xf32>, vector<8x8xf32>, vector<8x8xf32> -> vector<8x8xf32>
    %cst_34 = arith.constant dense<0xFF800000> : vector<8xf32>
    %98 = vector.multi_reduction <maximumf>, %97, %cst_34 [1] : vector<8x8xf32> to vector<8xf32>
    %99 = vector.shape_cast %98 : vector<8xf32> to vector<8x1xf32>
    %100 = vector.broadcast %99 : vector<8x1xf32> to vector<8x8xf32>
    %101 = arith.subf %97, %100 : vector<8x8xf32>
    %102 = math.exp %101 : vector<8x8xf32>
    %cst_35 = arith.constant dense<0.000000e+00> : vector<8xf32>
    %103 = vector.multi_reduction <add>, %102, %cst_35 [1] : vector<8x8xf32> to vector<8xf32>
    %104 = vector.shape_cast %103 : vector<8xf32> to vector<8x1xf32>
    %105 = tpu.reciprocal %104 {approx = true} : vector<8x1xf32> -> vector<8x1xf32>
    %106 = vector.broadcast %105 : vector<8x1xf32> to vector<8x8xf32>
    %107 = arith.mulf %102, %106 : vector<8x8xf32>
    %cst_36 = arith.constant dense<0.000000e+00> : vector<8x8xf32>
    %108 = tpu.matmul %107, %96, %cst_36 {dimension_numbers = #tpu.dot_dimension_numbers<[1], [0], [0], [1], [0, 0, 1, 1], [], []>} : vector<8x8xf32>, vector<8x8xf32>, vector<8x8xf32> -> vector<8x8xf32>
    %109 = vector.extract_strided_slice %15 {offsets = [8, 16], sizes = [8, 8], strides = [1, 1]} : vector<16x32xf32> to vector<8x8xf32>
    %110 = vector.extract_strided_slice %16 {offsets = [8, 16], sizes = [8, 8], strides = [1, 1]} : vector<16x32xf32> to vector<8x8xf32>
    %111 = vector.extract_strided_slice %17 {offsets = [8, 16], sizes = [8, 8], strides = [1, 1]} : vector<16x32xf32> to vector<8x8xf32>
    %cst_37 = arith.constant dense<0.000000e+00> : vector<8x8xf32>
    %112 = tpu.matmul %109, %110, %cst_37 {dimension_numbers = #tpu.dot_dimension_numbers<[1], [1], [0], [0], [0, 0, 1, 0], [], []>} : vector<8x8xf32>, vector<8x8xf32>, vector<8x8xf32> -> vector<8x8xf32>
    %cst_38 = arith.constant dense<0xFF800000> : vector<8xf32>
    %113 = vector.multi_reduction <maximumf>, %112, %cst_38 [1] : vector<8x8xf32> to vector<8xf32>
    %114 = vector.shape_cast %113 : vector<8xf32> to vector<8x1xf32>
    %115 = vector.broadcast %114 : vector<8x1xf32> to vector<8x8xf32>
    %116 = arith.subf %112, %115 : vector<8x8xf32>
    %117 = math.exp %116 : vector<8x8xf32>
    %cst_39 = arith.constant dense<0.000000e+00> : vector<8xf32>
    %118 = vector.multi_reduction <add>, %117, %cst_39 [1] : vector<8x8xf32> to vector<8xf32>
    %119 = vector.shape_cast %118 : vector<8xf32> to vector<8x1xf32>
    %120 = tpu.reciprocal %119 {approx = true} : vector<8x1xf32> -> vector<8x1xf32>
    %121 = vector.broadcast %120 : vector<8x1xf32> to vector<8x8xf32>
    %122 = arith.mulf %117, %121 : vector<8x8xf32>
    %cst_40 = arith.constant dense<0.000000e+00> : vector<8x8xf32>
    %123 = tpu.matmul %122, %111, %cst_40 {dimension_numbers = #tpu.dot_dimension_numbers<[1], [0], [0], [1], [0, 0, 1, 1], [], []>} : vector<8x8xf32>, vector<8x8xf32>, vector<8x8xf32> -> vector<8x8xf32>
    %124 = vector.extract_strided_slice %15 {offsets = [8, 24], sizes = [8, 8], strides = [1, 1]} : vector<16x32xf32> to vector<8x8xf32>
    %125 = vector.extract_strided_slice %16 {offsets = [8, 24], sizes = [8, 8], strides = [1, 1]} : vector<16x32xf32> to vector<8x8xf32>
    %126 = vector.extract_strided_slice %17 {offsets = [8, 24], sizes = [8, 8], strides = [1, 1]} : vector<16x32xf32> to vector<8x8xf32>
    %cst_41 = arith.constant dense<0.000000e+00> : vector<8x8xf32>
    %127 = tpu.matmul %124, %125, %cst_41 {dimension_numbers = #tpu.dot_dimension_numbers<[1], [1], [0], [0], [0, 0, 1, 0], [], []>} : vector<8x8xf32>, vector<8x8xf32>, vector<8x8xf32> -> vector<8x8xf32>
    %cst_42 = arith.constant dense<0xFF800000> : vector<8xf32>
    %128 = vector.multi_reduction <maximumf>, %127, %cst_42 [1] : vector<8x8xf32> to vector<8xf32>
    %129 = vector.shape_cast %128 : vector<8xf32> to vector<8x1xf32>
    %130 = vector.broadcast %129 : vector<8x1xf32> to vector<8x8xf32>
    %131 = arith.subf %127, %130 : vector<8x8xf32>
    %132 = math.exp %131 : vector<8x8xf32>
    %cst_43 = arith.constant dense<0.000000e+00> : vector<8xf32>
    %133 = vector.multi_reduction <add>, %132, %cst_43 [1] : vector<8x8xf32> to vector<8xf32>
    %134 = vector.shape_cast %133 : vector<8xf32> to vector<8x1xf32>
    %135 = tpu.reciprocal %134 {approx = true} : vector<8x1xf32> -> vector<8x1xf32>
    %136 = vector.broadcast %135 : vector<8x1xf32> to vector<8x8xf32>
    %137 = arith.mulf %132, %136 : vector<8x8xf32>
    %cst_44 = arith.constant dense<0.000000e+00> : vector<8x8xf32>
    %138 = tpu.matmul %137, %126, %cst_44 {dimension_numbers = #tpu.dot_dimension_numbers<[1], [0], [0], [1], [0, 0, 1, 1], [], []>} : vector<8x8xf32>, vector<8x8xf32>, vector<8x8xf32> -> vector<8x8xf32>
    %139 = tpu.concatenate %93, %108, %123, %138 in 1 : vector<8x8xf32>, vector<8x8xf32>, vector<8x8xf32>, vector<8x8xf32> -> vector<8x32xf32>
    %140 = tpu.concatenate %78, %139 in 0 : vector<8x32xf32>, vector<8x32xf32> -> vector<16x32xf32>
    %c0_45 = arith.constant 0 : index
    %c0_46 = arith.constant 0 : index
    %c0_47 = arith.constant 0 : index
    %141 = vector.load %arg5[%c0_45, %c0_46, %c0_47] : memref<2x32x32xf32, #tpu.memory_space<vmem>>, vector<1x32x32xf32>
    %142 = vector.shape_cast %141 : vector<1x32x32xf32> to vector<32x32xf32>
    %cst_48 = arith.constant dense<0.000000e+00> : vector<16x32xf32>
    %143 = tpu.matmul %140, %142, %cst_48 {dimension_numbers = #tpu.dot_dimension_numbers<[1], [0], [0], [1], [0, 0, 1, 1], [], []>} : vector<16x32xf32>, vector<32x32xf32>, vector<16x32xf32> -> vector<16x32xf32>
    %c0_49 = arith.constant 0 : index
    %c0_50 = arith.constant 0 : index
    %c0_51 = arith.constant 0 : index
    %144 = vector.load %arg6[%c0_49, %c0_50, %c0_51] : memref<2x1x32xf32, #tpu.memory_space<vmem>>, vector<1x1x32xf32>
    %145 = vector.shape_cast %144 : vector<1x1x32xf32> to vector<1x32xf32>
    %146 = vector.broadcast %145 : vector<1x32xf32> to vector<16x32xf32>
    %147 = arith.addf %143, %146 : vector<16x32xf32>
    %148 = arith.addf %5, %147 : vector<16x32xf32>
    %c0_52 = arith.constant 0 : index
    %c0_53 = arith.constant 0 : index
    %c0_54 = arith.constant 0 : index
    %149 = vector.load %arg7[%c0_52, %c0_53, %c0_54] : memref<2x1x32xf32, #tpu.memory_space<vmem>>, vector<1x1x32xf32>
    %150 = vector.shape_cast %149 : vector<1x1x32xf32> to vector<1x32xf32>
    %c0_55 = arith.constant 0 : index
    %c0_56 = arith.constant 0 : index
    %c0_57 = arith.constant 0 : index
    %151 = vector.load %arg8[%c0_55, %c0_56, %c0_57] : memref<2x1x32xf32, #tpu.memory_space<vmem>>, vector<1x1x32xf32>
    %152 = vector.shape_cast %151 : vector<1x1x32xf32> to vector<1x32xf32>
    %cst_58 = arith.constant dense<0.000000e+00> : vector<16xf32>
    %153 = vector.multi_reduction <add>, %148, %cst_58 [1] : vector<16x32xf32> to vector<16xf32>
    %154 = vector.shape_cast %153 : vector<16xf32> to vector<16x1xf32>
    %cst_59 = arith.constant 3.200000e+01 : f32
    %155 = vector.broadcast %cst_59 : f32 to vector<16x1xf32>
    %156 = arith.divf %154, %155 : vector<16x1xf32>
    %157 = vector.broadcast %156 : vector<16x1xf32> to vector<16x32xf32>
    %158 = arith.subf %148, %157 : vector<16x32xf32>
    %159 = arith.mulf %158, %158 : vector<16x32xf32>
    %cst_60 = arith.constant dense<0.000000e+00> : vector<16xf32>
    %160 = vector.multi_reduction <add>, %159, %cst_60 [1] : vector<16x32xf32> to vector<16xf32>
    %161 = vector.shape_cast %160 : vector<16xf32> to vector<16x1xf32>
    %cst_61 = arith.constant 3.200000e+01 : f32
    %162 = vector.broadcast %cst_61 : f32 to vector<16x1xf32>
    %163 = arith.divf %161, %162 : vector<16x1xf32>
    %cst_62 = arith.constant 9.99999974E-6 : f32
    %164 = vector.broadcast %cst_62 : f32 to vector<16x1xf32>
    %165 = arith.addf %163, %164 : vector<16x1xf32>
    %166 = math.rsqrt %165 : vector<16x1xf32>
    %167 = vector.broadcast %166 : vector<16x1xf32> to vector<16x32xf32>
    %168 = arith.mulf %158, %167 : vector<16x32xf32>
    %169 = vector.broadcast %150 : vector<1x32xf32> to vector<16x32xf32>
    %170 = arith.mulf %168, %169 : vector<16x32xf32>
    %171 = vector.broadcast %152 : vector<1x32xf32> to vector<16x32xf32>
    %172 = arith.addf %170, %171 : vector<16x32xf32>
    %c0_63 = arith.constant 0 : index
    %c0_64 = arith.constant 0 : index
    %c0_65 = arith.constant 0 : index
    %173 = vector.load %arg9[%c0_63, %c0_64, %c0_65] : memref<2x32x2048xf32, #tpu.memory_space<vmem>>, vector<1x32x2048xf32>
    %174 = vector.shape_cast %173 : vector<1x32x2048xf32> to vector<32x2048xf32>
    %cst_66 = arith.constant dense<0.000000e+00> : vector<16x2048xf32>
    %175 = tpu.matmul %172, %174, %cst_66 {dimension_numbers = #tpu.dot_dimension_numbers<[1], [0], [0], [1], [0, 0, 1, 1], [], []>} : vector<16x32xf32>, vector<32x2048xf32>, vector<16x2048xf32> -> vector<16x2048xf32>
    %c0_67 = arith.constant 0 : index
    %c0_68 = arith.constant 0 : index
    %c0_69 = arith.constant 0 : index
    %176 = vector.load %arg10[%c0_67, %c0_68, %c0_69] : memref<2x1x2048xf32, #tpu.memory_space<vmem>>, vector<1x1x2048xf32>
    %177 = vector.shape_cast %176 : vector<1x1x2048xf32> to vector<1x2048xf32>
    %178 = vector.broadcast %177 : vector<1x2048xf32> to vector<16x2048xf32>
    %179 = arith.addf %175, %178 : vector<16x2048xf32>
    %cst_70 = arith.constant 0.000000e+00 : f32
    %180 = vector.broadcast %cst_70 : f32 to vector<16x2048xf32>
    %181 = arith.maximumf %179, %180 : vector<16x2048xf32>
    %c0_71 = arith.constant 0 : index
    %c0_72 = arith.constant 0 : index
    %c0_73 = arith.constant 0 : index
    %182 = vector.load %arg11[%c0_71, %c0_72, %c0_73] : memref<2x2048x32xf32, #tpu.memory_space<vmem>>, vector<1x2048x32xf32>
    %183 = vector.shape_cast %182 : vector<1x2048x32xf32> to vector<2048x32xf32>
    %cst_74 = arith.constant dense<0.000000e+00> : vector<16x32xf32>
    %184 = tpu.matmul %181, %183, %cst_74 {dimension_numbers = #tpu.dot_dimension_numbers<[1], [0], [0], [1], [0, 0, 1, 1], [], []>} : vector<16x2048xf32>, vector<2048x32xf32>, vector<16x32xf32> -> vector<16x32xf32>
    %c0_75 = arith.constant 0 : index
    %c0_76 = arith.constant 0 : index
    %c0_77 = arith.constant 0 : index
    %185 = vector.load %arg12[%c0_75, %c0_76, %c0_77] : memref<2x1x32xf32, #tpu.memory_space<vmem>>, vector<1x1x32xf32>
    %186 = vector.shape_cast %185 : vector<1x1x32xf32> to vector<1x32xf32>
    %187 = vector.broadcast %186 : vector<1x32xf32> to vector<16x32xf32>
    %188 = arith.addf %184, %187 : vector<16x32xf32>
    %189 = arith.addf %172, %188 : vector<16x32xf32>
    %c0_78 = arith.constant 0 : index
    %c0_79 = arith.constant 0 : index
    %c0_80 = arith.constant 0 : index
    %190 = vector.load %arg13[%c0_78, %c0_79, %c0_80] : memref<2x1x32xf32, #tpu.memory_space<vmem>>, vector<1x1x32xf32>
    %191 = vector.shape_cast %190 : vector<1x1x32xf32> to vector<1x32xf32>
    %c0_81 = arith.constant 0 : index
    %c0_82 = arith.constant 0 : index
    %c0_83 = arith.constant 0 : index
    %192 = vector.load %arg14[%c0_81, %c0_82, %c0_83] : memref<2x1x32xf32, #tpu.memory_space<vmem>>, vector<1x1x32xf32>
    %193 = vector.shape_cast %192 : vector<1x1x32xf32> to vector<1x32xf32>
    %cst_84 = arith.constant dense<0.000000e+00> : vector<16xf32>
    %194 = vector.multi_reduction <add>, %189, %cst_84 [1] : vector<16x32xf32> to vector<16xf32>
    %195 = vector.shape_cast %194 : vector<16xf32> to vector<16x1xf32>
    %cst_85 = arith.constant 3.200000e+01 : f32
    %196 = vector.broadcast %cst_85 : f32 to vector<16x1xf32>
    %197 = arith.divf %195, %196 : vector<16x1xf32>
    %198 = vector.broadcast %197 : vector<16x1xf32> to vector<16x32xf32>
    %199 = arith.subf %189, %198 : vector<16x32xf32>
    %200 = arith.mulf %199, %199 : vector<16x32xf32>
    %cst_86 = arith.constant dense<0.000000e+00> : vector<16xf32>
    %201 = vector.multi_reduction <add>, %200, %cst_86 [1] : vector<16x32xf32> to vector<16xf32>
    %202 = vector.shape_cast %201 : vector<16xf32> to vector<16x1xf32>
    %cst_87 = arith.constant 3.200000e+01 : f32
    %203 = vector.broadcast %cst_87 : f32 to vector<16x1xf32>
    %204 = arith.divf %202, %203 : vector<16x1xf32>
    %cst_88 = arith.constant 9.99999974E-6 : f32
    %205 = vector.broadcast %cst_88 : f32 to vector<16x1xf32>
    %206 = arith.addf %204, %205 : vector<16x1xf32>
    %207 = math.rsqrt %206 : vector<16x1xf32>
    %208 = vector.broadcast %207 : vector<16x1xf32> to vector<16x32xf32>
    %209 = arith.mulf %199, %208 : vector<16x32xf32>
    %210 = vector.broadcast %191 : vector<1x32xf32> to vector<16x32xf32>
    %211 = arith.mulf %209, %210 : vector<16x32xf32>
    %212 = vector.broadcast %193 : vector<1x32xf32> to vector<16x32xf32>
    %213 = arith.addf %211, %212 : vector<16x32xf32>
    %c1 = arith.constant 1 : index
    %c0_89 = arith.constant 0 : index
    %c0_90 = arith.constant 0 : index
    %214 = vector.load %arg3[%c1, %c0_89, %c0_90] : memref<2x32x96xf32, #tpu.memory_space<vmem>>, vector<1x32x96xf32>
    %215 = vector.shape_cast %214 : vector<1x32x96xf32> to vector<32x96xf32>
    %cst_91 = arith.constant dense<0.000000e+00> : vector<16x96xf32>
    %216 = tpu.matmul %213, %215, %cst_91 {dimension_numbers = #tpu.dot_dimension_numbers<[1], [0], [0], [1], [0, 0, 1, 1], [], []>} : vector<16x32xf32>, vector<32x96xf32>, vector<16x96xf32> -> vector<16x96xf32>
    %c1_92 = arith.constant 1 : index
    %c0_93 = arith.constant 0 : index
    %c0_94 = arith.constant 0 : index
    %217 = vector.load %arg4[%c1_92, %c0_93, %c0_94] : memref<2x1x96xf32, #tpu.memory_space<vmem>>, vector<1x1x96xf32>
    %218 = vector.shape_cast %217 : vector<1x1x96xf32> to vector<1x96xf32>
    %219 = vector.broadcast %218 : vector<1x96xf32> to vector<16x96xf32>
    %220 = arith.addf %216, %219 : vector<16x96xf32>
    %221 = vector.extract_strided_slice %220 {offsets = [0, 0], sizes = [16, 32], strides = [1, 1]} : vector<16x96xf32> to vector<16x32xf32>
    %cst_95 = arith.constant 0.353553385 : f32
    %222 = vector.broadcast %cst_95 : f32 to vector<16x32xf32>
    %223 = arith.mulf %221, %222 : vector<16x32xf32>
    %224 = vector.extract_strided_slice %220 {offsets = [0, 32], sizes = [16, 32], strides = [1, 1]} : vector<16x96xf32> to vector<16x32xf32>
    %225 = vector.extract_strided_slice %220 {offsets = [0, 64], sizes = [16, 32], strides = [1, 1]} : vector<16x96xf32> to vector<16x32xf32>
    %226 = vector.extract_strided_slice %223 {offsets = [0, 0], sizes = [8, 8], strides = [1, 1]} : vector<16x32xf32> to vector<8x8xf32>
    %227 = vector.extract_strided_slice %224 {offsets = [0, 0], sizes = [8, 8], strides = [1, 1]} : vector<16x32xf32> to vector<8x8xf32>
    %228 = vector.extract_strided_slice %225 {offsets = [0, 0], sizes = [8, 8], strides = [1, 1]} : vector<16x32xf32> to vector<8x8xf32>
    %cst_96 = arith.constant dense<0.000000e+00> : vector<8x8xf32>
    %229 = tpu.matmul %226, %227, %cst_96 {dimension_numbers = #tpu.dot_dimension_numbers<[1], [1], [0], [0], [0, 0, 1, 0], [], []>} : vector<8x8xf32>, vector<8x8xf32>, vector<8x8xf32> -> vector<8x8xf32>
    %cst_97 = arith.constant dense<0xFF800000> : vector<8xf32>
    %230 = vector.multi_reduction <maximumf>, %229, %cst_97 [1] : vector<8x8xf32> to vector<8xf32>
    %231 = vector.shape_cast %230 : vector<8xf32> to vector<8x1xf32>
    %232 = vector.broadcast %231 : vector<8x1xf32> to vector<8x8xf32>
    %233 = arith.subf %229, %232 : vector<8x8xf32>
    %234 = math.exp %233 : vector<8x8xf32>
    %cst_98 = arith.constant dense<0.000000e+00> : vector<8xf32>
    %235 = vector.multi_reduction <add>, %234, %cst_98 [1] : vector<8x8xf32> to vector<8xf32>
    %236 = vector.shape_cast %235 : vector<8xf32> to vector<8x1xf32>
    %237 = tpu.reciprocal %236 {approx = true} : vector<8x1xf32> -> vector<8x1xf32>
    %238 = vector.broadcast %237 : vector<8x1xf32> to vector<8x8xf32>
    %239 = arith.mulf %234, %238 : vector<8x8xf32>
    %cst_99 = arith.constant dense<0.000000e+00> : vector<8x8xf32>
    %240 = tpu.matmul %239, %228, %cst_99 {dimension_numbers = #tpu.dot_dimension_numbers<[1], [0], [0], [1], [0, 0, 1, 1], [], []>} : vector<8x8xf32>, vector<8x8xf32>, vector<8x8xf32> -> vector<8x8xf32>
    %241 = vector.extract_strided_slice %223 {offsets = [0, 8], sizes = [8, 8], strides = [1, 1]} : vector<16x32xf32> to vector<8x8xf32>
    %242 = vector.extract_strided_slice %224 {offsets = [0, 8], sizes = [8, 8], strides = [1, 1]} : vector<16x32xf32> to vector<8x8xf32>
    %243 = vector.extract_strided_slice %225 {offsets = [0, 8], sizes = [8, 8], strides = [1, 1]} : vector<16x32xf32> to vector<8x8xf32>
    %cst_100 = arith.constant dense<0.000000e+00> : vector<8x8xf32>
    %244 = tpu.matmul %241, %242, %cst_100 {dimension_numbers = #tpu.dot_dimension_numbers<[1], [1], [0], [0], [0, 0, 1, 0], [], []>} : vector<8x8xf32>, vector<8x8xf32>, vector<8x8xf32> -> vector<8x8xf32>
    %cst_101 = arith.constant dense<0xFF800000> : vector<8xf32>
    %245 = vector.multi_reduction <maximumf>, %244, %cst_101 [1] : vector<8x8xf32> to vector<8xf32>
    %246 = vector.shape_cast %245 : vector<8xf32> to vector<8x1xf32>
    %247 = vector.broadcast %246 : vector<8x1xf32> to vector<8x8xf32>
    %248 = arith.subf %244, %247 : vector<8x8xf32>
    %249 = math.exp %248 : vector<8x8xf32>
    %cst_102 = arith.constant dense<0.000000e+00> : vector<8xf32>
    %250 = vector.multi_reduction <add>, %249, %cst_102 [1] : vector<8x8xf32> to vector<8xf32>
    %251 = vector.shape_cast %250 : vector<8xf32> to vector<8x1xf32>
    %252 = tpu.reciprocal %251 {approx = true} : vector<8x1xf32> -> vector<8x1xf32>
    %253 = vector.broadcast %252 : vector<8x1xf32> to vector<8x8xf32>
    %254 = arith.mulf %249, %253 : vector<8x8xf32>
    %cst_103 = arith.constant dense<0.000000e+00> : vector<8x8xf32>
    %255 = tpu.matmul %254, %243, %cst_103 {dimension_numbers = #tpu.dot_dimension_numbers<[1], [0], [0], [1], [0, 0, 1, 1], [], []>} : vector<8x8xf32>, vector<8x8xf32>, vector<8x8xf32> -> vector<8x8xf32>
    %256 = vector.extract_strided_slice %223 {offsets = [0, 16], sizes = [8, 8], strides = [1, 1]} : vector<16x32xf32> to vector<8x8xf32>
    %257 = vector.extract_strided_slice %224 {offsets = [0, 16], sizes = [8, 8], strides = [1, 1]} : vector<16x32xf32> to vector<8x8xf32>
    %258 = vector.extract_strided_slice %225 {offsets = [0, 16], sizes = [8, 8], strides = [1, 1]} : vector<16x32xf32> to vector<8x8xf32>
    %cst_104 = arith.constant dense<0.000000e+00> : vector<8x8xf32>
    %259 = tpu.matmul %256, %257, %cst_104 {dimension_numbers = #tpu.dot_dimension_numbers<[1], [1], [0], [0], [0, 0, 1, 0], [], []>} : vector<8x8xf32>, vector<8x8xf32>, vector<8x8xf32> -> vector<8x8xf32>
    %cst_105 = arith.constant dense<0xFF800000> : vector<8xf32>
    %260 = vector.multi_reduction <maximumf>, %259, %cst_105 [1] : vector<8x8xf32> to vector<8xf32>
    %261 = vector.shape_cast %260 : vector<8xf32> to vector<8x1xf32>
    %262 = vector.broadcast %261 : vector<8x1xf32> to vector<8x8xf32>
    %263 = arith.subf %259, %262 : vector<8x8xf32>
    %264 = math.exp %263 : vector<8x8xf32>
    %cst_106 = arith.constant dense<0.000000e+00> : vector<8xf32>
    %265 = vector.multi_reduction <add>, %264, %cst_106 [1] : vector<8x8xf32> to vector<8xf32>
    %266 = vector.shape_cast %265 : vector<8xf32> to vector<8x1xf32>
    %267 = tpu.reciprocal %266 {approx = true} : vector<8x1xf32> -> vector<8x1xf32>
    %268 = vector.broadcast %267 : vector<8x1xf32> to vector<8x8xf32>
    %269 = arith.mulf %264, %268 : vector<8x8xf32>
    %cst_107 = arith.constant dense<0.000000e+00> : vector<8x8xf32>
    %270 = tpu.matmul %269, %258, %cst_107 {dimension_numbers = #tpu.dot_dimension_numbers<[1], [0], [0], [1], [0, 0, 1, 1], [], []>} : vector<8x8xf32>, vector<8x8xf32>, vector<8x8xf32> -> vector<8x8xf32>
    %271 = vector.extract_strided_slice %223 {offsets = [0, 24], sizes = [8, 8], strides = [1, 1]} : vector<16x32xf32> to vector<8x8xf32>
    %272 = vector.extract_strided_slice %224 {offsets = [0, 24], sizes = [8, 8], strides = [1, 1]} : vector<16x32xf32> to vector<8x8xf32>
    %273 = vector.extract_strided_slice %225 {offsets = [0, 24], sizes = [8, 8], strides = [1, 1]} : vector<16x32xf32> to vector<8x8xf32>
    %cst_108 = arith.constant dense<0.000000e+00> : vector<8x8xf32>
    %274 = tpu.matmul %271, %272, %cst_108 {dimension_numbers = #tpu.dot_dimension_numbers<[1], [1], [0], [0], [0, 0, 1, 0], [], []>} : vector<8x8xf32>, vector<8x8xf32>, vector<8x8xf32> -> vector<8x8xf32>
    %cst_109 = arith.constant dense<0xFF800000> : vector<8xf32>
    %275 = vector.multi_reduction <maximumf>, %274, %cst_109 [1] : vector<8x8xf32> to vector<8xf32>
    %276 = vector.shape_cast %275 : vector<8xf32> to vector<8x1xf32>
    %277 = vector.broadcast %276 : vector<8x1xf32> to vector<8x8xf32>
    %278 = arith.subf %274, %277 : vector<8x8xf32>
    %279 = math.exp %278 : vector<8x8xf32>
    %cst_110 = arith.constant dense<0.000000e+00> : vector<8xf32>
    %280 = vector.multi_reduction <add>, %279, %cst_110 [1] : vector<8x8xf32> to vector<8xf32>
    %281 = vector.shape_cast %280 : vector<8xf32> to vector<8x1xf32>
    %282 = tpu.reciprocal %281 {approx = true} : vector<8x1xf32> -> vector<8x1xf32>
    %283 = vector.broadcast %282 : vector<8x1xf32> to vector<8x8xf32>
    %284 = arith.mulf %279, %283 : vector<8x8xf32>
    %cst_111 = arith.constant dense<0.000000e+00> : vector<8x8xf32>
    %285 = tpu.matmul %284, %273, %cst_111 {dimension_numbers = #tpu.dot_dimension_numbers<[1], [0], [0], [1], [0, 0, 1, 1], [], []>} : vector<8x8xf32>, vector<8x8xf32>, vector<8x8xf32> -> vector<8x8xf32>
    %286 = tpu.concatenate %240, %255, %270, %285 in 1 : vector<8x8xf32>, vector<8x8xf32>, vector<8x8xf32>, vector<8x8xf32> -> vector<8x32xf32>
    %287 = vector.extract_strided_slice %223 {offsets = [8, 0], sizes = [8, 8], strides = [1, 1]} : vector<16x32xf32> to vector<8x8xf32>
    %288 = vector.extract_strided_slice %224 {offsets = [8, 0], sizes = [8, 8], strides = [1, 1]} : vector<16x32xf32> to vector<8x8xf32>
    %289 = vector.extract_strided_slice %225 {offsets = [8, 0], sizes = [8, 8], strides = [1, 1]} : vector<16x32xf32> to vector<8x8xf32>
    %cst_112 = arith.constant dense<0.000000e+00> : vector<8x8xf32>
    %290 = tpu.matmul %287, %288, %cst_112 {dimension_numbers = #tpu.dot_dimension_numbers<[1], [1], [0], [0], [0, 0, 1, 0], [], []>} : vector<8x8xf32>, vector<8x8xf32>, vector<8x8xf32> -> vector<8x8xf32>
    %cst_113 = arith.constant dense<0xFF800000> : vector<8xf32>
    %291 = vector.multi_reduction <maximumf>, %290, %cst_113 [1] : vector<8x8xf32> to vector<8xf32>
    %292 = vector.shape_cast %291 : vector<8xf32> to vector<8x1xf32>
    %293 = vector.broadcast %292 : vector<8x1xf32> to vector<8x8xf32>
    %294 = arith.subf %290, %293 : vector<8x8xf32>
    %295 = math.exp %294 : vector<8x8xf32>
    %cst_114 = arith.constant dense<0.000000e+00> : vector<8xf32>
    %296 = vector.multi_reduction <add>, %295, %cst_114 [1] : vector<8x8xf32> to vector<8xf32>
    %297 = vector.shape_cast %296 : vector<8xf32> to vector<8x1xf32>
    %298 = tpu.reciprocal %297 {approx = true} : vector<8x1xf32> -> vector<8x1xf32>
    %299 = vector.broadcast %298 : vector<8x1xf32> to vector<8x8xf32>
    %300 = arith.mulf %295, %299 : vector<8x8xf32>
    %cst_115 = arith.constant dense<0.000000e+00> : vector<8x8xf32>
    %301 = tpu.matmul %300, %289, %cst_115 {dimension_numbers = #tpu.dot_dimension_numbers<[1], [0], [0], [1], [0, 0, 1, 1], [], []>} : vector<8x8xf32>, vector<8x8xf32>, vector<8x8xf32> -> vector<8x8xf32>
    %302 = vector.extract_strided_slice %223 {offsets = [8, 8], sizes = [8, 8], strides = [1, 1]} : vector<16x32xf32> to vector<8x8xf32>
    %303 = vector.extract_strided_slice %224 {offsets = [8, 8], sizes = [8, 8], strides = [1, 1]} : vector<16x32xf32> to vector<8x8xf32>
    %304 = vector.extract_strided_slice %225 {offsets = [8, 8], sizes = [8, 8], strides = [1, 1]} : vector<16x32xf32> to vector<8x8xf32>
    %cst_116 = arith.constant dense<0.000000e+00> : vector<8x8xf32>
    %305 = tpu.matmul %302, %303, %cst_116 {dimension_numbers = #tpu.dot_dimension_numbers<[1], [1], [0], [0], [0, 0, 1, 0], [], []>} : vector<8x8xf32>, vector<8x8xf32>, vector<8x8xf32> -> vector<8x8xf32>
    %cst_117 = arith.constant dense<0xFF800000> : vector<8xf32>
    %306 = vector.multi_reduction <maximumf>, %305, %cst_117 [1] : vector<8x8xf32> to vector<8xf32>
    %307 = vector.shape_cast %306 : vector<8xf32> to vector<8x1xf32>
    %308 = vector.broadcast %307 : vector<8x1xf32> to vector<8x8xf32>
    %309 = arith.subf %305, %308 : vector<8x8xf32>
    %310 = math.exp %309 : vector<8x8xf32>
    %cst_118 = arith.constant dense<0.000000e+00> : vector<8xf32>
    %311 = vector.multi_reduction <add>, %310, %cst_118 [1] : vector<8x8xf32> to vector<8xf32>
    %312 = vector.shape_cast %311 : vector<8xf32> to vector<8x1xf32>
    %313 = tpu.reciprocal %312 {approx = true} : vector<8x1xf32> -> vector<8x1xf32>
    %314 = vector.broadcast %313 : vector<8x1xf32> to vector<8x8xf32>
    %315 = arith.mulf %310, %314 : vector<8x8xf32>
    %cst_119 = arith.constant dense<0.000000e+00> : vector<8x8xf32>
    %316 = tpu.matmul %315, %304, %cst_119 {dimension_numbers = #tpu.dot_dimension_numbers<[1], [0], [0], [1], [0, 0, 1, 1], [], []>} : vector<8x8xf32>, vector<8x8xf32>, vector<8x8xf32> -> vector<8x8xf32>
    %317 = vector.extract_strided_slice %223 {offsets = [8, 16], sizes = [8, 8], strides = [1, 1]} : vector<16x32xf32> to vector<8x8xf32>
    %318 = vector.extract_strided_slice %224 {offsets = [8, 16], sizes = [8, 8], strides = [1, 1]} : vector<16x32xf32> to vector<8x8xf32>
    %319 = vector.extract_strided_slice %225 {offsets = [8, 16], sizes = [8, 8], strides = [1, 1]} : vector<16x32xf32> to vector<8x8xf32>
    %cst_120 = arith.constant dense<0.000000e+00> : vector<8x8xf32>
    %320 = tpu.matmul %317, %318, %cst_120 {dimension_numbers = #tpu.dot_dimension_numbers<[1], [1], [0], [0], [0, 0, 1, 0], [], []>} : vector<8x8xf32>, vector<8x8xf32>, vector<8x8xf32> -> vector<8x8xf32>
    %cst_121 = arith.constant dense<0xFF800000> : vector<8xf32>
    %321 = vector.multi_reduction <maximumf>, %320, %cst_121 [1] : vector<8x8xf32> to vector<8xf32>
    %322 = vector.shape_cast %321 : vector<8xf32> to vector<8x1xf32>
    %323 = vector.broadcast %322 : vector<8x1xf32> to vector<8x8xf32>
    %324 = arith.subf %320, %323 : vector<8x8xf32>
    %325 = math.exp %324 : vector<8x8xf32>
    %cst_122 = arith.constant dense<0.000000e+00> : vector<8xf32>
    %326 = vector.multi_reduction <add>, %325, %cst_122 [1] : vector<8x8xf32> to vector<8xf32>
    %327 = vector.shape_cast %326 : vector<8xf32> to vector<8x1xf32>
    %328 = tpu.reciprocal %327 {approx = true} : vector<8x1xf32> -> vector<8x1xf32>
    %329 = vector.broadcast %328 : vector<8x1xf32> to vector<8x8xf32>
    %330 = arith.mulf %325, %329 : vector<8x8xf32>
    %cst_123 = arith.constant dense<0.000000e+00> : vector<8x8xf32>
    %331 = tpu.matmul %330, %319, %cst_123 {dimension_numbers = #tpu.dot_dimension_numbers<[1], [0], [0], [1], [0, 0, 1, 1], [], []>} : vector<8x8xf32>, vector<8x8xf32>, vector<8x8xf32> -> vector<8x8xf32>
    %332 = vector.extract_strided_slice %223 {offsets = [8, 24], sizes = [8, 8], strides = [1, 1]} : vector<16x32xf32> to vector<8x8xf32>
    %333 = vector.extract_strided_slice %224 {offsets = [8, 24], sizes = [8, 8], strides = [1, 1]} : vector<16x32xf32> to vector<8x8xf32>
    %334 = vector.extract_strided_slice %225 {offsets = [8, 24], sizes = [8, 8], strides = [1, 1]} : vector<16x32xf32> to vector<8x8xf32>
    %cst_124 = arith.constant dense<0.000000e+00> : vector<8x8xf32>
    %335 = tpu.matmul %332, %333, %cst_124 {dimension_numbers = #tpu.dot_dimension_numbers<[1], [1], [0], [0], [0, 0, 1, 0], [], []>} : vector<8x8xf32>, vector<8x8xf32>, vector<8x8xf32> -> vector<8x8xf32>
    %cst_125 = arith.constant dense<0xFF800000> : vector<8xf32>
    %336 = vector.multi_reduction <maximumf>, %335, %cst_125 [1] : vector<8x8xf32> to vector<8xf32>
    %337 = vector.shape_cast %336 : vector<8xf32> to vector<8x1xf32>
    %338 = vector.broadcast %337 : vector<8x1xf32> to vector<8x8xf32>
    %339 = arith.subf %335, %338 : vector<8x8xf32>
    %340 = math.exp %339 : vector<8x8xf32>
    %cst_126 = arith.constant dense<0.000000e+00> : vector<8xf32>
    %341 = vector.multi_reduction <add>, %340, %cst_126 [1] : vector<8x8xf32> to vector<8xf32>
    %342 = vector.shape_cast %341 : vector<8xf32> to vector<8x1xf32>
    %343 = tpu.reciprocal %342 {approx = true} : vector<8x1xf32> -> vector<8x1xf32>
    %344 = vector.broadcast %343 : vector<8x1xf32> to vector<8x8xf32>
    %345 = arith.mulf %340, %344 : vector<8x8xf32>
    %cst_127 = arith.constant dense<0.000000e+00> : vector<8x8xf32>
    %346 = tpu.matmul %345, %334, %cst_127 {dimension_numbers = #tpu.dot_dimension_numbers<[1], [0], [0], [1], [0, 0, 1, 1], [], []>} : vector<8x8xf32>, vector<8x8xf32>, vector<8x8xf32> -> vector<8x8xf32>
    %347 = tpu.concatenate %301, %316, %331, %346 in 1 : vector<8x8xf32>, vector<8x8xf32>, vector<8x8xf32>, vector<8x8xf32> -> vector<8x32xf32>
    %348 = tpu.concatenate %286, %347 in 0 : vector<8x32xf32>, vector<8x32xf32> -> vector<16x32xf32>
    %c1_128 = arith.constant 1 : index
    %c0_129 = arith.constant 0 : index
    %c0_130 = arith.constant 0 : index
    %349 = vector.load %arg5[%c1_128, %c0_129, %c0_130] : memref<2x32x32xf32, #tpu.memory_space<vmem>>, vector<1x32x32xf32>
    %350 = vector.shape_cast %349 : vector<1x32x32xf32> to vector<32x32xf32>
    %cst_131 = arith.constant dense<0.000000e+00> : vector<16x32xf32>
    %351 = tpu.matmul %348, %350, %cst_131 {dimension_numbers = #tpu.dot_dimension_numbers<[1], [0], [0], [1], [0, 0, 1, 1], [], []>} : vector<16x32xf32>, vector<32x32xf32>, vector<16x32xf32> -> vector<16x32xf32>
    %c1_132 = arith.constant 1 : index
    %c0_133 = arith.constant 0 : index
    %c0_134 = arith.constant 0 : index
    %352 = vector.load %arg6[%c1_132, %c0_133, %c0_134] : memref<2x1x32xf32, #tpu.memory_space<vmem>>, vector<1x1x32xf32>
    %353 = vector.shape_cast %352 : vector<1x1x32xf32> to vector<1x32xf32>
    %354 = vector.broadcast %353 : vector<1x32xf32> to vector<16x32xf32>
    %355 = arith.addf %351, %354 : vector<16x32xf32>
    %356 = arith.addf %213, %355 : vector<16x32xf32>
    %c1_135 = arith.constant 1 : index
    %c0_136 = arith.constant 0 : index
    %c0_137 = arith.constant 0 : index
    %357 = vector.load %arg7[%c1_135, %c0_136, %c0_137] : memref<2x1x32xf32, #tpu.memory_space<vmem>>, vector<1x1x32xf32>
    %358 = vector.shape_cast %357 : vector<1x1x32xf32> to vector<1x32xf32>
    %c1_138 = arith.constant 1 : index
    %c0_139 = arith.constant 0 : index
    %c0_140 = arith.constant 0 : index
    %359 = vector.load %arg8[%c1_138, %c0_139, %c0_140] : memref<2x1x32xf32, #tpu.memory_space<vmem>>, vector<1x1x32xf32>
    %360 = vector.shape_cast %359 : vector<1x1x32xf32> to vector<1x32xf32>
    %cst_141 = arith.constant dense<0.000000e+00> : vector<16xf32>
    %361 = vector.multi_reduction <add>, %356, %cst_141 [1] : vector<16x32xf32> to vector<16xf32>
    %362 = vector.shape_cast %361 : vector<16xf32> to vector<16x1xf32>
    %cst_142 = arith.constant 3.200000e+01 : f32
    %363 = vector.broadcast %cst_142 : f32 to vector<16x1xf32>
    %364 = arith.divf %362, %363 : vector<16x1xf32>
    %365 = vector.broadcast %364 : vector<16x1xf32> to vector<16x32xf32>
    %366 = arith.subf %356, %365 : vector<16x32xf32>
    %367 = arith.mulf %366, %366 : vector<16x32xf32>
    %cst_143 = arith.constant dense<0.000000e+00> : vector<16xf32>
    %368 = vector.multi_reduction <add>, %367, %cst_143 [1] : vector<16x32xf32> to vector<16xf32>
    %369 = vector.shape_cast %368 : vector<16xf32> to vector<16x1xf32>
    %cst_144 = arith.constant 3.200000e+01 : f32
    %370 = vector.broadcast %cst_144 : f32 to vector<16x1xf32>
    %371 = arith.divf %369, %370 : vector<16x1xf32>
    %cst_145 = arith.constant 9.99999974E-6 : f32
    %372 = vector.broadcast %cst_145 : f32 to vector<16x1xf32>
    %373 = arith.addf %371, %372 : vector<16x1xf32>
    %374 = math.rsqrt %373 : vector<16x1xf32>
    %375 = vector.broadcast %374 : vector<16x1xf32> to vector<16x32xf32>
    %376 = arith.mulf %366, %375 : vector<16x32xf32>
    %377 = vector.broadcast %358 : vector<1x32xf32> to vector<16x32xf32>
    %378 = arith.mulf %376, %377 : vector<16x32xf32>
    %379 = vector.broadcast %360 : vector<1x32xf32> to vector<16x32xf32>
    %380 = arith.addf %378, %379 : vector<16x32xf32>
    %c1_146 = arith.constant 1 : index
    %c0_147 = arith.constant 0 : index
    %c0_148 = arith.constant 0 : index
    %381 = vector.load %arg9[%c1_146, %c0_147, %c0_148] : memref<2x32x2048xf32, #tpu.memory_space<vmem>>, vector<1x32x2048xf32>
    %382 = vector.shape_cast %381 : vector<1x32x2048xf32> to vector<32x2048xf32>
    %cst_149 = arith.constant dense<0.000000e+00> : vector<16x2048xf32>
    %383 = tpu.matmul %380, %382, %cst_149 {dimension_numbers = #tpu.dot_dimension_numbers<[1], [0], [0], [1], [0, 0, 1, 1], [], []>} : vector<16x32xf32>, vector<32x2048xf32>, vector<16x2048xf32> -> vector<16x2048xf32>
    %c1_150 = arith.constant 1 : index
    %c0_151 = arith.constant 0 : index
    %c0_152 = arith.constant 0 : index
    %384 = vector.load %arg10[%c1_150, %c0_151, %c0_152] : memref<2x1x2048xf32, #tpu.memory_space<vmem>>, vector<1x1x2048xf32>
    %385 = vector.shape_cast %384 : vector<1x1x2048xf32> to vector<1x2048xf32>
    %386 = vector.broadcast %385 : vector<1x2048xf32> to vector<16x2048xf32>
    %387 = arith.addf %383, %386 : vector<16x2048xf32>
    %cst_153 = arith.constant 0.000000e+00 : f32
    %388 = vector.broadcast %cst_153 : f32 to vector<16x2048xf32>
    %389 = arith.maximumf %387, %388 : vector<16x2048xf32>
    %c1_154 = arith.constant 1 : index
    %c0_155 = arith.constant 0 : index
    %c0_156 = arith.constant 0 : index
    %390 = vector.load %arg11[%c1_154, %c0_155, %c0_156] : memref<2x2048x32xf32, #tpu.memory_space<vmem>>, vector<1x2048x32xf32>
    %391 = vector.shape_cast %390 : vector<1x2048x32xf32> to vector<2048x32xf32>
    %cst_157 = arith.constant dense<0.000000e+00> : vector<16x32xf32>
    %392 = tpu.matmul %389, %391, %cst_157 {dimension_numbers = #tpu.dot_dimension_numbers<[1], [0], [0], [1], [0, 0, 1, 1], [], []>} : vector<16x2048xf32>, vector<2048x32xf32>, vector<16x32xf32> -> vector<16x32xf32>
    %c1_158 = arith.constant 1 : index
    %c0_159 = arith.constant 0 : index
    %c0_160 = arith.constant 0 : index
    %393 = vector.load %arg12[%c1_158, %c0_159, %c0_160] : memref<2x1x32xf32, #tpu.memory_space<vmem>>, vector<1x1x32xf32>
    %394 = vector.shape_cast %393 : vector<1x1x32xf32> to vector<1x32xf32>
    %395 = vector.broadcast %394 : vector<1x32xf32> to vector<16x32xf32>
    %396 = arith.addf %392, %395 : vector<16x32xf32>
    %397 = arith.addf %380, %396 : vector<16x32xf32>
    %c1_161 = arith.constant 1 : index
    %c0_162 = arith.constant 0 : index
    %c0_163 = arith.constant 0 : index
    %398 = vector.load %arg13[%c1_161, %c0_162, %c0_163] : memref<2x1x32xf32, #tpu.memory_space<vmem>>, vector<1x1x32xf32>
    %399 = vector.shape_cast %398 : vector<1x1x32xf32> to vector<1x32xf32>
    %c1_164 = arith.constant 1 : index
    %c0_165 = arith.constant 0 : index
    %c0_166 = arith.constant 0 : index
    %400 = vector.load %arg14[%c1_164, %c0_165, %c0_166] : memref<2x1x32xf32, #tpu.memory_space<vmem>>, vector<1x1x32xf32>
    %401 = vector.shape_cast %400 : vector<1x1x32xf32> to vector<1x32xf32>
    %cst_167 = arith.constant dense<0.000000e+00> : vector<16xf32>
    %402 = vector.multi_reduction <add>, %397, %cst_167 [1] : vector<16x32xf32> to vector<16xf32>
    %403 = vector.shape_cast %402 : vector<16xf32> to vector<16x1xf32>
    %cst_168 = arith.constant 3.200000e+01 : f32
    %404 = vector.broadcast %cst_168 : f32 to vector<16x1xf32>
    %405 = arith.divf %403, %404 : vector<16x1xf32>
    %406 = vector.broadcast %405 : vector<16x1xf32> to vector<16x32xf32>
    %407 = arith.subf %397, %406 : vector<16x32xf32>
    %408 = arith.mulf %407, %407 : vector<16x32xf32>
    %cst_169 = arith.constant dense<0.000000e+00> : vector<16xf32>
    %409 = vector.multi_reduction <add>, %408, %cst_169 [1] : vector<16x32xf32> to vector<16xf32>
    %410 = vector.shape_cast %409 : vector<16xf32> to vector<16x1xf32>
    %cst_170 = arith.constant 3.200000e+01 : f32
    %411 = vector.broadcast %cst_170 : f32 to vector<16x1xf32>
    %412 = arith.divf %410, %411 : vector<16x1xf32>
    %cst_171 = arith.constant 9.99999974E-6 : f32
    %413 = vector.broadcast %cst_171 : f32 to vector<16x1xf32>
    %414 = arith.addf %412, %413 : vector<16x1xf32>
    %415 = math.rsqrt %414 : vector<16x1xf32>
    %416 = vector.broadcast %415 : vector<16x1xf32> to vector<16x32xf32>
    %417 = arith.mulf %407, %416 : vector<16x32xf32>
    %418 = vector.broadcast %399 : vector<1x32xf32> to vector<16x32xf32>
    %419 = arith.mulf %417, %418 : vector<16x32xf32>
    %420 = vector.broadcast %401 : vector<1x32xf32> to vector<16x32xf32>
    %421 = arith.addf %419, %420 : vector<16x32xf32>
    %422 = vector.extract_strided_slice %421 {offsets = [7, 0], sizes = [1, 32], strides = [1, 1]} : vector<16x32xf32> to vector<1x32xf32>
    %423 = vector.extract_strided_slice %421 {offsets = [15, 0], sizes = [1, 32], strides = [1, 1]} : vector<16x32xf32> to vector<1x32xf32>
    %424 = tpu.concatenate %422, %423 in 0 : vector<1x32xf32>, vector<1x32xf32> -> vector<2x32xf32>
    %c0_172 = arith.constant 0 : index
    %c0_173 = arith.constant 0 : index
    %425 = vector.load %arg15[%c0_172, %c0_173] : memref<32x10xf32, #tpu.memory_space<vmem>>, vector<32x10xf32>
    %c0_174 = arith.constant 0 : index
    %c0_175 = arith.constant 0 : index
    %426 = vector.load %arg16[%c0_174, %c0_175] : memref<256x10xf32, #tpu.memory_space<vmem>>, vector<256x10xf32>
    %cst_176 = arith.constant 0.000000e+00 : f32
    %427 = vector.broadcast %cst_176 : f32 to vector<2x32xf32>
    %428 = arith.subf %427, %424 : vector<2x32xf32>
    %429 = math.exp %428 : vector<2x32xf32>
    %cst_177 = arith.constant 1.000000e+00 : f32
    %430 = vector.broadcast %cst_177 : f32 to vector<2x32xf32>
    %431 = arith.addf %430, %429 : vector<2x32xf32>
    %cst_178 = arith.constant 1.000000e+00 : f32
    %432 = vector.broadcast %cst_178 : f32 to vector<2x32xf32>
    %433 = arith.divf %432, %431 : vector<2x32xf32>
    %434 = arith.mulf %424, %433 : vector<2x32xf32>
    %cst_179 = arith.constant dense<0.000000e+00> : vector<2x10xf32>
    %435 = tpu.matmul %434, %425, %cst_179 {dimension_numbers = #tpu.dot_dimension_numbers<[1], [0], [0], [1], [0, 0, 1, 1], [], []>} : vector<2x32xf32>, vector<32x10xf32>, vector<2x10xf32> -> vector<2x10xf32>
    %cst_180 = arith.constant -2.200000e+00 : f32
    %436 = vector.broadcast %cst_180 : f32 to vector<2x32xf32>
    %437 = arith.cmpf oge, %424, %436 : vector<2x32xf32>
    %cst_181 = arith.constant -1.800000e+00 : f32
    %438 = vector.broadcast %cst_181 : f32 to vector<2x32xf32>
    %439 = arith.cmpf olt, %424, %438 : vector<2x32xf32>
    %440 = arith.andi %437, %439 : vector<2x32xi1>
    %441 = arith.extui %440 : vector<2x32xi1> to vector<2x32xi32>
    %442 = arith.sitofp %441 : vector<2x32xi32> to vector<2x32xf32>
    %cst_182 = arith.constant -1.800000e+00 : f32
    %443 = vector.broadcast %cst_182 : f32 to vector<2x32xf32>
    %444 = arith.cmpf oge, %424, %443 : vector<2x32xf32>
    %cst_183 = arith.constant -1.400000e+00 : f32
    %445 = vector.broadcast %cst_183 : f32 to vector<2x32xf32>
    %446 = arith.cmpf olt, %424, %445 : vector<2x32xf32>
    %447 = arith.andi %444, %446 : vector<2x32xi1>
    %448 = arith.extui %447 : vector<2x32xi1> to vector<2x32xi32>
    %449 = arith.sitofp %448 : vector<2x32xi32> to vector<2x32xf32>
    %cst_184 = arith.constant -1.400000e+00 : f32
    %450 = vector.broadcast %cst_184 : f32 to vector<2x32xf32>
    %451 = arith.cmpf oge, %424, %450 : vector<2x32xf32>
    %cst_185 = arith.constant -1.000000e+00 : f32
    %452 = vector.broadcast %cst_185 : f32 to vector<2x32xf32>
    %453 = arith.cmpf olt, %424, %452 : vector<2x32xf32>
    %454 = arith.andi %451, %453 : vector<2x32xi1>
    %455 = arith.extui %454 : vector<2x32xi1> to vector<2x32xi32>
    %456 = arith.sitofp %455 : vector<2x32xi32> to vector<2x32xf32>
    %cst_186 = arith.constant -1.000000e+00 : f32
    %457 = vector.broadcast %cst_186 : f32 to vector<2x32xf32>
    %458 = arith.cmpf oge, %424, %457 : vector<2x32xf32>
    %cst_187 = arith.constant -6.000000e-01 : f32
    %459 = vector.broadcast %cst_187 : f32 to vector<2x32xf32>
    %460 = arith.cmpf olt, %424, %459 : vector<2x32xf32>
    %461 = arith.andi %458, %460 : vector<2x32xi1>
    %462 = arith.extui %461 : vector<2x32xi1> to vector<2x32xi32>
    %463 = arith.sitofp %462 : vector<2x32xi32> to vector<2x32xf32>
    %cst_188 = arith.constant -6.000000e-01 : f32
    %464 = vector.broadcast %cst_188 : f32 to vector<2x32xf32>
    %465 = arith.cmpf oge, %424, %464 : vector<2x32xf32>
    %cst_189 = arith.constant -2.000000e-01 : f32
    %466 = vector.broadcast %cst_189 : f32 to vector<2x32xf32>
    %467 = arith.cmpf olt, %424, %466 : vector<2x32xf32>
    %468 = arith.andi %465, %467 : vector<2x32xi1>
    %469 = arith.extui %468 : vector<2x32xi1> to vector<2x32xi32>
    %470 = arith.sitofp %469 : vector<2x32xi32> to vector<2x32xf32>
    %cst_190 = arith.constant -2.000000e-01 : f32
    %471 = vector.broadcast %cst_190 : f32 to vector<2x32xf32>
    %472 = arith.cmpf oge, %424, %471 : vector<2x32xf32>
    %cst_191 = arith.constant 2.000000e-01 : f32
    %473 = vector.broadcast %cst_191 : f32 to vector<2x32xf32>
    %474 = arith.cmpf olt, %424, %473 : vector<2x32xf32>
    %475 = arith.andi %472, %474 : vector<2x32xi1>
    %476 = arith.extui %475 : vector<2x32xi1> to vector<2x32xi32>
    %477 = arith.sitofp %476 : vector<2x32xi32> to vector<2x32xf32>
    %cst_192 = arith.constant 2.000000e-01 : f32
    %478 = vector.broadcast %cst_192 : f32 to vector<2x32xf32>
    %479 = arith.cmpf oge, %424, %478 : vector<2x32xf32>
    %cst_193 = arith.constant 6.000000e-01 : f32
    %480 = vector.broadcast %cst_193 : f32 to vector<2x32xf32>
    %481 = arith.cmpf olt, %424, %480 : vector<2x32xf32>
    %482 = arith.andi %479, %481 : vector<2x32xi1>
    %483 = arith.extui %482 : vector<2x32xi1> to vector<2x32xi32>
    %484 = arith.sitofp %483 : vector<2x32xi32> to vector<2x32xf32>
    %cst_194 = arith.constant 6.000000e-01 : f32
    %485 = vector.broadcast %cst_194 : f32 to vector<2x32xf32>
    %486 = arith.cmpf oge, %424, %485 : vector<2x32xf32>
    %cst_195 = arith.constant 1.000000e+00 : f32
    %487 = vector.broadcast %cst_195 : f32 to vector<2x32xf32>
    %488 = arith.cmpf olt, %424, %487 : vector<2x32xf32>
    %489 = arith.andi %486, %488 : vector<2x32xi1>
    %490 = arith.extui %489 : vector<2x32xi1> to vector<2x32xi32>
    %491 = arith.sitofp %490 : vector<2x32xi32> to vector<2x32xf32>
    %cst_196 = arith.constant 1.000000e+00 : f32
    %492 = vector.broadcast %cst_196 : f32 to vector<2x32xf32>
    %493 = arith.cmpf oge, %424, %492 : vector<2x32xf32>
    %cst_197 = arith.constant 1.400000e+00 : f32
    %494 = vector.broadcast %cst_197 : f32 to vector<2x32xf32>
    %495 = arith.cmpf olt, %424, %494 : vector<2x32xf32>
    %496 = arith.andi %493, %495 : vector<2x32xi1>
    %497 = arith.extui %496 : vector<2x32xi1> to vector<2x32xi32>
    %498 = arith.sitofp %497 : vector<2x32xi32> to vector<2x32xf32>
    %cst_198 = arith.constant 1.400000e+00 : f32
    %499 = vector.broadcast %cst_198 : f32 to vector<2x32xf32>
    %500 = arith.cmpf oge, %424, %499 : vector<2x32xf32>
    %cst_199 = arith.constant 1.800000e+00 : f32
    %501 = vector.broadcast %cst_199 : f32 to vector<2x32xf32>
    %502 = arith.cmpf olt, %424, %501 : vector<2x32xf32>
    %503 = arith.andi %500, %502 : vector<2x32xi1>
    %504 = arith.extui %503 : vector<2x32xi1> to vector<2x32xi32>
    %505 = arith.sitofp %504 : vector<2x32xi32> to vector<2x32xf32>
    %cst_200 = arith.constant 1.800000e+00 : f32
    %506 = vector.broadcast %cst_200 : f32 to vector<2x32xf32>
    %507 = arith.cmpf oge, %424, %506 : vector<2x32xf32>
    %cst_201 = arith.constant 2.200000e+00 : f32
    %508 = vector.broadcast %cst_201 : f32 to vector<2x32xf32>
    %509 = arith.cmpf olt, %424, %508 : vector<2x32xf32>
    %510 = arith.andi %507, %509 : vector<2x32xi1>
    %511 = arith.extui %510 : vector<2x32xi1> to vector<2x32xi32>
    %512 = arith.sitofp %511 : vector<2x32xi32> to vector<2x32xf32>
    %cst_202 = arith.constant -2.200000e+00 : f32
    %513 = vector.broadcast %cst_202 : f32 to vector<2x32xf32>
    %514 = arith.subf %424, %513 : vector<2x32xf32>
    %cst_203 = arith.constant 2.500000e+00 : f32
    %515 = vector.broadcast %cst_203 : f32 to vector<2x32xf32>
    %516 = arith.mulf %514, %515 : vector<2x32xf32>
    %517 = arith.mulf %516, %442 : vector<2x32xf32>
    %cst_204 = arith.constant -1.400000e+00 : f32
    %518 = vector.broadcast %cst_204 : f32 to vector<2x32xf32>
    %519 = arith.subf %518, %424 : vector<2x32xf32>
    %cst_205 = arith.constant 2.500000e+00 : f32
    %520 = vector.broadcast %cst_205 : f32 to vector<2x32xf32>
    %521 = arith.mulf %519, %520 : vector<2x32xf32>
    %522 = arith.mulf %521, %449 : vector<2x32xf32>
    %523 = arith.addf %517, %522 : vector<2x32xf32>
    %cst_206 = arith.constant -1.800000e+00 : f32
    %524 = vector.broadcast %cst_206 : f32 to vector<2x32xf32>
    %525 = arith.subf %424, %524 : vector<2x32xf32>
    %cst_207 = arith.constant 2.500000e+00 : f32
    %526 = vector.broadcast %cst_207 : f32 to vector<2x32xf32>
    %527 = arith.mulf %525, %526 : vector<2x32xf32>
    %528 = arith.mulf %527, %449 : vector<2x32xf32>
    %cst_208 = arith.constant -1.000000e+00 : f32
    %529 = vector.broadcast %cst_208 : f32 to vector<2x32xf32>
    %530 = arith.subf %529, %424 : vector<2x32xf32>
    %cst_209 = arith.constant 2.500000e+00 : f32
    %531 = vector.broadcast %cst_209 : f32 to vector<2x32xf32>
    %532 = arith.mulf %530, %531 : vector<2x32xf32>
    %533 = arith.mulf %532, %456 : vector<2x32xf32>
    %534 = arith.addf %528, %533 : vector<2x32xf32>
    %cst_210 = arith.constant -1.400000e+00 : f32
    %535 = vector.broadcast %cst_210 : f32 to vector<2x32xf32>
    %536 = arith.subf %424, %535 : vector<2x32xf32>
    %cst_211 = arith.constant 2.500000e+00 : f32
    %537 = vector.broadcast %cst_211 : f32 to vector<2x32xf32>
    %538 = arith.mulf %536, %537 : vector<2x32xf32>
    %539 = arith.mulf %538, %456 : vector<2x32xf32>
    %cst_212 = arith.constant -6.000000e-01 : f32
    %540 = vector.broadcast %cst_212 : f32 to vector<2x32xf32>
    %541 = arith.subf %540, %424 : vector<2x32xf32>
    %cst_213 = arith.constant 2.500000e+00 : f32
    %542 = vector.broadcast %cst_213 : f32 to vector<2x32xf32>
    %543 = arith.mulf %541, %542 : vector<2x32xf32>
    %544 = arith.mulf %543, %463 : vector<2x32xf32>
    %545 = arith.addf %539, %544 : vector<2x32xf32>
    %cst_214 = arith.constant -1.000000e+00 : f32
    %546 = vector.broadcast %cst_214 : f32 to vector<2x32xf32>
    %547 = arith.subf %424, %546 : vector<2x32xf32>
    %cst_215 = arith.constant 2.500000e+00 : f32
    %548 = vector.broadcast %cst_215 : f32 to vector<2x32xf32>
    %549 = arith.mulf %547, %548 : vector<2x32xf32>
    %550 = arith.mulf %549, %463 : vector<2x32xf32>
    %cst_216 = arith.constant -2.000000e-01 : f32
    %551 = vector.broadcast %cst_216 : f32 to vector<2x32xf32>
    %552 = arith.subf %551, %424 : vector<2x32xf32>
    %cst_217 = arith.constant 2.500000e+00 : f32
    %553 = vector.broadcast %cst_217 : f32 to vector<2x32xf32>
    %554 = arith.mulf %552, %553 : vector<2x32xf32>
    %555 = arith.mulf %554, %470 : vector<2x32xf32>
    %556 = arith.addf %550, %555 : vector<2x32xf32>
    %cst_218 = arith.constant -6.000000e-01 : f32
    %557 = vector.broadcast %cst_218 : f32 to vector<2x32xf32>
    %558 = arith.subf %424, %557 : vector<2x32xf32>
    %cst_219 = arith.constant 2.500000e+00 : f32
    %559 = vector.broadcast %cst_219 : f32 to vector<2x32xf32>
    %560 = arith.mulf %558, %559 : vector<2x32xf32>
    %561 = arith.mulf %560, %470 : vector<2x32xf32>
    %cst_220 = arith.constant 2.000000e-01 : f32
    %562 = vector.broadcast %cst_220 : f32 to vector<2x32xf32>
    %563 = arith.subf %562, %424 : vector<2x32xf32>
    %cst_221 = arith.constant 2.500000e+00 : f32
    %564 = vector.broadcast %cst_221 : f32 to vector<2x32xf32>
    %565 = arith.mulf %563, %564 : vector<2x32xf32>
    %566 = arith.mulf %565, %477 : vector<2x32xf32>
    %567 = arith.addf %561, %566 : vector<2x32xf32>
    %cst_222 = arith.constant -2.000000e-01 : f32
    %568 = vector.broadcast %cst_222 : f32 to vector<2x32xf32>
    %569 = arith.subf %424, %568 : vector<2x32xf32>
    %cst_223 = arith.constant 2.500000e+00 : f32
    %570 = vector.broadcast %cst_223 : f32 to vector<2x32xf32>
    %571 = arith.mulf %569, %570 : vector<2x32xf32>
    %572 = arith.mulf %571, %477 : vector<2x32xf32>
    %cst_224 = arith.constant 6.000000e-01 : f32
    %573 = vector.broadcast %cst_224 : f32 to vector<2x32xf32>
    %574 = arith.subf %573, %424 : vector<2x32xf32>
    %cst_225 = arith.constant 2.500000e+00 : f32
    %575 = vector.broadcast %cst_225 : f32 to vector<2x32xf32>
    %576 = arith.mulf %574, %575 : vector<2x32xf32>
    %577 = arith.mulf %576, %484 : vector<2x32xf32>
    %578 = arith.addf %572, %577 : vector<2x32xf32>
    %cst_226 = arith.constant 2.000000e-01 : f32
    %579 = vector.broadcast %cst_226 : f32 to vector<2x32xf32>
    %580 = arith.subf %424, %579 : vector<2x32xf32>
    %cst_227 = arith.constant 2.500000e+00 : f32
    %581 = vector.broadcast %cst_227 : f32 to vector<2x32xf32>
    %582 = arith.mulf %580, %581 : vector<2x32xf32>
    %583 = arith.mulf %582, %484 : vector<2x32xf32>
    %cst_228 = arith.constant 1.000000e+00 : f32
    %584 = vector.broadcast %cst_228 : f32 to vector<2x32xf32>
    %585 = arith.subf %584, %424 : vector<2x32xf32>
    %cst_229 = arith.constant 2.500000e+00 : f32
    %586 = vector.broadcast %cst_229 : f32 to vector<2x32xf32>
    %587 = arith.mulf %585, %586 : vector<2x32xf32>
    %588 = arith.mulf %587, %491 : vector<2x32xf32>
    %589 = arith.addf %583, %588 : vector<2x32xf32>
    %cst_230 = arith.constant 6.000000e-01 : f32
    %590 = vector.broadcast %cst_230 : f32 to vector<2x32xf32>
    %591 = arith.subf %424, %590 : vector<2x32xf32>
    %cst_231 = arith.constant 2.500000e+00 : f32
    %592 = vector.broadcast %cst_231 : f32 to vector<2x32xf32>
    %593 = arith.mulf %591, %592 : vector<2x32xf32>
    %594 = arith.mulf %593, %491 : vector<2x32xf32>
    %cst_232 = arith.constant 1.400000e+00 : f32
    %595 = vector.broadcast %cst_232 : f32 to vector<2x32xf32>
    %596 = arith.subf %595, %424 : vector<2x32xf32>
    %cst_233 = arith.constant 2.500000e+00 : f32
    %597 = vector.broadcast %cst_233 : f32 to vector<2x32xf32>
    %598 = arith.mulf %596, %597 : vector<2x32xf32>
    %599 = arith.mulf %598, %498 : vector<2x32xf32>
    %600 = arith.addf %594, %599 : vector<2x32xf32>
    %cst_234 = arith.constant 1.000000e+00 : f32
    %601 = vector.broadcast %cst_234 : f32 to vector<2x32xf32>
    %602 = arith.subf %424, %601 : vector<2x32xf32>
    %cst_235 = arith.constant 2.500000e+00 : f32
    %603 = vector.broadcast %cst_235 : f32 to vector<2x32xf32>
    %604 = arith.mulf %602, %603 : vector<2x32xf32>
    %605 = arith.mulf %604, %498 : vector<2x32xf32>
    %cst_236 = arith.constant 1.800000e+00 : f32
    %606 = vector.broadcast %cst_236 : f32 to vector<2x32xf32>
    %607 = arith.subf %606, %424 : vector<2x32xf32>
    %cst_237 = arith.constant 2.500000e+00 : f32
    %608 = vector.broadcast %cst_237 : f32 to vector<2x32xf32>
    %609 = arith.mulf %607, %608 : vector<2x32xf32>
    %610 = arith.mulf %609, %505 : vector<2x32xf32>
    %611 = arith.addf %605, %610 : vector<2x32xf32>
    %cst_238 = arith.constant 1.400000e+00 : f32
    %612 = vector.broadcast %cst_238 : f32 to vector<2x32xf32>
    %613 = arith.subf %424, %612 : vector<2x32xf32>
    %cst_239 = arith.constant 2.500000e+00 : f32
    %614 = vector.broadcast %cst_239 : f32 to vector<2x32xf32>
    %615 = arith.mulf %613, %614 : vector<2x32xf32>
    %616 = arith.mulf %615, %505 : vector<2x32xf32>
    %cst_240 = arith.constant 2.200000e+00 : f32
    %617 = vector.broadcast %cst_240 : f32 to vector<2x32xf32>
    %618 = arith.subf %617, %424 : vector<2x32xf32>
    %cst_241 = arith.constant 2.500000e+00 : f32
    %619 = vector.broadcast %cst_241 : f32 to vector<2x32xf32>
    %620 = arith.mulf %618, %619 : vector<2x32xf32>
    %621 = arith.mulf %620, %512 : vector<2x32xf32>
    %622 = arith.addf %616, %621 : vector<2x32xf32>
    %cst_242 = arith.constant -2.200000e+00 : f32
    %623 = vector.broadcast %cst_242 : f32 to vector<2x32xf32>
    %624 = arith.subf %424, %623 : vector<2x32xf32>
    %cst_243 = arith.constant 1.250000e+00 : f32
    %625 = vector.broadcast %cst_243 : f32 to vector<2x32xf32>
    %626 = arith.mulf %624, %625 : vector<2x32xf32>
    %627 = arith.mulf %626, %523 : vector<2x32xf32>
    %cst_244 = arith.constant -1.000000e+00 : f32
    %628 = vector.broadcast %cst_244 : f32 to vector<2x32xf32>
    %629 = arith.subf %628, %424 : vector<2x32xf32>
    %cst_245 = arith.constant 1.250000e+00 : f32
    %630 = vector.broadcast %cst_245 : f32 to vector<2x32xf32>
    %631 = arith.mulf %629, %630 : vector<2x32xf32>
    %632 = arith.mulf %631, %534 : vector<2x32xf32>
    %633 = arith.addf %627, %632 : vector<2x32xf32>
    %cst_246 = arith.constant -1.800000e+00 : f32
    %634 = vector.broadcast %cst_246 : f32 to vector<2x32xf32>
    %635 = arith.subf %424, %634 : vector<2x32xf32>
    %cst_247 = arith.constant 1.250000e+00 : f32
    %636 = vector.broadcast %cst_247 : f32 to vector<2x32xf32>
    %637 = arith.mulf %635, %636 : vector<2x32xf32>
    %638 = arith.mulf %637, %534 : vector<2x32xf32>
    %cst_248 = arith.constant -6.000000e-01 : f32
    %639 = vector.broadcast %cst_248 : f32 to vector<2x32xf32>
    %640 = arith.subf %639, %424 : vector<2x32xf32>
    %cst_249 = arith.constant 1.250000e+00 : f32
    %641 = vector.broadcast %cst_249 : f32 to vector<2x32xf32>
    %642 = arith.mulf %640, %641 : vector<2x32xf32>
    %643 = arith.mulf %642, %545 : vector<2x32xf32>
    %644 = arith.addf %638, %643 : vector<2x32xf32>
    %cst_250 = arith.constant -1.400000e+00 : f32
    %645 = vector.broadcast %cst_250 : f32 to vector<2x32xf32>
    %646 = arith.subf %424, %645 : vector<2x32xf32>
    %cst_251 = arith.constant 1.250000e+00 : f32
    %647 = vector.broadcast %cst_251 : f32 to vector<2x32xf32>
    %648 = arith.mulf %646, %647 : vector<2x32xf32>
    %649 = arith.mulf %648, %545 : vector<2x32xf32>
    %cst_252 = arith.constant -2.000000e-01 : f32
    %650 = vector.broadcast %cst_252 : f32 to vector<2x32xf32>
    %651 = arith.subf %650, %424 : vector<2x32xf32>
    %cst_253 = arith.constant 1.250000e+00 : f32
    %652 = vector.broadcast %cst_253 : f32 to vector<2x32xf32>
    %653 = arith.mulf %651, %652 : vector<2x32xf32>
    %654 = arith.mulf %653, %556 : vector<2x32xf32>
    %655 = arith.addf %649, %654 : vector<2x32xf32>
    %cst_254 = arith.constant -1.000000e+00 : f32
    %656 = vector.broadcast %cst_254 : f32 to vector<2x32xf32>
    %657 = arith.subf %424, %656 : vector<2x32xf32>
    %cst_255 = arith.constant 1.250000e+00 : f32
    %658 = vector.broadcast %cst_255 : f32 to vector<2x32xf32>
    %659 = arith.mulf %657, %658 : vector<2x32xf32>
    %660 = arith.mulf %659, %556 : vector<2x32xf32>
    %cst_256 = arith.constant 2.000000e-01 : f32
    %661 = vector.broadcast %cst_256 : f32 to vector<2x32xf32>
    %662 = arith.subf %661, %424 : vector<2x32xf32>
    %cst_257 = arith.constant 1.250000e+00 : f32
    %663 = vector.broadcast %cst_257 : f32 to vector<2x32xf32>
    %664 = arith.mulf %662, %663 : vector<2x32xf32>
    %665 = arith.mulf %664, %567 : vector<2x32xf32>
    %666 = arith.addf %660, %665 : vector<2x32xf32>
    %cst_258 = arith.constant -6.000000e-01 : f32
    %667 = vector.broadcast %cst_258 : f32 to vector<2x32xf32>
    %668 = arith.subf %424, %667 : vector<2x32xf32>
    %cst_259 = arith.constant 1.250000e+00 : f32
    %669 = vector.broadcast %cst_259 : f32 to vector<2x32xf32>
    %670 = arith.mulf %668, %669 : vector<2x32xf32>
    %671 = arith.mulf %670, %567 : vector<2x32xf32>
    %cst_260 = arith.constant 6.000000e-01 : f32
    %672 = vector.broadcast %cst_260 : f32 to vector<2x32xf32>
    %673 = arith.subf %672, %424 : vector<2x32xf32>
    %cst_261 = arith.constant 1.250000e+00 : f32
    %674 = vector.broadcast %cst_261 : f32 to vector<2x32xf32>
    %675 = arith.mulf %673, %674 : vector<2x32xf32>
    %676 = arith.mulf %675, %578 : vector<2x32xf32>
    %677 = arith.addf %671, %676 : vector<2x32xf32>
    %cst_262 = arith.constant -2.000000e-01 : f32
    %678 = vector.broadcast %cst_262 : f32 to vector<2x32xf32>
    %679 = arith.subf %424, %678 : vector<2x32xf32>
    %cst_263 = arith.constant 1.250000e+00 : f32
    %680 = vector.broadcast %cst_263 : f32 to vector<2x32xf32>
    %681 = arith.mulf %679, %680 : vector<2x32xf32>
    %682 = arith.mulf %681, %578 : vector<2x32xf32>
    %cst_264 = arith.constant 1.000000e+00 : f32
    %683 = vector.broadcast %cst_264 : f32 to vector<2x32xf32>
    %684 = arith.subf %683, %424 : vector<2x32xf32>
    %cst_265 = arith.constant 1.250000e+00 : f32
    %685 = vector.broadcast %cst_265 : f32 to vector<2x32xf32>
    %686 = arith.mulf %684, %685 : vector<2x32xf32>
    %687 = arith.mulf %686, %589 : vector<2x32xf32>
    %688 = arith.addf %682, %687 : vector<2x32xf32>
    %cst_266 = arith.constant 2.000000e-01 : f32
    %689 = vector.broadcast %cst_266 : f32 to vector<2x32xf32>
    %690 = arith.subf %424, %689 : vector<2x32xf32>
    %cst_267 = arith.constant 1.250000e+00 : f32
    %691 = vector.broadcast %cst_267 : f32 to vector<2x32xf32>
    %692 = arith.mulf %690, %691 : vector<2x32xf32>
    %693 = arith.mulf %692, %589 : vector<2x32xf32>
    %cst_268 = arith.constant 1.400000e+00 : f32
    %694 = vector.broadcast %cst_268 : f32 to vector<2x32xf32>
    %695 = arith.subf %694, %424 : vector<2x32xf32>
    %cst_269 = arith.constant 1.250000e+00 : f32
    %696 = vector.broadcast %cst_269 : f32 to vector<2x32xf32>
    %697 = arith.mulf %695, %696 : vector<2x32xf32>
    %698 = arith.mulf %697, %600 : vector<2x32xf32>
    %699 = arith.addf %693, %698 : vector<2x32xf32>
    %cst_270 = arith.constant 6.000000e-01 : f32
    %700 = vector.broadcast %cst_270 : f32 to vector<2x32xf32>
    %701 = arith.subf %424, %700 : vector<2x32xf32>
    %cst_271 = arith.constant 1.250000e+00 : f32
    %702 = vector.broadcast %cst_271 : f32 to vector<2x32xf32>
    %703 = arith.mulf %701, %702 : vector<2x32xf32>
    %704 = arith.mulf %703, %600 : vector<2x32xf32>
    %cst_272 = arith.constant 1.800000e+00 : f32
    %705 = vector.broadcast %cst_272 : f32 to vector<2x32xf32>
    %706 = arith.subf %705, %424 : vector<2x32xf32>
    %cst_273 = arith.constant 1.250000e+00 : f32
    %707 = vector.broadcast %cst_273 : f32 to vector<2x32xf32>
    %708 = arith.mulf %706, %707 : vector<2x32xf32>
    %709 = arith.mulf %708, %611 : vector<2x32xf32>
    %710 = arith.addf %704, %709 : vector<2x32xf32>
    %cst_274 = arith.constant 1.000000e+00 : f32
    %711 = vector.broadcast %cst_274 : f32 to vector<2x32xf32>
    %712 = arith.subf %424, %711 : vector<2x32xf32>
    %cst_275 = arith.constant 1.250000e+00 : f32
    %713 = vector.broadcast %cst_275 : f32 to vector<2x32xf32>
    %714 = arith.mulf %712, %713 : vector<2x32xf32>
    %715 = arith.mulf %714, %611 : vector<2x32xf32>
    %cst_276 = arith.constant 2.200000e+00 : f32
    %716 = vector.broadcast %cst_276 : f32 to vector<2x32xf32>
    %717 = arith.subf %716, %424 : vector<2x32xf32>
    %cst_277 = arith.constant 1.250000e+00 : f32
    %718 = vector.broadcast %cst_277 : f32 to vector<2x32xf32>
    %719 = arith.mulf %717, %718 : vector<2x32xf32>
    %720 = arith.mulf %719, %622 : vector<2x32xf32>
    %721 = arith.addf %715, %720 : vector<2x32xf32>
    %cst_278 = arith.constant -2.200000e+00 : f32
    %722 = vector.broadcast %cst_278 : f32 to vector<2x32xf32>
    %723 = arith.subf %424, %722 : vector<2x32xf32>
    %cst_279 = arith.constant 0.833333313 : f32
    %724 = vector.broadcast %cst_279 : f32 to vector<2x32xf32>
    %725 = arith.mulf %723, %724 : vector<2x32xf32>
    %726 = arith.mulf %725, %633 : vector<2x32xf32>
    %cst_280 = arith.constant -6.000000e-01 : f32
    %727 = vector.broadcast %cst_280 : f32 to vector<2x32xf32>
    %728 = arith.subf %727, %424 : vector<2x32xf32>
    %cst_281 = arith.constant 0.833333313 : f32
    %729 = vector.broadcast %cst_281 : f32 to vector<2x32xf32>
    %730 = arith.mulf %728, %729 : vector<2x32xf32>
    %731 = arith.mulf %730, %644 : vector<2x32xf32>
    %732 = arith.addf %726, %731 : vector<2x32xf32>
    %cst_282 = arith.constant -1.800000e+00 : f32
    %733 = vector.broadcast %cst_282 : f32 to vector<2x32xf32>
    %734 = arith.subf %424, %733 : vector<2x32xf32>
    %cst_283 = arith.constant 0.833333313 : f32
    %735 = vector.broadcast %cst_283 : f32 to vector<2x32xf32>
    %736 = arith.mulf %734, %735 : vector<2x32xf32>
    %737 = arith.mulf %736, %644 : vector<2x32xf32>
    %cst_284 = arith.constant -2.000000e-01 : f32
    %738 = vector.broadcast %cst_284 : f32 to vector<2x32xf32>
    %739 = arith.subf %738, %424 : vector<2x32xf32>
    %cst_285 = arith.constant 0.833333313 : f32
    %740 = vector.broadcast %cst_285 : f32 to vector<2x32xf32>
    %741 = arith.mulf %739, %740 : vector<2x32xf32>
    %742 = arith.mulf %741, %655 : vector<2x32xf32>
    %743 = arith.addf %737, %742 : vector<2x32xf32>
    %cst_286 = arith.constant -1.400000e+00 : f32
    %744 = vector.broadcast %cst_286 : f32 to vector<2x32xf32>
    %745 = arith.subf %424, %744 : vector<2x32xf32>
    %cst_287 = arith.constant 0.833333313 : f32
    %746 = vector.broadcast %cst_287 : f32 to vector<2x32xf32>
    %747 = arith.mulf %745, %746 : vector<2x32xf32>
    %748 = arith.mulf %747, %655 : vector<2x32xf32>
    %cst_288 = arith.constant 2.000000e-01 : f32
    %749 = vector.broadcast %cst_288 : f32 to vector<2x32xf32>
    %750 = arith.subf %749, %424 : vector<2x32xf32>
    %cst_289 = arith.constant 0.833333313 : f32
    %751 = vector.broadcast %cst_289 : f32 to vector<2x32xf32>
    %752 = arith.mulf %750, %751 : vector<2x32xf32>
    %753 = arith.mulf %752, %666 : vector<2x32xf32>
    %754 = arith.addf %748, %753 : vector<2x32xf32>
    %cst_290 = arith.constant -1.000000e+00 : f32
    %755 = vector.broadcast %cst_290 : f32 to vector<2x32xf32>
    %756 = arith.subf %424, %755 : vector<2x32xf32>
    %cst_291 = arith.constant 0.833333313 : f32
    %757 = vector.broadcast %cst_291 : f32 to vector<2x32xf32>
    %758 = arith.mulf %756, %757 : vector<2x32xf32>
    %759 = arith.mulf %758, %666 : vector<2x32xf32>
    %cst_292 = arith.constant 6.000000e-01 : f32
    %760 = vector.broadcast %cst_292 : f32 to vector<2x32xf32>
    %761 = arith.subf %760, %424 : vector<2x32xf32>
    %cst_293 = arith.constant 0.833333313 : f32
    %762 = vector.broadcast %cst_293 : f32 to vector<2x32xf32>
    %763 = arith.mulf %761, %762 : vector<2x32xf32>
    %764 = arith.mulf %763, %677 : vector<2x32xf32>
    %765 = arith.addf %759, %764 : vector<2x32xf32>
    %cst_294 = arith.constant -6.000000e-01 : f32
    %766 = vector.broadcast %cst_294 : f32 to vector<2x32xf32>
    %767 = arith.subf %424, %766 : vector<2x32xf32>
    %cst_295 = arith.constant 0.833333313 : f32
    %768 = vector.broadcast %cst_295 : f32 to vector<2x32xf32>
    %769 = arith.mulf %767, %768 : vector<2x32xf32>
    %770 = arith.mulf %769, %677 : vector<2x32xf32>
    %cst_296 = arith.constant 1.000000e+00 : f32
    %771 = vector.broadcast %cst_296 : f32 to vector<2x32xf32>
    %772 = arith.subf %771, %424 : vector<2x32xf32>
    %cst_297 = arith.constant 0.833333313 : f32
    %773 = vector.broadcast %cst_297 : f32 to vector<2x32xf32>
    %774 = arith.mulf %772, %773 : vector<2x32xf32>
    %775 = arith.mulf %774, %688 : vector<2x32xf32>
    %776 = arith.addf %770, %775 : vector<2x32xf32>
    %cst_298 = arith.constant -2.000000e-01 : f32
    %777 = vector.broadcast %cst_298 : f32 to vector<2x32xf32>
    %778 = arith.subf %424, %777 : vector<2x32xf32>
    %cst_299 = arith.constant 0.833333313 : f32
    %779 = vector.broadcast %cst_299 : f32 to vector<2x32xf32>
    %780 = arith.mulf %778, %779 : vector<2x32xf32>
    %781 = arith.mulf %780, %688 : vector<2x32xf32>
    %cst_300 = arith.constant 1.400000e+00 : f32
    %782 = vector.broadcast %cst_300 : f32 to vector<2x32xf32>
    %783 = arith.subf %782, %424 : vector<2x32xf32>
    %cst_301 = arith.constant 0.833333313 : f32
    %784 = vector.broadcast %cst_301 : f32 to vector<2x32xf32>
    %785 = arith.mulf %783, %784 : vector<2x32xf32>
    %786 = arith.mulf %785, %699 : vector<2x32xf32>
    %787 = arith.addf %781, %786 : vector<2x32xf32>
    %cst_302 = arith.constant 2.000000e-01 : f32
    %788 = vector.broadcast %cst_302 : f32 to vector<2x32xf32>
    %789 = arith.subf %424, %788 : vector<2x32xf32>
    %cst_303 = arith.constant 0.833333313 : f32
    %790 = vector.broadcast %cst_303 : f32 to vector<2x32xf32>
    %791 = arith.mulf %789, %790 : vector<2x32xf32>
    %792 = arith.mulf %791, %699 : vector<2x32xf32>
    %cst_304 = arith.constant 1.800000e+00 : f32
    %793 = vector.broadcast %cst_304 : f32 to vector<2x32xf32>
    %794 = arith.subf %793, %424 : vector<2x32xf32>
    %cst_305 = arith.constant 0.833333313 : f32
    %795 = vector.broadcast %cst_305 : f32 to vector<2x32xf32>
    %796 = arith.mulf %794, %795 : vector<2x32xf32>
    %797 = arith.mulf %796, %710 : vector<2x32xf32>
    %798 = arith.addf %792, %797 : vector<2x32xf32>
    %cst_306 = arith.constant 6.000000e-01 : f32
    %799 = vector.broadcast %cst_306 : f32 to vector<2x32xf32>
    %800 = arith.subf %424, %799 : vector<2x32xf32>
    %cst_307 = arith.constant 0.833333313 : f32
    %801 = vector.broadcast %cst_307 : f32 to vector<2x32xf32>
    %802 = arith.mulf %800, %801 : vector<2x32xf32>
    %803 = arith.mulf %802, %710 : vector<2x32xf32>
    %cst_308 = arith.constant 2.200000e+00 : f32
    %804 = vector.broadcast %cst_308 : f32 to vector<2x32xf32>
    %805 = arith.subf %804, %424 : vector<2x32xf32>
    %cst_309 = arith.constant 0.833333313 : f32
    %806 = vector.broadcast %cst_309 : f32 to vector<2x32xf32>
    %807 = arith.mulf %805, %806 : vector<2x32xf32>
    %808 = arith.mulf %807, %721 : vector<2x32xf32>
    %809 = arith.addf %803, %808 : vector<2x32xf32>
    %810 = tpu.concatenate %732, %743, %754, %765, %776, %787, %798, %809 in 1 : vector<2x32xf32>, vector<2x32xf32>, vector<2x32xf32>, vector<2x32xf32>, vector<2x32xf32>, vector<2x32xf32>, vector<2x32xf32>, vector<2x32xf32> -> vector<2x256xf32>
    %cst_310 = arith.constant dense<0.000000e+00> : vector<2x10xf32>
    %811 = tpu.matmul %810, %426, %cst_310 {dimension_numbers = #tpu.dot_dimension_numbers<[1], [0], [0], [1], [0, 0, 1, 1], [], []>} : vector<2x256xf32>, vector<256x10xf32>, vector<2x10xf32> -> vector<2x10xf32>
    %812 = arith.addf %435, %811 : vector<2x10xf32>
    %c0_311 = arith.constant 0 : index
    %c0_312 = arith.constant 0 : index
    %813 = vector.load %arg17[%c0_311, %c0_312] : memref<10x3xf32, #tpu.memory_space<vmem>>, vector<10x3xf32>
    %c0_313 = arith.constant 0 : index
    %c0_314 = arith.constant 0 : index
    %814 = vector.load %arg18[%c0_313, %c0_314] : memref<80x3xf32, #tpu.memory_space<vmem>>, vector<80x3xf32>
    %cst_315 = arith.constant 0.000000e+00 : f32
    %815 = vector.broadcast %cst_315 : f32 to vector<2x10xf32>
    %816 = arith.subf %815, %812 : vector<2x10xf32>
    %817 = math.exp %816 : vector<2x10xf32>
    %cst_316 = arith.constant 1.000000e+00 : f32
    %818 = vector.broadcast %cst_316 : f32 to vector<2x10xf32>
    %819 = arith.addf %818, %817 : vector<2x10xf32>
    %cst_317 = arith.constant 1.000000e+00 : f32
    %820 = vector.broadcast %cst_317 : f32 to vector<2x10xf32>
    %821 = arith.divf %820, %819 : vector<2x10xf32>
    %822 = arith.mulf %812, %821 : vector<2x10xf32>
    %cst_318 = arith.constant dense<0.000000e+00> : vector<2x3xf32>
    %823 = tpu.matmul %822, %813, %cst_318 {dimension_numbers = #tpu.dot_dimension_numbers<[1], [0], [0], [1], [0, 0, 1, 1], [], []>} : vector<2x10xf32>, vector<10x3xf32>, vector<2x3xf32> -> vector<2x3xf32>
    %cst_319 = arith.constant -2.200000e+00 : f32
    %824 = vector.broadcast %cst_319 : f32 to vector<2x10xf32>
    %825 = arith.cmpf oge, %812, %824 : vector<2x10xf32>
    %cst_320 = arith.constant -1.800000e+00 : f32
    %826 = vector.broadcast %cst_320 : f32 to vector<2x10xf32>
    %827 = arith.cmpf olt, %812, %826 : vector<2x10xf32>
    %828 = arith.andi %825, %827 : vector<2x10xi1>
    %829 = arith.extui %828 : vector<2x10xi1> to vector<2x10xi32>
    %830 = arith.sitofp %829 : vector<2x10xi32> to vector<2x10xf32>
    %cst_321 = arith.constant -1.800000e+00 : f32
    %831 = vector.broadcast %cst_321 : f32 to vector<2x10xf32>
    %832 = arith.cmpf oge, %812, %831 : vector<2x10xf32>
    %cst_322 = arith.constant -1.400000e+00 : f32
    %833 = vector.broadcast %cst_322 : f32 to vector<2x10xf32>
    %834 = arith.cmpf olt, %812, %833 : vector<2x10xf32>
    %835 = arith.andi %832, %834 : vector<2x10xi1>
    %836 = arith.extui %835 : vector<2x10xi1> to vector<2x10xi32>
    %837 = arith.sitofp %836 : vector<2x10xi32> to vector<2x10xf32>
    %cst_323 = arith.constant -1.400000e+00 : f32
    %838 = vector.broadcast %cst_323 : f32 to vector<2x10xf32>
    %839 = arith.cmpf oge, %812, %838 : vector<2x10xf32>
    %cst_324 = arith.constant -1.000000e+00 : f32
    %840 = vector.broadcast %cst_324 : f32 to vector<2x10xf32>
    %841 = arith.cmpf olt, %812, %840 : vector<2x10xf32>
    %842 = arith.andi %839, %841 : vector<2x10xi1>
    %843 = arith.extui %842 : vector<2x10xi1> to vector<2x10xi32>
    %844 = arith.sitofp %843 : vector<2x10xi32> to vector<2x10xf32>
    %cst_325 = arith.constant -1.000000e+00 : f32
    %845 = vector.broadcast %cst_325 : f32 to vector<2x10xf32>
    %846 = arith.cmpf oge, %812, %845 : vector<2x10xf32>
    %cst_326 = arith.constant -6.000000e-01 : f32
    %847 = vector.broadcast %cst_326 : f32 to vector<2x10xf32>
    %848 = arith.cmpf olt, %812, %847 : vector<2x10xf32>
    %849 = arith.andi %846, %848 : vector<2x10xi1>
    %850 = arith.extui %849 : vector<2x10xi1> to vector<2x10xi32>
    %851 = arith.sitofp %850 : vector<2x10xi32> to vector<2x10xf32>
    %cst_327 = arith.constant -6.000000e-01 : f32
    %852 = vector.broadcast %cst_327 : f32 to vector<2x10xf32>
    %853 = arith.cmpf oge, %812, %852 : vector<2x10xf32>
    %cst_328 = arith.constant -2.000000e-01 : f32
    %854 = vector.broadcast %cst_328 : f32 to vector<2x10xf32>
    %855 = arith.cmpf olt, %812, %854 : vector<2x10xf32>
    %856 = arith.andi %853, %855 : vector<2x10xi1>
    %857 = arith.extui %856 : vector<2x10xi1> to vector<2x10xi32>
    %858 = arith.sitofp %857 : vector<2x10xi32> to vector<2x10xf32>
    %cst_329 = arith.constant -2.000000e-01 : f32
    %859 = vector.broadcast %cst_329 : f32 to vector<2x10xf32>
    %860 = arith.cmpf oge, %812, %859 : vector<2x10xf32>
    %cst_330 = arith.constant 2.000000e-01 : f32
    %861 = vector.broadcast %cst_330 : f32 to vector<2x10xf32>
    %862 = arith.cmpf olt, %812, %861 : vector<2x10xf32>
    %863 = arith.andi %860, %862 : vector<2x10xi1>
    %864 = arith.extui %863 : vector<2x10xi1> to vector<2x10xi32>
    %865 = arith.sitofp %864 : vector<2x10xi32> to vector<2x10xf32>
    %cst_331 = arith.constant 2.000000e-01 : f32
    %866 = vector.broadcast %cst_331 : f32 to vector<2x10xf32>
    %867 = arith.cmpf oge, %812, %866 : vector<2x10xf32>
    %cst_332 = arith.constant 6.000000e-01 : f32
    %868 = vector.broadcast %cst_332 : f32 to vector<2x10xf32>
    %869 = arith.cmpf olt, %812, %868 : vector<2x10xf32>
    %870 = arith.andi %867, %869 : vector<2x10xi1>
    %871 = arith.extui %870 : vector<2x10xi1> to vector<2x10xi32>
    %872 = arith.sitofp %871 : vector<2x10xi32> to vector<2x10xf32>
    %cst_333 = arith.constant 6.000000e-01 : f32
    %873 = vector.broadcast %cst_333 : f32 to vector<2x10xf32>
    %874 = arith.cmpf oge, %812, %873 : vector<2x10xf32>
    %cst_334 = arith.constant 1.000000e+00 : f32
    %875 = vector.broadcast %cst_334 : f32 to vector<2x10xf32>
    %876 = arith.cmpf olt, %812, %875 : vector<2x10xf32>
    %877 = arith.andi %874, %876 : vector<2x10xi1>
    %878 = arith.extui %877 : vector<2x10xi1> to vector<2x10xi32>
    %879 = arith.sitofp %878 : vector<2x10xi32> to vector<2x10xf32>
    %cst_335 = arith.constant 1.000000e+00 : f32
    %880 = vector.broadcast %cst_335 : f32 to vector<2x10xf32>
    %881 = arith.cmpf oge, %812, %880 : vector<2x10xf32>
    %cst_336 = arith.constant 1.400000e+00 : f32
    %882 = vector.broadcast %cst_336 : f32 to vector<2x10xf32>
    %883 = arith.cmpf olt, %812, %882 : vector<2x10xf32>
    %884 = arith.andi %881, %883 : vector<2x10xi1>
    %885 = arith.extui %884 : vector<2x10xi1> to vector<2x10xi32>
    %886 = arith.sitofp %885 : vector<2x10xi32> to vector<2x10xf32>
    %cst_337 = arith.constant 1.400000e+00 : f32
    %887 = vector.broadcast %cst_337 : f32 to vector<2x10xf32>
    %888 = arith.cmpf oge, %812, %887 : vector<2x10xf32>
    %cst_338 = arith.constant 1.800000e+00 : f32
    %889 = vector.broadcast %cst_338 : f32 to vector<2x10xf32>
    %890 = arith.cmpf olt, %812, %889 : vector<2x10xf32>
    %891 = arith.andi %888, %890 : vector<2x10xi1>
    %892 = arith.extui %891 : vector<2x10xi1> to vector<2x10xi32>
    %893 = arith.sitofp %892 : vector<2x10xi32> to vector<2x10xf32>
    %cst_339 = arith.constant 1.800000e+00 : f32
    %894 = vector.broadcast %cst_339 : f32 to vector<2x10xf32>
    %895 = arith.cmpf oge, %812, %894 : vector<2x10xf32>
    %cst_340 = arith.constant 2.200000e+00 : f32
    %896 = vector.broadcast %cst_340 : f32 to vector<2x10xf32>
    %897 = arith.cmpf olt, %812, %896 : vector<2x10xf32>
    %898 = arith.andi %895, %897 : vector<2x10xi1>
    %899 = arith.extui %898 : vector<2x10xi1> to vector<2x10xi32>
    %900 = arith.sitofp %899 : vector<2x10xi32> to vector<2x10xf32>
    %cst_341 = arith.constant -2.200000e+00 : f32
    %901 = vector.broadcast %cst_341 : f32 to vector<2x10xf32>
    %902 = arith.subf %812, %901 : vector<2x10xf32>
    %cst_342 = arith.constant 2.500000e+00 : f32
    %903 = vector.broadcast %cst_342 : f32 to vector<2x10xf32>
    %904 = arith.mulf %902, %903 : vector<2x10xf32>
    %905 = arith.mulf %904, %830 : vector<2x10xf32>
    %cst_343 = arith.constant -1.400000e+00 : f32
    %906 = vector.broadcast %cst_343 : f32 to vector<2x10xf32>
    %907 = arith.subf %906, %812 : vector<2x10xf32>
    %cst_344 = arith.constant 2.500000e+00 : f32
    %908 = vector.broadcast %cst_344 : f32 to vector<2x10xf32>
    %909 = arith.mulf %907, %908 : vector<2x10xf32>
    %910 = arith.mulf %909, %837 : vector<2x10xf32>
    %911 = arith.addf %905, %910 : vector<2x10xf32>
    %cst_345 = arith.constant -1.800000e+00 : f32
    %912 = vector.broadcast %cst_345 : f32 to vector<2x10xf32>
    %913 = arith.subf %812, %912 : vector<2x10xf32>
    %cst_346 = arith.constant 2.500000e+00 : f32
    %914 = vector.broadcast %cst_346 : f32 to vector<2x10xf32>
    %915 = arith.mulf %913, %914 : vector<2x10xf32>
    %916 = arith.mulf %915, %837 : vector<2x10xf32>
    %cst_347 = arith.constant -1.000000e+00 : f32
    %917 = vector.broadcast %cst_347 : f32 to vector<2x10xf32>
    %918 = arith.subf %917, %812 : vector<2x10xf32>
    %cst_348 = arith.constant 2.500000e+00 : f32
    %919 = vector.broadcast %cst_348 : f32 to vector<2x10xf32>
    %920 = arith.mulf %918, %919 : vector<2x10xf32>
    %921 = arith.mulf %920, %844 : vector<2x10xf32>
    %922 = arith.addf %916, %921 : vector<2x10xf32>
    %cst_349 = arith.constant -1.400000e+00 : f32
    %923 = vector.broadcast %cst_349 : f32 to vector<2x10xf32>
    %924 = arith.subf %812, %923 : vector<2x10xf32>
    %cst_350 = arith.constant 2.500000e+00 : f32
    %925 = vector.broadcast %cst_350 : f32 to vector<2x10xf32>
    %926 = arith.mulf %924, %925 : vector<2x10xf32>
    %927 = arith.mulf %926, %844 : vector<2x10xf32>
    %cst_351 = arith.constant -6.000000e-01 : f32
    %928 = vector.broadcast %cst_351 : f32 to vector<2x10xf32>
    %929 = arith.subf %928, %812 : vector<2x10xf32>
    %cst_352 = arith.constant 2.500000e+00 : f32
    %930 = vector.broadcast %cst_352 : f32 to vector<2x10xf32>
    %931 = arith.mulf %929, %930 : vector<2x10xf32>
    %932 = arith.mulf %931, %851 : vector<2x10xf32>
    %933 = arith.addf %927, %932 : vector<2x10xf32>
    %cst_353 = arith.constant -1.000000e+00 : f32
    %934 = vector.broadcast %cst_353 : f32 to vector<2x10xf32>
    %935 = arith.subf %812, %934 : vector<2x10xf32>
    %cst_354 = arith.constant 2.500000e+00 : f32
    %936 = vector.broadcast %cst_354 : f32 to vector<2x10xf32>
    %937 = arith.mulf %935, %936 : vector<2x10xf32>
    %938 = arith.mulf %937, %851 : vector<2x10xf32>
    %cst_355 = arith.constant -2.000000e-01 : f32
    %939 = vector.broadcast %cst_355 : f32 to vector<2x10xf32>
    %940 = arith.subf %939, %812 : vector<2x10xf32>
    %cst_356 = arith.constant 2.500000e+00 : f32
    %941 = vector.broadcast %cst_356 : f32 to vector<2x10xf32>
    %942 = arith.mulf %940, %941 : vector<2x10xf32>
    %943 = arith.mulf %942, %858 : vector<2x10xf32>
    %944 = arith.addf %938, %943 : vector<2x10xf32>
    %cst_357 = arith.constant -6.000000e-01 : f32
    %945 = vector.broadcast %cst_357 : f32 to vector<2x10xf32>
    %946 = arith.subf %812, %945 : vector<2x10xf32>
    %cst_358 = arith.constant 2.500000e+00 : f32
    %947 = vector.broadcast %cst_358 : f32 to vector<2x10xf32>
    %948 = arith.mulf %946, %947 : vector<2x10xf32>
    %949 = arith.mulf %948, %858 : vector<2x10xf32>
    %cst_359 = arith.constant 2.000000e-01 : f32
    %950 = vector.broadcast %cst_359 : f32 to vector<2x10xf32>
    %951 = arith.subf %950, %812 : vector<2x10xf32>
    %cst_360 = arith.constant 2.500000e+00 : f32
    %952 = vector.broadcast %cst_360 : f32 to vector<2x10xf32>
    %953 = arith.mulf %951, %952 : vector<2x10xf32>
    %954 = arith.mulf %953, %865 : vector<2x10xf32>
    %955 = arith.addf %949, %954 : vector<2x10xf32>
    %cst_361 = arith.constant -2.000000e-01 : f32
    %956 = vector.broadcast %cst_361 : f32 to vector<2x10xf32>
    %957 = arith.subf %812, %956 : vector<2x10xf32>
    %cst_362 = arith.constant 2.500000e+00 : f32
    %958 = vector.broadcast %cst_362 : f32 to vector<2x10xf32>
    %959 = arith.mulf %957, %958 : vector<2x10xf32>
    %960 = arith.mulf %959, %865 : vector<2x10xf32>
    %cst_363 = arith.constant 6.000000e-01 : f32
    %961 = vector.broadcast %cst_363 : f32 to vector<2x10xf32>
    %962 = arith.subf %961, %812 : vector<2x10xf32>
    %cst_364 = arith.constant 2.500000e+00 : f32
    %963 = vector.broadcast %cst_364 : f32 to vector<2x10xf32>
    %964 = arith.mulf %962, %963 : vector<2x10xf32>
    %965 = arith.mulf %964, %872 : vector<2x10xf32>
    %966 = arith.addf %960, %965 : vector<2x10xf32>
    %cst_365 = arith.constant 2.000000e-01 : f32
    %967 = vector.broadcast %cst_365 : f32 to vector<2x10xf32>
    %968 = arith.subf %812, %967 : vector<2x10xf32>
    %cst_366 = arith.constant 2.500000e+00 : f32
    %969 = vector.broadcast %cst_366 : f32 to vector<2x10xf32>
    %970 = arith.mulf %968, %969 : vector<2x10xf32>
    %971 = arith.mulf %970, %872 : vector<2x10xf32>
    %cst_367 = arith.constant 1.000000e+00 : f32
    %972 = vector.broadcast %cst_367 : f32 to vector<2x10xf32>
    %973 = arith.subf %972, %812 : vector<2x10xf32>
    %cst_368 = arith.constant 2.500000e+00 : f32
    %974 = vector.broadcast %cst_368 : f32 to vector<2x10xf32>
    %975 = arith.mulf %973, %974 : vector<2x10xf32>
    %976 = arith.mulf %975, %879 : vector<2x10xf32>
    %977 = arith.addf %971, %976 : vector<2x10xf32>
    %cst_369 = arith.constant 6.000000e-01 : f32
    %978 = vector.broadcast %cst_369 : f32 to vector<2x10xf32>
    %979 = arith.subf %812, %978 : vector<2x10xf32>
    %cst_370 = arith.constant 2.500000e+00 : f32
    %980 = vector.broadcast %cst_370 : f32 to vector<2x10xf32>
    %981 = arith.mulf %979, %980 : vector<2x10xf32>
    %982 = arith.mulf %981, %879 : vector<2x10xf32>
    %cst_371 = arith.constant 1.400000e+00 : f32
    %983 = vector.broadcast %cst_371 : f32 to vector<2x10xf32>
    %984 = arith.subf %983, %812 : vector<2x10xf32>
    %cst_372 = arith.constant 2.500000e+00 : f32
    %985 = vector.broadcast %cst_372 : f32 to vector<2x10xf32>
    %986 = arith.mulf %984, %985 : vector<2x10xf32>
    %987 = arith.mulf %986, %886 : vector<2x10xf32>
    %988 = arith.addf %982, %987 : vector<2x10xf32>
    %cst_373 = arith.constant 1.000000e+00 : f32
    %989 = vector.broadcast %cst_373 : f32 to vector<2x10xf32>
    %990 = arith.subf %812, %989 : vector<2x10xf32>
    %cst_374 = arith.constant 2.500000e+00 : f32
    %991 = vector.broadcast %cst_374 : f32 to vector<2x10xf32>
    %992 = arith.mulf %990, %991 : vector<2x10xf32>
    %993 = arith.mulf %992, %886 : vector<2x10xf32>
    %cst_375 = arith.constant 1.800000e+00 : f32
    %994 = vector.broadcast %cst_375 : f32 to vector<2x10xf32>
    %995 = arith.subf %994, %812 : vector<2x10xf32>
    %cst_376 = arith.constant 2.500000e+00 : f32
    %996 = vector.broadcast %cst_376 : f32 to vector<2x10xf32>
    %997 = arith.mulf %995, %996 : vector<2x10xf32>
    %998 = arith.mulf %997, %893 : vector<2x10xf32>
    %999 = arith.addf %993, %998 : vector<2x10xf32>
    %cst_377 = arith.constant 1.400000e+00 : f32
    %1000 = vector.broadcast %cst_377 : f32 to vector<2x10xf32>
    %1001 = arith.subf %812, %1000 : vector<2x10xf32>
    %cst_378 = arith.constant 2.500000e+00 : f32
    %1002 = vector.broadcast %cst_378 : f32 to vector<2x10xf32>
    %1003 = arith.mulf %1001, %1002 : vector<2x10xf32>
    %1004 = arith.mulf %1003, %893 : vector<2x10xf32>
    %cst_379 = arith.constant 2.200000e+00 : f32
    %1005 = vector.broadcast %cst_379 : f32 to vector<2x10xf32>
    %1006 = arith.subf %1005, %812 : vector<2x10xf32>
    %cst_380 = arith.constant 2.500000e+00 : f32
    %1007 = vector.broadcast %cst_380 : f32 to vector<2x10xf32>
    %1008 = arith.mulf %1006, %1007 : vector<2x10xf32>
    %1009 = arith.mulf %1008, %900 : vector<2x10xf32>
    %1010 = arith.addf %1004, %1009 : vector<2x10xf32>
    %cst_381 = arith.constant -2.200000e+00 : f32
    %1011 = vector.broadcast %cst_381 : f32 to vector<2x10xf32>
    %1012 = arith.subf %812, %1011 : vector<2x10xf32>
    %cst_382 = arith.constant 1.250000e+00 : f32
    %1013 = vector.broadcast %cst_382 : f32 to vector<2x10xf32>
    %1014 = arith.mulf %1012, %1013 : vector<2x10xf32>
    %1015 = arith.mulf %1014, %911 : vector<2x10xf32>
    %cst_383 = arith.constant -1.000000e+00 : f32
    %1016 = vector.broadcast %cst_383 : f32 to vector<2x10xf32>
    %1017 = arith.subf %1016, %812 : vector<2x10xf32>
    %cst_384 = arith.constant 1.250000e+00 : f32
    %1018 = vector.broadcast %cst_384 : f32 to vector<2x10xf32>
    %1019 = arith.mulf %1017, %1018 : vector<2x10xf32>
    %1020 = arith.mulf %1019, %922 : vector<2x10xf32>
    %1021 = arith.addf %1015, %1020 : vector<2x10xf32>
    %cst_385 = arith.constant -1.800000e+00 : f32
    %1022 = vector.broadcast %cst_385 : f32 to vector<2x10xf32>
    %1023 = arith.subf %812, %1022 : vector<2x10xf32>
    %cst_386 = arith.constant 1.250000e+00 : f32
    %1024 = vector.broadcast %cst_386 : f32 to vector<2x10xf32>
    %1025 = arith.mulf %1023, %1024 : vector<2x10xf32>
    %1026 = arith.mulf %1025, %922 : vector<2x10xf32>
    %cst_387 = arith.constant -6.000000e-01 : f32
    %1027 = vector.broadcast %cst_387 : f32 to vector<2x10xf32>
    %1028 = arith.subf %1027, %812 : vector<2x10xf32>
    %cst_388 = arith.constant 1.250000e+00 : f32
    %1029 = vector.broadcast %cst_388 : f32 to vector<2x10xf32>
    %1030 = arith.mulf %1028, %1029 : vector<2x10xf32>
    %1031 = arith.mulf %1030, %933 : vector<2x10xf32>
    %1032 = arith.addf %1026, %1031 : vector<2x10xf32>
    %cst_389 = arith.constant -1.400000e+00 : f32
    %1033 = vector.broadcast %cst_389 : f32 to vector<2x10xf32>
    %1034 = arith.subf %812, %1033 : vector<2x10xf32>
    %cst_390 = arith.constant 1.250000e+00 : f32
    %1035 = vector.broadcast %cst_390 : f32 to vector<2x10xf32>
    %1036 = arith.mulf %1034, %1035 : vector<2x10xf32>
    %1037 = arith.mulf %1036, %933 : vector<2x10xf32>
    %cst_391 = arith.constant -2.000000e-01 : f32
    %1038 = vector.broadcast %cst_391 : f32 to vector<2x10xf32>
    %1039 = arith.subf %1038, %812 : vector<2x10xf32>
    %cst_392 = arith.constant 1.250000e+00 : f32
    %1040 = vector.broadcast %cst_392 : f32 to vector<2x10xf32>
    %1041 = arith.mulf %1039, %1040 : vector<2x10xf32>
    %1042 = arith.mulf %1041, %944 : vector<2x10xf32>
    %1043 = arith.addf %1037, %1042 : vector<2x10xf32>
    %cst_393 = arith.constant -1.000000e+00 : f32
    %1044 = vector.broadcast %cst_393 : f32 to vector<2x10xf32>
    %1045 = arith.subf %812, %1044 : vector<2x10xf32>
    %cst_394 = arith.constant 1.250000e+00 : f32
    %1046 = vector.broadcast %cst_394 : f32 to vector<2x10xf32>
    %1047 = arith.mulf %1045, %1046 : vector<2x10xf32>
    %1048 = arith.mulf %1047, %944 : vector<2x10xf32>
    %cst_395 = arith.constant 2.000000e-01 : f32
    %1049 = vector.broadcast %cst_395 : f32 to vector<2x10xf32>
    %1050 = arith.subf %1049, %812 : vector<2x10xf32>
    %cst_396 = arith.constant 1.250000e+00 : f32
    %1051 = vector.broadcast %cst_396 : f32 to vector<2x10xf32>
    %1052 = arith.mulf %1050, %1051 : vector<2x10xf32>
    %1053 = arith.mulf %1052, %955 : vector<2x10xf32>
    %1054 = arith.addf %1048, %1053 : vector<2x10xf32>
    %cst_397 = arith.constant -6.000000e-01 : f32
    %1055 = vector.broadcast %cst_397 : f32 to vector<2x10xf32>
    %1056 = arith.subf %812, %1055 : vector<2x10xf32>
    %cst_398 = arith.constant 1.250000e+00 : f32
    %1057 = vector.broadcast %cst_398 : f32 to vector<2x10xf32>
    %1058 = arith.mulf %1056, %1057 : vector<2x10xf32>
    %1059 = arith.mulf %1058, %955 : vector<2x10xf32>
    %cst_399 = arith.constant 6.000000e-01 : f32
    %1060 = vector.broadcast %cst_399 : f32 to vector<2x10xf32>
    %1061 = arith.subf %1060, %812 : vector<2x10xf32>
    %cst_400 = arith.constant 1.250000e+00 : f32
    %1062 = vector.broadcast %cst_400 : f32 to vector<2x10xf32>
    %1063 = arith.mulf %1061, %1062 : vector<2x10xf32>
    %1064 = arith.mulf %1063, %966 : vector<2x10xf32>
    %1065 = arith.addf %1059, %1064 : vector<2x10xf32>
    %cst_401 = arith.constant -2.000000e-01 : f32
    %1066 = vector.broadcast %cst_401 : f32 to vector<2x10xf32>
    %1067 = arith.subf %812, %1066 : vector<2x10xf32>
    %cst_402 = arith.constant 1.250000e+00 : f32
    %1068 = vector.broadcast %cst_402 : f32 to vector<2x10xf32>
    %1069 = arith.mulf %1067, %1068 : vector<2x10xf32>
    %1070 = arith.mulf %1069, %966 : vector<2x10xf32>
    %cst_403 = arith.constant 1.000000e+00 : f32
    %1071 = vector.broadcast %cst_403 : f32 to vector<2x10xf32>
    %1072 = arith.subf %1071, %812 : vector<2x10xf32>
    %cst_404 = arith.constant 1.250000e+00 : f32
    %1073 = vector.broadcast %cst_404 : f32 to vector<2x10xf32>
    %1074 = arith.mulf %1072, %1073 : vector<2x10xf32>
    %1075 = arith.mulf %1074, %977 : vector<2x10xf32>
    %1076 = arith.addf %1070, %1075 : vector<2x10xf32>
    %cst_405 = arith.constant 2.000000e-01 : f32
    %1077 = vector.broadcast %cst_405 : f32 to vector<2x10xf32>
    %1078 = arith.subf %812, %1077 : vector<2x10xf32>
    %cst_406 = arith.constant 1.250000e+00 : f32
    %1079 = vector.broadcast %cst_406 : f32 to vector<2x10xf32>
    %1080 = arith.mulf %1078, %1079 : vector<2x10xf32>
    %1081 = arith.mulf %1080, %977 : vector<2x10xf32>
    %cst_407 = arith.constant 1.400000e+00 : f32
    %1082 = vector.broadcast %cst_407 : f32 to vector<2x10xf32>
    %1083 = arith.subf %1082, %812 : vector<2x10xf32>
    %cst_408 = arith.constant 1.250000e+00 : f32
    %1084 = vector.broadcast %cst_408 : f32 to vector<2x10xf32>
    %1085 = arith.mulf %1083, %1084 : vector<2x10xf32>
    %1086 = arith.mulf %1085, %988 : vector<2x10xf32>
    %1087 = arith.addf %1081, %1086 : vector<2x10xf32>
    %cst_409 = arith.constant 6.000000e-01 : f32
    %1088 = vector.broadcast %cst_409 : f32 to vector<2x10xf32>
    %1089 = arith.subf %812, %1088 : vector<2x10xf32>
    %cst_410 = arith.constant 1.250000e+00 : f32
    %1090 = vector.broadcast %cst_410 : f32 to vector<2x10xf32>
    %1091 = arith.mulf %1089, %1090 : vector<2x10xf32>
    %1092 = arith.mulf %1091, %988 : vector<2x10xf32>
    %cst_411 = arith.constant 1.800000e+00 : f32
    %1093 = vector.broadcast %cst_411 : f32 to vector<2x10xf32>
    %1094 = arith.subf %1093, %812 : vector<2x10xf32>
    %cst_412 = arith.constant 1.250000e+00 : f32
    %1095 = vector.broadcast %cst_412 : f32 to vector<2x10xf32>
    %1096 = arith.mulf %1094, %1095 : vector<2x10xf32>
    %1097 = arith.mulf %1096, %999 : vector<2x10xf32>
    %1098 = arith.addf %1092, %1097 : vector<2x10xf32>
    %cst_413 = arith.constant 1.000000e+00 : f32
    %1099 = vector.broadcast %cst_413 : f32 to vector<2x10xf32>
    %1100 = arith.subf %812, %1099 : vector<2x10xf32>
    %cst_414 = arith.constant 1.250000e+00 : f32
    %1101 = vector.broadcast %cst_414 : f32 to vector<2x10xf32>
    %1102 = arith.mulf %1100, %1101 : vector<2x10xf32>
    %1103 = arith.mulf %1102, %999 : vector<2x10xf32>
    %cst_415 = arith.constant 2.200000e+00 : f32
    %1104 = vector.broadcast %cst_415 : f32 to vector<2x10xf32>
    %1105 = arith.subf %1104, %812 : vector<2x10xf32>
    %cst_416 = arith.constant 1.250000e+00 : f32
    %1106 = vector.broadcast %cst_416 : f32 to vector<2x10xf32>
    %1107 = arith.mulf %1105, %1106 : vector<2x10xf32>
    %1108 = arith.mulf %1107, %1010 : vector<2x10xf32>
    %1109 = arith.addf %1103, %1108 : vector<2x10xf32>
    %cst_417 = arith.constant -2.200000e+00 : f32
    %1110 = vector.broadcast %cst_417 : f32 to vector<2x10xf32>
    %1111 = arith.subf %812, %1110 : vector<2x10xf32>
    %cst_418 = arith.constant 0.833333313 : f32
    %1112 = vector.broadcast %cst_418 : f32 to vector<2x10xf32>
    %1113 = arith.mulf %1111, %1112 : vector<2x10xf32>
    %1114 = arith.mulf %1113, %1021 : vector<2x10xf32>
    %cst_419 = arith.constant -6.000000e-01 : f32
    %1115 = vector.broadcast %cst_419 : f32 to vector<2x10xf32>
    %1116 = arith.subf %1115, %812 : vector<2x10xf32>
    %cst_420 = arith.constant 0.833333313 : f32
    %1117 = vector.broadcast %cst_420 : f32 to vector<2x10xf32>
    %1118 = arith.mulf %1116, %1117 : vector<2x10xf32>
    %1119 = arith.mulf %1118, %1032 : vector<2x10xf32>
    %1120 = arith.addf %1114, %1119 : vector<2x10xf32>
    %cst_421 = arith.constant -1.800000e+00 : f32
    %1121 = vector.broadcast %cst_421 : f32 to vector<2x10xf32>
    %1122 = arith.subf %812, %1121 : vector<2x10xf32>
    %cst_422 = arith.constant 0.833333313 : f32
    %1123 = vector.broadcast %cst_422 : f32 to vector<2x10xf32>
    %1124 = arith.mulf %1122, %1123 : vector<2x10xf32>
    %1125 = arith.mulf %1124, %1032 : vector<2x10xf32>
    %cst_423 = arith.constant -2.000000e-01 : f32
    %1126 = vector.broadcast %cst_423 : f32 to vector<2x10xf32>
    %1127 = arith.subf %1126, %812 : vector<2x10xf32>
    %cst_424 = arith.constant 0.833333313 : f32
    %1128 = vector.broadcast %cst_424 : f32 to vector<2x10xf32>
    %1129 = arith.mulf %1127, %1128 : vector<2x10xf32>
    %1130 = arith.mulf %1129, %1043 : vector<2x10xf32>
    %1131 = arith.addf %1125, %1130 : vector<2x10xf32>
    %cst_425 = arith.constant -1.400000e+00 : f32
    %1132 = vector.broadcast %cst_425 : f32 to vector<2x10xf32>
    %1133 = arith.subf %812, %1132 : vector<2x10xf32>
    %cst_426 = arith.constant 0.833333313 : f32
    %1134 = vector.broadcast %cst_426 : f32 to vector<2x10xf32>
    %1135 = arith.mulf %1133, %1134 : vector<2x10xf32>
    %1136 = arith.mulf %1135, %1043 : vector<2x10xf32>
    %cst_427 = arith.constant 2.000000e-01 : f32
    %1137 = vector.broadcast %cst_427 : f32 to vector<2x10xf32>
    %1138 = arith.subf %1137, %812 : vector<2x10xf32>
    %cst_428 = arith.constant 0.833333313 : f32
    %1139 = vector.broadcast %cst_428 : f32 to vector<2x10xf32>
    %1140 = arith.mulf %1138, %1139 : vector<2x10xf32>
    %1141 = arith.mulf %1140, %1054 : vector<2x10xf32>
    %1142 = arith.addf %1136, %1141 : vector<2x10xf32>
    %cst_429 = arith.constant -1.000000e+00 : f32
    %1143 = vector.broadcast %cst_429 : f32 to vector<2x10xf32>
    %1144 = arith.subf %812, %1143 : vector<2x10xf32>
    %cst_430 = arith.constant 0.833333313 : f32
    %1145 = vector.broadcast %cst_430 : f32 to vector<2x10xf32>
    %1146 = arith.mulf %1144, %1145 : vector<2x10xf32>
    %1147 = arith.mulf %1146, %1054 : vector<2x10xf32>
    %cst_431 = arith.constant 6.000000e-01 : f32
    %1148 = vector.broadcast %cst_431 : f32 to vector<2x10xf32>
    %1149 = arith.subf %1148, %812 : vector<2x10xf32>
    %cst_432 = arith.constant 0.833333313 : f32
    %1150 = vector.broadcast %cst_432 : f32 to vector<2x10xf32>
    %1151 = arith.mulf %1149, %1150 : vector<2x10xf32>
    %1152 = arith.mulf %1151, %1065 : vector<2x10xf32>
    %1153 = arith.addf %1147, %1152 : vector<2x10xf32>
    %cst_433 = arith.constant -6.000000e-01 : f32
    %1154 = vector.broadcast %cst_433 : f32 to vector<2x10xf32>
    %1155 = arith.subf %812, %1154 : vector<2x10xf32>
    %cst_434 = arith.constant 0.833333313 : f32
    %1156 = vector.broadcast %cst_434 : f32 to vector<2x10xf32>
    %1157 = arith.mulf %1155, %1156 : vector<2x10xf32>
    %1158 = arith.mulf %1157, %1065 : vector<2x10xf32>
    %cst_435 = arith.constant 1.000000e+00 : f32
    %1159 = vector.broadcast %cst_435 : f32 to vector<2x10xf32>
    %1160 = arith.subf %1159, %812 : vector<2x10xf32>
    %cst_436 = arith.constant 0.833333313 : f32
    %1161 = vector.broadcast %cst_436 : f32 to vector<2x10xf32>
    %1162 = arith.mulf %1160, %1161 : vector<2x10xf32>
    %1163 = arith.mulf %1162, %1076 : vector<2x10xf32>
    %1164 = arith.addf %1158, %1163 : vector<2x10xf32>
    %cst_437 = arith.constant -2.000000e-01 : f32
    %1165 = vector.broadcast %cst_437 : f32 to vector<2x10xf32>
    %1166 = arith.subf %812, %1165 : vector<2x10xf32>
    %cst_438 = arith.constant 0.833333313 : f32
    %1167 = vector.broadcast %cst_438 : f32 to vector<2x10xf32>
    %1168 = arith.mulf %1166, %1167 : vector<2x10xf32>
    %1169 = arith.mulf %1168, %1076 : vector<2x10xf32>
    %cst_439 = arith.constant 1.400000e+00 : f32
    %1170 = vector.broadcast %cst_439 : f32 to vector<2x10xf32>
    %1171 = arith.subf %1170, %812 : vector<2x10xf32>
    %cst_440 = arith.constant 0.833333313 : f32
    %1172 = vector.broadcast %cst_440 : f32 to vector<2x10xf32>
    %1173 = arith.mulf %1171, %1172 : vector<2x10xf32>
    %1174 = arith.mulf %1173, %1087 : vector<2x10xf32>
    %1175 = arith.addf %1169, %1174 : vector<2x10xf32>
    %cst_441 = arith.constant 2.000000e-01 : f32
    %1176 = vector.broadcast %cst_441 : f32 to vector<2x10xf32>
    %1177 = arith.subf %812, %1176 : vector<2x10xf32>
    %cst_442 = arith.constant 0.833333313 : f32
    %1178 = vector.broadcast %cst_442 : f32 to vector<2x10xf32>
    %1179 = arith.mulf %1177, %1178 : vector<2x10xf32>
    %1180 = arith.mulf %1179, %1087 : vector<2x10xf32>
    %cst_443 = arith.constant 1.800000e+00 : f32
    %1181 = vector.broadcast %cst_443 : f32 to vector<2x10xf32>
    %1182 = arith.subf %1181, %812 : vector<2x10xf32>
    %cst_444 = arith.constant 0.833333313 : f32
    %1183 = vector.broadcast %cst_444 : f32 to vector<2x10xf32>
    %1184 = arith.mulf %1182, %1183 : vector<2x10xf32>
    %1185 = arith.mulf %1184, %1098 : vector<2x10xf32>
    %1186 = arith.addf %1180, %1185 : vector<2x10xf32>
    %cst_445 = arith.constant 6.000000e-01 : f32
    %1187 = vector.broadcast %cst_445 : f32 to vector<2x10xf32>
    %1188 = arith.subf %812, %1187 : vector<2x10xf32>
    %cst_446 = arith.constant 0.833333313 : f32
    %1189 = vector.broadcast %cst_446 : f32 to vector<2x10xf32>
    %1190 = arith.mulf %1188, %1189 : vector<2x10xf32>
    %1191 = arith.mulf %1190, %1098 : vector<2x10xf32>
    %cst_447 = arith.constant 2.200000e+00 : f32
    %1192 = vector.broadcast %cst_447 : f32 to vector<2x10xf32>
    %1193 = arith.subf %1192, %812 : vector<2x10xf32>
    %cst_448 = arith.constant 0.833333313 : f32
    %1194 = vector.broadcast %cst_448 : f32 to vector<2x10xf32>
    %1195 = arith.mulf %1193, %1194 : vector<2x10xf32>
    %1196 = arith.mulf %1195, %1109 : vector<2x10xf32>
    %1197 = arith.addf %1191, %1196 : vector<2x10xf32>
    %1198 = tpu.concatenate %1120, %1131, %1142, %1153, %1164, %1175, %1186, %1197 in 1 : vector<2x10xf32>, vector<2x10xf32>, vector<2x10xf32>, vector<2x10xf32>, vector<2x10xf32>, vector<2x10xf32>, vector<2x10xf32>, vector<2x10xf32> -> vector<2x80xf32>
    %cst_449 = arith.constant dense<0.000000e+00> : vector<2x3xf32>
    %1199 = tpu.matmul %1198, %814, %cst_449 {dimension_numbers = #tpu.dot_dimension_numbers<[1], [0], [0], [1], [0, 0, 1, 1], [], []>} : vector<2x80xf32>, vector<80x3xf32>, vector<2x3xf32> -> vector<2x3xf32>
    %1200 = arith.addf %823, %1199 : vector<2x3xf32>
    %c0_450 = arith.constant 0 : index
    %c0_451 = arith.constant 0 : index
    %1201 = vector.load %arg19[%c0_450, %c0_451] : memref<2x3xf32, #tpu.memory_space<vmem>>, vector<2x3xf32>
    tpu.vector_store %arg19[%c0_450, %c0_451], %1200 {strides = array<i32>} : memref<2x3xf32, #tpu.memory_space<vmem>>, vector<2x3xf32>,
    return
  }
}

</mosaic_0001>

<bundles_post_ra>
// kernel: _lambda_.1
= control target key start
LH: loop header
LB: loop body
LE: loop exit
PB: predicated region body
PF: predicated region fallthrough
CT: control target
= control target key end

     0   :  { %s11918_s0 = inlined_call_operand.hbm [shape: f32[16,4], index: 0, kind: input, shape index: {}]   ;;  %s11919_s1 = inlined_call_operand.hbm [shape: f32[4,32], index: 1, kind: input, shape index: {}]   ;;  %s11920_s2 = inlined_call_operand.hbm [shape: f32[1,32], index: 2, kind: input, shape index: {}]   ;;  %s11921_s3 = inlined_call_operand.hbm [shape: f32[2,32,96], index: 3, kind: input, shape index: {}]   ;;  %s11922_s4 = inlined_call_operand.hbm [shape: f32[2,1,96], index: 4, kind: input, shape index: {}]   ;;  %s11923_s5 = inlined_call_operand.hbm [shape: f32[2,32,32], index: 5, kind: input, shape index: {}]   ;;  %s11924_s6 = inlined_call_operand.hbm [shape: f32[2,1,32], index: 6, kind: input, shape index: {}]   ;;  %s11925_s7 = inlined_call_operand.hbm [shape: f32[2,1,32], index: 7, kind: input, shape index: {}, may-alias: {7,13}]   ;;  %s11926_s8 = inlined_call_operand.hbm [shape: f32[2,1,32], index: 8, kind: input, shape index: {}, may-alias: {8,14}]   ;;  %s11927_s9 = inlined_call_operand.hbm [shape: f32[2,32,2048], index: 9, kind: input, shape index: {}]   ;;  %s11928_s10 = inlined_call_operand.hbm [shape: f32[2,1,2048], index: 10, kind: input, shape index: {}]   ;;  %s11929_s11 = inlined_call_operand.hbm [shape: f32[2,2048,32], index: 11, kind: input, shape index: {}]   ;;  %s11930_s12 = inlined_call_operand.hbm [shape: f32[2,1,32], index: 12, kind: input, shape index: {}]   ;;  %s11931_s13 = inlined_call_operand.hbm [shape: f32[2,1,32], index: 13, kind: input, shape index: {}, may-alias: {7,13}]   ;;  %s11932_s14 = inlined_call_operand.hbm [shape: f32[2,1,32], index: 14, kind: input, shape index: {}, may-alias: {8,14}]   ;;  %s11933_s15 = inlined_call_operand.hbm [shape: f32[32,10], index: 15, kind: input, shape index: {}]   ;;  %s11934_s16 = inlined_call_operand.hbm [shape: f32[256,10], index: 16, kind: input, shape index: {}]   ;;  %s11935_s17 = inlined_call_operand.hbm [shape: f32[10,3], index: 17, kind: input, shape index: {}]   ;;  %s11936_s18 = inlined_call_operand.hbm [shape: f32[80,3], index: 18, kind: input, shape index: {}]   ;;  %s11937_s19 = inlined_call_operand.hbm [shape: f32[2,3], index: 19, kind: output, shape index: {}]  }
   0x1   :  { %11945 = sst [smem:[#allocation44_spill]] %s11918_s0 }
   0x2   :  { %11946 = sst [smem:[#allocation45_spill]] %s11919_s1 }
   0x3   :  { %11947 = sst [smem:[#allocation46_spill]] %s11920_s2 }
   0x4   :  { %11948 = sst [smem:[#allocation47_spill]] %s11921_s3 }
   0x5   :  { %11949 = sst [smem:[#allocation48_spill]] %s11937_s19 }
   0x6   :  { %24 = vsyncpa [#allocation3], 0 }
   0x7   :  { %25 = vsyncpa [#allocation6], 0 }
   0x8   :  { %26 = vsyncpa [#allocation9], 0 }
   0x9   :  { %27 = vsyncpa [#allocation12], 0 }
   0xa   :  { %28 = vsyncpa [#allocation15], 0 }
   0xb   :  { %29 = vsyncpa [#allocation18], 0 }
   0xc   :  { %30 = vsyncpa [#allocation21], 0 }
   0xd   :  { %31 = vsyncpa [#allocation24], 0 }
   0xe   :  { %32 = vsyncpa [#allocation27], 0 }
   0xf   :  { %33 = vsyncpa [#allocation30], 0 }
  0x10   :  { %34 = vsyncpa [#allocation4], 0  ;;  %s10399_s0 = smov [#allocation5]   ;;  %s11950_s1 = sld [smem:[#allocation45_spill]] }
  0x11   :  { %s53_s30 = sshll.u32 %s10399_s0, 4  ;;  %s54_s30 = int_to_ptr.vmem [resolvable:$true] %s53_s30 }
  0x16   :  { %s9937_s22 = scalar_lea.hbm %s11950_s1, 64 }
  0x17   :  { %p9938_p0 = scmp.ne.s32.totalorder %s11950_s1, %s9937_s22  ;;  %p9941_p1 = scmp.lt.u32.totalorder %s9937_s22, %s11950_s1 }
  0x19   :  { %p9943_p2 = pnand %p9941_p1, %p9938_p0 }
  0x1b   :  { %9946 = shalt.err (!%p9943_p2)
}
  0x1c   :  { %s9947_s3 = scalar_lea.vmem %s54_s30, 64  ;;  %p9952_p4 = scmp.lt.s32.totalorder %s54_s30, %s54_s30 }
  0x1d   :  { %p9948_p3 = scmp.ne.s32.totalorder %s54_s30, %s9947_s3  ;;  %p9953_p5 = scmp.lt.s32.totalorder %s9947_s3, %s9947_s3 }
  0x1f   :  { %p9954_p6 = por %p9953_p5, %p9952_p4 }
  0x21   :  { %p9955_p7 = pnand %p9954_p6, %p9948_p3 }
  0x23   :  { %9958 = shalt.err (!%p9955_p7)
}
  0x24   :  { %56 = dma.hbm_to_vmem [thread:$0]  %s11950_s1, 64, %s54_s30, [#allocation6]  }
  0x25   :  { %s10400_s28 = smov [#allocation8]   ;;  %s10401_s0 = smov [#allocation11]  }
  0x26   :  { %s72_s29 = sshll.u32 %s10400_s28, 4  ;;  %s96_s20 = sshll.u32 %s10401_s0, 4  ;;  %s73_s29 = int_to_ptr.vmem [resolvable:$true] %s72_s29  ;;  %s97_s20 = int_to_ptr.vmem [resolvable:$true] %s96_s20 }
  0x27   :  { %s11951_s2 = sld [smem:[#allocation47_spill]] }
  0x2d   :  { %s9959_s23 = scalar_lea.hbm %s11951_s2, 1024 }
  0x2e   :  { %p9960_p8 = scmp.ne.s32.totalorder %s11951_s2, %s9959_s23  ;;  %p9963_p9 = scmp.lt.u32.totalorder %s9959_s23, %s11951_s2 }
  0x30   :  { %p9965_p10 = pnand %p9963_p9, %p9960_p8 }
  0x32   :  { %9968 = shalt.err (!%p9965_p10)
}
  0x33   :  { %s9969_s30 = scalar_lea.vmem %s73_s29, 1024  ;;  %p9974_p12 = scmp.lt.s32.totalorder %s73_s29, %s73_s29 }
  0x34   :  { %p9970_p11 = scmp.ne.s32.totalorder %s73_s29, %s9969_s30  ;;  %p9975_p13 = scmp.lt.s32.totalorder %s9969_s30, %s9969_s30 }
  0x36   :  { %p9976_p0 = por %p9975_p13, %p9974_p12 }
  0x38   :  { %p9977_p1 = pnand %p9976_p0, %p9970_p11 }
  0x3a   :  { %9980 = shalt.err (!%p9977_p1)
}
  0x3b   :  { %s10402_s1 = smov 128   ;;  %s10403_s26 = smov 8  }
  0x3c   :  { %78 = dma.hbm_to_vmem [thread:$0]  %s11951_s2, 1024, %s73_s29, [#allocation9], %s10402_s1, %s10402_s1, %s10403_s26  }
  0x3d   :  { %s9981_s21 = scalar_lea.hbm %s11923_s5, 1024 }
  0x3e   :  { %p9982_p2 = scmp.ne.s32.totalorder %s11923_s5, %s9981_s21  ;;  %p9985_p3 = scmp.lt.u32.totalorder %s9981_s21, %s11923_s5 }
  0x40   :  { %p9987_p4 = pnand %p9985_p3, %p9982_p2 }
  0x42   :  { %9990 = shalt.err (!%p9987_p4)
}
  0x43   :  { %s9991_s3 = scalar_lea.vmem %s97_s20, 1024  ;;  %p9996_p6 = scmp.lt.s32.totalorder %s97_s20, %s97_s20 }
  0x44   :  { %p9992_p5 = scmp.ne.s32.totalorder %s97_s20, %s9991_s3  ;;  %p9997_p7 = scmp.lt.s32.totalorder %s9991_s3, %s9991_s3 }
  0x46   :  { %p9998_p8 = por %p9997_p7, %p9996_p6 }
  0x48   :  { %p9999_p9 = pnand %p9998_p8, %p9992_p5 }
  0x4a   :  { %10002 = shalt.err (!%p9999_p9)
}
  0x4b   :  { %102 = dma.hbm_to_vmem [thread:$0]  %s11923_s5, 1024, %s97_s20, [#allocation12], %s10402_s1, %s10402_s1, %s10403_s26  }
  0x4c   :  { %s10404_s30 = smov [#allocation14]   ;;  %s10405_s28 = smov [#allocation17]  }
  0x4d   :  { %s120_s27 = sshll.u32 %s10404_s30, 4  ;;  %s144_s19 = sshll.u32 %s10405_s28, 4  ;;  %s121_s27 = int_to_ptr.vmem [resolvable:$true] %s120_s27  ;;  %s145_s19 = int_to_ptr.vmem [resolvable:$true] %s144_s19 }
  0x4e   :  { %s10003_s22 = scalar_lea.hbm %s11925_s7, 32 }
  0x4f   :  { %p10004_p10 = scmp.ne.s32.totalorder %s11925_s7, %s10003_s22  ;;  %p10007_p11 = scmp.lt.u32.totalorder %s10003_s22, %s11925_s7 }
  0x51   :  { %p10009_p12 = pnand %p10007_p11, %p10004_p10 }
  0x53   :  { %10012 = shalt.err (!%p10009_p12)
}
  0x54   :  { %s10013_s5 = scalar_lea.vmem %s121_s27, 32  ;;  %p10018_p0 = scmp.lt.s32.totalorder %s121_s27, %s121_s27 }
  0x55   :  { %p10014_p13 = scmp.ne.s32.totalorder %s121_s27, %s10013_s5  ;;  %p10019_p1 = scmp.lt.s32.totalorder %s10013_s5, %s10013_s5 }
  0x57   :  { %p10020_p2 = por %p10019_p1, %p10018_p0 }
  0x59   :  { %p10021_p3 = pnand %p10020_p2, %p10014_p13 }
  0x5b   :  { %10024 = shalt.err (!%p10021_p3)
}
  0x5c   :  { %s11943_s20 = smov 16   ;;  %s10407_s29 = smov 1  }
  0x5d   :  { %126 = dma.hbm_to_vmem [thread:$0]  %s11925_s7, 32, %s121_s27, [#allocation15], %s11943_s20, %s11943_s20, %s10407_s29  }
  0x5e   :  { %s10025_s21 = scalar_lea.hbm %s11927_s9, 16384 }
  0x5f   :  { %p10026_p4 = scmp.ne.s32.totalorder %s11927_s9, %s10025_s21  ;;  %p10029_p5 = scmp.lt.u32.totalorder %s10025_s21, %s11927_s9 }
  0x61   :  { %p10031_p6 = pnand %p10029_p5, %p10026_p4 }
  0x63   :  { %10034 = shalt.err (!%p10031_p6)
}
  0x64   :  { %s10035_s3 = scalar_lea.vmem %s145_s19, 16384  ;;  %p10040_p8 = scmp.lt.s32.totalorder %s145_s19, %s145_s19 }
  0x65   :  { %p10036_p7 = scmp.ne.s32.totalorder %s145_s19, %s10035_s3  ;;  %p10041_p9 = scmp.lt.s32.totalorder %s10035_s3, %s10035_s3 }
  0x67   :  { %p10042_p10 = por %p10041_p9, %p10040_p8 }
  0x69   :  { %p10043_p11 = pnand %p10042_p10, %p10036_p7 }
  0x6b   :  { %10046 = shalt.err (!%p10043_p11)
}
  0x6c   :  { %s10408_s7 = smov 2048   ;;  %s10409_s2 = smov [#allocation20]  }
  0x6d   :  { %150 = dma.hbm_to_vmem [thread:$0]  %s11927_s9, 16384, %s145_s19, [#allocation18], %s10408_s7, %s10408_s7, %s10402_s1  }
  0x6e   :  { %s168_s30 = sshll.u32 %s10409_s2, 4  ;;  %s10410_s28 = smov [#allocation23]   ;;  %s169_s30 = int_to_ptr.vmem [resolvable:$true] %s168_s30 }
  0x6f   :  { %s192_s0 = sshll.u32 %s10410_s28, 4  ;;  %s10047_s23 = scalar_lea.hbm %s11929_s11, 65536  ;;  %s10618_s0 = int_to_ptr.vmem [resolvable:$true] %s192_s0 }
  0x70   :  { %p10048_p12 = scmp.ne.s32.totalorder %s11929_s11, %s10047_s23  ;;  %p10051_p13 = scmp.lt.u32.totalorder %s10047_s23, %s11929_s11 }
  0x72   :  { %p10053_p0 = pnand %p10051_p13, %p10048_p12 }
  0x74   :  { %10056 = shalt.err (!%p10053_p0)
}
  0x75   :  { %s10057_s9 = scalar_lea.vmem %s169_s30, 65536  ;;  %p10062_p2 = scmp.lt.s32.totalorder %s169_s30, %s169_s30 }
  0x76   :  { %p10058_p1 = scmp.ne.s32.totalorder %s169_s30, %s10057_s9  ;;  %p10063_p3 = scmp.lt.s32.totalorder %s10057_s9, %s10057_s9 }
  0x78   :  { %p10064_p4 = por %p10063_p3, %p10062_p2 }
  0x7a   :  { %p10065_p5 = pnand %p10064_p4, %p10058_p1 }
  0x7c   :  { %10068 = shalt.err (!%p10065_p5)
}
  0x7d   :  { %174 = dma.hbm_to_vmem [thread:$0]  %s11929_s11, 65536, %s169_s30, [#allocation21], %s10402_s1, %s10402_s1, %s10403_s26  }
  0x7e   :  { %s10069_s20 = scalar_lea.hbm %s11931_s13, 32 }
  0x7f   :  { %p10070_p6 = scmp.ne.s32.totalorder %s11931_s13, %s10069_s20  ;;  %p10073_p7 = scmp.lt.u32.totalorder %s10069_s20, %s11931_s13 }
  0x81   :  { %p10075_p8 = pnand %p10073_p7, %p10070_p6 }
  0x83   :  { %10078 = shalt.err (!%p10075_p8)
}
  0x84   :  { %s10079_s23 = scalar_lea.vmem %s10618_s0, 32  ;;  %p10084_p10 = scmp.lt.s32.totalorder %s10618_s0, %s10618_s0 }
  0x85   :  { %p10080_p9 = scmp.ne.s32.totalorder %s10618_s0, %s10079_s23  ;;  %p10085_p11 = scmp.lt.s32.totalorder %s10079_s23, %s10079_s23 }
  0x87   :  { %p10086_p12 = por %p10085_p11, %p10084_p10 }
  0x89   :  { %p10087_p13 = pnand %p10086_p12, %p10080_p9 }
  0x8b   :  { %10090 = shalt.err (!%p10087_p13)
}
  0x8c   :  { %s11952_s11 = smov 16   ;;  %s10411_s25 = smov [#allocation26]  }
  0x8d   :  { %198 = dma.hbm_to_vmem [thread:$0]  %s11931_s13, 32, %s10618_s0, [#allocation24], %s11952_s11, %s11952_s11, %s10407_s29  }
  0x8e   :  { %s216_s3 = sshll.u32 %s10411_s25, 4  ;;  %s10412_s9 = smov [#allocation29]   ;;  %s217_s3 = int_to_ptr.vmem [resolvable:$true] %s216_s3 }
  0x8f   :  { %s240_s19 = sshll.u32 %s10412_s9, 4  ;;  %s10091_s5 = scalar_lea.hbm %s11933_s15, 512  ;;  %s10655_s19 = int_to_ptr.vmem [resolvable:$true] %s240_s19 }
  0x90   :  { %p10092_p0 = scmp.ne.s32.totalorder %s11933_s15, %s10091_s5  ;;  %p10095_p1 = scmp.lt.u32.totalorder %s10091_s5, %s11933_s15 }
  0x92   :  { %p10097_p2 = pnand %p10095_p1, %p10092_p0 }
  0x94   :  { %10100 = shalt.err (!%p10097_p2)
}
  0x95   :  { %s10101_s13 = scalar_lea.vmem %s217_s3, 512  ;;  %p10106_p4 = scmp.lt.s32.totalorder %s217_s3, %s217_s3 }
  0x96   :  { %p10102_p3 = scmp.ne.s32.totalorder %s217_s3, %s10101_s13  ;;  %p10107_p5 = scmp.lt.s32.totalorder %s10101_s13, %s10101_s13 }
  0x98   :  { %p10108_p6 = por %p10107_p5, %p10106_p4 }
  0x9a   :  { %p10109_p7 = pnand %p10108_p6, %p10102_p3 }
  0x9c   :  { %10112 = shalt.err (!%p10109_p7)
}
  0x9d   :  { %222 = dma.hbm_to_vmem [thread:$0]  %s11933_s15, 512, %s217_s3, [#allocation27], %s10402_s1, %s10402_s1, %s10403_s26  }
  0x9e   :  { %s10113_s24 = scalar_lea.hbm %s11935_s17, 256 }
  0x9f   :  { %p10114_p8 = scmp.ne.s32.totalorder %s11935_s17, %s10113_s24  ;;  %p10117_p9 = scmp.lt.u32.totalorder %s10113_s24, %s11935_s17 }
  0xa1   :  { %p10119_p10 = pnand %p10117_p9, %p10114_p8 }
  0xa3   :  { %10122 = shalt.err (!%p10119_p10)
}
  0xa4   :  { %s10123_s5 = scalar_lea.vmem %s10655_s19, 256  ;;  %p10128_p12 = scmp.lt.s32.totalorder %s10655_s19, %s10655_s19 }
  0xa5   :  { %p10124_p11 = scmp.ne.s32.totalorder %s10655_s19, %s10123_s5  ;;  %p10129_p13 = scmp.lt.s32.totalorder %s10123_s5, %s10123_s5 }
  0xa7   :  { %p10130_p0 = por %p10129_p13, %p10128_p12 }
  0xa9   :  { %p10131_p1 = pnand %p10130_p0, %p10124_p11 }
  0xab   :  { %10134 = shalt.err (!%p10131_p1)
}
  0xac   :  { %246 = dma.hbm_to_vmem [thread:$0]  %s11935_s17, 256, %s10655_s19, [#allocation30], %s10402_s1, %s10402_s1, %s10403_s26  }
  0xad   :  { %s10413_s20 = smov [#allocation2]   ;;  %s10414_s28 = smov [#allocation7]  }
  0xae   :  { %s40_s2 = sshll.u32 %s10413_s20, 4  ;;  %s63_s21 = sshll.u32 %s10414_s28, 4  ;;  %s41_s2 = int_to_ptr.vmem [resolvable:$true] %s40_s2  ;;  %s64_s21 = int_to_ptr.vmem [resolvable:$true] %s63_s21 }
  0xaf   :  { %s11953_s22 = sld [smem:[#allocation44_spill]] }
  0xb5   :  { %s10135_s23 = scalar_lea.hbm %s11953_s22, 256 }
  0xb6   :  { %p10136_p2 = scmp.ne.s32.totalorder %s11953_s22, %s10135_s23  ;;  %p10139_p3 = scmp.lt.u32.totalorder %s10135_s23, %s11953_s22 }
  0xb8   :  { %p10141_p4 = pnand %p10139_p3, %p10136_p2 }
  0xba   :  { %10144 = shalt.err (!%p10141_p4)
}
  0xbb   :  { %s10145_s17 = scalar_lea.vmem %s41_s2, 256  ;;  %p10150_p6 = scmp.lt.s32.totalorder %s41_s2, %s41_s2 }
  0xbc   :  { %p10146_p5 = scmp.ne.s32.totalorder %s41_s2, %s10145_s17  ;;  %p10151_p7 = scmp.lt.s32.totalorder %s10145_s17, %s10145_s17 }
  0xbe   :  { %p10152_p8 = por %p10151_p7, %p10150_p6 }
  0xc0   :  { %p10153_p9 = pnand %p10152_p8, %p10146_p5 }
  0xc2   :  { %10156 = shalt.err (!%p10153_p9)
}
  0xc3   :  { %46 = dma.hbm_to_vmem [thread:$0]  %s11953_s22, 256, %s41_s2, [#allocation3], %s10402_s1, %s10402_s1, %s10403_s26  }
  0xc4   :  { %s11954_s15 = sld [smem:[#allocation46_spill]] }
  0xca   :  { %s10157_s3 = scalar_lea.hbm %s11954_s15, 16 }
  0xcb   :  { %p10158_p10 = scmp.ne.s32.totalorder %s11954_s15, %s10157_s3  ;;  %p10161_p11 = scmp.lt.u32.totalorder %s10157_s3, %s11954_s15 }
  0xcd   :  { %p10163_p12 = pnand %p10161_p11, %p10158_p10 }
  0xcf   :  { %10166 = shalt.err (!%p10163_p12)
}
  0xd0   :  { %s10167_s23 = scalar_lea.vmem %s64_s21, 16  ;;  %s10171_s30 = scalar_lea.vmem %s64_s21, 32 }
  0xd1   :  { %p10168_p13 = scmp.ne.s32.totalorder %s64_s21, %s10167_s23  ;;  %p10172_p0 = scmp.lt.s32.totalorder %s64_s21, %s64_s21 }
  0xd2   :  { %p10173_p1 = scmp.lt.s32.totalorder %s10171_s30, %s10167_s23 }
  0xd4   :  { %p10174_p2 = por %p10173_p1, %p10172_p0 }
  0xd6   :  { %p10175_p3 = pnand %p10174_p2, %p10168_p13 }
  0xd8   :  { %10178 = shalt.err (!%p10175_p3)
}
  0xd9   :  { %66 = dma.hbm_to_vmem [thread:$0]  %s11954_s15, 16, %s64_s21, [#allocation6]  }
  0xda   :  { %s10415_s24 = smov [#allocation10]   ;;  %s10416_s9 = smov [#allocation13]  }
  0xdb   :  { %s84_s25 = sshll.u32 %s10415_s24, 4  ;;  %s108_s17 = sshll.u32 %s10416_s9, 4  ;;  %s85_s25 = int_to_ptr.vmem [resolvable:$true] %s84_s25  ;;  %s10719_s17 = int_to_ptr.vmem [resolvable:$true] %s108_s17 }
  0xdc   :  { %s10179_s27 = scalar_lea.hbm %s11922_s4, 32 }
  0xdd   :  { %p10180_p4 = scmp.ne.s32.totalorder %s11922_s4, %s10179_s27  ;;  %p10183_p5 = scmp.lt.u32.totalorder %s10179_s27, %s11922_s4 }
  0xdf   :  { %p10185_p6 = pnand %p10183_p5, %p10180_p4 }
  0xe1   :  { %10188 = shalt.err (!%p10185_p6)
}
  0xe2   :  { %s10189_s21 = scalar_lea.vmem %s85_s25, 32  ;;  %p10194_p8 = scmp.lt.s32.totalorder %s85_s25, %s85_s25 }
  0xe3   :  { %p10190_p7 = scmp.ne.s32.totalorder %s85_s25, %s10189_s21  ;;  %p10195_p9 = scmp.lt.s32.totalorder %s10189_s21, %s10189_s21 }
  0xe5   :  { %p10196_p10 = por %p10195_p9, %p10194_p8 }
  0xe7   :  { %p10197_p11 = pnand %p10196_p10, %p10190_p7 }
  0xe9   :  { %10200 = shalt.err (!%p10197_p11)
}
  0xea   :  { %90 = dma.hbm_to_vmem [thread:$0]  %s11922_s4, 32, %s85_s25, [#allocation9], %s11952_s11, %s11952_s11, %s10407_s29  }
  0xeb   :  { %s10201_s30 = scalar_lea.hbm %s11924_s6, 32 }
  0xec   :  { %p10202_p12 = scmp.ne.s32.totalorder %s11924_s6, %s10201_s30  ;;  %p10205_p13 = scmp.lt.u32.totalorder %s10201_s30, %s11924_s6 }
  0xee   :  { %p10207_p0 = pnand %p10205_p13, %p10202_p12 }
  0xf0   :  { %10210 = shalt.err (!%p10207_p0)
}
  0xf1   :  { %s10211_s19 = scalar_lea.vmem %s10719_s17, 32  ;;  %p10216_p2 = scmp.lt.s32.totalorder %s10719_s17, %s10719_s17 }
  0xf2   :  { %p10212_p1 = scmp.ne.s32.totalorder %s10719_s17, %s10211_s19  ;;  %p10217_p3 = scmp.lt.s32.totalorder %s10211_s19, %s10211_s19 }
  0xf4   :  { %p10218_p4 = por %p10217_p3, %p10216_p2 }
  0xf6   :  { %p10219_p5 = pnand %p10218_p4, %p10212_p1 }
  0xf8   :  { %10222 = shalt.err (!%p10219_p5)
}
  0xf9   :  { %114 = dma.hbm_to_vmem [thread:$0]  %s11924_s6, 32, %s10719_s17, [#allocation12], %s11952_s11, %s11952_s11, %s10407_s29  }
  0xfa   :  { %s10417_s7 = smov [#allocation16]   ;;  %s10418_s5 = smov [#allocation19]  }
  0xfb   :  { %s132_s27 = sshll.u32 %s10417_s7, 4  ;;  %s156_s3 = sshll.u32 %s10418_s5, 4  ;;  %s133_s27 = int_to_ptr.vmem [resolvable:$true] %s132_s27  ;;  %s10756_s3 = int_to_ptr.vmem [resolvable:$true] %s156_s3 }
  0xfc   :  { %s10223_s21 = scalar_lea.hbm %s11926_s8, 32 }
  0xfd   :  { %p10224_p6 = scmp.ne.s32.totalorder %s11926_s8, %s10223_s21  ;;  %p10227_p7 = scmp.lt.u32.totalorder %s10223_s21, %s11926_s8 }
  0xff   :  { %p10229_p8 = pnand %p10227_p7, %p10224_p6 }
 0x101   :  { %10232 = shalt.err (!%p10229_p8)
}
 0x102   :  { %s10233_s6 = scalar_lea.vmem %s133_s27, 32  ;;  %p10238_p10 = scmp.lt.s32.totalorder %s133_s27, %s133_s27 }
 0x103   :  { %p10234_p9 = scmp.ne.s32.totalorder %s133_s27, %s10233_s6  ;;  %p10239_p11 = scmp.lt.s32.totalorder %s10233_s6, %s10233_s6 }
 0x105   :  { %p10240_p12 = por %p10239_p11, %p10238_p10 }
 0x107   :  { %p10241_p13 = pnand %p10240_p12, %p10234_p9 }
 0x109   :  { %10244 = shalt.err (!%p10241_p13)
}
 0x10a   :  { %138 = dma.hbm_to_vmem [thread:$0]  %s11926_s8, 32, %s133_s27, [#allocation15], %s11952_s11, %s11952_s11, %s10407_s29  }
 0x10b   :  { %s10245_s24 = scalar_lea.hbm %s11928_s10, 512 }
 0x10c   :  { %p10246_p0 = scmp.ne.s32.totalorder %s11928_s10, %s10245_s24  ;;  %p10249_p1 = scmp.lt.u32.totalorder %s10245_s24, %s11928_s10 }
 0x10e   :  { %p10251_p2 = pnand %p10249_p1, %p10246_p0 }
 0x110   :  { %10254 = shalt.err (!%p10251_p2)
}
 0x111   :  { %s10255_s7 = scalar_lea.vmem %s10756_s3, 512  ;;  %p10260_p4 = scmp.lt.s32.totalorder %s10756_s3, %s10756_s3 }
 0x112   :  { %p10256_p3 = scmp.ne.s32.totalorder %s10756_s3, %s10255_s7  ;;  %p10261_p5 = scmp.lt.s32.totalorder %s10255_s7, %s10255_s7 }
 0x114   :  { %p10262_p6 = por %p10261_p5, %p10260_p4 }
 0x116   :  { %p10263_p7 = pnand %p10262_p6, %p10256_p3 }
 0x118   :  { %10266 = shalt.err (!%p10263_p7)
}
 0x119   :  { %s10419_s8 = smov 256   ;;  %s10420_s20 = smov [#allocation22]  }
 0x11a   :  { %162 = dma.hbm_to_vmem [thread:$0]  %s11928_s10, 512, %s10756_s3, [#allocation18], %s10419_s8, %s10419_s8, %s11952_s11  }
 0x11b   :  { %s180_s28 = sshll.u32 %s10420_s20, 4  ;;  %s10421_s21 = smov [#allocation25]   ;;  %s181_s28 = int_to_ptr.vmem [resolvable:$true] %s180_s28 }
 0x11c   :  { %s204_s15 = sshll.u32 %s10421_s21, 4  ;;  %s10267_s23 = scalar_lea.hbm %s11930_s12, 32  ;;  %s205_s15 = int_to_ptr.vmem [resolvable:$true] %s204_s15 }
 0x11d   :  { %p10268_p8 = scmp.ne.s32.totalorder %s11930_s12, %s10267_s23  ;;  %p10271_p9 = scmp.lt.u32.totalorder %s10267_s23, %s11930_s12 }
 0x11f   :  { %p10273_p10 = pnand %p10271_p9, %p10268_p8 }
 0x121   :  { %10276 = shalt.err (!%p10273_p10)
}
 0x122   :  { %s10277_s10 = scalar_lea.vmem %s181_s28, 32  ;;  %p10282_p12 = scmp.lt.s32.totalorder %s181_s28, %s181_s28 }
 0x123   :  { %p10278_p11 = scmp.ne.s32.totalorder %s181_s28, %s10277_s10  ;;  %p10283_p13 = scmp.lt.s32.totalorder %s10277_s10, %s10277_s10 }
 0x125   :  { %p10284_p0 = por %p10283_p13, %p10282_p12 }
 0x127   :  { %p10285_p1 = pnand %p10284_p0, %p10278_p11 }
 0x129   :  { %10288 = shalt.err (!%p10285_p1)
}
 0x12a   :  { %186 = dma.hbm_to_vmem [thread:$0]  %s11930_s12, 32, %s181_s28, [#allocation21], %s11952_s11, %s11952_s11, %s10407_s29  }
 0x12b   :  { %s10289_s19 = scalar_lea.hbm %s11932_s14, 32 }
 0x12c   :  { %p10290_p2 = scmp.ne.s32.totalorder %s11932_s14, %s10289_s19  ;;  %p10293_p3 = scmp.lt.u32.totalorder %s10289_s19, %s11932_s14 }
 0x12e   :  { %p10295_p4 = pnand %p10293_p3, %p10290_p2 }
 0x130   :  { %10298 = shalt.err (!%p10295_p4)
}
 0x131   :  { %s10299_s27 = scalar_lea.vmem %s205_s15, 32  ;;  %p10304_p6 = scmp.lt.s32.totalorder %s205_s15, %s205_s15 }
 0x132   :  { %p10300_p5 = scmp.ne.s32.totalorder %s205_s15, %s10299_s27  ;;  %p10305_p7 = scmp.lt.s32.totalorder %s10299_s27, %s10299_s27 }
 0x134   :  { %p10306_p8 = por %p10305_p7, %p10304_p6 }
 0x136   :  { %p10307_p9 = pnand %p10306_p8, %p10300_p5 }
 0x138   :  { %10310 = shalt.err (!%p10307_p9)
}
 0x139   :  { %210 = dma.hbm_to_vmem [thread:$0]  %s11932_s14, 32, %s205_s15, [#allocation24], %s11952_s11, %s11952_s11, %s10407_s29  }
 0x13a   :  { %s10422_s20 = smov [#allocation28]   ;;  %s10423_s21 = smov [#allocation31]  }
 0x13b   :  { %s228_s28 = sshll.u32 %s10422_s20, 4  ;;  %s252_s13 = sshll.u32 %s10423_s21, 4  ;;  %s229_s28 = int_to_ptr.vmem [resolvable:$true] %s228_s28  ;;  %s253_s13 = int_to_ptr.vmem [resolvable:$true] %s252_s13 }
 0x13c   :  { %s10311_s6 = scalar_lea.hbm %s11934_s16, 4096 }
 0x13d   :  { %p10312_p10 = scmp.ne.s32.totalorder %s11934_s16, %s10311_s6  ;;  %p10315_p11 = scmp.lt.u32.totalorder %s10311_s6, %s11934_s16 }
 0x13f   :  { %p10317_p12 = pnand %p10315_p11, %p10312_p10 }
 0x141   :  { %10320 = shalt.err (!%p10317_p12)
}
 0x142   :  { %s10321_s14 = scalar_lea.vmem %s229_s28, 4096  ;;  %p10326_p0 = scmp.lt.s32.totalorder %s229_s28, %s229_s28 }
 0x143   :  { %p10322_p13 = scmp.ne.s32.totalorder %s229_s28, %s10321_s14  ;;  %p10327_p1 = scmp.lt.s32.totalorder %s10321_s14, %s10321_s14 }
 0x145   :  { %p10328_p2 = por %p10327_p1, %p10326_p0 }
 0x147   :  { %p10329_p3 = pnand %p10328_p2, %p10322_p13 }
 0x149   :  { %10332 = shalt.err (!%p10329_p3)
}
 0x14a   :  { %234 = dma.hbm_to_vmem [thread:$0]  %s11934_s16, 4096, %s229_s28, [#allocation27], %s10402_s1, %s10402_s1, %s10403_s26  }
 0x14b   :  { %s10333_s24 = scalar_lea.hbm %s11936_s18, 1280 }
 0x14c   :  { %p10334_p4 = scmp.ne.s32.totalorder %s11936_s18, %s10333_s24  ;;  %p10337_p5 = scmp.lt.u32.totalorder %s10333_s24, %s11936_s18 }
 0x14e   :  { %p10339_p6 = pnand %p10337_p5, %p10334_p4 }
 0x150   :  { %10342 = shalt.err (!%p10339_p6)
}
 0x151   :  { %s10343_s7 = scalar_lea.vmem %s253_s13, 1280  ;;  %p10348_p8 = scmp.lt.s32.totalorder %s253_s13, %s253_s13 }
 0x152   :  { %p10344_p7 = scmp.ne.s32.totalorder %s253_s13, %s10343_s7  ;;  %p10349_p9 = scmp.lt.s32.totalorder %s10343_s7, %s10343_s7 }
 0x154   :  { %p10350_p10 = por %p10349_p9, %p10348_p8 }
 0x156   :  { %p10351_p11 = pnand %p10350_p10, %p10344_p7 }
 0x158   :  { %10354 = shalt.err (!%p10351_p11)
}
 0x159   :  { %258 = dma.hbm_to_vmem [thread:$0]  %s11936_s18, 1280, %s253_s13, [#allocation30], %s10402_s1, %s10402_s1, %s10403_s26  }
 0x15a   :  { %10377 = dma.done.wait [#allocation3], 256  }
 0x15b   :  { %10378 = vsyncadd [#allocation3], 4294967040 }
 0x15c   :  { %10379 = dma.done.wait [#allocation6], 80  }
 0x15d   :  { %10380 = vsyncadd [#allocation6], 4294967216 }
 0x15e   :  { %10381 = dma.done.wait [#allocation9], 1056  }
 0x15f   :  { %10382 = vsyncadd [#allocation9], 4294966240 }
 0x160   :  { %10383 = dma.done.wait [#allocation12], 1056  }
 0x161   :  { %10384 = vsyncadd [#allocation12], 4294966240 }
 0x162   :  { %10385 = dma.done.wait [#allocation15], 64  }
 0x163   :  { %10386 = vsyncadd [#allocation15], 4294967232 }
 0x164   :  { %10387 = dma.done.wait [#allocation18], 16896  }
 0x165   :  { %10388 = vsyncadd [#allocation18], 4294950400 }
 0x166   :  { %10389 = dma.done.wait [#allocation21], 65568  }
 0x167   :  { %10390 = vsyncadd [#allocation21], 4294901728 }
 0x168   :  { %10391 = dma.done.wait [#allocation24], 64  }
 0x169   :  { %10392 = vsyncadd [#allocation24], 4294967232 }
 0x16a   :  { %10393 = dma.done.wait [#allocation27], 4608  }
 0x16b   :  { %10394 = vsyncadd [#allocation27], 4294962688 }
 0x16c   :  { %10395 = dma.done.wait [#allocation30], 1536  }
 0x16d   :  { %10396 = vsyncadd [#allocation30], 4294965760  ;;  %vm333_vm0 = vcmask 1043456   ;;  %vm326_vm1 = vcmask 31744   ;;  %v318_v0 = vld [vmem:[#allocation5] sm:$0xf] }
 0x16e   :  { %v316_v1 = vld [vmem:[#allocation2] sm:$0xff]  ;;  %v317_v2 = vld [vmem:[#allocation2 + $0x8] sm:$0xff]  ;;  %8804 = vmatprep.subr.msk.mxu1 %vm333_vm0, %v318_v0  ;;  %v412_v3 = vld [vmem:[#allocation8] sm:$0xff]  ;;  %vm423_vm2 = vcmask 261120   ;;  %v10424_v14 = vmov 0.0   ;;  %vm10425_vm3 = vmmov 0  }
 0x16f   :  { %8806 = vmatprep.mubr.msk.f32.mxu1 %vm326_vm1, %v316_v1  ;;  %v413_v4 = vld [vmem:[#allocation8 + $0x8] sm:$0xff]  ;;  %8805 = vmatpush3.msk.msra.mxu1 %vm333_vm0, %v318_v0  ;;  %v414_v6 = vld [vmem:[#allocation8 + $0x10] sm:$0xff]  ;;  %v415_v7 = vld [vmem:[#allocation8 + $0x18] sm:$0xff]  ;;  %s10426_s18 = smov 96   ;;  %s10427_s1 = smov 120   ;;  %vm510_vm4 = vcmask 64512  }
 0x170   :  { %v9054_v5 = vpack.c.bf16 %v413_v4, %v412_v3  ;;  %8807 = vmatmul.mubr.msk.f32.vlgmr.msra.gmra.mrb[0].mxu1 %vm326_vm1, %v317_v2  ;;  %v9058_v8 = vpack.c.bf16 %v415_v7, %v414_v6  ;;  %v7899_v9 = vld [vmem:[#allocation7] ss:$0 sm:$0xff]  ;;  %8820 = vmatprep.subr.mxu0 %v10424_v14  ;;  %v7903_v15 = vld [vmem:[#allocation10] ss:$0 sm:$0xff]  ;;  %s10428_s27 = smov 88   ;;  %s10429_s12 = smov 80  }
 0x171   :  { %8822 = vmatprep.mubr.msk.f32.mxu0 %vm10425_vm3, %v10424_v14  ;;  %s10430_s5 = smov 112   ;;  %s10431_s20 = smov 72   ;;  %vm1181_vm5 = vcmask 130048   ;;  %vm1183_vm6 = vcmask 195584   ;;  %vm7021_vm7 = vcmask 1040384  }
 0x172   :  { %9055 = vmatprep.subr.bf16.mxu1 %v9054_v5  ;;  %s10432_s28 = smov 104   ;;  %s10433_s21 = smov 64  }
 0x173   :  { %9057 = vmatpush3.bf16.msra.mxu1 %v9054_v5  ;;  %s10434_s13 = smov 56   ;;  %s10435_s0 = smov 40  }
 0x174   :  { %9059 = vmatprep.subr.bf16.mxu1 %v9058_v8  ;;  %s10436_s23 = smov 48   ;;  %s10437_s6 = smov 24  }
 0x175   :  { %s10441_s17 = smov 10   ;;  %s10442_s30 = smov 30  }
 0x176   :  { %s10443_s2 = smov 50   ;;  %s10444_s10 = smov 60  }
 0x177   :  { %9061 = vmatpush3.bf16.msra.mxu1 %v9058_v8  ;;  %s10445_s14 = smov 70   ;;  %s10447_s29 = smov [#allocation32]  }
 0x178   :  { %8830 = vmatprep.subr.mxu1 %v10424_v14  ;;  %s7881_s15 = sshll.u32 %s10447_s29, 4  ;;  %s7882_s15 = int_to_ptr.vmem [resolvable:$true] %s7881_s15 }
 0x179   :  { %s10355_s3 = scalar_lea.vmem %s7882_s15, 32  ;;  %p10360_p13 = scmp.lt.s32.totalorder %s7882_s15, %s7882_s15 }
 0x17a   :  { %p10356_p12 = scmp.ne.s32.totalorder %s7882_s15, %s10355_s3  ;;  %p10361_p0 = scmp.lt.s32.totalorder %s10355_s3, %s10355_s3 }
 0x17c   :  { %p10362_p1 = por %p10361_p0, %p10360_p13 }
 0x17e   :  { %p10363_p2 = pnand %p10362_p1, %p10356_p12 }
 0x243   :  { %v8808_v10 = vpop.f32.mrb[0].mxu1 }
 0x244   :  { %v403_v11 = vpop.f32.mrb[1].mxu1  ;;  %v10853_v13 = vadd.f32 %v8808_v10, %v7899_v9 }
 0x245   :  { %v10851_v12 = vadd.f32 %v7899_v9, %v403_v11 }
 0x247   :  { %8817 = vmatprep.mubr.msk.f32.mxu1 %vm423_vm2, %v10851_v12 }
 0x248   :  { %8818 = vmatmul.mubr.msk.f32.vlgmr.msra.gmra.mrb[2].mxu1 %vm423_vm2, %v10853_v13 }
 0x249   :  { %8832 = vmatprep.mubr.msk.f32.mxu1 %vm10425_vm3, %v10424_v14 }
 0x31b   :  { %v8819_v16 = vpop.f32.mrb[2].mxu1 }
 0x31c   :  { %v496_v17 = vpop.f32.mrb[3].mxu1  ;;  %v10878_v20 = vadd.f32 %v8819_v16, %v7903_v15 }
 0x31d   :  { %v10865_v18 = vadd.f32 %v7903_v15, %v496_v17 }
 0x31e   :  { %v506_v21 = vmul.f32 0.35355338, %v10878_v20 }
 0x31f   :  { %508 = vrot.lane.b32.xlu0 %v10865_v18, %s10426_s18  ;;  %v505_v19 = vmul.f32 0.35355338, %v10865_v18 }
 0x321   :  { %673 = vrot.lane.b32.xlu1 %v505_v19, %s10427_s1 }
 0x323   :  { %675 = vrot.lane.b32.xlu0 %v10865_v18, %s10428_s27 }
 0x325   :  { %840 = vrot.lane.b32.xlu1 %v10865_v18, %s10429_s12 }
 0x327   :  { %838 = vrot.lane.b32.xlu0 %v505_v19, %s10430_s5 }
 0x329   :  { %1005 = vrot.lane.b32.xlu1 %v10865_v18, %s10431_s20 }
 0x32b   :  { %1003 = vrot.lane.b32.xlu0 %v505_v19, %s10432_s28 }
 0x32d   :  { %1186 = vrot.lane.b32.xlu1 %v10878_v20, %s10426_s18 }
 0x32f   :  { %1352 = vrot.lane.b32.xlu0 %v10878_v20, %s10428_s27 }
 0x331   :  { %1350 = vrot.lane.b32.xlu1 %v506_v21, %s10427_s1 }
 0x333   :  { %1517 = vrot.lane.b32.xlu0 %v10878_v20, %s10429_s12 }
 0x335   :  { %1515 = vrot.lane.b32.xlu1 %v506_v21, %s10430_s5 }
 0x337   :  { %1682 = vrot.lane.b32.xlu0 %v10878_v20, %s10431_s20 }
 0x339   :  { %1680 = vrot.lane.b32.xlu1 %v506_v21, %s10432_s28 }
 0x33b   :  { %597 = vrot.lane.b32.xlu0 %v10865_v18, %s10433_s21 }
 0x33d   :  { %762 = vrot.lane.b32.xlu1 %v10865_v18, %s10434_s13 }
 0x391   :  { %v509_v22 = vpop.permute.xlu0 %508 }
 0x392   :  { %8821 = vmatpush3.xpose.msk.msra.mxu0 %vm510_vm4, %v509_v22 }
 0x393   :  { %v674_v23 = vpop.permute.xlu1 %673  ;;  %8825 = vmatprep.subr.mxu0 %v10424_v14 }
 0x395   :  { %v676_v24 = vpop.permute.xlu0 %675  ;;  %8823 = vmatmul.mubr.msk.f32.vlgmr.msra.gmra.mrb[0].mxu0 %vm510_vm4, %v505_v19 }
 0x396   :  { %8831 = vmatpush3.xpose.msk.msra.mxu1 %vm510_vm4, %v676_v24  ;;  %8827 = vmatprep.mubr.msk.f32.mxu0 %vm10425_vm3, %v10424_v14 }
 0x397   :  { %v841_v25 = vpop.permute.xlu1 %840  ;;  %8840 = vmatprep.subr.mxu1 %v10424_v14 }
 0x399   :  { %v839_v26 = vpop.permute.xlu0 %838  ;;  %8833 = vmatmul.mubr.msk.f32.vlgmr.msra.gmra.mrb[4].mxu1 %vm510_vm4, %v674_v23 }
 0x39a   :  { %8841 = vmatpush3.xpose.msk.msra.mxu1 %vm510_vm4, %v841_v25  ;;  %8842 = vmatprep.mubr.msk.f32.mxu1 %vm10425_vm3, %v10424_v14 }
 0x39b   :  { %v1006_v27 = vpop.permute.xlu1 %1005  ;;  %8850 = vmatprep.subr.mxu1 %v10424_v14 }
 0x39d   :  { %v1004_v28 = vpop.permute.xlu0 %1003  ;;  %8843 = vmatmul.mubr.msk.f32.vlgmr.msra.gmra.mrb[6].mxu1 %vm510_vm4, %v839_v26 }
 0x39e   :  { %8851 = vmatpush3.xpose.msk.msra.mxu1 %vm510_vm4, %v1006_v27  ;;  %8852 = vmatprep.mubr.msk.f32.mxu1 %vm10425_vm3, %v10424_v14 }
 0x39f   :  { %v1187_v29 = vpop.permute.xlu1 %1186  ;;  %8860 = vmatprep.subr.mxu1 %v10424_v14 }
 0x3a1   :  { %v1353_v30 = vpop.permute.xlu0 %1352  ;;  %8853 = vmatmul.mubr.msk.f32.vlgmr.msra.gmra.mrb[8].mxu1 %vm510_vm4, %v1004_v28 }
 0x3a2   :  { %8861 = vmatpush3.xpose.msk.msra.mxu1 %vm510_vm4, %v1187_v29  ;;  %8862 = vmatprep.mubr.msk.f32.mxu1 %vm10425_vm3, %v10424_v14 }
 0x3a3   :  { %8870 = vmatprep.subr.mxu1 %v10424_v14  ;;  %v1351_v31 = vpop.permute.xlu1 %1350 }
 0x3a5   :  { %v1518_v32 = vpop.permute.xlu0 %1517  ;;  %8863 = vmatmul.mubr.msk.f32.vlgmr.msra.gmra.mrb[10].mxu1 %vm510_vm4, %v506_v21 }
 0x3a6   :  { %8871 = vmatpush3.xpose.msk.msra.mxu1 %vm510_vm4, %v1353_v30  ;;  %8872 = vmatprep.mubr.msk.f32.mxu1 %vm10425_vm3, %v10424_v14 }
 0x3a7   :  { %8880 = vmatprep.subr.mxu1 %v10424_v14  ;;  %v1516_v34 = vpop.permute.xlu1 %1515 }
 0x3a9   :  { %v1683_v33 = vpop.permute.xlu0 %1682  ;;  %8873 = vmatmul.mubr.msk.f32.vlgmr.msra.gmra.mrb[12].mxu1 %vm510_vm4, %v1351_v31 }
 0x3aa   :  { %8881 = vmatpush3.xpose.msk.msra.mxu1 %vm510_vm4, %v1518_v32  ;;  %8882 = vmatprep.mubr.msk.f32.mxu1 %vm10425_vm3, %v10424_v14 }
 0x3ab   :  { %8890 = vmatprep.subr.mxu1 %v10424_v14  ;;  %v1681_v36 = vpop.permute.xlu1 %1680 }
 0x3ad   :  { %v598_v35 = vpop.permute.xlu0 %597  ;;  %8883 = vmatmul.mubr.msk.f32.vlgmr.msra.gmra.mrb[14].mxu1 %vm510_vm4, %v1516_v34 }
 0x3ae   :  { %8826 = vmatpush3.msra.mxu0 %v598_v35  ;;  %8891 = vmatpush3.xpose.msk.msra.mxu1 %vm510_vm4, %v1683_v33 }
 0x3af   :  { %8892 = vmatprep.mubr.msk.f32.mxu1 %vm10425_vm3, %v10424_v14  ;;  %8835 = vmatprep.subr.mxu0 %v10424_v14  ;;  %v10947_v61 = vpop.permute.xlu1 %762 }
 0x3b1   :  { %8893 = vmatmul.mubr.msk.f32.vlgmr.msra.gmra.mrb[16].mxu1 %vm510_vm4, %v1681_v36 }
 0x468   :  { %v582_v37 = vpop.f32.mrb[0].mxu0 }
 0x469   :  { %v8824_v38 = vpop.f32.mrb[1].mxu0  ;;  %v586_v39 = vsel %vm510_vm4, %v582_v37, -inf }
 0x46a   :  { %587 = vmax.xlane.f32.xlu0 %v586_v39 }
 0x46c   :  { %v747_v40 = vpop.f32.mrb[4].mxu1 }
 0x46d   :  { %v8834_v41 = vpop.f32.mrb[5].mxu1  ;;  %v751_v42 = vsel %vm510_vm4, %v747_v40, -inf }
 0x46e   :  { %752 = vmax.xlane.f32.xlu1 %v751_v42 }
 0x470   :  { %v912_v43 = vpop.f32.mrb[6].mxu1 }
 0x471   :  { %v8844_v44 = vpop.f32.mrb[7].mxu1  ;;  %v916_v45 = vsel %vm510_vm4, %v912_v43, -inf }
 0x472   :  { %917 = vmax.xlane.f32.xlu0 %v916_v45 }
 0x474   :  { %v1077_v46 = vpop.f32.mrb[8].mxu1 }
 0x475   :  { %v8854_v47 = vpop.f32.mrb[9].mxu1  ;;  %v1081_v48 = vsel %vm510_vm4, %v1077_v46, -inf }
 0x476   :  { %1082 = vmax.xlane.f32.xlu0 %v1081_v48 }
 0x478   :  { %v1259_v49 = vpop.f32.mrb[10].mxu1 }
 0x479   :  { %v8864_v50 = vpop.f32.mrb[11].mxu1  ;;  %v1263_v51 = vsel %vm510_vm4, %v1259_v49, -inf }
 0x47a   :  { %1264 = vmax.xlane.f32.xlu1 %v1263_v51 }
 0x47c   :  { %v1424_v52 = vpop.f32.mrb[12].mxu1 }
 0x47d   :  { %v8874_v53 = vpop.f32.mrb[13].mxu1  ;;  %v1428_v54 = vsel %vm510_vm4, %v1424_v52, -inf }
 0x47e   :  { %1429 = vmax.xlane.f32.xlu0 %v1428_v54 }
 0x480   :  { %v1589_v55 = vpop.f32.mrb[14].mxu1 }
 0x481   :  { %v8884_v56 = vpop.f32.mrb[15].mxu1  ;;  %v1593_v57 = vsel %vm510_vm4, %v1589_v55, -inf }
 0x482   :  { %1594 = vmax.xlane.f32.xlu1 %v1593_v57 }
 0x484   :  { %v1754_v58 = vpop.f32.mrb[16].mxu1 }
 0x485   :  { %v8894_v59 = vpop.f32.mrb[17].mxu1  ;;  %v1758_v60 = vsel %vm510_vm4, %v1754_v58, -inf }
 0x486   :  { %1759 = vmax.xlane.f32.xlu0 %v1758_v60 }
 0x493   :  { %1092 = vrot.lane.b32.xlu1 %v10865_v18, %s10435_s0 }
 0x49c   :  { %927 = vrot.lane.b32.xlu0 %v10865_v18, %s10436_s23 }
 0x4f7   :  { %v588_v62 = vpop.xlane.xlu0 %587 }
 0x4f8   :  { %v589_v63 = vsub.f32 %v582_v37, %v588_v62 }
 0x4fa   :  { %v590_v0 = vmul.f32 1.442695, %v589_v63 }
 0x4fb   :  { %v753_v1 = vpop.xlane.xlu1 %752 }
 0x4fc   :  { %9849 = vpow2.f32 %v590_v0  ;;  %v754_v2 = vsub.f32 %v747_v40, %v753_v1 }
 0x4fe   :  { %v755_v3 = vmul.f32 1.442695, %v754_v2 }
 0x4ff   :  { %v918_v4 = vpop.xlane.xlu0 %917 }
 0x500   :  { %9851 = vpow2.f32 %v755_v3  ;;  %v919_v5 = vsub.f32 %v912_v43, %v918_v4 }
 0x502   :  { %v920_v6 = vmul.f32 1.442695, %v919_v5 }
 0x503   :  { %v1083_v7 = vpop.xlane.xlu0 %1082 }
 0x504   :  { %9853 = vpow2.f32 %v920_v6  ;;  %v1084_v8 = vsub.f32 %v1077_v46, %v1083_v7 }
 0x506   :  { %v9850_v9 = vpop.eup %9849  ;;  %v1085_v10 = vmul.f32 1.442695, %v1084_v8 }
 0x507   :  { %v592_v11 = vsel %vm510_vm4, %v9850_v9, 0.0  ;;  %v1265_v22 = vpop.xlane.xlu1 %1264 }
 0x508   :  { %9855 = vpow2.f32 %v1085_v10  ;;  %593 = vadd.xlane.f32.xlu1 %v592_v11  ;;  %v1266_v23 = vsub.f32 %v1259_v49, %v1265_v22  ;;  %v1862_v22 = vld [vmem:[#allocation11 + $0x10] sm:$0xff] }
 0x50a   :  { %v9852_v15 = vpop.eup %9851  ;;  %v1267_v27 = vmul.f32 1.442695, %v1266_v23  ;;  %v1863_v23 = vld [vmem:[#allocation11 + $0x18] sm:$0xff] }
 0x50b   :  { %v757_v16 = vsel %vm510_vm4, %v9852_v15, 0.0  ;;  %v1430_v24 = vpop.xlane.xlu0 %1429 }
 0x50c   :  { %758 = vadd.xlane.f32.xlu0 %v757_v16  ;;  %v1431_v26 = vsub.f32 %v1424_v52, %v1430_v24  ;;  %9857 = vpow2.f32 %v1267_v27  ;;  %v9066_v24 = vpack.c.bf16 %v1863_v23, %v1862_v22  ;;  %v2033_v22 = vld [vmem:[#allocation17 + $0x110] sm:$0xff] }
 0x50d   :  { %v2049_v23 = vld [vmem:[#allocation17 + $0x190] sm:$0xff] }
 0x50e   :  { %v9854_v17 = vpop.eup %9853  ;;  %v1432_v30 = vmul.f32 1.442695, %v1431_v26 }
 0x50f   :  { %v922_v18 = vsel %vm510_vm4, %v9854_v17, 0.0  ;;  %v1595_v25 = vpop.xlane.xlu1 %1594 }
 0x510   :  { %923 = vadd.xlane.f32.xlu1 %v922_v18  ;;  %v1596_v28 = vsub.f32 %v1589_v55, %v1595_v25  ;;  %9859 = vpow2.f32 %v1432_v30  ;;  %v1860_v18 = vld [vmem:[#allocation11] sm:$0xff] }
 0x512   :  { %v10952_v19 = vpop.eup %9855  ;;  %v1597_v31 = vmul.f32 1.442695, %v1596_v28 }
 0x513   :  { %v1087_v21 = vsel %vm510_vm4, %v10952_v19, 0.0  ;;  %v1760_v29 = vpop.xlane.xlu0 %1759  ;;  %v1093_v42 = vpop.permute.xlu1 %1092 }
 0x514   :  { %1088 = vadd.xlane.f32.xlu0 %v1087_v21  ;;  %v1761_v32 = vsub.f32 %v1754_v58, %v1760_v29  ;;  %9861 = vpow2.f32 %v1597_v31 }
 0x516   :  { %v1762_v33 = vmul.f32 1.442695, %v1761_v32  ;;  %v9858_v34 = vpop.eup %9857 }
 0x517   :  { %v1269_v36 = vsel %vm510_vm4, %v9858_v34, 0.0  ;;  %v928_v43 = vpop.permute.xlu0 %927 }
 0x518   :  { %9863 = vpow2.f32 %v1762_v33 }
 0x51a   :  { %v10960_v35 = vpop.eup %9859 }
 0x51b   :  { %v1434_v39 = vsel %vm510_vm4, %v10960_v35, 0.0 }
 0x51e   :  { %v10963_v37 = vpop.eup %9861 }
 0x51f   :  { %v1599_v38 = vsel %vm510_vm4, %v10963_v37, 0.0 }
 0x521   :  { %1439 = vrot.lane.b32.xlu1 %v10878_v20, %s10434_s13 }
 0x522   :  { %v10969_v40 = vpop.eup %9863 }
 0x523   :  { %v1764_v41 = vsel %vm510_vm4, %v10969_v40, 0.0 }
 0x52a   :  { %1274 = vrot.lane.b32.xlu0 %v10878_v20, %s10433_s21 }
 0x545   :  { %1270 = vadd.xlane.f32.xlu1 %v1269_v36 }
 0x549   :  { %1600 = vadd.xlane.f32.xlu1 %v1599_v38  ;;  %1435 = vadd.xlane.f32.xlu0 %v1434_v39 }
 0x54d   :  { %1765 = vadd.xlane.f32.xlu1 %v1764_v41 }
 0x55e   :  { %1769 = vrot.lane.b32.xlu1 %v10878_v20, %s10435_s0 }
 0x55f   :  { %1604 = vrot.lane.b32.xlu0 %v10878_v20, %s10436_s23 }
 0x595   :  { %v594_v44 = vpop.xlane.xlu1 %593 }
 0x596   :  { %9865 = vrcp.f32 %v594_v44 }
 0x599   :  { %v759_v45 = vpop.xlane.xlu0 %758 }
 0x59a   :  { %9867 = vrcp.f32 %v759_v45  ;;  %v7930_v45 = vld [vmem:[#allocation13] ss:$0 sm:$0xff] }
 0x59d   :  { %v924_v46 = vpop.xlane.xlu1 %923 }
 0x59e   :  { %9869 = vrcp.f32 %v924_v46 }
 0x5a0   :  { %v9866_v47 = vpop.eup %9865 }
 0x5a1   :  { %v596_v48 = vmul.f32 %v9866_v47, %v9850_v9  ;;  %v1089_v49 = vpop.xlane.xlu0 %1088  ;;  %v1440_v56 = vpop.permute.xlu1 %1439 }
 0x5a2   :  { %9871 = vrcp.f32 %v1089_v49 }
 0x5a3   :  { %8828 = vmatmul.mubr.msk.f32.vlgmr.msra.gmra.mrb[2].mxu0 %vm510_vm4, %v596_v48 }
 0x5a4   :  { %v9868_v50 = vpop.eup %9867  ;;  %8836 = vmatpush3.msra.mxu0 %v10947_v61  ;;  %8837 = vmatprep.mubr.msk.f32.mxu0 %vm10425_vm3, %v10424_v14 }
 0x5a5   :  { %v761_v20 = vmul.f32 %v9868_v50, %v9852_v15  ;;  %8845 = vmatprep.subr.mxu0 %v10424_v14  ;;  %v1275_v55 = vpop.permute.xlu0 %1274 }
 0x5a7   :  { %8838 = vmatmul.mubr.msk.f32.vlgmr.msra.gmra.mrb[4].mxu0 %vm510_vm4, %v761_v20 }
 0x5a8   :  { %v9870_v51 = vpop.eup %9869  ;;  %8846 = vmatpush3.msra.mxu0 %v928_v43  ;;  %8847 = vmatprep.mubr.msk.f32.mxu0 %vm10425_vm3, %v10424_v14 }
 0x5a9   :  { %v926_v52 = vmul.f32 %v9870_v51, %v9854_v17  ;;  %8855 = vmatprep.subr.mxu0 %v10424_v14 }
 0x5ab   :  { %8848 = vmatmul.mubr.msk.f32.vlgmr.msra.gmra.mrb[6].mxu0 %vm510_vm4, %v926_v52 }
 0x5ac   :  { %v9872_v53 = vpop.eup %9871  ;;  %8856 = vmatpush3.msra.mxu0 %v1093_v42  ;;  %8857 = vmatprep.mubr.msk.f32.mxu0 %vm10425_vm3, %v10424_v14 }
 0x5ad   :  { %v1091_v54 = vmul.f32 %v9872_v53, %v10952_v19  ;;  %8865 = vmatprep.subr.mxu0 %v10424_v14  ;;  %v1861_v19 = vld [vmem:[#allocation11 + $0x8] sm:$0xff] }
 0x5ae   :  { %v9062_v21 = vpack.c.bf16 %v1861_v19, %v1860_v18  ;;  %v2047_v18 = vld [vmem:[#allocation17 + $0x180] sm:$0xff] }
 0x5af   :  { %8858 = vmatmul.mubr.msk.f32.vlgmr.msra.gmra.mrb[8].mxu0 %vm510_vm4, %v1091_v54 }
 0x5b0   :  { %8866 = vmatpush3.msra.mxu0 %v1275_v55  ;;  %8867 = vmatprep.mubr.msk.f32.mxu0 %vm10425_vm3, %v10424_v14 }
 0x5b1   :  { %8875 = vmatprep.subr.mxu0 %v10424_v14  ;;  %9063 = vmatprep.subr.bf16.mxu1 %v9062_v21 }
 0x5b2   :  { %9065 = vmatpush3.bf16.msra.mxu1 %v9062_v21 }
 0x5b3   :  { %9067 = vmatprep.subr.bf16.mxu1 %v9066_v24 }
 0x5b6   :  { %9069 = vmatpush3.bf16.msra.mxu1 %v9066_v24  ;;  %v9084_v24 = vpack.c.bf16 %v2049_v23, %v2033_v22 }
 0x5d2   :  { %v1271_v57 = vpop.xlane.xlu1 %1270 }
 0x5d3   :  { %9873 = vrcp.f32 %v1271_v57 }
 0x5d6   :  { %v1601_v58 = vpop.xlane.xlu1 %1600  ;;  %v1436_v59 = vpop.xlane.xlu0 %1435 }
 0x5d7   :  { %9875 = vrcp.f32 %v1436_v59 }
 0x5d8   :  { %9877 = vrcp.f32 %v1601_v58 }
 0x5da   :  { %v1766_v60 = vpop.xlane.xlu1 %1765  ;;  %v1605_v2 = vpop.permute.xlu0 %1604 }
 0x5db   :  { %9879 = vrcp.f32 %v1766_v60 }
 0x5dd   :  { %v9874_v61 = vpop.eup %9873 }
 0x5de   :  { %v1273_v62 = vmul.f32 %v9874_v61, %v9858_v34  ;;  %v1770_v5 = vpop.permute.xlu1 %1769  ;;  %v2000_v61 = vld [vmem:[#allocation17 + $0x8] sm:$0xff] }
 0x5e0   :  { %8868 = vmatmul.mubr.msk.f32.vlgmr.msra.gmra.mrb[10].mxu0 %vm510_vm4, %v1273_v62  ;;  %v2016_v62 = vld [vmem:[#allocation17 + $0x88] sm:$0xff] }
 0x5e1   :  { %8876 = vmatpush3.msra.mxu0 %v1440_v56  ;;  %8877 = vmatprep.mubr.msk.f32.mxu0 %vm10425_vm3, %v10424_v14  ;;  %v9876_v63 = vpop.eup %9875 }
 0x5e2   :  { %8885 = vmatprep.subr.mxu0 %v10424_v14  ;;  %v1438_v0 = vmul.f32 %v9876_v63, %v10960_v35  ;;  %v9878_v1 = vpop.eup %9877  ;;  %v2002_v63 = vld [vmem:[#allocation17 + $0x18] sm:$0xff] }
 0x5e3   :  { %v1603_v3 = vmul.f32 %v9878_v1, %v10963_v37  ;;  %v2018_v1 = vld [vmem:[#allocation17 + $0x98] sm:$0xff] }
 0x5e4   :  { %8878 = vmatmul.mubr.msk.f32.vlgmr.msra.gmra.mrb[12].mxu0 %vm510_vm4, %v1438_v0  ;;  %v9070_v0 = vpack.c.bf16 %v2016_v62, %v2000_v61  ;;  %v2024_v61 = vld [vmem:[#allocation17 + $0xc8] sm:$0xff]  ;;  %v2010_v62 = vld [vmem:[#allocation17 + $0x58] sm:$0xff] }
 0x5e5   :  { %8886 = vmatpush3.msra.mxu0 %v1605_v2  ;;  %8887 = vmatprep.mubr.msk.f32.mxu0 %vm10425_vm3, %v10424_v14  ;;  %v9880_v4 = vpop.eup %9879  ;;  %v1999_v2 = vld [vmem:[#allocation17] sm:$0xff] }
 0x5e6   :  { %8895 = vmatprep.subr.mxu0 %v10424_v14  ;;  %v1768_v6 = vmul.f32 %v9880_v4, %v10969_v40  ;;  %v9078_v4 = vpack.c.bf16 %v2018_v1, %v2002_v63  ;;  %v2026_v63 = vld [vmem:[#allocation17 + $0xd8] sm:$0xff]  ;;  %v2007_v1 = vld [vmem:[#allocation17 + $0x40] sm:$0xff] }
 0x5e8   :  { %8888 = vmatmul.mubr.msk.f32.vlgmr.msra.gmra.mrb[14].mxu0 %vm510_vm4, %v1603_v3  ;;  %v2015_v3 = vld [vmem:[#allocation17 + $0x80] sm:$0xff]  ;;  %9079 = vmatprep.subr.bf16.mxu1 %v9078_v4  ;;  %v2009_v4 = vld [vmem:[#allocation17 + $0x50] sm:$0xff] }
 0x5e9   :  { %8896 = vmatpush3.msra.mxu0 %v1770_v5  ;;  %8897 = vmatprep.mubr.msk.f32.mxu0 %vm10425_vm3, %v10424_v14  ;;  %v9072_v5 = vpack.c.bf16 %v2015_v3, %v1999_v2  ;;  %v2023_v3 = vld [vmem:[#allocation17 + $0xc0] sm:$0xff] }
 0x5ea   :  { %9071 = vmatprep.subr.bf16.mxu0 %v9070_v0 }
 0x5ec   :  { %8898 = vmatmul.mubr.msk.f32.vlgmr.msra.gmra.mrb[16].mxu0 %vm510_vm4, %v1768_v6  ;;  %v2001_v6 = vld [vmem:[#allocation17 + $0x10] sm:$0xff] }
 0x5ed   :  { %2217 = vmatprep.mubr.f32.mxu0 %v10424_v14  ;;  %9073 = vmatpush1.bf16.msra.mxu0 %v9072_v5  ;;  %v2025_v5 = vld [vmem:[#allocation17 + $0xd0] sm:$0xff] }
 0x676   :  { %v669_v7 = vpop.f32.mrb[2].mxu0 }
 0x677   :  { %v8829_v8 = vpop.f32.mrb[3].mxu0 }
 0x67a   :  { %v834_v9 = vpop.f32.mrb[4].mxu0 }
 0x67b   :  { %1169 = vrot.lane.b32.xlu0 %v834_v9, %s10403_s26  ;;  %v8839_v10 = vpop.f32.mrb[5].mxu0  ;;  %v2032_v9 = vld [vmem:[#allocation17 + $0x108] sm:$0xff] }
 0x67c   :  { %v2048_v10 = vld [vmem:[#allocation17 + $0x188] sm:$0xff] }
 0x67e   :  { %v999_v11 = vpop.f32.mrb[6].mxu0 }
 0x67f   :  { %1173 = vrot.lane.b32.xlu1 %v999_v11, %s11952_s11  ;;  %v8849_v15 = vpop.f32.mrb[7].mxu0  ;;  %v2034_v11 = vld [vmem:[#allocation17 + $0x118] sm:$0xff] }
 0x680   :  { %v9074_v15 = vpack.c.bf16 %v2048_v10, %v2032_v9  ;;  %v2056_v9 = vld [vmem:[#allocation17 + $0x1c8] sm:$0xff]  ;;  %v2042_v10 = vld [vmem:[#allocation17 + $0x158] sm:$0xff] }
 0x682   :  { %v1164_v16 = vpop.f32.mrb[8].mxu0  ;;  %9075 = vmatprep.subr.bf16.mxu0 %v9074_v15  ;;  %v9104_v15 = vpack.c.bf16 %v2023_v3, %v2007_v1  ;;  %v2804_v1 = vld [vmem:[#allocation20 + $0x18] sm:$0xff] }
 0x683   :  { %1177 = vrot.lane.b32.xlu1 %v1164_v16, %s10437_s6  ;;  %v8859_v17 = vpop.f32.mrb[9].mxu0  ;;  %v2050_v16 = vld [vmem:[#allocation17 + $0x198] sm:$0xff] }
 0x684   :  { %v2031_v17 = vld [vmem:[#allocation17 + $0x100] sm:$0xff]  ;;  %v9082_v19 = vpack.c.bf16 %v2050_v16, %v2034_v11  ;;  %v2058_v11 = vld [vmem:[#allocation17 + $0x1d8] sm:$0xff]  ;;  %v9112_v16 = vpack.c.bf16 %v2025_v5, %v2009_v4  ;;  %v2835_v5 = vld [vmem:[#allocation20 + $0x110] sm:$0xff] }
 0x685   :  { %v9076_v21 = vpack.c.bf16 %v2047_v18, %v2031_v17  ;;  %v2039_v17 = vld [vmem:[#allocation17 + $0x140] sm:$0xff]  ;;  %v9114_v23 = vpack.c.bf16 %v2058_v11, %v2042_v10  ;;  %v2854_v10 = vld [vmem:[#allocation20 + $0x1a8] sm:$0xff] }
 0x686   :  { %v2055_v18 = vld [vmem:[#allocation17 + $0x1c0] sm:$0xff] }
 0x687   :  { %9077 = vmatpush1.bf16.msra.mxu0 %v9076_v21  ;;  %v2057_v21 = vld [vmem:[#allocation17 + $0x1d0] sm:$0xff] }
 0x6b3   :  { %v1346_v25 = vpop.f32.mrb[10].mxu0 }
 0x6b4   :  { %v8869_v26 = vpop.f32.mrb[11].mxu0 }
 0x6b5   :  { %v2020_v26 = vld [vmem:[#allocation17 + $0xa8] sm:$0xff] }
 0x6b7   :  { %v1511_v27 = vpop.f32.mrb[12].mxu0 }
 0x6b8   :  { %1846 = vrot.lane.b32.xlu0 %v1511_v27, %s10403_s26  ;;  %v8879_v28 = vpop.f32.mrb[13].mxu0  ;;  %v2006_v27 = vld [vmem:[#allocation17 + $0x38] sm:$0xff] }
 0x6bb   :  { %v1676_v29 = vpop.f32.mrb[14].mxu0 }
 0x6bc   :  { %1850 = vrot.lane.b32.xlu0 %v1676_v29, %s11952_s11  ;;  %v8889_v30 = vpop.f32.mrb[15].mxu0  ;;  %v2022_v29 = vld [vmem:[#allocation17 + $0xb8] sm:$0xff] }
 0x6bd   :  { %v9094_v30 = vpack.c.bf16 %v2022_v29, %v2006_v27  ;;  %v2030_v27 = vld [vmem:[#allocation17 + $0xf8] sm:$0xff] }
 0x6bf   :  { %v1841_v31 = vpop.f32.mrb[16].mxu0 }
 0x6c0   :  { %1854 = vrot.lane.b32.xlu1 %v1841_v31, %s10437_s6  ;;  %v8899_v32 = vpop.f32.mrb[17].mxu0 }
 0x6ed   :  { %v1170_v33 = vpop.permute.xlu0 %1169 }
 0x6ee   :  { %v1180_v35 = vsel %vm510_vm4, %v669_v7, %v1170_v33  ;;  %v2017_v7 = vld [vmem:[#allocation17 + $0x90] sm:$0xff] }
 0x6ef   :  { %v9080_v8 = vpack.c.bf16 %v2017_v7, %v2001_v6  ;;  %v9110_v7 = vpack.c.bf16 %v2026_v63, %v2010_v62  ;;  %v2852_v62 = vld [vmem:[#allocation20 + $0x198] sm:$0xff] }
 0x6f1   :  { %v1174_v34 = vpop.permute.xlu1 %1173 }
 0x6f2   :  { %v1182_v36 = vsel %vm1181_vm5, %v1180_v35, %v1174_v34 }
 0x6f5   :  { %v1178_v37 = vpop.permute.xlu1 %1177 }
 0x6f6   :  { %v1184_v38 = vsel %vm1183_vm6, %v1182_v36, %v1178_v37 }
 0x6f7   :  { %8908 = vmatprep.mubr.msk.f32.mxu1 %vm423_vm2, %v1184_v38  ;;  %v7933_v38 = vld [vmem:[#allocation14] ss:$0 sm:$0xff] }
 0x72a   :  { %v1847_v39 = vpop.permute.xlu0 %1846 }
 0x72b   :  { %v1857_v41 = vsel %vm510_vm4, %v1346_v25, %v1847_v39  ;;  %v2004_v25 = vld [vmem:[#allocation17 + $0x28] sm:$0xff]  ;;  %v2003_v39 = vld [vmem:[#allocation17 + $0x20] sm:$0xff] }
 0x72c   :  { %v9086_v28 = vpack.c.bf16 %v2020_v26, %v2004_v25  ;;  %v2028_v25 = vld [vmem:[#allocation17 + $0xe8] sm:$0xff]  ;;  %v2014_v26 = vld [vmem:[#allocation17 + $0x78] sm:$0xff] }
 0x72e   :  { %v1851_v40 = vpop.permute.xlu0 %1850  ;;  %9087 = vmatprep.subr.bf16.mxu0 %v9086_v28  ;;  %v9108_v28 = vpack.c.bf16 %v2055_v18, %v2039_v17  ;;  %v2806_v17 = vld [vmem:[#allocation20 + $0x28] sm:$0xff] }
 0x72f   :  { %v1858_v42 = vsel %vm1181_vm5, %v1857_v41, %v1851_v40  ;;  %v2019_v41 = vld [vmem:[#allocation17 + $0xa0] sm:$0xff] }
 0x732   :  { %v1855_v43 = vpop.permute.xlu1 %1854 }
 0x733   :  { %v1859_v44 = vsel %vm1183_vm6, %v1858_v42, %v1855_v43  ;;  %v2005_v42 = vld [vmem:[#allocation17 + $0x30] sm:$0xff] }
 0x734   :  { %8909 = vmatmul.mubr.msk.f32.vlgmr.msra.gmra.mrb[18].mxu1 %vm423_vm2, %v1859_v44  ;;  %v2021_v43 = vld [vmem:[#allocation17 + $0xb0] sm:$0xff]  ;;  %v7934_v44 = vld [vmem:[#allocation16] ss:$0 sm:$0xff] }
 0x735   :  { %2294 = vmatprep.mubr.f32.mxu1 %v10424_v14  ;;  %9081 = vmatpush1.bf16.msra.mxu1 %v9080_v8  ;;  %v2040_v8 = vld [vmem:[#allocation17 + $0x148] sm:$0xff] }
 0x736   :  { %9083 = vmatprep.subr.bf16.mxu1 %v9082_v19  ;;  %v2041_v19 = vld [vmem:[#allocation17 + $0x150] sm:$0xff]  ;;  %v9106_v22 = vpack.c.bf16 %v2056_v9, %v2040_v8  ;;  %v2822_v8 = vld [vmem:[#allocation20 + $0xa8] sm:$0xff]  ;;  %v2853_v9 = vld [vmem:[#allocation20 + $0x1a0] sm:$0xff] }
 0x737   :  { %v9116_v29 = vpack.c.bf16 %v2057_v21, %v2041_v19  ;;  %v9174_v19 = vpack.c.bf16 %v2854_v10, %v2853_v9  ;;  %v2837_v21 = vld [vmem:[#allocation20 + $0x120] sm:$0xff]  ;;  %v2832_v9 = vld [vmem:[#allocation20 + $0xf8] sm:$0xff]  ;;  %v2863_v10 = vld [vmem:[#allocation20 + $0x1f0] sm:$0xff] }
 0x739   :  { %9085 = vmatpush1.bf16.msra.mxu1 %v9084_v24  ;;  %v2012_v24 = vld [vmem:[#allocation17 + $0x68] sm:$0xff] }
 0x73a   :  { %9095 = vmatprep.subr.bf16.mxu1 %v9094_v30  ;;  %v2011_v30 = vld [vmem:[#allocation17 + $0x60] sm:$0xff] }
 0x807   :  { %v8910_v46 = vpop.f32.mrb[18].mxu1 }
 0x808   :  { %v1949_v47 = vadd.f32 %v8910_v46, %v7930_v45  ;;  %v1943_v48 = vpop.f32.mrb[19].mxu1 }
 0x809   :  { %v1944_v49 = vadd.f32 %v7930_v45, %v1943_v48  ;;  %v2036_v45 = vld [vmem:[#allocation17 + $0x128] sm:$0xff]  ;;  %v2038_v48 = vld [vmem:[#allocation17 + $0x138] sm:$0xff] }
 0x80a   :  { %v1953_v50 = vadd.f32 %v1949_v47, %v10853_v13  ;;  %v2052_v47 = vld [vmem:[#allocation17 + $0x1a8] sm:$0xff] }
 0x80b   :  { %v1952_v20 = vadd.f32 %v1944_v49, %v10851_v12  ;;  %v2054_v49 = vld [vmem:[#allocation17 + $0x1b8] sm:$0xff] }
 0x80c   :  { %v1959_v51 = vsel %vm423_vm2, %v1953_v50, 0.0 }
 0x80d   :  { %1960 = vadd.xlane.f32.xlu1 %v1959_v51  ;;  %v1956_v52 = vsel %vm423_vm2, %v1952_v20, 0.0  ;;  %v9096_v51 = vpack.c.bf16 %v2021_v43, %v2005_v42  ;;  %v2043_v42 = vld [vmem:[#allocation17 + $0x160] sm:$0xff] }
 0x80e   :  { %1957 = vadd.xlane.f32.xlu0 %v1956_v52  ;;  %v2035_v52 = vld [vmem:[#allocation17 + $0x120] sm:$0xff] }
 0x80f   :  { %v2059_v43 = vld [vmem:[#allocation17 + $0x1e0] sm:$0xff] }
 0x89a   :  { %v1961_v53 = vpop.xlane.xlu1 %1960 }
 0x89b   :  { %v1964_v54 = vmul.f32 0.03125, %v1961_v53  ;;  %v1958_v55 = vpop.xlane.xlu0 %1957 }
 0x89c   :  { %v1963_v56 = vmul.f32 0.03125, %v1958_v55  ;;  %v2051_v55 = vld [vmem:[#allocation17 + $0x1a0] sm:$0xff] }
 0x89d   :  { %v11030_v57 = vsub.f32 %v1953_v50, %v1964_v54  ;;  %v9092_v0 = vpack.c.bf16 %v2051_v55, %v2035_v52  ;;  %v2802_v55 = vld [vmem:[#allocation20 + $0x8] sm:$0xff] }
 0x89e   :  { %v1965_v58 = vsub.f32 %v1952_v20, %v1963_v56  ;;  %v9088_v20 = vpack.c.bf16 %v2019_v41, %v2003_v39  ;;  %v2037_v56 = vld [vmem:[#allocation17 + $0x130] sm:$0xff]  ;;  %v2062_v39 = vld [vmem:[#allocation17 + $0x1f8] sm:$0xff] }
 0x89f   :  { %v1968_v13 = vmul.f32 %v11030_v57, %v11030_v57 }
 0x8a0   :  { %v1967_v59 = vmul.f32 %v1965_v58, %v1965_v58 }
 0x8a1   :  { %v1972_v12 = vsel %vm423_vm2, %v1968_v13, 0.0  ;;  %v2008_v13 = vld [vmem:[#allocation17 + $0x48] sm:$0xff] }
 0x8a2   :  { %v1969_v60 = vsel %vm423_vm2, %v1967_v59, 0.0  ;;  %v9090_v59 = vpack.c.bf16 %v2052_v47, %v2036_v45  ;;  %v9102_v6 = vpack.c.bf16 %v2024_v61, %v2008_v13  ;;  %v2061_v45 = vld [vmem:[#allocation17 + $0x1f0] sm:$0xff] }
 0x8a3   :  { %1970 = vadd.xlane.f32.xlu0 %v1969_v60  ;;  %v9098_v60 = vpack.c.bf16 %v2054_v49, %v2038_v48  ;;  %v2817_v48 = vld [vmem:[#allocation20 + $0x80] sm:$0xff]  ;;  %v2818_v49 = vld [vmem:[#allocation20 + $0x88] sm:$0xff]  ;;  %v2819_v13 = vld [vmem:[#allocation20 + $0x90] sm:$0xff] }
 0x8a4   :  { %v2851_v61 = vld [vmem:[#allocation20 + $0x190] sm:$0xff] }
 0x8a5   :  { %v9170_v4 = vpack.c.bf16 %v2852_v62, %v2851_v61  ;;  %v2862_v61 = vld [vmem:[#allocation20 + $0x1e8] sm:$0xff] }
 0x8a7   :  { %1973 = vadd.xlane.f32.xlu0 %v1972_v12 }
 0x930   :  { %v1971_v31 = vpop.xlane.xlu0 %1970 }
 0x931   :  { %v1975_v32 = vmul.f32 0.03125, %v1971_v31  ;;  %v2027_v31 = vld [vmem:[#allocation17 + $0xe0] sm:$0xff] }
 0x933   :  { %v1977_v33 = vadd.f32 1e-05, %v1975_v32  ;;  %v2013_v32 = vld [vmem:[#allocation17 + $0x70] sm:$0xff] }
 0x934   :  { %v1974_v34 = vpop.xlane.xlu0 %1973 }
 0x935   :  { %9881 = vrsqrt.f32 %v1977_v33  ;;  %v1976_v35 = vmul.f32 0.03125, %v1974_v34  ;;  %v2029_v33 = vld [vmem:[#allocation17 + $0xf0] sm:$0xff]  ;;  %v9118_v34 = vpack.c.bf16 %v2028_v25, %v2012_v24  ;;  %v2824_v24 = vld [vmem:[#allocation20 + $0xb8] sm:$0xff] }
 0x936   :  { %v9128_v41 = vpack.c.bf16 %v2029_v33, %v2013_v32  ;;  %v2855_v25 = vld [vmem:[#allocation20 + $0x1b0] sm:$0xff] }
 0x937   :  { %v1978_v36 = vadd.f32 1e-05, %v1976_v35  ;;  %v9126_v35 = vpack.c.bf16 %v2030_v27, %v2014_v26  ;;  %v2856_v26 = vld [vmem:[#allocation20 + $0x1b8] sm:$0xff]  ;;  %v2839_v33 = vld [vmem:[#allocation20 + $0x130] sm:$0xff] }
 0x938   :  { %v9178_v32 = vpack.c.bf16 %v2856_v26, %v2855_v25  ;;  %v2882_v25 = vld [vmem:[#allocation20 + $0x288] sm:$0xff]  ;;  %v2913_v26 = vld [vmem:[#allocation20 + $0x380] sm:$0xff] }
 0x939   :  { %9883 = vrsqrt.f32 %v1978_v36  ;;  %v2044_v36 = vld [vmem:[#allocation17 + $0x168] sm:$0xff] }
 0x93f   :  { %v9882_v37 = vpop.eup %9881 }
 0x940   :  { %v1981_v40 = vmul.f32 %v9882_v37, %v1965_v58  ;;  %v2053_v58 = vld [vmem:[#allocation17 + $0x1b0] sm:$0xff]  ;;  %v2060_v37 = vld [vmem:[#allocation17 + $0x1e8] sm:$0xff] }
 0x942   :  { %v1989_v46 = vmul.f32 %v7933_v38, %v1981_v40  ;;  %v9120_v40 = vpack.c.bf16 %v2027_v31, %v2011_v30  ;;  %v2808_v30 = vld [vmem:[#allocation20 + $0x38] sm:$0xff] }
 0x943   :  { %v9884_v50 = vpop.eup %9883 }
 0x944   :  { %v11036_v53 = vadd.f32 %v7934_v44, %v1989_v46  ;;  %v1982_v54 = vmul.f32 %v9884_v50, %v11030_v57  ;;  %v9100_v57 = vpack.c.bf16 %v2053_v58, %v2037_v56  ;;  %v9122_v46 = vpack.c.bf16 %v2060_v37, %v2044_v36  ;;  %v2849_v50 = vld [vmem:[#allocation20 + $0x180] sm:$0xff]  ;;  %v2826_v36 = vld [vmem:[#allocation20 + $0xc8] sm:$0xff] }
 0x945   :  { %v9134_v56 = vpack.c.bf16 %v2818_v49, %v2817_v48  ;;  %v2857_v37 = vld [vmem:[#allocation20 + $0x1c0] sm:$0xff]  ;;  %v2828_v48 = vld [vmem:[#allocation20 + $0xd8] sm:$0xff]  ;;  %v2859_v49 = vld [vmem:[#allocation20 + $0x1d0] sm:$0xff] }
 0x946   :  { %v1990_v12 = vmul.f32 %v7933_v38, %v1982_v54  ;;  %7935 = vmatmul.mubr.msk.f32.vlgmr.msra.gmra.mrb[18].mxu0 %vm423_vm2, %v11036_v53  ;;  %7937 = vmatmul.mubr.msk.f32.vlgmr.msra.gmra.mrb[20].mxu1 %vm423_vm2, %v11036_v53  ;;  %v2046_v38 = vld [vmem:[#allocation17 + $0x178] sm:$0xff]  ;;  %v2801_v54 = vld [vmem:[#allocation20] sm:$0xff] }
 0x947   :  { %9089 = vmatpush1.bf16.msra.mxu0 %v9088_v20  ;;  %9097 = vmatpush1.bf16.msra.mxu1 %v9096_v51  ;;  %v9130_v47 = vpack.c.bf16 %v2062_v39, %v2046_v38  ;;  %v2850_v20 = vld [vmem:[#allocation20 + $0x188] sm:$0xff]  ;;  %v9124_v51 = vpack.c.bf16 %v2059_v43, %v2043_v42  ;;  %v9136_v63 = vpack.c.bf16 %v2802_v55, %v2801_v54  ;;  %v2812_v54 = vld [vmem:[#allocation20 + $0x58] sm:$0xff] }
 0x948   :  { %v11043_v2 = vadd.f32 %v7934_v44, %v1990_v12  ;;  %2223 = vmatprep.mubr.f32.mxu0 %v10424_v14  ;;  %2300 = vmatprep.mubr.f32.mxu1 %v10424_v14  ;;  %v2045_v44 = vld [vmem:[#allocation17 + $0x170] sm:$0xff]  ;;  %v9166_v58 = vpack.c.bf16 %v2850_v20, %v2849_v50  ;;  %v2820_v12 = vld [vmem:[#allocation20 + $0x98] sm:$0xff]  ;;  %v2858_v38 = vld [vmem:[#allocation20 + $0x1c8] sm:$0xff] }
 0x949   :  { %9091 = vmatprep.subr.bf16.mxu0 %v9090_v59  ;;  %9099 = vmatprep.subr.bf16.mxu1 %v9098_v60  ;;  %v9132_v52 = vpack.c.bf16 %v2061_v45, %v2045_v44  ;;  %v2833_v59 = vld [vmem:[#allocation20 + $0x100] sm:$0xff]  ;;  %v2834_v60 = vld [vmem:[#allocation20 + $0x108] sm:$0xff]  ;;  %v9138_v3 = vpack.c.bf16 %v2820_v12, %v2819_v13  ;;  %v9182_v44 = vpack.c.bf16 %v2858_v38, %v2857_v37  ;;  %v2860_v50 = vld [vmem:[#allocation20 + $0x1d8] sm:$0xff] }
 0x94a   :  { %7936 = vmatmul.mubr.msk.f32.gmra.mrb[20].mxu0 %vm423_vm2, %v11043_v2  ;;  %7938 = vmatmul.mubr.msk.f32.gmra.mrb[22].mxu1 %vm423_vm2, %v11043_v2  ;;  %v2810_v42 = vld [vmem:[#allocation20 + $0x48] sm:$0xff]  ;;  %v2841_v45 = vld [vmem:[#allocation20 + $0x140] sm:$0xff] }
 0x94b   :  { %9093 = vmatpush1.bf16.msra.mxu0 %v9092_v0  ;;  %9101 = vmatpush1.bf16.msra.mxu1 %v9100_v57  ;;  %v9168_v0 = vpack.c.bf16 %v2834_v60, %v2833_v59  ;;  %v2803_v57 = vld [vmem:[#allocation20 + $0x10] sm:$0xff]  ;;  %v2844_v59 = vld [vmem:[#allocation20 + $0x158] sm:$0xff]  ;;  %v2829_v60 = vld [vmem:[#allocation20 + $0xe0] sm:$0xff] }
 0x94c   :  { %2371 = vmatprep.mubr.f32.mxu0 %v10424_v14  ;;  %2448 = vmatprep.mubr.f32.mxu1 %v10424_v14  ;;  %v9140_v11 = vpack.c.bf16 %v2804_v1, %v2803_v57  ;;  %v2830_v13 = vld [vmem:[#allocation20 + $0xe8] sm:$0xff]  ;;  %v2861_v12 = vld [vmem:[#allocation20 + $0x1e0] sm:$0xff] }
 0x94d   :  { %9103 = vmatprep.subr.bf16.mxu0 %v9102_v6  ;;  %9111 = vmatprep.subr.bf16.mxu1 %v9110_v7  ;;  %v2836_v6 = vld [vmem:[#allocation20 + $0x118] sm:$0xff]  ;;  %v2821_v7 = vld [vmem:[#allocation20 + $0xa0] sm:$0xff]  ;;  %v9158_v57 = vpack.c.bf16 %v2830_v13, %v2829_v60  ;;  %v9190_v1 = vpack.c.bf16 %v2862_v61, %v2861_v12  ;;  %v2867_v61 = vld [vmem:[#allocation20 + $0x210] sm:$0xff] }
 0x94e   :  { %7939 = vmatmul.mubr.msk.f32.vlgmr.msra.gmra.mrb[22].mxu0 %vm423_vm2, %v11036_v53  ;;  %7941 = vmatmul.mubr.msk.f32.vlgmr.msra.gmra.mrb[24].mxu1 %vm423_vm2, %v11036_v53  ;;  %v9142_v18 = vpack.c.bf16 %v2822_v8, %v2821_v7  ;;  %v2831_v8 = vld [vmem:[#allocation20 + $0xf0] sm:$0xff] }
 0x94f   :  { %9105 = vmatpush1.bf16.msra.mxu0 %v9104_v15  ;;  %9113 = vmatpush1.bf16.msra.mxu1 %v9112_v16  ;;  %v9172_v15 = vpack.c.bf16 %v2836_v6, %v2835_v5  ;;  %v2805_v16 = vld [vmem:[#allocation20 + $0x20] sm:$0xff]  ;;  %v2846_v5 = vld [vmem:[#allocation20 + $0x168] sm:$0xff] }
 0x950   :  { %2377 = vmatprep.mubr.f32.mxu0 %v10424_v14  ;;  %2454 = vmatprep.mubr.f32.mxu1 %v10424_v14  ;;  %v9144_v27 = vpack.c.bf16 %v2806_v17, %v2805_v16  ;;  %v2815_v16 = vld [vmem:[#allocation20 + $0x70] sm:$0xff]  ;;  %v2816_v17 = vld [vmem:[#allocation20 + $0x78] sm:$0xff] }
 0x951   :  { %9107 = vmatprep.subr.bf16.mxu0 %v9106_v22  ;;  %9115 = vmatprep.subr.bf16.mxu1 %v9114_v23  ;;  %v2838_v22 = vld [vmem:[#allocation20 + $0x128] sm:$0xff]  ;;  %v2823_v23 = vld [vmem:[#allocation20 + $0xb0] sm:$0xff] }
 0x952   :  { %7940 = vmatmul.mubr.msk.f32.gmra.mrb[24].mxu0 %vm423_vm2, %v11043_v2  ;;  %7942 = vmatmul.mubr.msk.f32.gmra.mrb[26].mxu1 %vm423_vm2, %v11043_v2  ;;  %v9146_v31 = vpack.c.bf16 %v2824_v24, %v2823_v23  ;;  %v2881_v24 = vld [vmem:[#allocation20 + $0x280] sm:$0xff] }
 0x953   :  { %9109 = vmatpush1.bf16.msra.mxu0 %v9108_v28  ;;  %9117 = vmatpush1.bf16.msra.mxu1 %v9116_v29  ;;  %v9176_v28 = vpack.c.bf16 %v2838_v22, %v2837_v21  ;;  %v2807_v29 = vld [vmem:[#allocation20 + $0x30] sm:$0xff]  ;;  %v2848_v22 = vld [vmem:[#allocation20 + $0x178] sm:$0xff] }
 0x954   :  { %2525 = vmatprep.mubr.f32.mxu0 %v10424_v14  ;;  %2602 = vmatprep.mubr.f32.mxu1 %v10424_v14  ;;  %v9148_v39 = vpack.c.bf16 %v2808_v30, %v2807_v29  ;;  %v2847_v21 = vld [vmem:[#allocation20 + $0x170] sm:$0xff]  ;;  %v2067_v30 = vlaneseq }
 0x955   :  { %9119 = vmatprep.subr.bf16.mxu0 %v9118_v34  ;;  %9127 = vmatprep.subr.bf16.mxu1 %v9126_v35  ;;  %v2840_v34 = vld [vmem:[#allocation20 + $0x138] sm:$0xff]  ;;  %v2825_v35 = vld [vmem:[#allocation20 + $0xc0] sm:$0xff]  ;;  %v9196_v23 = vpack.c.bf16 %v2848_v22, %v2847_v21  ;;  %v2886_v21 = vld [vmem:[#allocation20 + $0x2a8] sm:$0xff] }
 0x956   :  { %7943 = vmatmul.mubr.msk.f32.vlgmr.msra.gmra.mrb[26].mxu0 %vm423_vm2, %v11036_v53  ;;  %7945 = vmatmul.mubr.msk.f32.vlgmr.msra.gmra.mrb[28].mxu1 %vm423_vm2, %v11036_v53  ;;  %v9150_v43 = vpack.c.bf16 %v2826_v36, %v2825_v35  ;;  %v2917_v22 = vld [vmem:[#allocation20 + $0x3a0] sm:$0xff] }
 0x957   :  { %9121 = vmatpush1.bf16.msra.mxu0 %v9120_v40  ;;  %9129 = vmatpush1.bf16.msra.mxu1 %v9128_v41  ;;  %v9180_v40 = vpack.c.bf16 %v2840_v34, %v2839_v33  ;;  %v2809_v41 = vld [vmem:[#allocation20 + $0x40] sm:$0xff] }
 0x958   :  { %2531 = vmatprep.mubr.f32.mxu0 %v10424_v14  ;;  %2608 = vmatprep.mubr.f32.mxu1 %v10424_v14  ;;  %v9152_v20 = vpack.c.bf16 %v2810_v42, %v2809_v41  ;;  %v11095_v34 = vld [vmem:[#allocation19] sm:$0xff]  ;;  %v2866_v42 = vld [vmem:[#allocation20 + $0x208] sm:$0xff] }
 0x959   :  { %9123 = vmatprep.subr.bf16.mxu0 %v9122_v46  ;;  %9131 = vmatprep.subr.bf16.mxu1 %v9130_v47  ;;  %v2842_v46 = vld [vmem:[#allocation20 + $0x148] sm:$0xff]  ;;  %v2827_v47 = vld [vmem:[#allocation20 + $0xd0] sm:$0xff]  ;;  %v2865_v41 = vld [vmem:[#allocation20 + $0x200] sm:$0xff] }
 0x95a   :  { %7944 = vmatmul.mubr.msk.f32.gmra.mrb[28].mxu0 %vm423_vm2, %v11043_v2  ;;  %7946 = vmatmul.mubr.msk.f32.gmra.mrb[30].mxu1 %vm423_vm2, %v11043_v2  ;;  %v9154_v55 = vpack.c.bf16 %v2828_v48, %v2827_v47  ;;  %v2898_v47 = vld [vmem:[#allocation20 + $0x308] sm:$0xff]  ;;  %v2883_v48 = vld [vmem:[#allocation20 + $0x290] sm:$0xff]  ;;  %v9200_v60 = vpack.c.bf16 %v2866_v42, %v2865_v41 }
 0x95b   :  { %9125 = vmatpush1.bf16.msra.mxu0 %v9124_v51  ;;  %9133 = vmatpush1.bf16.msra.mxu1 %v9132_v52  ;;  %v9184_v51 = vpack.c.bf16 %v2842_v46, %v2841_v45  ;;  %v2811_v52 = vld [vmem:[#allocation20 + $0x50] sm:$0xff]  ;;  %v2897_v46 = vld [vmem:[#allocation20 + $0x300] sm:$0xff] }
 0x95c   :  { %2679 = vmatprep.mubr.f32.mxu0 %v10424_v14  ;;  %2756 = vmatprep.mubr.f32.mxu1 %v10424_v14  ;;  %v9156_v62 = vpack.c.bf16 %v2812_v54, %v2811_v52  ;;  %v2884_v52 = vld [vmem:[#allocation20 + $0x298] sm:$0xff]  ;;  %v2915_v54 = vld [vmem:[#allocation20 + $0x390] sm:$0xff]  ;;  %v9232_v13 = vpack.c.bf16 %v2898_v47, %v2897_v46  ;;  %v2902_v46 = vld [vmem:[#allocation20 + $0x328] sm:$0xff] }
 0x95d   :  { %9135 = vmatprep.subr.bf16.mxu0 %v9134_v56  ;;  %9167 = vmatprep.subr.bf16.mxu1 %v9166_v58  ;;  %v9186_v56 = vpack.c.bf16 %v2860_v50, %v2859_v49  ;;  %v2843_v58 = vld [vmem:[#allocation20 + $0x150] sm:$0xff] }
 0x95e   :  { %7947 = vmatmul.mubr.msk.f32.vlgmr.msra.gmra.mrb[30].mxu0 %vm423_vm2, %v11036_v53  ;;  %7949 = vmatmul.mubr.msk.f32.vlgmr.msra.gmra.mrb[32].mxu1 %vm423_vm2, %v11036_v53  ;;  %v2887_v47 = vld [vmem:[#allocation20 + $0x2b0] sm:$0xff] }
 0x95f   :  { %2685 = vmatprep.mubr.f32.mxu0 %v10424_v14  ;;  %2762 = vmatprep.mubr.f32.mxu1 %v10424_v14 }
 0x960   :  { %9137 = vmatpush3.bf16.msra.mxu0 %v9136_v63  ;;  %9169 = vmatpush3.bf16.msra.mxu1 %v9168_v0  ;;  %v9188_v63 = vpack.c.bf16 %v2844_v59, %v2843_v58  ;;  %v2813_v0 = vld [vmem:[#allocation20 + $0x60] sm:$0xff] }
 0x961   :  { %9139 = vmatprep.subr.bf16.mxu0 %v9138_v3  ;;  %9171 = vmatprep.subr.bf16.mxu1 %v9170_v4  ;;  %v2814_v3 = vld [vmem:[#allocation20 + $0x68] sm:$0xff]  ;;  %v2845_v4 = vld [vmem:[#allocation20 + $0x160] sm:$0xff] }
 0x962   :  { %7948 = vmatmul.mubr.msk.f32.gmra.mrb[32].mxu0 %vm423_vm2, %v11043_v2  ;;  %7950 = vmatmul.mubr.msk.f32.gmra.mrb[34].mxu1 %vm423_vm2, %v11043_v2  ;;  %v9160_v6 = vpack.c.bf16 %v2814_v3, %v2813_v0  ;;  %v9192_v7 = vpack.c.bf16 %v2846_v5, %v2845_v4  ;;  %v2868_v4 = vld [vmem:[#allocation20 + $0x218] sm:$0xff]  ;;  %v2899_v5 = vld [vmem:[#allocation20 + $0x310] sm:$0xff] }
 0x964   :  { %9141 = vmatpush3.bf16.msra.mxu0 %v9140_v11  ;;  %9173 = vmatpush3.bf16.msra.mxu1 %v9172_v15  ;;  %v9162_v11 = vpack.c.bf16 %v2832_v9, %v2831_v8  ;;  %v2864_v15 = vld [vmem:[#allocation20 + $0x1f8] sm:$0xff] }
 0x965   :  { %9143 = vmatprep.subr.bf16.mxu0 %v9142_v18  ;;  %9175 = vmatprep.subr.bf16.mxu1 %v9174_v19  ;;  %v9194_v18 = vpack.c.bf16 %v2864_v15, %v2863_v10  ;;  %v9164_v19 = vpack.c.bf16 %v2816_v17, %v2815_v16  ;;  %v2900_v15 = vld [vmem:[#allocation20 + $0x318] sm:$0xff]  ;;  %v2885_v16 = vld [vmem:[#allocation20 + $0x2a0] sm:$0xff] }
 0x968   :  { %9145 = vmatpush3.bf16.msra.mxu0 %v9144_v27  ;;  %9177 = vmatpush3.bf16.msra.mxu1 %v9176_v28  ;;  %v9198_v27 = vpack.c.bf16 %v2882_v25, %v2881_v24  ;;  %v2914_v28 = vld [vmem:[#allocation20 + $0x388] sm:$0xff]  ;;  %v2869_v24 = vld [vmem:[#allocation20 + $0x220] sm:$0xff] }
 0x969   :  { %9147 = vmatprep.subr.bf16.mxu0 %v9146_v31  ;;  %9179 = vmatprep.subr.bf16.mxu1 %v9178_v32  ;;  %v9230_v29 = vpack.c.bf16 %v2914_v28, %v2913_v26  ;;  %v11087_v31 = vshrl.u32 %v2067_v30, 7  ;;  %v9236_v30 = vpack.c.bf16 %v2900_v15, %v2899_v5  ;;  %v2890_v5 = vld [vmem:[#allocation20 + $0x2c8] sm:$0xff]  ;;  %v2873_v15 = vld [vmem:[#allocation20 + $0x240] sm:$0xff] }
 0x96b   :  { %v11090_v32 = vsub.s32 0, %v11087_v31  ;;  %v11093_v33 = vsub.s32 2, %v11087_v31  ;;  %v11098_v35 = vsub.s32 1, %v11087_v31  ;;  %v11101_v36 = vsub.s32 3, %v11087_v31 }
 0x96c   :  { %9149 = vmatpush3.bf16.msra.mxu0 %v9148_v39  ;;  %9181 = vmatpush3.bf16.msra.mxu1 %v9180_v40  ;;  %v11115_v59 = vsub.s32 7, %v11087_v31 }
 0x96d   :  { %9151 = vmatprep.subr.bf16.mxu0 %v9150_v43  ;;  %9183 = vmatprep.subr.bf16.mxu1 %v9182_v44  ;;  %v2070_v37 = vrot.slane %v11095_v34, %v11090_v32  ;;  %v2078_v38 = vrot.slane %v11095_v34, %v11093_v33  ;;  %v2074_v39 = vrot.slane %v11095_v34, %v11098_v35  ;;  %v11112_v43 = vsub.s32 5, %v11087_v31 }
 0x96e   :  { %v2082_v40 = vrot.slane %v11095_v34, %v11101_v36 }
 0x96f   :  { %v11119_v12 = vrot.slane %v11095_v34, %v11112_v43 }
 0x970   :  { %9153 = vmatpush3.bf16.msra.mxu0 %v9152_v20  ;;  %9185 = vmatpush3.bf16.msra.mxu1 %v9184_v51 }
 0x971   :  { %9155 = vmatprep.subr.bf16.mxu0 %v9154_v55  ;;  %9187 = vmatprep.subr.bf16.mxu1 %v9186_v56  ;;  %v2916_v55 = vld [vmem:[#allocation20 + $0x398] sm:$0xff] }
 0x972   :  { %v9234_v3 = vpack.c.bf16 %v2916_v55, %v2915_v54 }
 0x974   :  { %9157 = vmatpush3.bf16.msra.mxu0 %v9156_v62  ;;  %9189 = vmatpush3.bf16.msra.mxu1 %v9188_v63 }
 0x975   :  { %9159 = vmatprep.subr.bf16.mxu0 %v9158_v57  ;;  %9191 = vmatprep.subr.bf16.mxu1 %v9190_v1  ;;  %v9202_v1 = vpack.c.bf16 %v2884_v52, %v2883_v48 }
 0x978   :  { %9161 = vmatpush3.bf16.msra.mxu0 %v9160_v6  ;;  %9193 = vmatpush3.bf16.msra.mxu1 %v9192_v7 }
 0x979   :  { %9163 = vmatprep.subr.bf16.mxu0 %v9162_v11  ;;  %9195 = vmatprep.subr.bf16.mxu1 %v9194_v18 }
 0x97c   :  { %9165 = vmatpush3.bf16.msra.mxu0 %v9164_v19  ;;  %9197 = vmatpush3.bf16.msra.mxu1 %v9196_v23  ;;  %v11123_v19 = vrot.slane %v11095_v34, %v11115_v59  ;;  %v2918_v23 = vld [vmem:[#allocation20 + $0x3a8] sm:$0xff] }
 0x97d   :  { %9199 = vmatprep.subr.bf16.mxu0 %v9198_v27  ;;  %9231 = vmatprep.subr.bf16.mxu1 %v9230_v29  ;;  %v9204_v29 = vpack.c.bf16 %v2868_v4, %v2867_v61  ;;  %v2872_v61 = vld [vmem:[#allocation20 + $0x238] sm:$0xff]  ;;  %v2889_v4 = vld [vmem:[#allocation20 + $0x2c0] sm:$0xff] }
 0xa19   :  { %v2219_v44 = vpop.f32.mrb[18].mxu0  ;;  %v2296_v45 = vpop.f32.mrb[20].mxu1 }
 0xa1a   :  { %v2220_v49 = vadd.f32 %v2219_v44, %v2070_v37  ;;  %v2297_v50 = vadd.f32 %v2296_v45, %v2078_v38  ;;  %v2221_v20 = vpop.f32.mrb[19].mxu0  ;;  %v2298_v51 = vpop.f32.mrb[21].mxu1  ;;  %v9206_v44 = vpack.c.bf16 %v2886_v21, %v2885_v16  ;;  %v9238_v45 = vpack.c.bf16 %v2918_v23, %v2917_v22  ;;  %v2874_v16 = vld [vmem:[#allocation20 + $0x248] sm:$0xff]  ;;  %v2905_v23 = vld [vmem:[#allocation20 + $0x340] sm:$0xff] }
 0xa1b   :  { %v2222_v56 = vadd.f32 %v2221_v20, %v2074_v39  ;;  %v2299_v58 = vadd.f32 %v2298_v51, %v2082_v40  ;;  %v2919_v20 = vld [vmem:[#allocation20 + $0x3b0] sm:$0xff]  ;;  %v2920_v51 = vld [vmem:[#allocation20 + $0x3b8] sm:$0xff]  ;;  %v9214_v21 = vpack.c.bf16 %v2890_v5, %v2889_v4 }
 0xa1c   :  { %v2769_v6 = vmax.f32 %v2220_v49, 0.0  ;;  %v2771_v7 = vmax.f32 %v2297_v50, 0.0  ;;  %v2888_v50 = vld [vmem:[#allocation20 + $0x2b8] sm:$0xff] }
 0xa1d   :  { %v2770_v62 = vmax.f32 %v2222_v56, 0.0  ;;  %v2772_v63 = vmax.f32 %v2299_v58, 0.0  ;;  %v2225_v0 = vpop.f32.mrb[20].mxu0  ;;  %v2302_v57 = vpop.f32.mrb[22].mxu1 }
 0xa1e   :  { %v2226_v8 = vadd.f32 %v2225_v0, %v2070_v37  ;;  %v2303_v9 = vadd.f32 %v2302_v57, %v2078_v38  ;;  %v2227_v10 = vpop.f32.mrb[21].mxu0  ;;  %v2304_v11 = vpop.f32.mrb[23].mxu1  ;;  %v2870_v37 = vld [vmem:[#allocation20 + $0x228] sm:$0xff]  ;;  %v2901_v38 = vld [vmem:[#allocation20 + $0x320] sm:$0xff]  ;;  %v9210_v0 = vpack.c.bf16 %v2888_v50, %v2887_v47  ;;  %v9242_v57 = vpack.c.bf16 %v2920_v51, %v2919_v20 }
 0xa1f   :  { %v2228_v17 = vadd.f32 %v2227_v10, %v2074_v39  ;;  %v2305_v18 = vadd.f32 %v2304_v11, %v2082_v40  ;;  %3128 = vmatprep.mubr.f32.mxu0 %v2770_v62  ;;  %3203 = vmatprep.mubr.f32.mxu1 %v2772_v63  ;;  %v9208_v58 = vpack.c.bf16 %v2870_v37, %v2869_v24  ;;  %v2906_v24 = vld [vmem:[#allocation20 + $0x348] sm:$0xff]  ;;  %v2893_v50 = vld [vmem:[#allocation20 + $0x2e0] sm:$0xff] }
 0xa20   :  { %3129 = vmatmul.mubr.f32.vlgmr.msra.gmra.mrb[34].mxu0 %v2769_v6  ;;  %3204 = vmatmul.mubr.f32.vlgmr.msra.gmra.mrb[36].mxu1 %v2771_v7  ;;  %v2785_v39 = vmax.f32 %v2226_v8, 0.0  ;;  %v2787_v40 = vmax.f32 %v2303_v9, 0.0  ;;  %v2921_v6 = vld [vmem:[#allocation20 + $0x3c0] sm:$0xff]  ;;  %v2922_v7 = vld [vmem:[#allocation20 + $0x3c8] sm:$0xff] }
 0xa21   :  { %v2786_v25 = vmax.f32 %v2228_v17, 0.0  ;;  %v2788_v26 = vmax.f32 %v2305_v18, 0.0  ;;  %9201 = vmatpush3.bf16.msra.mxu0 %v9200_v60  ;;  %9233 = vmatpush3.bf16.msra.mxu1 %v9232_v13  ;;  %v11125_v27 = vpop.f32.mrb[22].mxu0  ;;  %v11127_v28 = vpop.f32.mrb[24].mxu1  ;;  %v9240_v60 = vpack.c.bf16 %v2902_v46, %v2901_v38  ;;  %v2871_v13 = vld [vmem:[#allocation20 + $0x230] sm:$0xff]  ;;  %v9246_v22 = vpack.c.bf16 %v2922_v7, %v2921_v6  ;;  %v2894_v20 = vld [vmem:[#allocation20 + $0x2e8] sm:$0xff] }
 0xa22   :  { %v2375_v41 = vpop.f32.mrb[23].mxu0  ;;  %v2452_v42 = vpop.f32.mrb[25].mxu1  ;;  %9203 = vmatprep.subr.bf16.mxu0 %v9202_v1  ;;  %9235 = vmatprep.subr.bf16.mxu1 %v9234_v3  ;;  %v2903_v1 = vld [vmem:[#allocation20 + $0x330] sm:$0xff]  ;;  %v2904_v3 = vld [vmem:[#allocation20 + $0x338] sm:$0xff]  ;;  %v9212_v10 = vpack.c.bf16 %v2872_v61, %v2871_v13  ;;  %v2925_v51 = vld [vmem:[#allocation20 + $0x3e0] sm:$0xff]  ;;  %v9222_v5 = vpack.c.bf16 %v2894_v20, %v2893_v50 }
 0xa23   :  { %v2376_v48 = vadd.f32 %v2375_v41, %v11119_v12  ;;  %v2453_v49 = vadd.f32 %v2452_v42, %v11123_v19  ;;  %3133 = vmatprep.mubr.f32.mxu0 %v2786_v25  ;;  %3208 = vmatprep.mubr.f32.mxu1 %v2788_v26  ;;  %v9244_v11 = vpack.c.bf16 %v2904_v3, %v2903_v1  ;;  %v2891_v25 = vld [vmem:[#allocation20 + $0x2d0] sm:$0xff]  ;;  %v2892_v26 = vld [vmem:[#allocation20 + $0x2d8] sm:$0xff]  ;;  %v11163_v1 = vsub.s32 6, %v11087_v31  ;;  %v2909_v7 = vld [vmem:[#allocation20 + $0x360] sm:$0xff] }
 0xa24   :  { %3134 = vmatmul.mubr.f32.gmra.mrb[36].mxu0 %v2785_v39  ;;  %3209 = vmatmul.mubr.f32.gmra.mrb[38].mxu1 %v2787_v40  ;;  %v9216_v39 = vpack.c.bf16 %v2874_v16, %v2873_v15  ;;  %v9248_v40 = vpack.c.bf16 %v2906_v24, %v2905_v23  ;;  %v2875_v41 = vld [vmem:[#allocation20 + $0x250] sm:$0xff]  ;;  %v2876_v42 = vld [vmem:[#allocation20 + $0x258] sm:$0xff]  ;;  %v9218_v46 = vpack.c.bf16 %v2892_v26, %v2891_v25  ;;  %v2977_v50 = vld [vmem:[#allocation20 + $0x580] sm:$0xff] }
 0xa25   :  { %v2774_v52 = vmax.f32 %v2376_v48, 0.0  ;;  %v2776_v54 = vmax.f32 %v2453_v49, 0.0  ;;  %9205 = vmatpush3.bf16.msra.mxu0 %v9204_v29  ;;  %9237 = vmatpush3.bf16.msra.mxu1 %v9236_v30  ;;  %v11131_v55 = vpop.f32.mrb[24].mxu0  ;;  %v11133_v56 = vpop.f32.mrb[26].mxu1  ;;  %v2923_v29 = vld [vmem:[#allocation20 + $0x3d0] sm:$0xff]  ;;  %v2924_v30 = vld [vmem:[#allocation20 + $0x3d8] sm:$0xff]  ;;  %v9220_v13 = vpack.c.bf16 %v2876_v42, %v2875_v41 }
 0xa26   :  { %v11135_v62 = vpop.f32.mrb[25].mxu0  ;;  %v11137_v63 = vpop.f32.mrb[27].mxu1  ;;  %9207 = vmatprep.subr.bf16.mxu0 %v9206_v44  ;;  %9239 = vmatprep.subr.bf16.mxu1 %v9238_v45  ;;  %v9250_v47 = vpack.c.bf16 %v2924_v30, %v2923_v29  ;;  %v2907_v48 = vld [vmem:[#allocation20 + $0x350] sm:$0xff]  ;;  %v2908_v49 = vld [vmem:[#allocation20 + $0x358] sm:$0xff]  ;;  %v2978_v20 = vld [vmem:[#allocation20 + $0x588] sm:$0xff] }
 0xa27   :  { %3278 = vmatprep.mubr.f32.mxu0 %v2774_v52  ;;  %3353 = vmatprep.mubr.f32.mxu1 %v2776_v54  ;;  %v2926_v52 = vld [vmem:[#allocation20 + $0x3e8] sm:$0xff]  ;;  %v11156_v54 = vsub.s32 4, %v11087_v31  ;;  %v9252_v61 = vpack.c.bf16 %v2908_v49, %v2907_v48  ;;  %v2896_v15 = vld [vmem:[#allocation20 + $0x2f8] sm:$0xff]  ;;  %v2927_v16 = vld [vmem:[#allocation20 + $0x3f0] sm:$0xff] }
 0xa28   :  { %v9254_v6 = vpack.c.bf16 %v2926_v52, %v2925_v51  ;;  %v2879_v26 = vld [vmem:[#allocation20 + $0x270] sm:$0xff]  ;;  %v2880_v29 = vld [vmem:[#allocation20 + $0x278] sm:$0xff]  ;;  %v2945_v48 = vld [vmem:[#allocation20 + $0x480] sm:$0xff] }
 0xa29   :  { %9209 = vmatpush3.bf16.msra.mxu0 %v9208_v58  ;;  %9241 = vmatpush3.bf16.msra.mxu1 %v9240_v60  ;;  %v11139_v8 = vpop.f32.mrb[26].mxu0  ;;  %v11141_v9 = vpop.f32.mrb[28].mxu1  ;;  %v2911_v30 = vld [vmem:[#allocation20 + $0x370] sm:$0xff]  ;;  %v2946_v49 = vld [vmem:[#allocation20 + $0x488] sm:$0xff]  ;;  %v2929_v52 = vld [vmem:[#allocation20 + $0x400] sm:$0xff] }
 0xa2a   :  { %v11143_v17 = vpop.f32.mrb[27].mxu0  ;;  %v11145_v18 = vpop.f32.mrb[29].mxu1  ;;  %9211 = vmatprep.subr.bf16.mxu0 %v9210_v0  ;;  %9243 = vmatprep.subr.bf16.mxu1 %v9242_v57  ;;  %v2877_v0 = vld [vmem:[#allocation20 + $0x260] sm:$0xff]  ;;  %v2878_v57 = vld [vmem:[#allocation20 + $0x268] sm:$0xff] }
 0xa2b   :  { %v9224_v24 = vpack.c.bf16 %v2878_v57, %v2877_v0  ;;  %v11181_v51 = vld [vmem:[#allocation19 + $0x8] sm:$0xff]  ;;  %v9262_v0 = vpack.c.bf16 %v2946_v49, %v2945_v48  ;;  %v2961_v57 = vld [vmem:[#allocation20 + $0x500] sm:$0xff] }
 0xa2d   :  { %9213 = vmatpush3.bf16.msra.mxu0 %v9212_v10  ;;  %9245 = vmatpush3.bf16.msra.mxu1 %v9244_v11  ;;  %v11147_v37 = vpop.f32.mrb[28].mxu0  ;;  %v11149_v38 = vpop.f32.mrb[30].mxu1  ;;  %v2910_v10 = vld [vmem:[#allocation20 + $0x368] sm:$0xff]  ;;  %v2895_v11 = vld [vmem:[#allocation20 + $0x2f0] sm:$0xff] }
 0xa2e   :  { %v11151_v44 = vpop.f32.mrb[29].mxu0  ;;  %v11153_v45 = vpop.f32.mrb[31].mxu1  ;;  %9215 = vmatprep.subr.bf16.mxu0 %v9214_v21  ;;  %9247 = vmatprep.subr.bf16.mxu1 %v9246_v22  ;;  %v2928_v21 = vld [vmem:[#allocation20 + $0x3f8] sm:$0xff]  ;;  %v2086_v22 = vrot.slane %v11095_v34, %v11156_v54  ;;  %v9256_v25 = vpack.c.bf16 %v2910_v10, %v2909_v7  ;;  %v9226_v42 = vpack.c.bf16 %v2896_v15, %v2895_v11  ;;  %v2962_v7 = vld [vmem:[#allocation20 + $0x508] sm:$0xff] }
 0xa2f   :  { %v9294_v11 = vpack.c.bf16 %v2978_v20, %v2977_v50  ;;  %v2948_v15 = vld [vmem:[#allocation20 + $0x498] sm:$0xff] }
 0xa31   :  { %9217 = vmatpush3.bf16.msra.mxu0 %v9216_v39  ;;  %9249 = vmatpush3.bf16.msra.mxu1 %v9248_v40  ;;  %v11158_v58 = vpop.f32.mrb[30].mxu0  ;;  %v11160_v60 = vpop.f32.mrb[32].mxu1  ;;  %v2094_v39 = vrot.slane %v11095_v34, %v11163_v1  ;;  %v9228_v34 = vpack.c.bf16 %v2880_v29, %v2879_v26  ;;  %v11191_v26 = vrot.slane %v11181_v51, %v11098_v35 }
 0xa32   :  { %v11165_v3 = vpop.f32.mrb[31].mxu0  ;;  %v11167_v4 = vpop.f32.mrb[33].mxu1  ;;  %9219 = vmatprep.subr.bf16.mxu0 %v9218_v46  ;;  %9251 = vmatprep.subr.bf16.mxu1 %v9250_v47  ;;  %v9258_v46 = vpack.c.bf16 %v2928_v21, %v2927_v16  ;;  %v2912_v47 = vld [vmem:[#allocation20 + $0x378] sm:$0xff]  ;;  %v2979_v16 = vld [vmem:[#allocation20 + $0x590] sm:$0xff]  ;;  %v9296_v29 = vpack.c.bf16 %v2962_v7, %v2961_v57  ;;  %v2934_v7 = vld [vmem:[#allocation20 + $0x428] sm:$0xff] }
 0xa33   :  { %v2451_v10 = vadd.f32 %v11127_v28, %v2094_v39  ;;  %v2980_v21 = vld [vmem:[#allocation20 + $0x598] sm:$0xff]  ;;  %v2530_v50 = vadd.f32 %v11143_v17, %v11191_v26  ;;  %v2933_v17 = vld [vmem:[#allocation20 + $0x420] sm:$0xff] }
 0xa35   :  { %9221 = vmatpush3.bf16.msra.mxu0 %v9220_v13  ;;  %9253 = vmatpush3.bf16.msra.mxu1 %v9252_v61  ;;  %v11171_v31 = vpop.f32.mrb[32].mxu0  ;;  %v11173_v23 = vpop.f32.mrb[34].mxu1  ;;  %v2930_v13 = vld [vmem:[#allocation20 + $0x408] sm:$0xff]  ;;  %v9260_v61 = vpack.c.bf16 %v2912_v47, %v2911_v30  ;;  %v2775_v47 = vmax.f32 %v2451_v10, 0.0 }
 0xa36   :  { %v11177_v40 = vpop.f32.mrb[33].mxu0  ;;  %v11179_v41 = vpop.f32.mrb[35].mxu1  ;;  %9223 = vmatprep.subr.bf16.mxu0 %v9222_v5  ;;  %9255 = vmatprep.subr.bf16.mxu1 %v9254_v6  ;;  %v2947_v5 = vld [vmem:[#allocation20 + $0x490] sm:$0xff]  ;;  %v2374_v6 = vadd.f32 %v11125_v27, %v2086_v22  ;;  %v11195_v27 = vrot.slane %v11181_v51, %v11101_v36  ;;  %v9264_v28 = vpack.c.bf16 %v2930_v13, %v2929_v52  ;;  %v2964_v13 = vld [vmem:[#allocation20 + $0x518] sm:$0xff] }
 0xa37   :  { %v9266_v30 = vpack.c.bf16 %v2948_v15, %v2947_v5  ;;  %v2963_v52 = vld [vmem:[#allocation20 + $0x510] sm:$0xff]  ;;  %v2778_v5 = vmax.f32 %v2530_v50, 0.0  ;;  %v2966_v15 = vld [vmem:[#allocation20 + $0x528] sm:$0xff] }
 0xa38   :  { %v2607_v20 = vadd.f32 %v11145_v18, %v11195_v27  ;;  %v9300_v57 = vpack.c.bf16 %v2964_v13, %v2963_v52  ;;  %v2937_v52 = vld [vmem:[#allocation20 + $0x440] sm:$0xff]  ;;  %v2938_v13 = vld [vmem:[#allocation20 + $0x448] sm:$0xff] }
 0xa39   :  { %9225 = vmatpush3.bf16.msra.mxu0 %v9224_v24  ;;  %9257 = vmatpush3.bf16.msra.mxu1 %v9256_v25  ;;  %v2382_v24 = vadd.f32 %v11135_v62, %v11119_v12  ;;  %v2459_v25 = vadd.f32 %v11137_v63, %v11123_v19  ;;  %v2380_v12 = vadd.f32 %v11131_v55, %v2086_v22  ;;  %v2931_v62 = vld [vmem:[#allocation20 + $0x410] sm:$0xff]  ;;  %v2932_v63 = vld [vmem:[#allocation20 + $0x418] sm:$0xff]  ;;  %v2950_v55 = vld [vmem:[#allocation20 + $0x4a8] sm:$0xff] }
 0xa3a   :  { %9227 = vmatprep.subr.bf16.mxu0 %v9226_v42  ;;  %9259 = vmatprep.subr.bf16.mxu1 %v9258_v46  ;;  %v9298_v42 = vpack.c.bf16 %v2980_v21, %v2979_v16  ;;  %v2773_v46 = vmax.f32 %v2374_v6, 0.0  ;;  %v2457_v19 = vadd.f32 %v11133_v56, %v2094_v39  ;;  %v2981_v22 = vld [vmem:[#allocation20 + $0x5a0] sm:$0xff]  ;;  %v2982_v56 = vld [vmem:[#allocation20 + $0x5a8] sm:$0xff]  ;;  %v2780_v18 = vmax.f32 %v2607_v20, 0.0  ;;  %v2951_v16 = vld [vmem:[#allocation20 + $0x4b0] sm:$0xff] }
 0xa3b   :  { %v2790_v48 = vmax.f32 %v2382_v24, 0.0  ;;  %v2792_v49 = vmax.f32 %v2459_v25, 0.0  ;;  %v2789_v39 = vmax.f32 %v2380_v12, 0.0  ;;  %v9302_v10 = vpack.c.bf16 %v2982_v56, %v2981_v22  ;;  %v2952_v21 = vld [vmem:[#allocation20 + $0x4b8] sm:$0xff]  ;;  %v2983_v24 = vld [vmem:[#allocation20 + $0x5b0] sm:$0xff]  ;;  %v2969_v22 = vld [vmem:[#allocation20 + $0x540] sm:$0xff] }
 0xa3c   :  { %v2984_v25 = vld [vmem:[#allocation20 + $0x5b8] sm:$0xff]  ;;  %v2967_v12 = vld [vmem:[#allocation20 + $0x530] sm:$0xff]  ;;  %v2970_v56 = vld [vmem:[#allocation20 + $0x548] sm:$0xff] }
 0xa3d   :  { %9229 = vmatpush3.bf16.msra.mxu0 %v9228_v34  ;;  %9261 = vmatpush3.bf16.msra.mxu1 %v9260_v61  ;;  %v2949_v34 = vld [vmem:[#allocation20 + $0x4a0] sm:$0xff]  ;;  %v2791_v61 = vmax.f32 %v2457_v19, 0.0  ;;  %v2968_v19 = vld [vmem:[#allocation20 + $0x538] sm:$0xff] }
 0xa3e   :  { %9263 = vmatprep.subr.bf16.mxu0 %v9262_v0  ;;  %9295 = vmatprep.subr.bf16.mxu1 %v9294_v11  ;;  %v9268_v0 = vpack.c.bf16 %v2932_v63, %v2931_v62  ;;  %v9270_v6 = vpack.c.bf16 %v2950_v55, %v2949_v34  ;;  %v2965_v11 = vld [vmem:[#allocation20 + $0x520] sm:$0xff]  ;;  %v2954_v63 = vld [vmem:[#allocation20 + $0x4c8] sm:$0xff]  ;;  %v9308_v20 = vpack.c.bf16 %v2968_v19, %v2967_v12 }
 0xa3f   :  { %v2953_v62 = vld [vmem:[#allocation20 + $0x4c0] sm:$0xff]  ;;  %v2974_v19 = vld [vmem:[#allocation20 + $0x568] sm:$0xff] }
 0xa40   :  { %3279 = vmatmul.mubr.f32.vlgmr.msra.gmra.mrb[38].mxu0 %v2773_v46  ;;  %3354 = vmatmul.mubr.f32.vlgmr.msra.gmra.mrb[40].mxu1 %v2775_v47  ;;  %v2935_v46 = vld [vmem:[#allocation20 + $0x430] sm:$0xff]  ;;  %v2936_v47 = vld [vmem:[#allocation20 + $0x438] sm:$0xff]  ;;  %v9278_v34 = vpack.c.bf16 %v2954_v63, %v2953_v62  ;;  %v2973_v12 = vld [vmem:[#allocation20 + $0x560] sm:$0xff] }
 0xa41   :  { %3283 = vmatprep.mubr.f32.mxu0 %v2790_v48  ;;  %3358 = vmatprep.mubr.f32.mxu1 %v2792_v49  ;;  %v2985_v48 = vld [vmem:[#allocation20 + $0x5c0] sm:$0xff]  ;;  %v2986_v49 = vld [vmem:[#allocation20 + $0x5c8] sm:$0xff]  ;;  %v9276_v50 = vpack.c.bf16 %v2936_v47, %v2935_v46  ;;  %v2959_v62 = vld [vmem:[#allocation20 + $0x4f0] sm:$0xff] }
 0xa42   :  { %9265 = vmatpush3.bf16.msra.mxu0 %v9264_v28  ;;  %9297 = vmatpush3.bf16.msra.mxu1 %v9296_v29  ;;  %v9272_v28 = vpack.c.bf16 %v2934_v7, %v2933_v17  ;;  %v9304_v29 = vpack.c.bf16 %v2966_v15, %v2965_v11  ;;  %v9310_v55 = vpack.c.bf16 %v2986_v49, %v2985_v48  ;;  %v2971_v11 = vld [vmem:[#allocation20 + $0x550] sm:$0xff]  ;;  %v2972_v15 = vld [vmem:[#allocation20 + $0x558] sm:$0xff]  ;;  %v2941_v46 = vld [vmem:[#allocation20 + $0x460] sm:$0xff] }
 0xa43   :  { %9267 = vmatprep.subr.bf16.mxu0 %v9266_v30  ;;  %9299 = vmatprep.subr.bf16.mxu1 %v9298_v42  ;;  %v9274_v30 = vpack.c.bf16 %v2952_v21, %v2951_v16  ;;  %v9306_v42 = vpack.c.bf16 %v2984_v25, %v2983_v24  ;;  %v9280_v17 = vpack.c.bf16 %v2938_v13, %v2937_v52  ;;  %v2957_v16 = vld [vmem:[#allocation20 + $0x4e0] sm:$0xff]  ;;  %v2958_v21 = vld [vmem:[#allocation20 + $0x4e8] sm:$0xff]  ;;  %v2960_v63 = vld [vmem:[#allocation20 + $0x4f8] sm:$0xff] }
 0xa44   :  { %3284 = vmatmul.mubr.f32.gmra.mrb[40].mxu0 %v2789_v39  ;;  %3359 = vmatmul.mubr.f32.gmra.mrb[42].mxu1 %v2791_v61  ;;  %v2955_v39 = vld [vmem:[#allocation20 + $0x4d0] sm:$0xff]  ;;  %v2956_v61 = vld [vmem:[#allocation20 + $0x4d8] sm:$0xff]  ;;  %v9312_v7 = vpack.c.bf16 %v2970_v56, %v2969_v22  ;;  %v2989_v24 = vld [vmem:[#allocation20 + $0x5e0] sm:$0xff]  ;;  %v9320_v52 = vpack.c.bf16 %v2974_v19, %v2973_v12  ;;  %v2110_v22 = vrot.slane %v11181_v51, %v11093_v33 }
 0xa45   :  { %3428 = vmatprep.mubr.f32.mxu0 %v2778_v5  ;;  %3503 = vmatprep.mubr.f32.mxu1 %v2780_v18  ;;  %v2939_v5 = vld [vmem:[#allocation20 + $0x450] sm:$0xff]  ;;  %v2940_v18 = vld [vmem:[#allocation20 + $0x458] sm:$0xff]  ;;  %v2990_v25 = vld [vmem:[#allocation20 + $0x5e8] sm:$0xff]  ;;  %v9290_v56 = vpack.c.bf16 %v2960_v63, %v2959_v62  ;;  %v11215_v12 = vrot.slane %v11181_v51, %v11112_v43 }
 0xa46   :  { %9269 = vmatpush3.bf16.msra.mxu0 %v9268_v0  ;;  %9301 = vmatpush3.bf16.msra.mxu1 %v9300_v57  ;;  %v2987_v0 = vld [vmem:[#allocation20 + $0x5d0] sm:$0xff]  ;;  %v2988_v57 = vld [vmem:[#allocation20 + $0x5d8] sm:$0xff]  ;;  %v2942_v47 = vld [vmem:[#allocation20 + $0x468] sm:$0xff] }
 0xa47   :  { %9271 = vmatprep.subr.bf16.mxu0 %v9270_v6  ;;  %9303 = vmatprep.subr.bf16.mxu1 %v9302_v10  ;;  %v9282_v6 = vpack.c.bf16 %v2956_v61, %v2955_v39  ;;  %v9314_v10 = vpack.c.bf16 %v2988_v57, %v2987_v0  ;;  %v2991_v48 = vld [vmem:[#allocation20 + $0x5f0] sm:$0xff]  ;;  %v2992_v49 = vld [vmem:[#allocation20 + $0x5f8] sm:$0xff]  ;;  %v3009_v0 = vld [vmem:[#allocation20 + $0x680] sm:$0xff] }
 0xa48   :  { %v2943_v13 = vld [vmem:[#allocation20 + $0x470] sm:$0xff]  ;;  %v9322_v39 = vpack.c.bf16 %v2992_v49, %v2991_v48  ;;  %v2976_v61 = vld [vmem:[#allocation20 + $0x578] sm:$0xff]  ;;  %v3010_v57 = vld [vmem:[#allocation20 + $0x688] sm:$0xff] }
 0xa4a   :  { %9273 = vmatpush3.bf16.msra.mxu0 %v9272_v28  ;;  %9305 = vmatpush3.bf16.msra.mxu1 %v9304_v29  ;;  %v9284_v28 = vpack.c.bf16 %v2940_v18, %v2939_v5  ;;  %v9316_v29 = vpack.c.bf16 %v2972_v15, %v2971_v11  ;;  %v2993_v5 = vld [vmem:[#allocation20 + $0x600] sm:$0xff]  ;;  %v2994_v18 = vld [vmem:[#allocation20 + $0x608] sm:$0xff]  ;;  %v9326_v11 = vpack.c.bf16 %v3010_v57, %v3009_v0 }
 0xa4b   :  { %9275 = vmatprep.subr.bf16.mxu0 %v9274_v30  ;;  %9307 = vmatprep.subr.bf16.mxu1 %v9306_v42  ;;  %v9286_v30 = vpack.c.bf16 %v2958_v21, %v2957_v16  ;;  %v9318_v42 = vpack.c.bf16 %v2990_v25, %v2989_v24  ;;  %v3025_v15 = vld [vmem:[#allocation20 + $0x700] sm:$0xff]  ;;  %v3026_v16 = vld [vmem:[#allocation20 + $0x708] sm:$0xff]  ;;  %v3011_v21 = vld [vmem:[#allocation20 + $0x690] sm:$0xff]  ;;  %v2605_v25 = vadd.f32 %v11141_v9, %v2110_v22 }
 0xa4c   :  { %v9328_v9 = vpack.c.bf16 %v2994_v18, %v2993_v5  ;;  %v9360_v19 = vpack.c.bf16 %v3026_v16, %v3025_v15  ;;  %v3016_v15 = vld [vmem:[#allocation20 + $0x6b8] sm:$0xff]  ;;  %v3047_v16 = vld [vmem:[#allocation20 + $0x7b0] sm:$0xff] }
 0xa4d   :  { %v2779_v49 = vmax.f32 %v2605_v25, 0.0 }
 0xa4e   :  { %9277 = vmatpush3.bf16.msra.mxu0 %v9276_v50  ;;  %9309 = vmatpush3.bf16.msra.mxu1 %v9308_v20  ;;  %v2102_v50 = vrot.slane %v11181_v51, %v11090_v32  ;;  %v9288_v20 = vpack.c.bf16 %v2942_v47, %v2941_v46  ;;  %v3043_v46 = vld [vmem:[#allocation20 + $0x790] sm:$0xff]  ;;  %v3044_v47 = vld [vmem:[#allocation20 + $0x798] sm:$0xff] }
 0xa4f   :  { %9279 = vmatprep.subr.bf16.mxu0 %v9278_v34  ;;  %9311 = vmatprep.subr.bf16.mxu1 %v9310_v55  ;;  %v2944_v34 = vld [vmem:[#allocation20 + $0x478] sm:$0xff]  ;;  %v2975_v55 = vld [vmem:[#allocation20 + $0x570] sm:$0xff]  ;;  %v9362_v63 = vpack.c.bf16 %v3044_v47, %v3043_v46 }
 0xa50   :  { %v2528_v24 = vadd.f32 %v11139_v8, %v2102_v50  ;;  %v11219_v8 = vrot.slane %v11181_v51, %v11115_v59 }
 0xa52   :  { %9281 = vmatpush3.bf16.msra.mxu0 %v9280_v17  ;;  %9313 = vmatpush3.bf16.msra.mxu1 %v9312_v7  ;;  %v3041_v17 = vld [vmem:[#allocation20 + $0x780] sm:$0xff]  ;;  %v3042_v7 = vld [vmem:[#allocation20 + $0x788] sm:$0xff]  ;;  %v2777_v48 = vmax.f32 %v2528_v24, 0.0 }
 0xa53   :  { %9283 = vmatprep.subr.bf16.mxu0 %v9282_v6  ;;  %9315 = vmatprep.subr.bf16.mxu1 %v9314_v10  ;;  %v9292_v6 = vpack.c.bf16 %v2944_v34, %v2943_v13  ;;  %v9324_v10 = vpack.c.bf16 %v2976_v61, %v2975_v55  ;;  %v2684_v13 = vadd.f32 %v11165_v3, %v11215_v12  ;;  %v3027_v55 = vld [vmem:[#allocation20 + $0x710] sm:$0xff]  ;;  %v2997_v3 = vld [vmem:[#allocation20 + $0x620] sm:$0xff] }
 0xa54   :  { %v2761_v34 = vadd.f32 %v11167_v4, %v11219_v8 }
 0xa56   :  { %9285 = vmatpush3.bf16.msra.mxu0 %v9284_v28  ;;  %9317 = vmatpush3.bf16.msra.mxu1 %v9316_v29  ;;  %v9358_v28 = vpack.c.bf16 %v3042_v7, %v3041_v17  ;;  %v3012_v29 = vld [vmem:[#allocation20 + $0x698] sm:$0xff]  ;;  %v2998_v17 = vld [vmem:[#allocation20 + $0x628] sm:$0xff]  ;;  %v2782_v7 = vmax.f32 %v2684_v13, 0.0  ;;  %v2784_v4 = vmax.f32 %v2761_v34, 0.0  ;;  %v3019_v13 = vld [vmem:[#allocation20 + $0x6d0] sm:$0xff] }
 0xa57   :  { %9287 = vmatprep.subr.bf16.mxu0 %v9286_v30  ;;  %9319 = vmatprep.subr.bf16.mxu1 %v9318_v42  ;;  %v2536_v30 = vadd.f32 %v11151_v44, %v11191_v26  ;;  %v2613_v42 = vadd.f32 %v11153_v45, %v11195_v27  ;;  %v9330_v62 = vpack.c.bf16 %v3012_v29, %v3011_v21  ;;  %v2995_v26 = vld [vmem:[#allocation20 + $0x610] sm:$0xff]  ;;  %v2996_v27 = vld [vmem:[#allocation20 + $0x618] sm:$0xff] }
 0xa58   :  { %v2534_v44 = vadd.f32 %v11147_v37, %v2102_v50  ;;  %v2611_v45 = vadd.f32 %v11149_v38, %v2110_v22  ;;  %v3014_v37 = vld [vmem:[#allocation20 + $0x6a8] sm:$0xff]  ;;  %v3045_v50 = vld [vmem:[#allocation20 + $0x7a0] sm:$0xff]  ;;  %v9332_v0 = vpack.c.bf16 %v2996_v27, %v2995_v26  ;;  %v3048_v21 = vld [vmem:[#allocation20 + $0x7b8] sm:$0xff]  ;;  %v9336_v24 = vpack.c.bf16 %v2998_v17, %v2997_v3 }
 0xa59   :  { %v3046_v38 = vld [vmem:[#allocation20 + $0x7a8] sm:$0xff]  ;;  %v3000_v29 = vld [vmem:[#allocation20 + $0x638] sm:$0xff]  ;;  %v9370_v47 = vpack.c.bf16 %v3048_v21, %v3047_v16  ;;  %v3021_v3 = vld [vmem:[#allocation20 + $0x6e0] sm:$0xff] }
 0xa5a   :  { %9289 = vmatpush3.bf16.msra.mxu0 %v9288_v20  ;;  %9321 = vmatpush3.bf16.msra.mxu1 %v9320_v52  ;;  %v2794_v20 = vmax.f32 %v2536_v30, 0.0  ;;  %v2796_v52 = vmax.f32 %v2613_v42, 0.0  ;;  %v2793_v22 = vmax.f32 %v2534_v44, 0.0  ;;  %v2795_v61 = vmax.f32 %v2611_v45, 0.0  ;;  %v3031_v30 = vld [vmem:[#allocation20 + $0x730] sm:$0xff]  ;;  %v3032_v42 = vld [vmem:[#allocation20 + $0x738] sm:$0xff] }
 0xa5b   :  { %9291 = vmatprep.subr.bf16.mxu0 %v9290_v56  ;;  %9323 = vmatprep.subr.bf16.mxu1 %v9322_v39  ;;  %v3028_v56 = vld [vmem:[#allocation20 + $0x718] sm:$0xff]  ;;  %v3013_v39 = vld [vmem:[#allocation20 + $0x6a0] sm:$0xff]  ;;  %v9366_v18 = vpack.c.bf16 %v3046_v38, %v3045_v50  ;;  %v3002_v45 = vld [vmem:[#allocation20 + $0x648] sm:$0xff] }
 0xa5c   :  { %v9364_v57 = vpack.c.bf16 %v3028_v56, %v3027_v55  ;;  %v9334_v5 = vpack.c.bf16 %v3014_v37, %v3013_v39  ;;  %v3001_v44 = vld [vmem:[#allocation20 + $0x640] sm:$0xff]  ;;  %v3020_v34 = vld [vmem:[#allocation20 + $0x6d8] sm:$0xff]  ;;  %v3051_v55 = vld [vmem:[#allocation20 + $0x7d0] sm:$0xff] }
 0xa5d   :  { %v3052_v56 = vld [vmem:[#allocation20 + $0x7d8] sm:$0xff]  ;;  %v9344_v39 = vpack.c.bf16 %v3002_v45, %v3001_v44  ;;  %v3003_v50 = vld [vmem:[#allocation20 + $0x650] sm:$0xff]  ;;  %v3022_v17 = vld [vmem:[#allocation20 + $0x6e8] sm:$0xff] }
 0xa5e   :  { %9293 = vmatpush3.bf16.msra.mxu0 %v9292_v6  ;;  %9325 = vmatpush3.bf16.msra.mxu1 %v9324_v10  ;;  %v3029_v6 = vld [vmem:[#allocation20 + $0x720] sm:$0xff]  ;;  %v3030_v10 = vld [vmem:[#allocation20 + $0x728] sm:$0xff]  ;;  %v3004_v38 = vld [vmem:[#allocation20 + $0x658] sm:$0xff] }
 0xa5f   :  { %9327 = vmatprep.subr.bf16.mxu0 %v9326_v11  ;;  %9359 = vmatprep.subr.bf16.mxu1 %v9358_v28  ;;  %v3015_v11 = vld [vmem:[#allocation20 + $0x6b0] sm:$0xff]  ;;  %v9368_v25 = vpack.c.bf16 %v3030_v10, %v3029_v6  ;;  %v3005_v6 = vld [vmem:[#allocation20 + $0x660] sm:$0xff]  ;;  %v3006_v10 = vld [vmem:[#allocation20 + $0x668] sm:$0xff] }
 0xa60   :  { %v2999_v28 = vld [vmem:[#allocation20 + $0x630] sm:$0xff]  ;;  %v9338_v46 = vpack.c.bf16 %v3016_v15, %v3015_v11  ;;  %v9350_v11 = vpack.c.bf16 %v3022_v17, %v3021_v3  ;;  %v3037_v16 = vld [vmem:[#allocation20 + $0x760] sm:$0xff]  ;;  %v3038_v21 = vld [vmem:[#allocation20 + $0x768] sm:$0xff] }
 0xa61   :  { %3429 = vmatmul.mubr.f32.vlgmr.msra.gmra.mrb[42].mxu0 %v2777_v48  ;;  %3504 = vmatmul.mubr.f32.vlgmr.msra.gmra.mrb[44].mxu1 %v2779_v49  ;;  %v9340_v48 = vpack.c.bf16 %v3000_v29, %v2999_v28  ;;  %v9372_v49 = vpack.c.bf16 %v3032_v42, %v3031_v30  ;;  %v3055_v28 = vld [vmem:[#allocation20 + $0x7f0] sm:$0xff]  ;;  %v3056_v29 = vld [vmem:[#allocation20 + $0x7f8] sm:$0xff]  ;;  %v9384_v30 = vpack.c.bf16 %v3038_v21, %v3037_v16 }
 0xa62   :  { %3433 = vmatprep.mubr.f32.mxu0 %v2794_v20  ;;  %3508 = vmatprep.mubr.f32.mxu1 %v2796_v52  ;;  %v3033_v20 = vld [vmem:[#allocation20 + $0x740] sm:$0xff]  ;;  %v3034_v52 = vld [vmem:[#allocation20 + $0x748] sm:$0xff]  ;;  %v3007_v42 = vld [vmem:[#allocation20 + $0x670] sm:$0xff] }
 0xa63   :  { %9329 = vmatpush3.bf16.msra.mxu0 %v9328_v9  ;;  %9361 = vmatpush3.bf16.msra.mxu1 %v9360_v19  ;;  %v3017_v9 = vld [vmem:[#allocation20 + $0x6c0] sm:$0xff]  ;;  %v3018_v19 = vld [vmem:[#allocation20 + $0x6c8] sm:$0xff]  ;;  %v9376_v37 = vpack.c.bf16 %v3034_v52, %v3033_v20  ;;  %v2767_v20 = vadd.f32 %v11179_v41, %v11219_v8 }
 0xa64   :  { %9331 = vmatprep.subr.bf16.mxu0 %v9330_v62  ;;  %9363 = vmatprep.subr.bf16.mxu1 %v9362_v63  ;;  %v3049_v62 = vld [vmem:[#allocation20 + $0x7c0] sm:$0xff]  ;;  %v3050_v63 = vld [vmem:[#allocation20 + $0x7c8] sm:$0xff]  ;;  %v9342_v26 = vpack.c.bf16 %v3018_v19, %v3017_v9  ;;  %v2126_v9 = vrot.slane %v11181_v51, %v11163_v1 }
 0xa65   :  { %3434 = vmatmul.mubr.f32.gmra.mrb[44].mxu0 %v2793_v22  ;;  %3509 = vmatmul.mubr.f32.gmra.mrb[46].mxu1 %v2795_v61  ;;  %v9374_v27 = vpack.c.bf16 %v3050_v63, %v3049_v62  ;;  %v9346_v22 = vpack.c.bf16 %v3020_v34, %v3019_v13  ;;  %v9378_v61 = vpack.c.bf16 %v3052_v56, %v3051_v55  ;;  %v3008_v63 = vld [vmem:[#allocation20 + $0x678] sm:$0xff] }
 0xa66   :  { %3578 = vmatprep.mubr.f32.mxu0 %v2782_v7  ;;  %3653 = vmatprep.mubr.f32.mxu1 %v2784_v4  ;;  %v3053_v7 = vld [vmem:[#allocation20 + $0x7e0] sm:$0xff]  ;;  %v3054_v4 = vld [vmem:[#allocation20 + $0x7e8] sm:$0xff]  ;;  %v9386_v62 = vpack.c.bf16 %v3056_v29, %v3055_v28  ;;  %v9356_v44 = vpack.c.bf16 %v3008_v63, %v3007_v42  ;;  %v2765_v55 = vadd.f32 %v11173_v23, %v2126_v9 }
 0xa67   :  { %9333 = vmatpush3.bf16.msra.mxu0 %v9332_v0  ;;  %9365 = vmatpush3.bf16.msra.mxu1 %v9364_v57  ;;  %v3035_v0 = vld [vmem:[#allocation20 + $0x750] sm:$0xff]  ;;  %v3036_v57 = vld [vmem:[#allocation20 + $0x758] sm:$0xff]  ;;  %v9382_v15 = vpack.c.bf16 %v3054_v4, %v3053_v7 }
 0xa68   :  { %9335 = vmatprep.subr.bf16.mxu0 %v9334_v5  ;;  %9367 = vmatprep.subr.bf16.mxu1 %v9366_v18  ;;  %v9348_v5 = vpack.c.bf16 %v3004_v38, %v3003_v50  ;;  %v9380_v18 = vpack.c.bf16 %v3036_v57, %v3035_v0 }
 0xa6b   :  { %9337 = vmatpush3.bf16.msra.mxu0 %v9336_v24  ;;  %9369 = vmatpush3.bf16.msra.mxu1 %v9368_v25  ;;  %v3023_v24 = vld [vmem:[#allocation20 + $0x6f0] sm:$0xff]  ;;  %v3024_v25 = vld [vmem:[#allocation20 + $0x6f8] sm:$0xff] }
 0xa6c   :  { %9339 = vmatprep.subr.bf16.mxu0 %v9338_v46  ;;  %9371 = vmatprep.subr.bf16.mxu1 %v9370_v47  ;;  %v2118_v46 = vrot.slane %v11181_v51, %v11156_v54  ;;  %v9352_v47 = vpack.c.bf16 %v3006_v10, %v3005_v6  ;;  %v9354_v19 = vpack.c.bf16 %v3024_v25, %v3023_v24 }
 0xa6d   :  { %v2690_v51 = vadd.f32 %v11177_v40, %v11215_v12  ;;  %v2799_v12 = vmax.f32 %v2765_v55, 0.0 }
 0xa6e   :  { %v2688_v34 = vadd.f32 %v11171_v31, %v2118_v46  ;;  %v7951_v31 = vld [vmem:[#allocation22] ss:$0 sm:$0xff] }
 0xa6f   :  { %9341 = vmatpush3.bf16.msra.mxu0 %v9340_v48  ;;  %9373 = vmatpush3.bf16.msra.mxu1 %v9372_v49  ;;  %v3039_v48 = vld [vmem:[#allocation20 + $0x770] sm:$0xff]  ;;  %v3040_v49 = vld [vmem:[#allocation20 + $0x778] sm:$0xff] }
 0xa70   :  { %9343 = vmatprep.subr.bf16.mxu0 %v9342_v26  ;;  %9375 = vmatprep.subr.bf16.mxu1 %v9374_v27  ;;  %v9388_v45 = vpack.c.bf16 %v3040_v49, %v3039_v48  ;;  %v2682_v26 = vadd.f32 %v11158_v58, %v2118_v46  ;;  %v2759_v27 = vadd.f32 %v11160_v60, %v2126_v9  ;;  %v2798_v58 = vmax.f32 %v2690_v51, 0.0 }
 0xa71   :  { %v2800_v60 = vmax.f32 %v2767_v20, 0.0  ;;  %v2797_v40 = vmax.f32 %v2688_v34, 0.0 }
 0xa72   :  { %v2781_v52 = vmax.f32 %v2682_v26, 0.0  ;;  %v2783_v13 = vmax.f32 %v2759_v27, 0.0 }
 0xa73   :  { %9345 = vmatpush3.bf16.msra.mxu0 %v9344_v39  ;;  %9377 = vmatpush3.bf16.msra.mxu1 %v9376_v37 }
 0xa74   :  { %9347 = vmatprep.subr.bf16.mxu0 %v9346_v22  ;;  %9379 = vmatprep.subr.bf16.mxu1 %v9378_v61 }
 0xa77   :  { %9349 = vmatpush3.bf16.msra.mxu0 %v9348_v5  ;;  %9381 = vmatpush3.bf16.msra.mxu1 %v9380_v18 }
 0xa78   :  { %9351 = vmatprep.subr.bf16.mxu0 %v9350_v11  ;;  %9383 = vmatprep.subr.bf16.mxu1 %v9382_v15 }
 0xa7b   :  { %9353 = vmatpush3.bf16.msra.mxu0 %v9352_v47  ;;  %9385 = vmatpush3.bf16.msra.mxu1 %v9384_v30 }
 0xa7c   :  { %9355 = vmatprep.subr.bf16.mxu0 %v9354_v19  ;;  %9387 = vmatprep.subr.bf16.mxu1 %v9386_v62 }
 0xa7f   :  { %9357 = vmatpush3.bf16.msra.mxu0 %v9356_v44  ;;  %9389 = vmatpush3.bf16.msra.mxu1 %v9388_v45 }
 0xa80   :  { %8927 = vmatprep.subr.mxu1 %v10424_v14 }
 0xa82   :  { %3579 = vmatmul.mubr.f32.vlgmr.msra.gmra.mrb[46].mxu0 %v2781_v52  ;;  %3654 = vmatmul.mubr.f32.vlgmr.msra.gmra.mrb[48].mxu1 %v2783_v13 }
 0xa83   :  { %3583 = vmatprep.mubr.f32.mxu0 %v2798_v58  ;;  %3658 = vmatprep.mubr.f32.mxu1 %v2800_v60 }
 0xa86   :  { %3584 = vmatmul.mubr.f32.gmra.mrb[48].mxu0 %v2797_v40  ;;  %3659 = vmatmul.mubr.f32.gmra.mrb[50].mxu1 %v2799_v12 }
 0xa87   :  { %8929 = vmatprep.mubr.msk.f32.mxu1 %vm10425_vm3, %v10424_v14 }
 0xaf3   :  { %v8130_v41 = vpop.f32.mrb[34].mxu0  ;;  %v8168_v8 = vpop.f32.mrb[36].mxu1 }
 0xaf4   :  { %v8131_v56 = vpop.f32.mrb[35].mxu0  ;;  %v8169_v23 = vpop.f32.mrb[37].mxu1 }
 0xaf5   :  { %v8132_v39 = vadd.f32 %v8131_v56, %v8130_v41  ;;  %v8170_v37 = vadd.f32 %v8169_v23, %v8168_v8 }
 0xaf7   :  { %v3131_v50 = vadd.f32 %v8132_v39, %v7951_v31  ;;  %v8133_v38 = vpop.f32.mrb[36].mxu0  ;;  %v8171_v22 = vpop.f32.mrb[38].mxu1 }
 0xaf8   :  { %v8134_v61 = vpop.f32.mrb[37].mxu0  ;;  %v8172_v0 = vpop.f32.mrb[39].mxu1 }
 0xaf9   :  { %v3206_v57 = vadd.f32 %v8170_v37, %v3131_v50  ;;  %v8135_v3 = vadd.f32 %v8134_v61, %v8133_v38  ;;  %v8173_v17 = vadd.f32 %v8172_v0, %v8171_v22 }
 0xafb   :  { %v3136_v7 = vadd.f32 %v8135_v3, %v7951_v31 }
 0xafd   :  { %v3211_v4 = vadd.f32 %v8173_v17, %v3136_v7 }
 0xb13   :  { %v8206_v5 = vpop.f32.mrb[38].mxu0  ;;  %v8244_v18 = vpop.f32.mrb[40].mxu1 }
 0xb14   :  { %v8207_v6 = vpop.f32.mrb[39].mxu0  ;;  %v8245_v10 = vpop.f32.mrb[41].mxu1 }
 0xb15   :  { %v8208_v11 = vadd.f32 %v8207_v6, %v8206_v5  ;;  %v8246_v15 = vadd.f32 %v8245_v10, %v8244_v18 }
 0xb17   :  { %v3281_v16 = vadd.f32 %v8208_v11, %v3206_v57  ;;  %v8209_v21 = vpop.f32.mrb[40].mxu0  ;;  %v8247_v24 = vpop.f32.mrb[42].mxu1 }
 0xb18   :  { %v8210_v25 = vpop.f32.mrb[41].mxu0  ;;  %v8248_v28 = vpop.f32.mrb[43].mxu1 }
 0xb19   :  { %v3356_v29 = vadd.f32 %v8246_v15, %v3281_v16  ;;  %v8211_v46 = vadd.f32 %v8210_v25, %v8209_v21  ;;  %v8249_v47 = vadd.f32 %v8248_v28, %v8247_v24  ;;  %v3711_v24 = vld [vmem:[#allocation8 + $0x20] sm:$0xff]  ;;  %v3712_v25 = vld [vmem:[#allocation8 + $0x28] sm:$0xff]  ;;  %v3713_v28 = vld [vmem:[#allocation8 + $0x30] sm:$0xff] }
 0xb1b   :  { %v3286_v30 = vadd.f32 %v8211_v46, %v3211_v4 }
 0xb1d   :  { %v3361_v42 = vadd.f32 %v8249_v47, %v3286_v30 }
 0xb34   :  { %v8282_v9 = vpop.f32.mrb[42].mxu0  ;;  %v8320_v19 = vpop.f32.mrb[44].mxu1 }
 0xb35   :  { %v8283_v62 = vpop.f32.mrb[43].mxu0  ;;  %v8321_v63 = vpop.f32.mrb[45].mxu1 }
 0xb36   :  { %v8284_v48 = vadd.f32 %v8283_v62, %v8282_v9  ;;  %v8322_v49 = vadd.f32 %v8321_v63, %v8320_v19 }
 0xb38   :  { %v3431_v44 = vadd.f32 %v8284_v48, %v3356_v29  ;;  %v8285_v45 = vpop.f32.mrb[44].mxu0  ;;  %v8323_v26 = vpop.f32.mrb[46].mxu1  ;;  %v3714_v29 = vld [vmem:[#allocation8 + $0x38] sm:$0xff]  ;;  %v7952_v48 = vld [vmem:[#allocation23] ss:$0 sm:$0xff] }
 0xb39   :  { %v8286_v27 = vpop.f32.mrb[45].mxu0  ;;  %v8324_v51 = vpop.f32.mrb[47].mxu1  ;;  %v9394_v46 = vpack.c.bf16 %v3714_v29, %v3713_v28 }
 0xb3a   :  { %v3506_v20 = vadd.f32 %v8322_v49, %v3431_v44  ;;  %v8287_v52 = vadd.f32 %v8286_v27, %v8285_v45  ;;  %v8325_v13 = vadd.f32 %v8324_v51, %v8323_v26  ;;  %v7953_v44 = vld [vmem:[#allocation25] ss:$0 sm:$0xff] }
 0xb3c   :  { %v3436_v34 = vadd.f32 %v8287_v52, %v3361_v42 }
 0xb3e   :  { %v3511_v55 = vadd.f32 %v8325_v13, %v3436_v34  ;;  %v7954_v13 = vld [vmem:[#allocation10 + $0x1] ss:$0 sm:$0xff] }
 0xb55   :  { %v8358_v58 = vpop.f32.mrb[46].mxu0  ;;  %v8396_v60 = vpop.f32.mrb[48].mxu1 }
 0xb56   :  { %v8359_v40 = vpop.f32.mrb[47].mxu0  ;;  %v8397_v12 = vpop.f32.mrb[49].mxu1 }
 0xb57   :  { %v8360_v41 = vadd.f32 %v8359_v40, %v8358_v58  ;;  %v8398_v8 = vadd.f32 %v8397_v12, %v8396_v60 }
 0xb59   :  { %v3581_v31 = vadd.f32 %v8360_v41, %v3506_v20  ;;  %v8361_v56 = vpop.f32.mrb[48].mxu0  ;;  %v8399_v23 = vpop.f32.mrb[50].mxu1 }
 0xb5a   :  { %v8362_v39 = vpop.f32.mrb[49].mxu0  ;;  %v8400_v37 = vpop.f32.mrb[51].mxu1 }
 0xb5b   :  { %v3656_v50 = vadd.f32 %v8398_v8, %v3581_v31  ;;  %v8363_v38 = vadd.f32 %v8362_v39, %v8361_v56  ;;  %v8401_v22 = vadd.f32 %v8400_v37, %v8399_v23 }
 0xb5d   :  { %v3586_v61 = vadd.f32 %v8363_v38, %v3511_v55  ;;  %v3664_v0 = vadd.f32 %v3656_v50, %v11036_v53 }
 0xb5f   :  { %v3661_v57 = vadd.f32 %v8401_v22, %v3586_v61  ;;  %v3668_v3 = vsel %vm423_vm2, %v3664_v0, 0.0 }
 0xb60   :  { %3669 = vadd.xlane.f32.xlu1 %v3668_v3 }
 0xb61   :  { %v3665_v17 = vadd.f32 %v3661_v57, %v11043_v2  ;;  %v9390_v2 = vpack.c.bf16 %v3712_v25, %v3711_v24 }
 0xb63   :  { %v3671_v7 = vsel %vm423_vm2, %v3665_v17, 0.0  ;;  %9391 = vmatprep.subr.bf16.mxu0 %v9390_v2 }
 0xb64   :  { %3672 = vadd.xlane.f32.xlu0 %v3671_v7  ;;  %9393 = vmatpush3.bf16.msra.mxu0 %v9390_v2 }
 0xb65   :  { %9395 = vmatprep.subr.bf16.mxu0 %v9394_v46 }
 0xb68   :  { %9397 = vmatpush3.bf16.msra.mxu0 %v9394_v46 }
 0xb69   :  { %8922 = vmatprep.subr.mxu0 %v10424_v14 }
 0xbed   :  { %v3670_v4 = vpop.xlane.xlu1 %3669 }
 0xbee   :  { %v3674_v5 = vmul.f32 0.03125, %v3670_v4 }
 0xbf0   :  { %v3676_v18 = vsub.f32 %v3664_v0, %v3674_v5 }
 0xbf1   :  { %v3673_v6 = vpop.xlane.xlu0 %3672 }
 0xbf2   :  { %v3675_v10 = vmul.f32 0.03125, %v3673_v6  ;;  %v3678_v11 = vmul.f32 %v3676_v18, %v3676_v18 }
 0xbf4   :  { %v3677_v15 = vsub.f32 %v3665_v17, %v3675_v10  ;;  %v3680_v16 = vsel %vm423_vm2, %v3678_v11, 0.0 }
 0xbf5   :  { %3681 = vadd.xlane.f32.xlu1 %v3680_v16 }
 0xbf6   :  { %v3679_v53 = vmul.f32 %v3677_v15, %v3677_v15 }
 0xbf8   :  { %v3683_v21 = vsel %vm423_vm2, %v3679_v53, 0.0 }
 0xbf9   :  { %3684 = vadd.xlane.f32.xlu0 %v3683_v21 }
 0xc82   :  { %v3682_v47 = vpop.xlane.xlu1 %3681 }
 0xc83   :  { %v3686_v30 = vmul.f32 0.03125, %v3682_v47 }
 0xc85   :  { %v3688_v42 = vadd.f32 1e-05, %v3686_v30 }
 0xc86   :  { %v3685_v9 = vpop.xlane.xlu0 %3684 }
 0xc87   :  { %9885 = vrsqrt.f32 %v3688_v42  ;;  %v3687_v19 = vmul.f32 0.03125, %v3685_v9 }
 0xc89   :  { %v3689_v62 = vadd.f32 1e-05, %v3687_v19 }
 0xc8b   :  { %9887 = vrsqrt.f32 %v3689_v62 }
 0xc91   :  { %v9886_v63 = vpop.eup %9885 }
 0xc92   :  { %v3692_v49 = vmul.f32 %v9886_v63, %v3676_v18 }
 0xc94   :  { %v3700_v45 = vmul.f32 %v7952_v48, %v3692_v49 }
 0xc95   :  { %v9888_v26 = vpop.eup %9887 }
 0xc96   :  { %v3693_v27 = vmul.f32 %v9888_v26, %v3677_v15  ;;  %v11249_v51 = vadd.f32 %v7953_v44, %v3700_v45 }
 0xc98   :  { %v3701_v20 = vmul.f32 %v7952_v48, %v3693_v27  ;;  %8919 = vmatprep.mubr.msk.f32.mxu0 %vm423_vm2, %v11249_v51 }
 0xc9a   :  { %v11253_v52 = vadd.f32 %v7953_v44, %v3701_v20 }
 0xc9c   :  { %8920 = vmatmul.mubr.msk.f32.vlgmr.msra.gmra.mrb[50].mxu0 %vm423_vm2, %v11253_v52 }
 0xc9d   :  { %8924 = vmatprep.mubr.msk.f32.mxu0 %vm10425_vm3, %v10424_v14 }
 0xd6f   :  { %v8921_v34 = vpop.f32.mrb[50].mxu0 }
 0xd70   :  { %v3795_v55 = vpop.f32.mrb[51].mxu0  ;;  %v11271_v40 = vadd.f32 %v8921_v34, %v7954_v13 }
 0xd71   :  { %v11259_v58 = vadd.f32 %v7954_v13, %v3795_v55 }
 0xd72   :  { %v3805_v12 = vmul.f32 0.35355338, %v11271_v40 }
 0xd73   :  { %3973 = vrot.lane.b32.xlu0 %v11259_v58, %s10428_s27  ;;  %3807 = vrot.lane.b32.xlu1 %v11259_v58, %s10426_s18  ;;  %v3804_v60 = vmul.f32 0.35355338, %v11259_v58 }
 0xd77   :  { %4136 = vrot.lane.b32.xlu0 %v3804_v60, %s10430_s5  ;;  %3971 = vrot.lane.b32.xlu1 %v3804_v60, %s10427_s1 }
 0xd7b   :  { %4301 = vrot.lane.b32.xlu0 %v3804_v60, %s10432_s28  ;;  %4138 = vrot.lane.b32.xlu1 %v11259_v58, %s10429_s12 }
 0xd7f   :  { %4648 = vrot.lane.b32.xlu0 %v11271_v40, %s10428_s27  ;;  %4303 = vrot.lane.b32.xlu1 %v11259_v58, %s10431_s20 }
 0xd83   :  { %4813 = vrot.lane.b32.xlu0 %v11271_v40, %s10429_s12  ;;  %4482 = vrot.lane.b32.xlu1 %v11271_v40, %s10426_s18 }
 0xd87   :  { %4978 = vrot.lane.b32.xlu0 %v11271_v40, %s10431_s20  ;;  %4646 = vrot.lane.b32.xlu1 %v3805_v12, %s10427_s1 }
 0xd8b   :  { %3895 = vrot.lane.b32.xlu0 %v11259_v58, %s10433_s21  ;;  %4811 = vrot.lane.b32.xlu1 %v3805_v12, %s10430_s5 }
 0xd8f   :  { %4976 = vrot.lane.b32.xlu1 %v3805_v12, %s10432_s28 }
 0xd93   :  { %4060 = vrot.lane.b32.xlu1 %v11259_v58, %s10434_s13 }
 0xde5   :  { %v3974_v41 = vpop.permute.xlu0 %3973  ;;  %v3808_v8 = vpop.permute.xlu1 %3807 }
 0xde6   :  { %8923 = vmatpush3.xpose.msk.msra.mxu0 %vm510_vm4, %v3808_v8 }
 0xde7   :  { %8932 = vmatprep.subr.mxu0 %v10424_v14 }
 0xde9   :  { %v4137_v31 = vpop.permute.xlu0 %4136  ;;  %v3972_v56 = vpop.permute.xlu1 %3971  ;;  %8925 = vmatmul.mubr.msk.f32.vlgmr.msra.gmra.mrb[52].mxu0 %vm510_vm4, %v3804_v60 }
 0xdea   :  { %8933 = vmatpush3.xpose.msk.msra.mxu0 %vm510_vm4, %v3974_v41  ;;  %8934 = vmatprep.mubr.msk.f32.mxu0 %vm10425_vm3, %v10424_v14 }
 0xdeb   :  { %8942 = vmatprep.subr.mxu0 %v10424_v14 }
 0xded   :  { %v4302_v23 = vpop.permute.xlu0 %4301  ;;  %v4139_v39 = vpop.permute.xlu1 %4138  ;;  %8935 = vmatmul.mubr.msk.f32.vlgmr.msra.gmra.mrb[54].mxu0 %vm510_vm4, %v3972_v56 }
 0xdee   :  { %8943 = vmatpush3.xpose.msk.msra.mxu0 %vm510_vm4, %v4139_v39  ;;  %8944 = vmatprep.mubr.msk.f32.mxu0 %vm10425_vm3, %v10424_v14 }
 0xdef   :  { %8952 = vmatprep.subr.mxu0 %v10424_v14 }
 0xdf1   :  { %v4649_v37 = vpop.permute.xlu0 %4648  ;;  %v4304_v50 = vpop.permute.xlu1 %4303  ;;  %8945 = vmatmul.mubr.msk.f32.vlgmr.msra.gmra.mrb[56].mxu0 %vm510_vm4, %v4137_v31 }
 0xdf2   :  { %8953 = vmatpush3.xpose.msk.msra.mxu0 %vm510_vm4, %v4304_v50  ;;  %8954 = vmatprep.mubr.msk.f32.mxu0 %vm10425_vm3, %v10424_v14 }
 0xdf3   :  { %8962 = vmatprep.subr.mxu0 %v10424_v14 }
 0xdf5   :  { %v4814_v38 = vpop.permute.xlu0 %4813  ;;  %v4483_v22 = vpop.permute.xlu1 %4482  ;;  %8955 = vmatmul.mubr.msk.f32.vlgmr.msra.gmra.mrb[58].mxu0 %vm510_vm4, %v4302_v23 }
 0xdf6   :  { %8963 = vmatpush3.xpose.msk.msra.mxu0 %vm510_vm4, %v4483_v22  ;;  %8964 = vmatprep.mubr.msk.f32.mxu0 %vm10425_vm3, %v10424_v14 }
 0xdf7   :  { %8972 = vmatprep.subr.mxu0 %v10424_v14 }
 0xdf9   :  { %v4979_v61 = vpop.permute.xlu0 %4978  ;;  %v4647_v0 = vpop.permute.xlu1 %4646  ;;  %8965 = vmatmul.mubr.msk.f32.vlgmr.msra.gmra.mrb[60].mxu0 %vm510_vm4, %v3805_v12 }
 0xdfa   :  { %8973 = vmatpush3.xpose.msk.msra.mxu0 %vm510_vm4, %v4649_v37  ;;  %8974 = vmatprep.mubr.msk.f32.mxu0 %vm10425_vm3, %v10424_v14 }
 0xdfb   :  { %8982 = vmatprep.subr.mxu0 %v10424_v14 }
 0xdfd   :  { %v3896_v57 = vpop.permute.xlu0 %3895  ;;  %8975 = vmatmul.mubr.msk.f32.vlgmr.msra.gmra.mrb[62].mxu0 %vm510_vm4, %v4647_v0  ;;  %v4812_v3 = vpop.permute.xlu1 %4811 }
 0xdfe   :  { %8928 = vmatpush3.msra.mxu1 %v3896_v57  ;;  %8983 = vmatpush3.xpose.msk.msra.mxu0 %vm510_vm4, %v4814_v38 }
 0xdff   :  { %8984 = vmatprep.mubr.msk.f32.mxu0 %vm10425_vm3, %v10424_v14  ;;  %8992 = vmatprep.subr.mxu0 %v10424_v14 }
 0xe00   :  { %8937 = vmatprep.subr.mxu1 %v10424_v14 }
 0xe01   :  { %8985 = vmatmul.mubr.msk.f32.vlgmr.msra.gmra.mrb[64].mxu0 %vm510_vm4, %v4812_v3  ;;  %v4977_v17 = vpop.permute.xlu1 %4976 }
 0xe02   :  { %8993 = vmatpush3.xpose.msk.msra.mxu0 %vm510_vm4, %v4979_v61  ;;  %8994 = vmatprep.mubr.msk.f32.mxu0 %vm10425_vm3, %v10424_v14 }
 0xe05   :  { %8995 = vmatmul.mubr.msk.f32.vlgmr.msra.gmra.mrb[66].mxu0 %vm510_vm4, %v4977_v17  ;;  %v11341_v48 = vpop.permute.xlu1 %4060 }
 0xebc   :  { %v3880_v7 = vpop.f32.mrb[52].mxu0 }
 0xebd   :  { %v8926_v4 = vpop.f32.mrb[53].mxu0  ;;  %v3884_v5 = vsel %vm510_vm4, %v3880_v7, -inf }
 0xebe   :  { %3885 = vmax.xlane.f32.xlu0 %v3884_v5 }
 0xec0   :  { %v4045_v18 = vpop.f32.mrb[54].mxu0 }
 0xec1   :  { %v8936_v6 = vpop.f32.mrb[55].mxu0  ;;  %v4049_v10 = vsel %vm510_vm4, %v4045_v18, -inf }
 0xec2   :  { %4050 = vmax.xlane.f32.xlu1 %v4049_v10 }
 0xec4   :  { %v4210_v11 = vpop.f32.mrb[56].mxu0 }
 0xec5   :  { %v8946_v15 = vpop.f32.mrb[57].mxu0  ;;  %v4214_v16 = vsel %vm510_vm4, %v4210_v11, -inf }
 0xec6   :  { %4215 = vmax.xlane.f32.xlu0 %v4214_v16 }
 0xec8   :  { %v4375_v53 = vpop.f32.mrb[58].mxu0 }
 0xec9   :  { %v8956_v21 = vpop.f32.mrb[59].mxu0  ;;  %v4379_v24 = vsel %vm510_vm4, %v4375_v53, -inf }
 0xeca   :  { %4380 = vmax.xlane.f32.xlu0 %v4379_v24 }
 0xecc   :  { %v4555_v25 = vpop.f32.mrb[60].mxu0 }
 0xecd   :  { %v8966_v2 = vpop.f32.mrb[61].mxu0  ;;  %v4559_v28 = vsel %vm510_vm4, %v4555_v25, -inf }
 0xece   :  { %4560 = vmax.xlane.f32.xlu1 %v4559_v28 }
 0xed0   :  { %v4720_v29 = vpop.f32.mrb[62].mxu0 }
 0xed1   :  { %v8976_v46 = vpop.f32.mrb[63].mxu0  ;;  %v4724_v47 = vsel %vm510_vm4, %v4720_v29, -inf }
 0xed2   :  { %4725 = vmax.xlane.f32.xlu0 %v4724_v47 }
 0xed4   :  { %v4885_v30 = vpop.f32.mrb[64].mxu0 }
 0xed5   :  { %v8986_v42 = vpop.f32.mrb[65].mxu0  ;;  %v4889_v9 = vsel %vm510_vm4, %v4885_v30, -inf }
 0xed6   :  { %4890 = vmax.xlane.f32.xlu1 %v4889_v9 }
 0xed8   :  { %v5050_v19 = vpop.f32.mrb[66].mxu0 }
 0xed9   :  { %v8996_v62 = vpop.f32.mrb[67].mxu0  ;;  %v5054_v63 = vsel %vm510_vm4, %v5050_v19, -inf }
 0xeda   :  { %5055 = vmax.xlane.f32.xlu0 %v5054_v63 }
 0xee7   :  { %4390 = vrot.lane.b32.xlu1 %v11259_v58, %s10435_s0 }
 0xef0   :  { %4225 = vrot.lane.b32.xlu0 %v11259_v58, %s10436_s23 }
 0xf4b   :  { %v3886_v49 = vpop.xlane.xlu0 %3885 }
 0xf4c   :  { %v3887_v44 = vsub.f32 %v3880_v7, %v3886_v49 }
 0xf4e   :  { %v3888_v45 = vmul.f32 1.442695, %v3887_v44 }
 0xf4f   :  { %v4051_v26 = vpop.xlane.xlu1 %4050 }
 0xf50   :  { %9889 = vpow2.f32 %v3888_v45  ;;  %v4052_v27 = vsub.f32 %v4045_v18, %v4051_v26 }
 0xf52   :  { %v4053_v20 = vmul.f32 1.442695, %v4052_v27 }
 0xf53   :  { %v4216_v13 = vpop.xlane.xlu0 %4215 }
 0xf54   :  { %9891 = vpow2.f32 %v4053_v20  ;;  %v4217_v34 = vsub.f32 %v4210_v11, %v4216_v13 }
 0xf56   :  { %v4218_v55 = vmul.f32 1.442695, %v4217_v34 }
 0xf57   :  { %v4381_v60 = vpop.xlane.xlu0 %4380 }
 0xf58   :  { %9893 = vpow2.f32 %v4218_v55  ;;  %v4382_v12 = vsub.f32 %v4375_v53, %v4381_v60 }
 0xf5a   :  { %v9890_v41 = vpop.eup %9889  ;;  %v4383_v8 = vmul.f32 1.442695, %v4382_v12 }
 0xf5b   :  { %v3890_v58 = vsel %vm510_vm4, %v9890_v41, 0.0  ;;  %v4561_v38 = vpop.xlane.xlu1 %4560 }
 0xf5c   :  { %9895 = vpow2.f32 %v4383_v8  ;;  %3891 = vadd.xlane.f32.xlu1 %v3890_v58  ;;  %v4562_v22 = vsub.f32 %v4555_v25, %v4561_v38 }
 0xf5e   :  { %v9892_v31 = vpop.eup %9891  ;;  %v4563_v3 = vmul.f32 1.442695, %v4562_v22 }
 0xf5f   :  { %v4055_v56 = vsel %vm510_vm4, %v9892_v31, 0.0  ;;  %v4726_v61 = vpop.xlane.xlu0 %4725 }
 0xf60   :  { %4056 = vadd.xlane.f32.xlu0 %v4055_v56  ;;  %v4727_v57 = vsub.f32 %v4720_v29, %v4726_v61  ;;  %9897 = vpow2.f32 %v4563_v3  ;;  %v5157_v3 = vld [vmem:[#allocation11 + $0x20] sm:$0xff] }
 0xf62   :  { %v9894_v23 = vpop.eup %9893  ;;  %v4728_v4 = vmul.f32 1.442695, %v4727_v57 }
 0xf63   :  { %v4220_v39 = vsel %vm510_vm4, %v9894_v23, 0.0  ;;  %v4891_v0 = vpop.xlane.xlu1 %4890 }
 0xf64   :  { %4221 = vadd.xlane.f32.xlu1 %v4220_v39  ;;  %v4892_v17 = vsub.f32 %v4885_v30, %v4891_v0  ;;  %9899 = vpow2.f32 %v4728_v4  ;;  %v5159_v4 = vld [vmem:[#allocation11 + $0x30] sm:$0xff] }
 0xf66   :  { %v11346_v37 = vpop.eup %9895  ;;  %v4893_v5 = vmul.f32 1.442695, %v4892_v17  ;;  %v5158_v17 = vld [vmem:[#allocation11 + $0x28] sm:$0xff] }
 0xf67   :  { %v4385_v50 = vsel %vm510_vm4, %v11346_v37, 0.0  ;;  %v5056_v7 = vpop.xlane.xlu0 %5055  ;;  %v4391_v2 = vpop.permute.xlu1 %4390 }
 0xf68   :  { %4386 = vadd.xlane.f32.xlu0 %v4385_v50  ;;  %v5057_v18 = vsub.f32 %v5050_v19, %v5056_v7  ;;  %9901 = vpow2.f32 %v4893_v5  ;;  %v9398_v7 = vpack.c.bf16 %v5158_v17, %v5157_v3  ;;  %v5160_v5 = vld [vmem:[#allocation11 + $0x38] sm:$0xff] }
 0xf69   :  { %v5317_v3 = vld [vmem:[#allocation17 + $0x290] sm:$0xff] }
 0xf6a   :  { %v5058_v6 = vmul.f32 1.442695, %v5057_v18  ;;  %v9898_v10 = vpop.eup %9897  ;;  %9399 = vmatprep.subr.bf16.mxu0 %v9398_v7  ;;  %v9402_v18 = vpack.c.bf16 %v5160_v5, %v5159_v4  ;;  %v5348_v4 = vld [vmem:[#allocation17 + $0x388] sm:$0xff]  ;;  %v5334_v5 = vld [vmem:[#allocation17 + $0x318] sm:$0xff] }
 0xf6b   :  { %v4565_v15 = vsel %vm510_vm4, %v9898_v10, 0.0  ;;  %v4226_v28 = vpop.permute.xlu0 %4225  ;;  %9401 = vmatpush3.bf16.msra.mxu0 %v9398_v7  ;;  %v5332_v7 = vld [vmem:[#allocation17 + $0x308] sm:$0xff] }
 0xf6c   :  { %9903 = vpow2.f32 %v5058_v6  ;;  %9403 = vmatprep.subr.bf16.mxu0 %v9402_v18 }
 0xf6e   :  { %v11354_v11 = vpop.eup %9899 }
 0xf6f   :  { %v4730_v21 = vsel %vm510_vm4, %v11354_v11, 0.0  ;;  %9405 = vmatpush3.bf16.msra.mxu0 %v9402_v18  ;;  %v9410_v18 = vpack.c.bf16 %v5348_v4, %v5332_v7  ;;  %v5307_v7 = vld [vmem:[#allocation17 + $0x240] sm:$0xff] }
 0xf72   :  { %v11357_v16 = vpop.eup %9901 }
 0xf73   :  { %v4895_v53 = vsel %vm510_vm4, %v11357_v16, 0.0 }
 0xf75   :  { %4735 = vrot.lane.b32.xlu1 %v11271_v40, %s10434_s13 }
 0xf76   :  { %v11363_v24 = vpop.eup %9903 }
 0xf77   :  { %v5060_v25 = vsel %vm510_vm4, %v11363_v24, 0.0 }
 0xf7e   :  { %4570 = vrot.lane.b32.xlu0 %v11271_v40, %s10433_s21 }
 0xf99   :  { %4566 = vadd.xlane.f32.xlu1 %v4565_v15 }
 0xf9d   :  { %4896 = vadd.xlane.f32.xlu1 %v4895_v53  ;;  %4731 = vadd.xlane.f32.xlu0 %v4730_v21 }
 0xfa1   :  { %5061 = vadd.xlane.f32.xlu1 %v5060_v25 }
 0xfb2   :  { %5065 = vrot.lane.b32.xlu1 %v11271_v40, %s10435_s0 }
 0xfb3   :  { %4900 = vrot.lane.b32.xlu0 %v11271_v40, %s10436_s23 }
 0xfe9   :  { %v3892_v29 = vpop.xlane.xlu1 %3891 }
 0xfea   :  { %9905 = vrcp.f32 %v3892_v29 }
 0xfed   :  { %v4057_v46 = vpop.xlane.xlu0 %4056 }
 0xfee   :  { %9907 = vrcp.f32 %v4057_v46 }
 0xff1   :  { %v4222_v47 = vpop.xlane.xlu1 %4221 }
 0xff2   :  { %9909 = vrcp.f32 %v4222_v47 }
 0xff4   :  { %v9906_v30 = vpop.eup %9905 }
 0xff5   :  { %v3894_v42 = vmul.f32 %v9906_v30, %v9890_v41  ;;  %v4387_v9 = vpop.xlane.xlu0 %4386  ;;  %v4736_v45 = vpop.permute.xlu1 %4735 }
 0xff6   :  { %9911 = vrcp.f32 %v4387_v9 }
 0xff7   :  { %8930 = vmatmul.mubr.msk.f32.vlgmr.msra.gmra.mrb[52].mxu1 %vm510_vm4, %v3894_v42 }
 0xff8   :  { %v9908_v19 = vpop.eup %9907  ;;  %8938 = vmatpush3.msra.mxu1 %v11341_v48  ;;  %8939 = vmatprep.mubr.msk.f32.mxu1 %vm10425_vm3, %v10424_v14 }
 0xff9   :  { %v4059_v40 = vmul.f32 %v9908_v19, %v9892_v31  ;;  %8947 = vmatprep.subr.mxu1 %v10424_v14  ;;  %v4571_v44 = vpop.permute.xlu0 %4570 }
 0xffb   :  { %8940 = vmatmul.mubr.msk.f32.vlgmr.msra.gmra.mrb[54].mxu1 %vm510_vm4, %v4059_v40 }
 0xffc   :  { %v9910_v62 = vpop.eup %9909  ;;  %8948 = vmatpush3.msra.mxu1 %v4226_v28  ;;  %8949 = vmatprep.mubr.msk.f32.mxu1 %vm10425_vm3, %v10424_v14 }
 0xffd   :  { %v4224_v63 = vmul.f32 %v9910_v62, %v9894_v23  ;;  %8957 = vmatprep.subr.mxu1 %v10424_v14 }
 0xfff   :  { %8950 = vmatmul.mubr.msk.f32.vlgmr.msra.gmra.mrb[56].mxu1 %vm510_vm4, %v4224_v63  ;;  %v7981_v63 = vld [vmem:[#allocation13 + $0x1] ss:$0 sm:$0xff] }
0x1000   :  { %v9912_v49 = vpop.eup %9911  ;;  %8958 = vmatpush3.msra.mxu1 %v4391_v2  ;;  %8959 = vmatprep.mubr.msk.f32.mxu1 %vm10425_vm3, %v10424_v14 }
0x1001   :  { %v4389_v48 = vmul.f32 %v9912_v49, %v11346_v37  ;;  %8967 = vmatprep.subr.mxu1 %v10424_v14 }
0x1003   :  { %8960 = vmatmul.mubr.msk.f32.vlgmr.msra.gmra.mrb[58].mxu1 %vm510_vm4, %v4389_v48 }
0x1004   :  { %8968 = vmatpush3.msra.mxu1 %v4571_v44  ;;  %8969 = vmatprep.mubr.msk.f32.mxu1 %vm10425_vm3, %v10424_v14 }
0x1005   :  { %8977 = vmatprep.subr.mxu1 %v10424_v14 }
0x1026   :  { %v4567_v26 = vpop.xlane.xlu1 %4566 }
0x1027   :  { %9913 = vrcp.f32 %v4567_v26 }
0x102a   :  { %v4897_v27 = vpop.xlane.xlu1 %4896  ;;  %v4732_v20 = vpop.xlane.xlu0 %4731 }
0x102b   :  { %9915 = vrcp.f32 %v4732_v20 }
0x102c   :  { %9917 = vrcp.f32 %v4897_v27 }
0x102e   :  { %v5062_v13 = vpop.xlane.xlu1 %5061  ;;  %v4901_v8 = vpop.permute.xlu0 %4900 }
0x102f   :  { %9919 = vrcp.f32 %v5062_v13 }
0x1031   :  { %v9914_v34 = vpop.eup %9913 }
0x1032   :  { %v4569_v55 = vmul.f32 %v9914_v34, %v9898_v10  ;;  %v5066_v56 = vpop.permute.xlu1 %5065 }
0x1034   :  { %8970 = vmatmul.mubr.msk.f32.vlgmr.msra.gmra.mrb[60].mxu1 %vm510_vm4, %v4569_v55 }
0x1035   :  { %8978 = vmatpush3.msra.mxu1 %v4736_v45  ;;  %8979 = vmatprep.mubr.msk.f32.mxu1 %vm10425_vm3, %v10424_v14  ;;  %v9916_v60 = vpop.eup %9915 }
0x1036   :  { %8987 = vmatprep.subr.mxu1 %v10424_v14  ;;  %v4734_v12 = vmul.f32 %v9916_v60, %v11354_v11  ;;  %v9918_v41 = vpop.eup %9917 }
0x1037   :  { %v4899_v58 = vmul.f32 %v9918_v41, %v11357_v16 }
0x1038   :  { %8980 = vmatmul.mubr.msk.f32.vlgmr.msra.gmra.mrb[62].mxu1 %vm510_vm4, %v4734_v12 }
0x1039   :  { %8988 = vmatpush3.msra.mxu1 %v4901_v8  ;;  %8989 = vmatprep.mubr.msk.f32.mxu1 %vm10425_vm3, %v10424_v14  ;;  %v9920_v31 = vpop.eup %9919 }
0x103a   :  { %8997 = vmatprep.subr.mxu1 %v10424_v14  ;;  %v5064_v23 = vmul.f32 %v9920_v31, %v11363_v24 }
0x103c   :  { %8990 = vmatmul.mubr.msk.f32.vlgmr.msra.gmra.mrb[64].mxu1 %vm510_vm4, %v4899_v58 }
0x103d   :  { %8998 = vmatpush3.msra.mxu1 %v5066_v56  ;;  %8999 = vmatprep.mubr.msk.f32.mxu1 %vm10425_vm3, %v10424_v14  ;;  %v5300_v56 = vld [vmem:[#allocation17 + $0x208] sm:$0xff] }
0x1040   :  { %9000 = vmatmul.mubr.msk.f32.vlgmr.msra.gmra.mrb[66].mxu1 %vm510_vm4, %v5064_v23  ;;  %v5316_v23 = vld [vmem:[#allocation17 + $0x288] sm:$0xff] }
0x1041   :  { %5518 = vmatprep.mubr.f32.mxu1 %v10424_v14 }
0x10ca   :  { %v3967_v39 = vpop.f32.mrb[52].mxu1 }
0x10cb   :  { %v8931_v37 = vpop.f32.mrb[53].mxu1 }
0x10cc   :  { %v9406_v37 = vpack.c.bf16 %v5316_v23, %v5300_v56 }
0x10ce   :  { %v4132_v50 = vpop.f32.mrb[54].mxu1  ;;  %9407 = vmatprep.subr.bf16.mxu1 %v9406_v37  ;;  %v5337_v37 = vld [vmem:[#allocation17 + $0x330] sm:$0xff] }
0x10cf   :  { %4467 = vrot.lane.b32.xlu0 %v4132_v50, %s10403_s26  ;;  %v8941_v38 = vpop.f32.mrb[55].mxu1  ;;  %v5318_v50 = vld [vmem:[#allocation17 + $0x298] sm:$0xff] }
0x10d0   :  { %v5299_v38 = vld [vmem:[#allocation17 + $0x200] sm:$0xff] }
0x10d2   :  { %v4297_v22 = vpop.f32.mrb[56].mxu1 }
0x10d3   :  { %4471 = vrot.lane.b32.xlu1 %v4297_v22, %s11952_s11  ;;  %v8951_v61 = vpop.f32.mrb[57].mxu1  ;;  %v5315_v22 = vld [vmem:[#allocation17 + $0x280] sm:$0xff] }
0x10d6   :  { %v4462_v0 = vpop.f32.mrb[58].mxu1 }
0x10d7   :  { %4475 = vrot.lane.b32.xlu1 %v4462_v0, %s10437_s6  ;;  %v8961_v57 = vpop.f32.mrb[59].mxu1  ;;  %v9408_v0 = vpack.c.bf16 %v5315_v22, %v5299_v38  ;;  %v5308_v22 = vld [vmem:[#allocation17 + $0x248] sm:$0xff] }
0x10d8   :  { %v5301_v57 = vld [vmem:[#allocation17 + $0x210] sm:$0xff] }
0x10d9   :  { %v9416_v17 = vpack.c.bf16 %v5317_v3, %v5301_v57  ;;  %9409 = vmatpush1.bf16.msra.mxu1 %v9408_v0  ;;  %v5324_v0 = vld [vmem:[#allocation17 + $0x2c8] sm:$0xff]  ;;  %v5310_v57 = vld [vmem:[#allocation17 + $0x258] sm:$0xff] }
0x10da   :  { %9411 = vmatprep.subr.bf16.mxu1 %v9410_v18  ;;  %v5326_v3 = vld [vmem:[#allocation17 + $0x2d8] sm:$0xff]  ;;  %v5309_v18 = vld [vmem:[#allocation17 + $0x250] sm:$0xff] }
0x1107   :  { %v4642_v6 = vpop.f32.mrb[60].mxu1 }
0x1108   :  { %v8971_v10 = vpop.f32.mrb[61].mxu1 }
0x1109   :  { %v5331_v10 = vld [vmem:[#allocation17 + $0x300] sm:$0xff] }
0x110b   :  { %v4807_v11 = vpop.f32.mrb[62].mxu1 }
0x110c   :  { %5142 = vrot.lane.b32.xlu0 %v4807_v11, %s10403_s26  ;;  %v8981_v15 = vpop.f32.mrb[63].mxu1  ;;  %v5347_v11 = vld [vmem:[#allocation17 + $0x380] sm:$0xff]  ;;  %s10439_s26 = smov 32  }
0x110f   :  { %v4972_v16 = vpop.f32.mrb[64].mxu1 }
0x1110   :  { %5146 = vrot.lane.b32.xlu0 %v4972_v16, %s11952_s11  ;;  %v8991_v53 = vpop.f32.mrb[65].mxu1  ;;  %v9412_v16 = vpack.c.bf16 %v5347_v11, %v5331_v10  ;;  %v9438_v10 = vpack.c.bf16 %v5324_v0, %v5308_v22  ;;  %v9446_v11 = vpack.c.bf16 %v5326_v3, %v5310_v57  ;;  %v6103_v0 = vld [vmem:[#allocation20 + $0x800] sm:$0xff]  ;;  %v6104_v57 = vld [vmem:[#allocation20 + $0x808] sm:$0xff]  ;;  %s10440_s11 = smov 20  }
0x1111   :  { %v5333_v53 = vld [vmem:[#allocation17 + $0x310] sm:$0xff] }
0x1112   :  { %9413 = vmatpush1.bf16.msra.mxu1 %v9412_v16  ;;  %v5356_v16 = vld [vmem:[#allocation17 + $0x3c8] sm:$0xff] }
0x1113   :  { %v5137_v21 = vpop.f32.mrb[66].mxu1 }
0x1114   :  { %5150 = vrot.lane.b32.xlu1 %v5137_v21, %s10437_s6  ;;  %v9001_v24 = vpop.f32.mrb[67].mxu1  ;;  %v5349_v21 = vld [vmem:[#allocation17 + $0x390] sm:$0xff] }
0x1115   :  { %v9420_v24 = vpack.c.bf16 %v5349_v21, %v5333_v53  ;;  %v5342_v53 = vld [vmem:[#allocation17 + $0x358] sm:$0xff] }
0x1116   :  { %v5358_v21 = vld [vmem:[#allocation17 + $0x3d8] sm:$0xff] }
0x1141   :  { %v4468_v25 = vpop.permute.xlu0 %4467 }
0x1142   :  { %v4478_v28 = vsel %vm510_vm4, %v3967_v39, %v4468_v25  ;;  %v5302_v39 = vld [vmem:[#allocation17 + $0x218] sm:$0xff]  ;;  %v5304_v25 = vld [vmem:[#allocation17 + $0x228] sm:$0xff] }
0x1143   :  { %v9414_v61 = vpack.c.bf16 %v5318_v50, %v5302_v39  ;;  %v5351_v39 = vld [vmem:[#allocation17 + $0x3a0] sm:$0xff] }
0x1145   :  { %v4472_v2 = vpop.permute.xlu1 %4471  ;;  %9415 = vmatprep.subr.bf16.mxu0 %v9414_v61 }
0x1146   :  { %v4479_v29 = vsel %vm1181_vm5, %v4478_v28, %v4472_v2  ;;  %v5320_v2 = vld [vmem:[#allocation17 + $0x2a8] sm:$0xff]  ;;  %v5306_v28 = vld [vmem:[#allocation17 + $0x238] sm:$0xff] }
0x1149   :  { %v4476_v46 = vpop.permute.xlu1 %4475 }
0x114a   :  { %v4480_v47 = vsel %vm1183_vm6, %v4479_v29, %v4476_v46  ;;  %v9422_v29 = vpack.c.bf16 %v5320_v2, %v5304_v25  ;;  %v5322_v46 = vld [vmem:[#allocation17 + $0x2b8] sm:$0xff]  ;;  %v5339_v2 = vld [vmem:[#allocation17 + $0x340] sm:$0xff] }
0x114b   :  { %9010 = vmatprep.mubr.msk.f32.mxu0 %vm423_vm2, %v4480_v47  ;;  %v9430_v47 = vpack.c.bf16 %v5322_v46, %v5306_v28  ;;  %v5355_v28 = vld [vmem:[#allocation17 + $0x3c0] sm:$0xff]  ;;  %v5357_v46 = vld [vmem:[#allocation17 + $0x3d0] sm:$0xff] }
0x114c   :  { %9423 = vmatprep.subr.bf16.mxu1 %v9422_v29  ;;  %v5341_v29 = vld [vmem:[#allocation17 + $0x350] sm:$0xff] }
0x117e   :  { %v5143_v30 = vpop.permute.xlu0 %5142 }
0x117f   :  { %v5153_v9 = vsel %vm510_vm4, %v4642_v6, %v5143_v30  ;;  %v5350_v6 = vld [vmem:[#allocation17 + $0x398] sm:$0xff] }
0x1180   :  { %v9418_v15 = vpack.c.bf16 %v5350_v6, %v5334_v5  ;;  %v5323_v5 = vld [vmem:[#allocation17 + $0x2c0] sm:$0xff]  ;;  %v5325_v6 = vld [vmem:[#allocation17 + $0x2d0] sm:$0xff] }
0x1181   :  { %v9448_v25 = vpack.c.bf16 %v5325_v6, %v5309_v18  ;;  %v6122_v18 = vld [vmem:[#allocation20 + $0x898] sm:$0xff]  ;;  %v6153_v6 = vld [vmem:[#allocation20 + $0x990] sm:$0xff] }
0x1182   :  { %v5147_v42 = vpop.permute.xlu0 %5146 }
0x1183   :  { %v5154_v19 = vsel %vm1181_vm5, %v5153_v9, %v5147_v42 }
0x1186   :  { %v5151_v40 = vpop.permute.xlu1 %5150 }
0x1187   :  { %v5155_v62 = vsel %vm1183_vm6, %v5154_v19, %v5151_v40 }
0x1188   :  { %9011 = vmatmul.mubr.msk.f32.vlgmr.msra.gmra.mrb[68].mxu0 %vm423_vm2, %v5155_v62 }
0x1189   :  { %5595 = vmatprep.mubr.f32.mxu0 %v10424_v14  ;;  %9417 = vmatpush1.bf16.msra.mxu0 %v9416_v17 }
0x118a   :  { %9419 = vmatprep.subr.bf16.mxu0 %v9418_v15  ;;  %v5340_v15 = vld [vmem:[#allocation17 + $0x348] sm:$0xff] }
0x118d   :  { %9421 = vmatpush1.bf16.msra.mxu0 %v9420_v24  ;;  %v9440_v24 = vpack.c.bf16 %v5323_v5, %v5307_v7  ;;  %v6136_v7 = vld [vmem:[#allocation20 + $0x908] sm:$0xff]  ;;  %v6121_v5 = vld [vmem:[#allocation20 + $0x890] sm:$0xff] }
0x118e   :  { %9431 = vmatprep.subr.bf16.mxu0 %v9430_v47  ;;  %v9442_v47 = vpack.c.bf16 %v5356_v16, %v5340_v15  ;;  %v6105_v16 = vld [vmem:[#allocation20 + $0x810] sm:$0xff] }
0x125b   :  { %v9012_v49 = vpop.f32.mrb[68].mxu0 }
0x125c   :  { %v5247_v48 = vadd.f32 %v9012_v49, %v7981_v63  ;;  %v5241_v44 = vpop.f32.mrb[69].mxu0  ;;  %v7984_v49 = vld [vmem:[#allocation14 + $0x1] ss:$0 sm:$0xff] }
0x125d   :  { %v5242_v45 = vadd.f32 %v7981_v63, %v5241_v44 }
0x125e   :  { %v5251_v26 = vadd.f32 %v5247_v48, %v11253_v52  ;;  %v5303_v48 = vld [vmem:[#allocation17 + $0x220] sm:$0xff] }
0x125f   :  { %v5250_v27 = vadd.f32 %v5242_v45, %v11249_v51  ;;  %v5319_v45 = vld [vmem:[#allocation17 + $0x2a0] sm:$0xff] }
0x1260   :  { %v5259_v20 = vsel %vm423_vm2, %v5251_v26, 0.0 }
0x1261   :  { %5260 = vadd.xlane.f32.xlu1 %v5259_v20  ;;  %v5256_v13 = vsel %vm423_vm2, %v5250_v27, 0.0  ;;  %v7985_v20 = vld [vmem:[#allocation16 + $0x1] ss:$0 sm:$0xff] }
0x1262   :  { %5257 = vadd.xlane.f32.xlu0 %v5256_v13  ;;  %v5336_v13 = vld [vmem:[#allocation17 + $0x328] sm:$0xff] }
0x12ee   :  { %v5261_v34 = vpop.xlane.xlu1 %5260 }
0x12ef   :  { %v5263_v55 = vmul.f32 0.03125, %v5261_v34  ;;  %v5258_v60 = vpop.xlane.xlu0 %5257 }
0x12f0   :  { %v5262_v12 = vmul.f32 0.03125, %v5258_v60  ;;  %v5338_v60 = vld [vmem:[#allocation17 + $0x338] sm:$0xff] }
0x12f1   :  { %v11424_v41 = vsub.f32 %v5251_v26, %v5263_v55  ;;  %v5305_v26 = vld [vmem:[#allocation17 + $0x230] sm:$0xff]  ;;  %v5352_v55 = vld [vmem:[#allocation17 + $0x3a8] sm:$0xff] }
0x12f2   :  { %v5264_v8 = vsub.f32 %v5250_v27, %v5262_v12  ;;  %v5321_v27 = vld [vmem:[#allocation17 + $0x2b0] sm:$0xff]  ;;  %v5354_v12 = vld [vmem:[#allocation17 + $0x3b8] sm:$0xff]  ;;  %v9426_v50 = vpack.c.bf16 %v5352_v55, %v5336_v13  ;;  %v5360_v13 = vld [vmem:[#allocation17 + $0x3e8] sm:$0xff] }
0x12f3   :  { %v5267_v52 = vmul.f32 %v11424_v41, %v11424_v41  ;;  %v9434_v38 = vpack.c.bf16 %v5354_v12, %v5338_v60  ;;  %v5362_v55 = vld [vmem:[#allocation17 + $0x3f8] sm:$0xff] }
0x12f4   :  { %v5266_v58 = vmul.f32 %v5264_v8, %v5264_v8 }
0x12f5   :  { %v5271_v51 = vsel %vm423_vm2, %v5267_v52, 0.0  ;;  %v9432_v52 = vpack.c.bf16 %v5321_v27, %v5305_v26 }
0x12f6   :  { %v5268_v31 = vsel %vm423_vm2, %v5266_v58, 0.0 }
0x12f7   :  { %5269 = vadd.xlane.f32.xlu0 %v5268_v31  ;;  %v9424_v31 = vpack.c.bf16 %v5319_v45, %v5303_v48  ;;  %v5327_v48 = vld [vmem:[#allocation17 + $0x2e0] sm:$0xff]  ;;  %v5329_v45 = vld [vmem:[#allocation17 + $0x2f0] sm:$0xff] }
0x12fb   :  { %5272 = vadd.xlane.f32.xlu0 %v5271_v51  ;;  %v5335_v51 = vld [vmem:[#allocation17 + $0x320] sm:$0xff] }
0x12fc   :  { %v9428_v17 = vpack.c.bf16 %v5351_v39, %v5335_v51  ;;  %v5361_v51 = vld [vmem:[#allocation17 + $0x3f0] sm:$0xff] }
0x1384   :  { %v5270_v30 = vpop.xlane.xlu0 %5269 }
0x1385   :  { %v5274_v42 = vmul.f32 0.03125, %v5270_v30  ;;  %v9450_v30 = vpack.c.bf16 %v5358_v21, %v5342_v53  ;;  %v6106_v53 = vld [vmem:[#allocation20 + $0x818] sm:$0xff]  ;;  %v9474_v21 = vpack.c.bf16 %v6122_v18, %v6121_v5  ;;  %v6113_v18 = vld [vmem:[#allocation20 + $0x850] sm:$0xff] }
0x1387   :  { %v5276_v9 = vadd.f32 1e-05, %v5274_v42  ;;  %v5312_v42 = vld [vmem:[#allocation17 + $0x268] sm:$0xff] }
0x1388   :  { %v5273_v19 = vpop.xlane.xlu0 %5272 }
0x1389   :  { %9921 = vrsqrt.f32 %v5276_v9  ;;  %v5275_v40 = vmul.f32 0.03125, %v5273_v19  ;;  %v5328_v9 = vld [vmem:[#allocation17 + $0x2e8] sm:$0xff]  ;;  %v5314_v19 = vld [vmem:[#allocation17 + $0x278] sm:$0xff] }
0x138a   :  { %v9454_v26 = vpack.c.bf16 %v5328_v9, %v5312_v42  ;;  %v6107_v9 = vld [vmem:[#allocation20 + $0x820] sm:$0xff] }
0x138b   :  { %v5277_v62 = vadd.f32 1e-05, %v5275_v40  ;;  %v5330_v40 = vld [vmem:[#allocation17 + $0x2f8] sm:$0xff] }
0x138c   :  { %v9462_v27 = vpack.c.bf16 %v5330_v40, %v5314_v19  ;;  %v6108_v19 = vld [vmem:[#allocation20 + $0x828] sm:$0xff] }
0x138d   :  { %9923 = vrsqrt.f32 %v5277_v62  ;;  %v9444_v62 = vpack.c.bf16 %v5355_v28, %v5339_v2  ;;  %v6138_v2 = vld [vmem:[#allocation20 + $0x918] sm:$0xff]  ;;  %v6123_v28 = vld [vmem:[#allocation20 + $0x8a0] sm:$0xff] }
0x1393   :  { %v9922_v63 = vpop.eup %9921 }
0x1394   :  { %v5280_v44 = vmul.f32 %v9922_v63, %v5264_v8  ;;  %v5353_v8 = vld [vmem:[#allocation17 + $0x3b0] sm:$0xff]  ;;  %v9452_v63 = vpack.c.bf16 %v5357_v46, %v5341_v29  ;;  %v6124_v29 = vld [vmem:[#allocation20 + $0x8a8] sm:$0xff]  ;;  %v6155_v46 = vld [vmem:[#allocation20 + $0x9a0] sm:$0xff] }
0x1395   :  { %v9478_v40 = vpack.c.bf16 %v6124_v29, %v6123_v28  ;;  %v6115_v29 = vld [vmem:[#allocation20 + $0x860] sm:$0xff] }
0x1396   :  { %v5288_v34 = vmul.f32 %v7984_v49, %v5280_v44  ;;  %v5313_v44 = vld [vmem:[#allocation17 + $0x270] sm:$0xff] }
0x1397   :  { %v9924_v58 = vpop.eup %9923  ;;  %v9464_v12 = vpack.c.bf16 %v5329_v45, %v5313_v44  ;;  %v6126_v44 = vld [vmem:[#allocation20 + $0x8b8] sm:$0xff]  ;;  %v6157_v45 = vld [vmem:[#allocation20 + $0x9b0] sm:$0xff] }
0x1398   :  { %v11430_v56 = vadd.f32 %v7985_v20, %v5288_v34  ;;  %v5281_v23 = vmul.f32 %v9924_v58, %v11424_v41  ;;  %v9436_v41 = vpack.c.bf16 %v5353_v8, %v5337_v37  ;;  %v5346_v34 = vld [vmem:[#allocation17 + $0x378] sm:$0xff]  ;;  %v5343_v58 = vld [vmem:[#allocation17 + $0x360] sm:$0xff]  ;;  %v6120_v8 = vld [vmem:[#allocation20 + $0x888] sm:$0xff] }
0x1399   :  { %v9466_v39 = vpack.c.bf16 %v5362_v55, %v5346_v34  ;;  %v6119_v37 = vld [vmem:[#allocation20 + $0x880] sm:$0xff]  ;;  %v6110_v34 = vld [vmem:[#allocation20 + $0x838] sm:$0xff] }
0x139a   :  { %v5289_v61 = vmul.f32 %v7984_v49, %v5281_v23  ;;  %7986 = vmatmul.mubr.msk.f32.vlgmr.msra.gmra.mrb[68].mxu1 %vm423_vm2, %v11430_v56  ;;  %7988 = vmatmul.mubr.msk.f32.vlgmr.msra.gmra.mrb[70].mxu0 %vm423_vm2, %v11430_v56  ;;  %v5311_v49 = vld [vmem:[#allocation17 + $0x260] sm:$0xff]  ;;  %v9470_v3 = vpack.c.bf16 %v6120_v8, %v6119_v37 }
0x139b   :  { %9425 = vmatpush1.bf16.msra.mxu1 %v9424_v31  ;;  %9433 = vmatpush1.bf16.msra.mxu0 %v9432_v52  ;;  %v9456_v60 = vpack.c.bf16 %v5327_v48, %v5311_v49  ;;  %v5359_v31 = vld [vmem:[#allocation17 + $0x3e0] sm:$0xff]  ;;  %v5345_v52 = vld [vmem:[#allocation17 + $0x370] sm:$0xff]  ;;  %v6140_v49 = vld [vmem:[#allocation20 + $0x928] sm:$0xff] }
0x139c   :  { %v11437_v4 = vadd.f32 %v7985_v20, %v5289_v61  ;;  %5524 = vmatprep.mubr.f32.mxu1 %v10424_v14  ;;  %5601 = vmatprep.mubr.f32.mxu0 %v10424_v14  ;;  %v5344_v20 = vld [vmem:[#allocation17 + $0x368] sm:$0xff]  ;;  %v9460_v22 = vpack.c.bf16 %v5359_v31, %v5343_v58  ;;  %v9468_v61 = vpack.c.bf16 %v5361_v51, %v5345_v52  ;;  %v6125_v48 = vld [vmem:[#allocation20 + $0x8b0] sm:$0xff]  ;;  %v6142_v58 = vld [vmem:[#allocation20 + $0x938] sm:$0xff] }
0x139d   :  { %9427 = vmatprep.subr.bf16.mxu1 %v9426_v50  ;;  %9435 = vmatprep.subr.bf16.mxu0 %v9434_v38  ;;  %v9458_v23 = vpack.c.bf16 %v5360_v13, %v5344_v20  ;;  %v6151_v50 = vld [vmem:[#allocation20 + $0x980] sm:$0xff]  ;;  %v6152_v38 = vld [vmem:[#allocation20 + $0x988] sm:$0xff]  ;;  %v6109_v13 = vld [vmem:[#allocation20 + $0x830] sm:$0xff]  ;;  %v9482_v55 = vpack.c.bf16 %v6126_v44, %v6125_v48 }
0x139e   :  { %7987 = vmatmul.mubr.msk.f32.gmra.mrb[70].mxu1 %vm423_vm2, %v11437_v4  ;;  %7989 = vmatmul.mubr.msk.f32.gmra.mrb[72].mxu0 %vm423_vm2, %v11437_v4  ;;  %v6127_v31 = vld [vmem:[#allocation20 + $0x8c0] sm:$0xff]  ;;  %v6128_v52 = vld [vmem:[#allocation20 + $0x8c8] sm:$0xff]  ;;  %v6166_v44 = vld [vmem:[#allocation20 + $0x9f8] sm:$0xff] }
0x139f   :  { %9429 = vmatpush1.bf16.msra.mxu1 %v9428_v17  ;;  %9437 = vmatpush1.bf16.msra.mxu0 %v9436_v41  ;;  %v9502_v17 = vpack.c.bf16 %v6152_v38, %v6151_v50  ;;  %v6135_v41 = vld [vmem:[#allocation20 + $0x900] sm:$0xff]  ;;  %v6112_v50 = vld [vmem:[#allocation20 + $0x848] sm:$0xff]  ;;  %v9486_v38 = vpack.c.bf16 %v6128_v52, %v6127_v31 }
0x13a0   :  { %5672 = vmatprep.mubr.f32.mxu1 %v10424_v14  ;;  %5749 = vmatprep.mubr.f32.mxu0 %v10424_v14  ;;  %v9504_v15 = vpack.c.bf16 %v6136_v7, %v6135_v41  ;;  %v6159_v51 = vld [vmem:[#allocation20 + $0x9c0] sm:$0xff]  ;;  %v6162_v41 = vld [vmem:[#allocation20 + $0x9d8] sm:$0xff]  ;;  %v6216_v52 = vld [vmem:[#allocation20 + $0xb88] sm:$0xff] }
0x13a1   :  { %9439 = vmatprep.subr.bf16.mxu1 %v9438_v10  ;;  %9447 = vmatprep.subr.bf16.mxu0 %v9446_v11  ;;  %v6154_v10 = vld [vmem:[#allocation20 + $0x998] sm:$0xff]  ;;  %v9472_v11 = vpack.c.bf16 %v6104_v57, %v6103_v0  ;;  %v6111_v8 = vld [vmem:[#allocation20 + $0x840] sm:$0xff]  ;;  %v6144_v0 = vld [vmem:[#allocation20 + $0x948] sm:$0xff] }
0x13a2   :  { %7990 = vmatmul.mubr.msk.f32.vlgmr.msra.gmra.mrb[72].mxu1 %vm423_vm2, %v11430_v56  ;;  %7992 = vmatmul.mubr.msk.f32.vlgmr.msra.gmra.mrb[74].mxu0 %vm423_vm2, %v11430_v56  ;;  %v6129_v57 = vld [vmem:[#allocation20 + $0x8d0] sm:$0xff]  ;;  %v9488_v7 = vpack.c.bf16 %v6112_v50, %v6111_v8 }
0x13a3   :  { %9441 = vmatpush1.bf16.msra.mxu1 %v9440_v24  ;;  %9449 = vmatpush1.bf16.msra.mxu0 %v9448_v25  ;;  %v9506_v24 = vpack.c.bf16 %v6154_v10, %v6153_v6  ;;  %v6137_v25 = vld [vmem:[#allocation20 + $0x910] sm:$0xff]  ;;  %v6114_v6 = vld [vmem:[#allocation20 + $0x858] sm:$0xff] }
0x13a4   :  { %5678 = vmatprep.mubr.f32.mxu1 %v10424_v14  ;;  %5755 = vmatprep.mubr.f32.mxu0 %v10424_v14  ;;  %v9508_v42 = vpack.c.bf16 %v6138_v2, %v6137_v25  ;;  %v6164_v25 = vld [vmem:[#allocation20 + $0x9e8] sm:$0xff]  ;;  %v9492_v2 = vpack.c.bf16 %v6114_v6, %v6113_v18  ;;  %v6186_v6 = vld [vmem:[#allocation20 + $0xa98] sm:$0xff] }
0x13a5   :  { %9443 = vmatprep.subr.bf16.mxu1 %v9442_v47  ;;  %9451 = vmatprep.subr.bf16.mxu0 %v9450_v30  ;;  %v6156_v47 = vld [vmem:[#allocation20 + $0x9a8] sm:$0xff]  ;;  %v9476_v30 = vpack.c.bf16 %v6106_v53, %v6105_v16  ;;  %v6146_v16 = vld [vmem:[#allocation20 + $0x958] sm:$0xff]  ;;  %v6131_v53 = vld [vmem:[#allocation20 + $0x8e0] sm:$0xff] }
0x13a6   :  { %7991 = vmatmul.mubr.msk.f32.gmra.mrb[74].mxu1 %vm423_vm2, %v11437_v4  ;;  %7993 = vmatmul.mubr.msk.f32.gmra.mrb[76].mxu0 %vm423_vm2, %v11437_v4 }
0x13a7   :  { %9445 = vmatpush1.bf16.msra.mxu1 %v9444_v62  ;;  %9453 = vmatpush1.bf16.msra.mxu0 %v9452_v63  ;;  %v9510_v62 = vpack.c.bf16 %v6156_v47, %v6155_v46  ;;  %v6139_v63 = vld [vmem:[#allocation20 + $0x920] sm:$0xff] }
0x13a8   :  { %5826 = vmatprep.mubr.f32.mxu1 %v10424_v14  ;;  %5903 = vmatprep.mubr.f32.mxu0 %v10424_v14  ;;  %v9512_v20 = vpack.c.bf16 %v6140_v49, %v6139_v63  ;;  %v6134_v63 = vld [vmem:[#allocation20 + $0x8f8] sm:$0xff]  ;;  %v6165_v49 = vld [vmem:[#allocation20 + $0x9f0] sm:$0xff] }
0x13a9   :  { %9455 = vmatprep.subr.bf16.mxu1 %v9454_v26  ;;  %9463 = vmatprep.subr.bf16.mxu0 %v9462_v27  ;;  %v6158_v26 = vld [vmem:[#allocation20 + $0x9b8] sm:$0xff]  ;;  %v9480_v27 = vpack.c.bf16 %v6108_v19, %v6107_v9  ;;  %v6148_v9 = vld [vmem:[#allocation20 + $0x968] sm:$0xff] }
0x13aa   :  { %7994 = vmatmul.mubr.msk.f32.vlgmr.msra.gmra.mrb[76].mxu1 %vm423_vm2, %v11430_v56  ;;  %7996 = vmatmul.mubr.msk.f32.vlgmr.msra.gmra.mrb[78].mxu0 %vm423_vm2, %v11430_v56 }
0x13ab   :  { %9457 = vmatpush1.bf16.msra.mxu1 %v9456_v60  ;;  %9465 = vmatpush1.bf16.msra.mxu0 %v9464_v12  ;;  %v9514_v60 = vpack.c.bf16 %v6158_v26, %v6157_v45  ;;  %v6141_v12 = vld [vmem:[#allocation20 + $0x930] sm:$0xff]  ;;  %v6118_v26 = vld [vmem:[#allocation20 + $0x878] sm:$0xff] }
0x13ac   :  { %5832 = vmatprep.mubr.f32.mxu1 %v10424_v14  ;;  %5909 = vmatprep.mubr.f32.mxu0 %v10424_v14  ;;  %v9516_v37 = vpack.c.bf16 %v6142_v58, %v6141_v12  ;;  %v6117_v45 = vld [vmem:[#allocation20 + $0x870] sm:$0xff]  ;;  %v6184_v12 = vld [vmem:[#allocation20 + $0xa88] sm:$0xff]  ;;  %v6215_v58 = vld [vmem:[#allocation20 + $0xb80] sm:$0xff] }
0x13ad   :  { %9459 = vmatprep.subr.bf16.mxu1 %v9458_v23  ;;  %9467 = vmatprep.subr.bf16.mxu0 %v9466_v39  ;;  %v6160_v23 = vld [vmem:[#allocation20 + $0x9c8] sm:$0xff]  ;;  %v9484_v39 = vpack.c.bf16 %v6110_v34, %v6109_v13  ;;  %v6149_v13 = vld [vmem:[#allocation20 + $0x970] sm:$0xff]  ;;  %v6150_v34 = vld [vmem:[#allocation20 + $0x978] sm:$0xff] }
0x13ae   :  { %7995 = vmatmul.mubr.msk.f32.gmra.mrb[78].mxu1 %vm423_vm2, %v11437_v4  ;;  %7997 = vmatmul.mubr.msk.f32.gmra.mrb[80].mxu0 %vm423_vm2, %v11437_v4 }
0x13af   :  { %9461 = vmatpush1.bf16.msra.mxu1 %v9460_v22  ;;  %9469 = vmatpush1.bf16.msra.mxu0 %v9468_v61  ;;  %v9518_v22 = vpack.c.bf16 %v6160_v23, %v6159_v51  ;;  %v6143_v61 = vld [vmem:[#allocation20 + $0x940] sm:$0xff]  ;;  %v9566_v51 = vpack.c.bf16 %v6216_v52, %v6215_v58  ;;  %v11481_v23 = vld [vmem:[#allocation19 + $0x10] sm:$0xff] }
0x13b0   :  { %5980 = vmatprep.mubr.f32.mxu1 %v10424_v14  ;;  %6057 = vmatprep.mubr.f32.mxu0 %v10424_v14  ;;  %v9520_v5 = vpack.c.bf16 %v6144_v0, %v6143_v61  ;;  %v5375_v8 = vrot.slane %v11481_v23, %v11098_v35  ;;  %v5383_v50 = vrot.slane %v11481_v23, %v11101_v36 }
0x13b1   :  { %9471 = vmatprep.subr.bf16.mxu1 %v9470_v3  ;;  %9503 = vmatprep.subr.bf16.mxu0 %v9502_v17  ;;  %v6130_v3 = vld [vmem:[#allocation20 + $0x8d8] sm:$0xff]  ;;  %v6161_v17 = vld [vmem:[#allocation20 + $0x9d0] sm:$0xff] }
0x13b2   :  { %7998 = vmatmul.mubr.msk.f32.vlgmr.msra.gmra.mrb[80].mxu1 %vm423_vm2, %v11430_v56  ;;  %8000 = vmatmul.mubr.msk.f32.vlgmr.msra.gmra.mrb[82].mxu0 %vm423_vm2, %v11430_v56  ;;  %v9490_v10 = vpack.c.bf16 %v6130_v3, %v6129_v57  ;;  %v6199_v57 = vld [vmem:[#allocation20 + $0xb00] sm:$0xff]  ;;  %v6200_v3 = vld [vmem:[#allocation20 + $0xb08] sm:$0xff] }
0x13b3   :  { %5986 = vmatprep.mubr.f32.mxu1 %v10424_v14  ;;  %6063 = vmatprep.mubr.f32.mxu0 %v10424_v14 }
0x13b4   :  { %9473 = vmatpush3.bf16.msra.mxu1 %v9472_v11  ;;  %9505 = vmatpush3.bf16.msra.mxu0 %v9504_v15  ;;  %v9522_v11 = vpack.c.bf16 %v6162_v41, %v6161_v17  ;;  %v6145_v15 = vld [vmem:[#allocation20 + $0x950] sm:$0xff] }
0x13b5   :  { %9475 = vmatprep.subr.bf16.mxu1 %v9474_v21  ;;  %9507 = vmatprep.subr.bf16.mxu0 %v9506_v24  ;;  %v6132_v21 = vld [vmem:[#allocation20 + $0x8e8] sm:$0xff]  ;;  %v6163_v24 = vld [vmem:[#allocation20 + $0x9e0] sm:$0xff]  ;;  %v9524_v28 = vpack.c.bf16 %v6146_v16, %v6145_v15  ;;  %v6185_v17 = vld [vmem:[#allocation20 + $0xa90] sm:$0xff] }
0x13b6   :  { %7999 = vmatmul.mubr.msk.f32.gmra.mrb[82].mxu1 %vm423_vm2, %v11437_v4  ;;  %8001 = vmatmul.mubr.msk.f32.gmra.mrb[84].mxu0 %vm423_vm2, %v11437_v4  ;;  %v9494_v46 = vpack.c.bf16 %v6132_v21, %v6131_v53  ;;  %v9526_v47 = vpack.c.bf16 %v6164_v25, %v6163_v24  ;;  %v9568_v21 = vpack.c.bf16 %v6200_v3, %v6199_v57  ;;  %v6169_v25 = vld [vmem:[#allocation20 + $0xa10] sm:$0xff]  ;;  %v6204_v3 = vld [vmem:[#allocation20 + $0xb28] sm:$0xff] }
0x13b7   :  { %v11493_v24 = vrot.slane %v11481_v23, %v11112_v43 }
0x13b8   :  { %9477 = vmatpush3.bf16.msra.mxu1 %v9476_v30  ;;  %9509 = vmatpush3.bf16.msra.mxu0 %v9508_v42  ;;  %v6116_v30 = vld [vmem:[#allocation20 + $0x868] sm:$0xff]  ;;  %v6147_v42 = vld [vmem:[#allocation20 + $0x960] sm:$0xff] }
0x13b9   :  { %9479 = vmatprep.subr.bf16.mxu1 %v9478_v40  ;;  %9511 = vmatprep.subr.bf16.mxu0 %v9510_v62  ;;  %v9496_v19 = vpack.c.bf16 %v6116_v30, %v6115_v29  ;;  %v9528_v40 = vpack.c.bf16 %v6148_v9, %v6147_v42  ;;  %v6133_v62 = vld [vmem:[#allocation20 + $0x8f0] sm:$0xff]  ;;  %v6170_v42 = vld [vmem:[#allocation20 + $0xa18] sm:$0xff] }
0x13ba   :  { %v9498_v48 = vpack.c.bf16 %v6134_v63, %v6133_v62  ;;  %v6201_v9 = vld [vmem:[#allocation20 + $0xb10] sm:$0xff] }
0x13bc   :  { %9481 = vmatpush3.bf16.msra.mxu1 %v9480_v27  ;;  %9513 = vmatpush3.bf16.msra.mxu0 %v9512_v20  ;;  %v9530_v27 = vpack.c.bf16 %v6166_v44, %v6165_v49  ;;  %v9500_v20 = vpack.c.bf16 %v6118_v26, %v6117_v45  ;;  %v6202_v44 = vld [vmem:[#allocation20 + $0xb18] sm:$0xff]  ;;  %v6187_v45 = vld [vmem:[#allocation20 + $0xaa0] sm:$0xff] }
0x13bd   :  { %9483 = vmatprep.subr.bf16.mxu1 %v9482_v55  ;;  %9515 = vmatprep.subr.bf16.mxu0 %v9514_v60  ;;  %v9532_v55 = vpack.c.bf16 %v6150_v34, %v6149_v13  ;;  %v6183_v60 = vld [vmem:[#allocation20 + $0xa80] sm:$0xff]  ;;  %v6188_v13 = vld [vmem:[#allocation20 + $0xaa8] sm:$0xff] }
0x13be   :  { %v9534_v31 = vpack.c.bf16 %v6184_v12, %v6183_v60  ;;  %v6219_v34 = vld [vmem:[#allocation20 + $0xba0] sm:$0xff] }
0x13bf   :  { %v6171_v60 = vld [vmem:[#allocation20 + $0xa20] sm:$0xff] }
0x13c0   :  { %9485 = vmatpush3.bf16.msra.mxu1 %v9484_v39  ;;  %9517 = vmatpush3.bf16.msra.mxu0 %v9516_v37  ;;  %v5371_v39 = vrot.slane %v11481_v23, %v11090_v32  ;;  %v5379_v37 = vrot.slane %v11481_v23, %v11093_v33 }
0x13c1   :  { %9487 = vmatprep.subr.bf16.mxu1 %v9486_v38  ;;  %9519 = vmatprep.subr.bf16.mxu0 %v9518_v22  ;;  %v6167_v38 = vld [vmem:[#allocation20 + $0xa00] sm:$0xff]  ;;  %v6168_v22 = vld [vmem:[#allocation20 + $0xa08] sm:$0xff] }
0x13c2   :  { %v9536_v53 = vpack.c.bf16 %v6168_v22, %v6167_v38 }
0x13c4   :  { %9489 = vmatpush3.bf16.msra.mxu1 %v9488_v7  ;;  %9521 = vmatpush3.bf16.msra.mxu0 %v9520_v5 }
0x13c5   :  { %9491 = vmatprep.subr.bf16.mxu1 %v9490_v10  ;;  %9523 = vmatprep.subr.bf16.mxu0 %v9522_v11  ;;  %v6217_v10 = vld [vmem:[#allocation20 + $0xb90] sm:$0xff]  ;;  %v6218_v11 = vld [vmem:[#allocation20 + $0xb98] sm:$0xff] }
0x13c6   :  { %v9570_v30 = vpack.c.bf16 %v6218_v11, %v6217_v10 }
0x13c8   :  { %9493 = vmatpush3.bf16.msra.mxu1 %v9492_v2  ;;  %9525 = vmatpush3.bf16.msra.mxu0 %v9524_v28 }
0x13c9   :  { %9495 = vmatprep.subr.bf16.mxu1 %v9494_v46  ;;  %9527 = vmatprep.subr.bf16.mxu0 %v9526_v47  ;;  %v9538_v47 = vpack.c.bf16 %v6186_v6, %v6185_v17  ;;  %v6189_v17 = vld [vmem:[#allocation20 + $0xab0] sm:$0xff]  ;;  %v6222_v6 = vld [vmem:[#allocation20 + $0xbb8] sm:$0xff] }
0x13cc   :  { %9497 = vmatpush3.bf16.msra.mxu1 %v9496_v19  ;;  %9529 = vmatpush3.bf16.msra.mxu0 %v9528_v40 }
0x13cd   :  { %9499 = vmatprep.subr.bf16.mxu1 %v9498_v48  ;;  %9531 = vmatprep.subr.bf16.mxu0 %v9530_v27 }
0x13d0   :  { %9501 = vmatpush3.bf16.msra.mxu1 %v9500_v20  ;;  %9533 = vmatpush3.bf16.msra.mxu0 %v9532_v55  ;;  %v11497_v20 = vrot.slane %v11481_v23, %v11115_v59  ;;  %v6220_v55 = vld [vmem:[#allocation20 + $0xba8] sm:$0xff] }
0x13d1   :  { %9535 = vmatprep.subr.bf16.mxu1 %v9534_v31  ;;  %9567 = vmatprep.subr.bf16.mxu0 %v9566_v51  ;;  %v9540_v51 = vpack.c.bf16 %v6170_v42, %v6169_v25  ;;  %v9574_v57 = vpack.c.bf16 %v6220_v55, %v6219_v34  ;;  %v6173_v25 = vld [vmem:[#allocation20 + $0xa30] sm:$0xff]  ;;  %v6206_v42 = vld [vmem:[#allocation20 + $0xb38] sm:$0xff] }
0x146d   :  { %v5520_v61 = vpop.f32.mrb[68].mxu1  ;;  %v5597_v0 = vpop.f32.mrb[70].mxu0 }
0x146e   :  { %v5521_v41 = vadd.f32 %v5520_v61, %v5371_v39  ;;  %v5598_v7 = vadd.f32 %v5597_v0, %v5379_v37  ;;  %v5522_v5 = vpop.f32.mrb[69].mxu1  ;;  %v5599_v18 = vpop.f32.mrb[71].mxu0  ;;  %v9542_v0 = vpack.c.bf16 %v6188_v13, %v6187_v45  ;;  %v6175_v45 = vld [vmem:[#allocation20 + $0xa40] sm:$0xff] }
0x146f   :  { %v5523_v15 = vadd.f32 %v5522_v5, %v5375_v8  ;;  %v5600_v16 = vadd.f32 %v5599_v18, %v5383_v50  ;;  %v6190_v5 = vld [vmem:[#allocation20 + $0xab8] sm:$0xff]  ;;  %v6221_v18 = vld [vmem:[#allocation20 + $0xbb0] sm:$0xff] }
0x1470   :  { %v6070_v19 = vmax.f32 %v5521_v41, 0.0  ;;  %v6072_v40 = vmax.f32 %v5598_v7, 0.0 }
0x1471   :  { %v6071_v2 = vmax.f32 %v5523_v15, 0.0  ;;  %v6073_v28 = vmax.f32 %v5600_v16, 0.0  ;;  %v5526_v29 = vpop.f32.mrb[70].mxu1  ;;  %v5603_v46 = vpop.f32.mrb[72].mxu0 }
0x1472   :  { %v5527_v62 = vadd.f32 %v5526_v29, %v5371_v39  ;;  %v5604_v63 = vadd.f32 %v5603_v46, %v5379_v37  ;;  %v5528_v49 = vpop.f32.mrb[71].mxu1  ;;  %v5605_v48 = vpop.f32.mrb[73].mxu0  ;;  %v9572_v39 = vpack.c.bf16 %v6202_v44, %v6201_v9  ;;  %v6172_v37 = vld [vmem:[#allocation20 + $0xa28] sm:$0xff]  ;;  %v9546_v46 = vpack.c.bf16 %v6190_v5, %v6189_v17  ;;  %v6191_v9 = vld [vmem:[#allocation20 + $0xac0] sm:$0xff]  ;;  %v6210_v5 = vld [vmem:[#allocation20 + $0xb58] sm:$0xff] }
0x1473   :  { %v5529_v26 = vadd.f32 %v5528_v49, %v5375_v8  ;;  %v5606_v27 = vadd.f32 %v5605_v48, %v5383_v50  ;;  %6431 = vmatprep.mubr.f32.mxu1 %v6071_v2  ;;  %6506 = vmatprep.mubr.f32.mxu0 %v6073_v28  ;;  %v6203_v8 = vld [vmem:[#allocation20 + $0xb20] sm:$0xff]  ;;  %v6174_v2 = vld [vmem:[#allocation20 + $0xa38] sm:$0xff] }
0x1474   :  { %6432 = vmatmul.mubr.f32.vlgmr.msra.gmra.mrb[84].mxu1 %v6070_v19  ;;  %6507 = vmatmul.mubr.f32.vlgmr.msra.gmra.mrb[86].mxu0 %v6072_v40  ;;  %v6086_v50 = vmax.f32 %v5527_v62, 0.0  ;;  %v6088_v38 = vmax.f32 %v5604_v63, 0.0  ;;  %v6192_v19 = vld [vmem:[#allocation20 + $0xac8] sm:$0xff]  ;;  %v6223_v40 = vld [vmem:[#allocation20 + $0xbc0] sm:$0xff]  ;;  %v9548_v48 = vpack.c.bf16 %v6174_v2, %v6173_v25 }
0x1475   :  { %v6087_v12 = vmax.f32 %v5529_v26, 0.0  ;;  %v6089_v58 = vmax.f32 %v5606_v27, 0.0  ;;  %9537 = vmatpush3.bf16.msra.mxu1 %v9536_v53  ;;  %9569 = vmatpush3.bf16.msra.mxu0 %v9568_v21  ;;  %v11499_v31 = vpop.f32.mrb[72].mxu1  ;;  %v11501_v52 = vpop.f32.mrb[74].mxu0  ;;  %v9544_v53 = vpack.c.bf16 %v6172_v37, %v6171_v60  ;;  %v9576_v21 = vpack.c.bf16 %v6204_v3, %v6203_v8  ;;  %v6224_v62 = vld [vmem:[#allocation20 + $0xbc8] sm:$0xff]  ;;  %v6207_v60 = vld [vmem:[#allocation20 + $0xb40] sm:$0xff] }
0x1476   :  { %v5676_v22 = vpop.f32.mrb[73].mxu1  ;;  %v5753_v61 = vpop.f32.mrb[75].mxu0  ;;  %9539 = vmatprep.subr.bf16.mxu1 %v9538_v47  ;;  %9571 = vmatprep.subr.bf16.mxu0 %v9570_v30  ;;  %v9578_v47 = vpack.c.bf16 %v6222_v6, %v6221_v18  ;;  %v6205_v30 = vld [vmem:[#allocation20 + $0xb30] sm:$0xff]  ;;  %v6176_v26 = vld [vmem:[#allocation20 + $0xa48] sm:$0xff]  ;;  %v9550_v34 = vpack.c.bf16 %v6192_v19, %v6191_v9  ;;  %v9582_v55 = vpack.c.bf16 %v6224_v62, %v6223_v40  ;;  %v6226_v37 = vld [vmem:[#allocation20 + $0xbd8] sm:$0xff] }
0x1477   :  { %v5677_v41 = vadd.f32 %v5676_v22, %v11493_v24  ;;  %v5754_v7 = vadd.f32 %v5753_v61, %v11497_v20  ;;  %6436 = vmatprep.mubr.f32.mxu1 %v6087_v12  ;;  %6511 = vmatprep.mubr.f32.mxu0 %v6089_v58  ;;  %v9580_v44 = vpack.c.bf16 %v6206_v42, %v6205_v30  ;;  %v6208_v12 = vld [vmem:[#allocation20 + $0xb48] sm:$0xff]  ;;  %v6193_v58 = vld [vmem:[#allocation20 + $0xad0] sm:$0xff]  ;;  %v6195_v18 = vld [vmem:[#allocation20 + $0xae0] sm:$0xff] }
0x1478   :  { %6437 = vmatmul.mubr.f32.gmra.mrb[86].mxu1 %v6086_v50  ;;  %6512 = vmatmul.mubr.f32.gmra.mrb[88].mxu0 %v6088_v38  ;;  %v9552_v38 = vpack.c.bf16 %v6176_v26, %v6175_v45  ;;  %v9584_v22 = vpack.c.bf16 %v6208_v12, %v6207_v60  ;;  %v6177_v61 = vld [vmem:[#allocation20 + $0xa50] sm:$0xff]  ;;  %v6196_v6 = vld [vmem:[#allocation20 + $0xae8] sm:$0xff]  ;;  %v6211_v40 = vld [vmem:[#allocation20 + $0xb60] sm:$0xff] }
0x1479   :  { %v6075_v10 = vmax.f32 %v5677_v41, 0.0  ;;  %v6077_v11 = vmax.f32 %v5754_v7, 0.0  ;;  %9541 = vmatpush3.bf16.msra.mxu1 %v9540_v51  ;;  %9573 = vmatpush3.bf16.msra.mxu0 %v9572_v39  ;;  %v11505_v15 = vpop.f32.mrb[74].mxu1  ;;  %v11507_v16 = vpop.f32.mrb[76].mxu0  ;;  %v6194_v51 = vld [vmem:[#allocation20 + $0xad8] sm:$0xff]  ;;  %v6225_v39 = vld [vmem:[#allocation20 + $0xbd0] sm:$0xff]  ;;  %v9558_v9 = vpack.c.bf16 %v6196_v6, %v6195_v18 }
0x147a   :  { %v11509_v28 = vpop.f32.mrb[75].mxu1  ;;  %v11511_v29 = vpop.f32.mrb[77].mxu0  ;;  %9543 = vmatprep.subr.bf16.mxu1 %v9542_v0  ;;  %9575 = vmatprep.subr.bf16.mxu0 %v9574_v57  ;;  %v6178_v0 = vld [vmem:[#allocation20 + $0xa58] sm:$0xff]  ;;  %v9554_v17 = vpack.c.bf16 %v6194_v51, %v6193_v58  ;;  %v9586_v41 = vpack.c.bf16 %v6226_v37, %v6225_v39  ;;  %v6209_v7 = vld [vmem:[#allocation20 + $0xb50] sm:$0xff]  ;;  %v6212_v62 = vld [vmem:[#allocation20 + $0xb68] sm:$0xff] }
0x147b   :  { %6581 = vmatprep.mubr.f32.mxu1 %v6075_v10  ;;  %6656 = vmatprep.mubr.f32.mxu0 %v6077_v11  ;;  %v6227_v10 = vld [vmem:[#allocation20 + $0xbe0] sm:$0xff]  ;;  %v6228_v11 = vld [vmem:[#allocation20 + $0xbe8] sm:$0xff]  ;;  %v9556_v25 = vpack.c.bf16 %v6178_v0, %v6177_v61  ;;  %v9588_v2 = vpack.c.bf16 %v6210_v5, %v6209_v7  ;;  %v6229_v45 = vld [vmem:[#allocation20 + $0xbf0] sm:$0xff]  ;;  %v9592_v58 = vpack.c.bf16 %v6212_v62, %v6211_v40 }
0x147c   :  { %v9590_v19 = vpack.c.bf16 %v6228_v11, %v6227_v10  ;;  %v6230_v26 = vld [vmem:[#allocation20 + $0xbf8] sm:$0xff]  ;;  %v6181_v51 = vld [vmem:[#allocation20 + $0xa70] sm:$0xff]  ;;  %v6247_v7 = vld [vmem:[#allocation20 + $0xc80] sm:$0xff] }
0x147d   :  { %9545 = vmatpush3.bf16.msra.mxu1 %v9544_v53  ;;  %9577 = vmatpush3.bf16.msra.mxu0 %v9576_v21  ;;  %v11513_v63 = vpop.f32.mrb[76].mxu1  ;;  %v11515_v49 = vpop.f32.mrb[78].mxu0  ;;  %v6182_v39 = vld [vmem:[#allocation20 + $0xa78] sm:$0xff]  ;;  %v6213_v37 = vld [vmem:[#allocation20 + $0xb70] sm:$0xff]  ;;  %v6248_v5 = vld [vmem:[#allocation20 + $0xc88] sm:$0xff] }
0x147e   :  { %v11517_v27 = vpop.f32.mrb[77].mxu1  ;;  %v11519_v13 = vpop.f32.mrb[79].mxu0  ;;  %9547 = vmatprep.subr.bf16.mxu1 %v9546_v46  ;;  %9579 = vmatprep.subr.bf16.mxu0 %v9578_v47  ;;  %v6179_v46 = vld [vmem:[#allocation20 + $0xa60] sm:$0xff]  ;;  %v6180_v47 = vld [vmem:[#allocation20 + $0xa68] sm:$0xff]  ;;  %v11549_v10 = vld [vmem:[#allocation19 + $0x18] sm:$0xff] }
0x147f   :  { %v9560_v12 = vpack.c.bf16 %v6180_v47, %v6179_v46  ;;  %v6279_v18 = vld [vmem:[#allocation20 + $0xd80] sm:$0xff]  ;;  %v6280_v6 = vld [vmem:[#allocation20 + $0xd88] sm:$0xff]  ;;  %v9598_v46 = vpack.c.bf16 %v6248_v5, %v6247_v7 }
0x1480   :  { %v6231_v11 = vld [vmem:[#allocation20 + $0xc00] sm:$0xff]  ;;  %v6264_v40 = vld [vmem:[#allocation20 + $0xd08] sm:$0xff] }
0x1481   :  { %9549 = vmatpush3.bf16.msra.mxu1 %v9548_v48  ;;  %9581 = vmatpush3.bf16.msra.mxu0 %v9580_v44  ;;  %v11521_v8 = vpop.f32.mrb[78].mxu1  ;;  %v11523_v50 = vpop.f32.mrb[80].mxu0  ;;  %v6197_v48 = vld [vmem:[#allocation20 + $0xaf0] sm:$0xff]  ;;  %v6198_v44 = vld [vmem:[#allocation20 + $0xaf8] sm:$0xff]  ;;  %v6263_v47 = vld [vmem:[#allocation20 + $0xd00] sm:$0xff] }
0x1482   :  { %v11525_v57 = vpop.f32.mrb[79].mxu1  ;;  %v11527_v3 = vpop.f32.mrb[81].mxu0  ;;  %9551 = vmatprep.subr.bf16.mxu1 %v9550_v34  ;;  %9583 = vmatprep.subr.bf16.mxu0 %v9582_v55  ;;  %v5387_v34 = vrot.slane %v11481_v23, %v11156_v54  ;;  %v9562_v0 = vpack.c.bf16 %v6198_v44, %v6197_v48  ;;  %v9630_v48 = vpack.c.bf16 %v6280_v6, %v6279_v18  ;;  %v6250_v44 = vld [vmem:[#allocation20 + $0xc98] sm:$0xff]  ;;  %v6265_v18 = vld [vmem:[#allocation20 + $0xd10] sm:$0xff] }
0x1483   :  { %v6266_v6 = vld [vmem:[#allocation20 + $0xd18] sm:$0xff] }
0x1485   :  { %9553 = vmatpush3.bf16.msra.mxu1 %v9552_v38  ;;  %9585 = vmatpush3.bf16.msra.mxu0 %v9584_v22  ;;  %v11529_v53 = vpop.f32.mrb[80].mxu1  ;;  %v11531_v21 = vpop.f32.mrb[82].mxu0  ;;  %v5395_v38 = vrot.slane %v11481_v23, %v11163_v1  ;;  %v9564_v23 = vpack.c.bf16 %v6182_v39, %v6181_v51  ;;  %v11559_v51 = vrot.slane %v11549_v10, %v11098_v35  ;;  %v6233_v35 = vld [vmem:[#allocation20 + $0xc10] sm:$0xff] }
0x1486   :  { %v11533_v30 = vpop.f32.mrb[81].mxu1  ;;  %v11535_v42 = vpop.f32.mrb[83].mxu0  ;;  %9555 = vmatprep.subr.bf16.mxu1 %v9554_v17  ;;  %9587 = vmatprep.subr.bf16.mxu0 %v9586_v41  ;;  %v9594_v17 = vpack.c.bf16 %v6230_v26, %v6229_v45  ;;  %v6214_v41 = vld [vmem:[#allocation20 + $0xb78] sm:$0xff]  ;;  %v6281_v45 = vld [vmem:[#allocation20 + $0xd90] sm:$0xff]  ;;  %v9632_v39 = vpack.c.bf16 %v6264_v40, %v6263_v47 }
0x1487   :  { %v5752_v62 = vadd.f32 %v11501_v52, %v5395_v38  ;;  %v6282_v26 = vld [vmem:[#allocation20 + $0xd98] sm:$0xff] }
0x1489   :  { %9557 = vmatpush3.bf16.msra.mxu1 %v9556_v25  ;;  %9589 = vmatpush3.bf16.msra.mxu0 %v9588_v2  ;;  %v11539_v55 = vpop.f32.mrb[82].mxu1  ;;  %v11541_v60 = vpop.f32.mrb[84].mxu0  ;;  %v6232_v25 = vld [vmem:[#allocation20 + $0xc08] sm:$0xff]  ;;  %v9596_v2 = vpack.c.bf16 %v6214_v41, %v6213_v37  ;;  %v6076_v41 = vmax.f32 %v5752_v62, 0.0 }
0x148a   :  { %v11545_v22 = vpop.f32.mrb[83].mxu1  ;;  %v11547_v61 = vpop.f32.mrb[85].mxu0  ;;  %9559 = vmatprep.subr.bf16.mxu1 %v9558_v9  ;;  %9591 = vmatprep.subr.bf16.mxu0 %v9590_v19  ;;  %v6249_v9 = vld [vmem:[#allocation20 + $0xc90] sm:$0xff]  ;;  %v5675_v19 = vadd.f32 %v11499_v31, %v5387_v34  ;;  %v11563_v31 = vrot.slane %v11549_v10, %v11101_v36  ;;  %v9600_v52 = vpack.c.bf16 %v6232_v25, %v6231_v11  ;;  %v6251_v11 = vld [vmem:[#allocation20 + $0xca0] sm:$0xff]  ;;  %v6268_v62 = vld [vmem:[#allocation20 + $0xd28] sm:$0xff] }
0x148b   :  { %v9602_v37 = vpack.c.bf16 %v6250_v44, %v6249_v9  ;;  %v5831_v36 = vadd.f32 %v11517_v27, %v11559_v51  ;;  %v6235_v27 = vld [vmem:[#allocation20 + $0xc20] sm:$0xff]  ;;  %v6254_v44 = vld [vmem:[#allocation20 + $0xcb8] sm:$0xff] }
0x148c   :  { %v5908_v5 = vadd.f32 %v11519_v13, %v11563_v31 }
0x148d   :  { %9561 = vmatpush3.bf16.msra.mxu1 %v9560_v12  ;;  %9593 = vmatpush3.bf16.msra.mxu0 %v9592_v58  ;;  %v5683_v12 = vadd.f32 %v11509_v28, %v11493_v24  ;;  %v5760_v58 = vadd.f32 %v11511_v29, %v11497_v20  ;;  %v5681_v24 = vadd.f32 %v11505_v15, %v5387_v34  ;;  %v6234_v28 = vld [vmem:[#allocation20 + $0xc18] sm:$0xff]  ;;  %v6252_v15 = vld [vmem:[#allocation20 + $0xca8] sm:$0xff]  ;;  %v6283_v34 = vld [vmem:[#allocation20 + $0xda0] sm:$0xff]  ;;  %v6079_v47 = vmax.f32 %v5831_v36, 0.0 }
0x148e   :  { %9563 = vmatprep.subr.bf16.mxu1 %v9562_v0  ;;  %9595 = vmatprep.subr.bf16.mxu0 %v9594_v17  ;;  %v9634_v0 = vpack.c.bf16 %v6282_v26, %v6281_v45  ;;  %v6074_v17 = vmax.f32 %v5675_v19, 0.0  ;;  %v5758_v20 = vadd.f32 %v11507_v16, %v5395_v38  ;;  %v6284_v16 = vld [vmem:[#allocation20 + $0xda8] sm:$0xff]  ;;  %v6081_v13 = vmax.f32 %v5908_v5, 0.0  ;;  %v6267_v19 = vld [vmem:[#allocation20 + $0xd20] sm:$0xff]  ;;  %v6285_v45 = vld [vmem:[#allocation20 + $0xdb0] sm:$0xff] }
0x148f   :  { %v6091_v29 = vmax.f32 %v5683_v12, 0.0  ;;  %v6093_v7 = vmax.f32 %v5760_v58, 0.0  ;;  %v6090_v38 = vmax.f32 %v5681_v24, 0.0  ;;  %v9606_v40 = vpack.c.bf16 %v6252_v15, %v6251_v11  ;;  %v6286_v26 = vld [vmem:[#allocation20 + $0xdb8] sm:$0xff]  ;;  %v6255_v24 = vld [vmem:[#allocation20 + $0xcc0] sm:$0xff]  ;;  %v6240_v5 = vld [vmem:[#allocation20 + $0xc48] sm:$0xff] }
0x1490   :  { %v6092_v25 = vmax.f32 %v5758_v20, 0.0  ;;  %v9638_v9 = vpack.c.bf16 %v6284_v16, %v6283_v34  ;;  %v9640_v58 = vpack.c.bf16 %v6268_v62, %v6267_v19  ;;  %v6256_v20 = vld [vmem:[#allocation20 + $0xcc8] sm:$0xff]  ;;  %v6239_v36 = vld [vmem:[#allocation20 + $0xc40] sm:$0xff]  ;;  %v6257_v34 = vld [vmem:[#allocation20 + $0xcd0] sm:$0xff] }
0x1491   :  { %9565 = vmatpush3.bf16.msra.mxu1 %v9564_v23  ;;  %9597 = vmatpush3.bf16.msra.mxu0 %v9596_v2  ;;  %v9604_v23 = vpack.c.bf16 %v6234_v28, %v6233_v35  ;;  %v9636_v2 = vpack.c.bf16 %v6266_v6, %v6265_v18  ;;  %v6287_v35 = vld [vmem:[#allocation20 + $0xdc0] sm:$0xff]  ;;  %v6288_v28 = vld [vmem:[#allocation20 + $0xdc8] sm:$0xff]  ;;  %v9614_v18 = vpack.c.bf16 %v6256_v20, %v6255_v24  ;;  %v6258_v16 = vld [vmem:[#allocation20 + $0xcd8] sm:$0xff] }
0x1492   :  { %9599 = vmatprep.subr.bf16.mxu1 %v9598_v46  ;;  %9631 = vmatprep.subr.bf16.mxu0 %v9630_v48  ;;  %v6236_v46 = vld [vmem:[#allocation20 + $0xc28] sm:$0xff]  ;;  %v6253_v48 = vld [vmem:[#allocation20 + $0xcb0] sm:$0xff]  ;;  %v9646_v6 = vpack.c.bf16 %v6288_v28, %v6287_v35  ;;  %v6271_v11 = vld [vmem:[#allocation20 + $0xd40] sm:$0xff]  ;;  %v5403_v35 = vrot.slane %v11549_v10, %v11090_v32 }
0x1493   :  { %v9608_v12 = vpack.c.bf16 %v6236_v46, %v6235_v27  ;;  %v6272_v15 = vld [vmem:[#allocation20 + $0xd48] sm:$0xff]  ;;  %v6241_v27 = vld [vmem:[#allocation20 + $0xc50] sm:$0xff]  ;;  %v6242_v46 = vld [vmem:[#allocation20 + $0xc58] sm:$0xff] }
0x1494   :  { %6582 = vmatmul.mubr.f32.vlgmr.msra.gmra.mrb[88].mxu1 %v6074_v17  ;;  %6657 = vmatmul.mubr.f32.vlgmr.msra.gmra.mrb[90].mxu0 %v6076_v41  ;;  %v6269_v17 = vld [vmem:[#allocation20 + $0xd30] sm:$0xff]  ;;  %v6270_v41 = vld [vmem:[#allocation20 + $0xd38] sm:$0xff]  ;;  %v6259_v19 = vld [vmem:[#allocation20 + $0xce0] sm:$0xff] }
0x1495   :  { %6586 = vmatprep.mubr.f32.mxu1 %v6091_v29  ;;  %6661 = vmatprep.mubr.f32.mxu0 %v6093_v7  ;;  %v9644_v7 = vpack.c.bf16 %v6270_v41, %v6269_v17  ;;  %v6260_v62 = vld [vmem:[#allocation20 + $0xce8] sm:$0xff]  ;;  %v6261_v17 = vld [vmem:[#allocation20 + $0xcf0] sm:$0xff]  ;;  %v6262_v41 = vld [vmem:[#allocation20 + $0xcf8] sm:$0xff] }
0x1496   :  { %9601 = vmatpush3.bf16.msra.mxu1 %v9600_v52  ;;  %9633 = vmatpush3.bf16.msra.mxu0 %v9632_v39  ;;  %v6237_v52 = vld [vmem:[#allocation20 + $0xc30] sm:$0xff]  ;;  %v6238_v39 = vld [vmem:[#allocation20 + $0xc38] sm:$0xff]  ;;  %v6295_v32 = vld [vmem:[#allocation20 + $0xe00] sm:$0xff] }
0x1497   :  { %9603 = vmatprep.subr.bf16.mxu1 %v9602_v37  ;;  %9635 = vmatprep.subr.bf16.mxu0 %v9634_v0  ;;  %v9610_v37 = vpack.c.bf16 %v6254_v44, %v6253_v48  ;;  %v9642_v0 = vpack.c.bf16 %v6286_v26, %v6285_v45  ;;  %v9612_v29 = vpack.c.bf16 %v6238_v39, %v6237_v52  ;;  %v6291_v48 = vld [vmem:[#allocation20 + $0xde0] sm:$0xff]  ;;  %v6292_v44 = vld [vmem:[#allocation20 + $0xde8] sm:$0xff]  ;;  %v6293_v24 = vld [vmem:[#allocation20 + $0xdf0] sm:$0xff] }
0x1498   :  { %6587 = vmatmul.mubr.f32.gmra.mrb[90].mxu1 %v6090_v38  ;;  %6662 = vmatmul.mubr.f32.gmra.mrb[92].mxu0 %v6092_v25  ;;  %v6289_v38 = vld [vmem:[#allocation20 + $0xdd0] sm:$0xff]  ;;  %v6290_v25 = vld [vmem:[#allocation20 + $0xdd8] sm:$0xff]  ;;  %v9620_v45 = vpack.c.bf16 %v6242_v46, %v6241_v27  ;;  %v9622_v52 = vpack.c.bf16 %v6260_v62, %v6259_v19  ;;  %v9654_v39 = vpack.c.bf16 %v6292_v44, %v6291_v48 }
0x1499   :  { %6731 = vmatprep.mubr.f32.mxu1 %v6079_v47  ;;  %6806 = vmatprep.mubr.f32.mxu0 %v6081_v13  ;;  %v9618_v47 = vpack.c.bf16 %v6258_v16, %v6257_v34  ;;  %v9650_v13 = vpack.c.bf16 %v6290_v25, %v6289_v38  ;;  %v6294_v20 = vld [vmem:[#allocation20 + $0xdf8] sm:$0xff]  ;;  %v6311_v34 = vld [vmem:[#allocation20 + $0xe80] sm:$0xff]  ;;  %v6312_v16 = vld [vmem:[#allocation20 + $0xe88] sm:$0xff] }
0x149a   :  { %9605 = vmatpush3.bf16.msra.mxu1 %v9604_v23  ;;  %9637 = vmatpush3.bf16.msra.mxu0 %v9636_v2  ;;  %v9616_v23 = vpack.c.bf16 %v6240_v5, %v6239_v36  ;;  %v9648_v2 = vpack.c.bf16 %v6272_v15, %v6271_v11  ;;  %v6246_v36 = vld [vmem:[#allocation20 + $0xc78] sm:$0xff]  ;;  %v6277_v5 = vld [vmem:[#allocation20 + $0xd70] sm:$0xff]  ;;  %v9658_v11 = vpack.c.bf16 %v6294_v20, %v6293_v24  ;;  %v6343_v38 = vld [vmem:[#allocation20 + $0xf80] sm:$0xff] }
0x149b   :  { %9607 = vmatprep.subr.bf16.mxu1 %v9606_v40  ;;  %9639 = vmatprep.subr.bf16.mxu0 %v9638_v9  ;;  %v6273_v40 = vld [vmem:[#allocation20 + $0xd50] sm:$0xff]  ;;  %v6274_v9 = vld [vmem:[#allocation20 + $0xd58] sm:$0xff]  ;;  %v6344_v25 = vld [vmem:[#allocation20 + $0xf88] sm:$0xff]  ;;  %v9662_v46 = vpack.c.bf16 %v6312_v16, %v6311_v34 }
0x149c   :  { %v9652_v26 = vpack.c.bf16 %v6274_v9, %v6273_v40  ;;  %v6278_v15 = vld [vmem:[#allocation20 + $0xd78] sm:$0xff]  ;;  %v6313_v40 = vld [vmem:[#allocation20 + $0xe90] sm:$0xff]  ;;  %v9694_v19 = vpack.c.bf16 %v6344_v25, %v6343_v38  ;;  %v6331_v34 = vld [vmem:[#allocation20 + $0xf20] sm:$0xff] }
0x149d   :  { %v9660_v27 = vpack.c.bf16 %v6278_v15, %v6277_v5  ;;  %v6314_v62 = vld [vmem:[#allocation20 + $0xe98] sm:$0xff]  ;;  %v6345_v48 = vld [vmem:[#allocation20 + $0xf90] sm:$0xff]  ;;  %v6332_v16 = vld [vmem:[#allocation20 + $0xf28] sm:$0xff] }
0x149e   :  { %9609 = vmatpush3.bf16.msra.mxu1 %v9608_v12  ;;  %9641 = vmatpush3.bf16.msra.mxu0 %v9640_v58  ;;  %v6243_v12 = vld [vmem:[#allocation20 + $0xc60] sm:$0xff]  ;;  %v6244_v58 = vld [vmem:[#allocation20 + $0xc68] sm:$0xff]  ;;  %v6346_v44 = vld [vmem:[#allocation20 + $0xf98] sm:$0xff] }
0x149f   :  { %9611 = vmatprep.subr.bf16.mxu1 %v9610_v37  ;;  %9643 = vmatprep.subr.bf16.mxu0 %v9642_v0  ;;  %v6275_v37 = vld [vmem:[#allocation20 + $0xd60] sm:$0xff]  ;;  %v6276_v0 = vld [vmem:[#allocation20 + $0xd68] sm:$0xff]  ;;  %v9624_v28 = vpack.c.bf16 %v6244_v58, %v6243_v12  ;;  %v11583_v12 = vrot.slane %v11549_v10, %v11112_v43  ;;  %v6297_v43 = vld [vmem:[#allocation20 + $0xe10] sm:$0xff] }
0x14a0   :  { %v6329_v24 = vld [vmem:[#allocation20 + $0xf10] sm:$0xff]  ;;  %v6330_v20 = vld [vmem:[#allocation20 + $0xf18] sm:$0xff] }
0x14a1   :  { %v9700_v5 = vpack.c.bf16 %v6330_v20, %v6329_v24  ;;  %v6317_v38 = vld [vmem:[#allocation20 + $0xeb0] sm:$0xff]  ;;  %v6318_v25 = vld [vmem:[#allocation20 + $0xeb8] sm:$0xff] }
0x14a2   :  { %9613 = vmatpush3.bf16.msra.mxu1 %v9612_v29  ;;  %9645 = vmatpush3.bf16.msra.mxu0 %v9644_v7  ;;  %v9656_v29 = vpack.c.bf16 %v6276_v0, %v6275_v37  ;;  %v6245_v7 = vld [vmem:[#allocation20 + $0xc70] sm:$0xff] }
0x14a3   :  { %9615 = vmatprep.subr.bf16.mxu1 %v9614_v18  ;;  %9647 = vmatprep.subr.bf16.mxu0 %v9646_v6  ;;  %v5411_v18 = vrot.slane %v11549_v10, %v11093_v33  ;;  %v9626_v6 = vpack.c.bf16 %v6262_v41, %v6261_v17  ;;  %v5829_v33 = vadd.f32 %v11513_v63, %v5403_v35 }
0x14a4   :  { %v11587_v63 = vrot.slane %v11549_v10, %v11115_v59  ;;  %v5985_v59 = vadd.f32 %v11533_v30, %v11583_v12  ;;  %v6299_v30 = vld [vmem:[#allocation20 + $0xe20] sm:$0xff] }
0x14a5   :  { %v5906_v9 = vadd.f32 %v11515_v49, %v5411_v18  ;;  %v6078_v37 = vmax.f32 %v5829_v33, 0.0  ;;  %v6333_v33 = vld [vmem:[#allocation20 + $0xf30] sm:$0xff] }
0x14a6   :  { %9617 = vmatpush3.bf16.msra.mxu1 %v9616_v23  ;;  %9649 = vmatpush3.bf16.msra.mxu0 %v9648_v2  ;;  %v6296_v23 = vld [vmem:[#allocation20 + $0xe08] sm:$0xff]  ;;  %v9628_v2 = vpack.c.bf16 %v6246_v36, %v6245_v7  ;;  %v6062_v41 = vadd.f32 %v11535_v42, %v11587_v63 }
0x14a7   :  { %9619 = vmatprep.subr.bf16.mxu1 %v9618_v47  ;;  %9651 = vmatprep.subr.bf16.mxu0 %v9650_v13  ;;  %v6327_v47 = vld [vmem:[#allocation20 + $0xf00] sm:$0xff]  ;;  %v6328_v13 = vld [vmem:[#allocation20 + $0xf08] sm:$0xff]  ;;  %v9664_v49 = vpack.c.bf16 %v6296_v23, %v6295_v32  ;;  %v6080_v0 = vmax.f32 %v5906_v9, 0.0  ;;  %v6349_v32 = vld [vmem:[#allocation20 + $0xfb0] sm:$0xff] }
0x14a8   :  { %v9696_v58 = vpack.c.bf16 %v6328_v13, %v6327_v47  ;;  %v6085_v42 = vmax.f32 %v6062_v41, 0.0  ;;  %v6350_v23 = vld [vmem:[#allocation20 + $0xfb8] sm:$0xff]  ;;  %v9674_v13 = vpack.c.bf16 %v6318_v25, %v6317_v38  ;;  %v6357_v38 = vld [vmem:[#allocation20 + $0xff0] sm:$0xff] }
0x14a9   :  { %v6302_v47 = vld [vmem:[#allocation20 + $0xe38] sm:$0xff] }
0x14aa   :  { %9621 = vmatpush3.bf16.msra.mxu1 %v9620_v45  ;;  %9653 = vmatpush3.bf16.msra.mxu0 %v9652_v26  ;;  %v5837_v45 = vadd.f32 %v11525_v57, %v11559_v51  ;;  %v5914_v26 = vadd.f32 %v11527_v3, %v11563_v31  ;;  %v5835_v57 = vadd.f32 %v11521_v8, %v5403_v35  ;;  %v6298_v51 = vld [vmem:[#allocation20 + $0xe18] sm:$0xff]  ;;  %v6316_v8 = vld [vmem:[#allocation20 + $0xea8] sm:$0xff]  ;;  %v6347_v35 = vld [vmem:[#allocation20 + $0xfa0] sm:$0xff] }
0x14ab   :  { %9623 = vmatprep.subr.bf16.mxu1 %v9622_v52  ;;  %9655 = vmatprep.subr.bf16.mxu0 %v9654_v39  ;;  %v9666_v52 = vpack.c.bf16 %v6314_v62, %v6313_v40  ;;  %v9698_v39 = vpack.c.bf16 %v6346_v44, %v6345_v48  ;;  %v5912_v3 = vadd.f32 %v11523_v50, %v5411_v18  ;;  %v6348_v50 = vld [vmem:[#allocation20 + $0xfa8] sm:$0xff]  ;;  %v6334_v9 = vld [vmem:[#allocation20 + $0xf38] sm:$0xff]  ;;  %v6351_v48 = vld [vmem:[#allocation20 + $0xfc0] sm:$0xff] }
0x14ac   :  { %v6095_v31 = vmax.f32 %v5837_v45, 0.0  ;;  %v6097_v17 = vmax.f32 %v5914_v26, 0.0  ;;  %v9668_v36 = vpack.c.bf16 %v6298_v51, %v6297_v43  ;;  %v6300_v18 = vld [vmem:[#allocation20 + $0xe28] sm:$0xff]  ;;  %v9702_v15 = vpack.c.bf16 %v6348_v50, %v6347_v35  ;;  %v6353_v43 = vld [vmem:[#allocation20 + $0xfd0] sm:$0xff]  ;;  %v6354_v51 = vld [vmem:[#allocation20 + $0xfd8] sm:$0xff] }
0x14ad   :  { %v6096_v7 = vmax.f32 %v5912_v3, 0.0  ;;  %v9706_v40 = vpack.c.bf16 %v6350_v23, %v6349_v32  ;;  %v6320_v62 = vld [vmem:[#allocation20 + $0xec8] sm:$0xff]  ;;  %v9708_v26 = vpack.c.bf16 %v6334_v9, %v6333_v33  ;;  %v6322_v3 = vld [vmem:[#allocation20 + $0xed8] sm:$0xff]  ;;  %v9714_v20 = vpack.c.bf16 %v6354_v51, %v6353_v43  ;;  %v6323_v35 = vld [vmem:[#allocation20 + $0xee0] sm:$0xff] }
0x14ae   :  { %9625 = vmatpush3.bf16.msra.mxu1 %v9624_v28  ;;  %9657 = vmatpush3.bf16.msra.mxu0 %v9656_v29  ;;  %v6315_v28 = vld [vmem:[#allocation20 + $0xea0] sm:$0xff]  ;;  %v6094_v29 = vmax.f32 %v5835_v57, 0.0  ;;  %v6352_v44 = vld [vmem:[#allocation20 + $0xfc8] sm:$0xff]  ;;  %v6321_v57 = vld [vmem:[#allocation20 + $0xed0] sm:$0xff]  ;;  %v5419_v32 = vrot.slane %v11549_v10, %v11156_v54 }
0x14af   :  { %9627 = vmatprep.subr.bf16.mxu1 %v9626_v6  ;;  %9659 = vmatprep.subr.bf16.mxu0 %v9658_v11  ;;  %v6083_v6 = vmax.f32 %v5985_v59, 0.0  ;;  %v9670_v11 = vpack.c.bf16 %v6316_v8, %v6315_v28  ;;  %v6305_v59 = vld [vmem:[#allocation20 + $0xe50] sm:$0xff]  ;;  %v6306_v41 = vld [vmem:[#allocation20 + $0xe58] sm:$0xff]  ;;  %v9682_v24 = vpack.c.bf16 %v6322_v3, %v6321_v57  ;;  %v6324_v50 = vld [vmem:[#allocation20 + $0xee8] sm:$0xff] }
0x14b0   :  { %v6337_v28 = vld [vmem:[#allocation20 + $0xf50] sm:$0xff]  ;;  %v6338_v8 = vld [vmem:[#allocation20 + $0xf58] sm:$0xff]  ;;  %v5983_v54 = vadd.f32 %v11529_v53, %v5419_v32 }
0x14b1   :  { %v6358_v25 = vld [vmem:[#allocation20 + $0xff8] sm:$0xff]  ;;  %v6341_v33 = vld [vmem:[#allocation20 + $0xf70] sm:$0xff] }
0x14b2   :  { %9629 = vmatpush3.bf16.msra.mxu1 %v9628_v2  ;;  %9661 = vmatpush3.bf16.msra.mxu0 %v9660_v27  ;;  %v9672_v2 = vpack.c.bf16 %v6300_v18, %v6299_v30  ;;  %v9704_v27 = vpack.c.bf16 %v6332_v16, %v6331_v34  ;;  %v6307_v30 = vld [vmem:[#allocation20 + $0xe60] sm:$0xff]  ;;  %v6308_v18 = vld [vmem:[#allocation20 + $0xe68] sm:$0xff]  ;;  %v6325_v34 = vld [vmem:[#allocation20 + $0xef0] sm:$0xff] }
0x14b3   :  { %9663 = vmatprep.subr.bf16.mxu1 %v9662_v46  ;;  %9695 = vmatprep.subr.bf16.mxu0 %v9694_v19  ;;  %v6301_v46 = vld [vmem:[#allocation20 + $0xe30] sm:$0xff]  ;;  %v6319_v19 = vld [vmem:[#allocation20 + $0xec0] sm:$0xff]  ;;  %v6326_v16 = vld [vmem:[#allocation20 + $0xef8] sm:$0xff]  ;;  %v9688_v23 = vpack.c.bf16 %v6308_v18, %v6307_v30 }
0x14b4   :  { %v9676_v45 = vpack.c.bf16 %v6302_v47, %v6301_v46  ;;  %v5427_v46 = vrot.slane %v11549_v10, %v11163_v1  ;;  %v9690_v47 = vpack.c.bf16 %v6326_v16, %v6325_v34  ;;  %v6342_v9 = vld [vmem:[#allocation20 + $0xf78] sm:$0xff]  ;;  %v5991_v1 = vadd.f32 %v11545_v22, %v11583_v12  ;;  %v8002_v12 = vld [vmem:[#allocation22 + $0x1] ss:$0 sm:$0xff] }
0x14b5   :  { %6732 = vmatmul.mubr.f32.vlgmr.msra.gmra.mrb[92].mxu1 %v6078_v37  ;;  %6807 = vmatmul.mubr.f32.vlgmr.msra.gmra.mrb[94].mxu0 %v6080_v0  ;;  %v6335_v37 = vld [vmem:[#allocation20 + $0xf40] sm:$0xff]  ;;  %v6336_v0 = vld [vmem:[#allocation20 + $0xf48] sm:$0xff]  ;;  %v6068_v10 = vadd.f32 %v11547_v61, %v11587_v63 }
0x14b6   :  { %6736 = vmatprep.mubr.f32.mxu1 %v6095_v31  ;;  %6811 = vmatprep.mubr.f32.mxu0 %v6097_v17  ;;  %v9712_v17 = vpack.c.bf16 %v6336_v0, %v6335_v37 }
0x14b7   :  { %9665 = vmatpush3.bf16.msra.mxu1 %v9664_v49  ;;  %9697 = vmatpush3.bf16.msra.mxu0 %v9696_v58  ;;  %v6303_v49 = vld [vmem:[#allocation20 + $0xe40] sm:$0xff]  ;;  %v6304_v58 = vld [vmem:[#allocation20 + $0xe48] sm:$0xff]  ;;  %v6101_v53 = vmax.f32 %v6068_v10, 0.0 }
0x14b8   :  { %9667 = vmatprep.subr.bf16.mxu1 %v9666_v52  ;;  %9699 = vmatprep.subr.bf16.mxu0 %v9698_v39  ;;  %v9678_v52 = vpack.c.bf16 %v6320_v62, %v6319_v19  ;;  %v9710_v39 = vpack.c.bf16 %v6352_v44, %v6351_v48  ;;  %v9680_v31 = vpack.c.bf16 %v6304_v58, %v6303_v49  ;;  %v6082_v44 = vmax.f32 %v5983_v54, 0.0 }
0x14b9   :  { %6737 = vmatmul.mubr.f32.gmra.mrb[94].mxu1 %v6094_v29  ;;  %6812 = vmatmul.mubr.f32.gmra.mrb[96].mxu0 %v6096_v7  ;;  %v6355_v29 = vld [vmem:[#allocation20 + $0xfe0] sm:$0xff]  ;;  %v6356_v7 = vld [vmem:[#allocation20 + $0xfe8] sm:$0xff]  ;;  %v9724_v62 = vpack.c.bf16 %v6342_v9, %v6341_v33  ;;  %v6060_v48 = vadd.f32 %v11531_v21, %v5427_v46  ;;  %v6066_v49 = vadd.f32 %v11541_v60, %v5427_v46  ;;  %v6099_v58 = vmax.f32 %v5991_v1, 0.0 }
0x14ba   :  { %6881 = vmatprep.mubr.f32.mxu1 %v6083_v6  ;;  %6956 = vmatprep.mubr.f32.mxu0 %v6085_v42  ;;  %v9686_v6 = vpack.c.bf16 %v6324_v50, %v6323_v35  ;;  %v9718_v42 = vpack.c.bf16 %v6356_v7, %v6355_v29 }
0x14bb   :  { %9669 = vmatpush3.bf16.msra.mxu1 %v9668_v36  ;;  %9701 = vmatpush3.bf16.msra.mxu0 %v9700_v5  ;;  %v9684_v36 = vpack.c.bf16 %v6306_v41, %v6305_v59  ;;  %v9716_v5 = vpack.c.bf16 %v6338_v8, %v6337_v28 }
0x14bc   :  { %9671 = vmatprep.subr.bf16.mxu1 %v9670_v11  ;;  %9703 = vmatprep.subr.bf16.mxu0 %v9702_v15  ;;  %v6339_v11 = vld [vmem:[#allocation20 + $0xf60] sm:$0xff]  ;;  %v6340_v15 = vld [vmem:[#allocation20 + $0xf68] sm:$0xff] }
0x14bf   :  { %9673 = vmatpush3.bf16.msra.mxu1 %v9672_v2  ;;  %9705 = vmatpush3.bf16.msra.mxu0 %v9704_v27  ;;  %v9720_v2 = vpack.c.bf16 %v6340_v15, %v6339_v11  ;;  %v6309_v27 = vld [vmem:[#allocation20 + $0xe70] sm:$0xff] }
0x14c0   :  { %9675 = vmatprep.subr.bf16.mxu1 %v9674_v13  ;;  %9707 = vmatprep.subr.bf16.mxu0 %v9706_v40  ;;  %v9722_v13 = vpack.c.bf16 %v6358_v25, %v6357_v38  ;;  %v6310_v40 = vld [vmem:[#allocation20 + $0xe78] sm:$0xff] }
0x14c1   :  { %v9692_v19 = vpack.c.bf16 %v6310_v40, %v6309_v27 }
0x14c3   :  { %9677 = vmatpush3.bf16.msra.mxu1 %v9676_v45  ;;  %9709 = vmatpush3.bf16.msra.mxu0 %v9708_v26  ;;  %v6084_v45 = vmax.f32 %v6060_v48, 0.0  ;;  %v5989_v26 = vadd.f32 %v11539_v55, %v5419_v32 }
0x14c4   :  { %9679 = vmatprep.subr.bf16.mxu1 %v9678_v52  ;;  %9711 = vmatprep.subr.bf16.mxu0 %v9710_v39  ;;  %v6100_v52 = vmax.f32 %v6066_v49, 0.0 }
0x14c5   :  { %v6098_v21 = vmax.f32 %v5989_v26, 0.0 }
0x14c7   :  { %9681 = vmatpush3.bf16.msra.mxu1 %v9680_v31  ;;  %9713 = vmatpush3.bf16.msra.mxu0 %v9712_v17 }
0x14c8   :  { %9683 = vmatprep.subr.bf16.mxu1 %v9682_v24  ;;  %9715 = vmatprep.subr.bf16.mxu0 %v9714_v20 }
0x14cb   :  { %9685 = vmatpush3.bf16.msra.mxu1 %v9684_v36  ;;  %9717 = vmatpush3.bf16.msra.mxu0 %v9716_v5 }
0x14cc   :  { %9687 = vmatprep.subr.bf16.mxu1 %v9686_v6  ;;  %9719 = vmatprep.subr.bf16.mxu0 %v9718_v42 }
0x14cf   :  { %9689 = vmatpush3.bf16.msra.mxu1 %v9688_v23  ;;  %9721 = vmatpush3.bf16.msra.mxu0 %v9720_v2 }
0x14d0   :  { %9691 = vmatprep.subr.bf16.mxu1 %v9690_v47  ;;  %9723 = vmatprep.subr.bf16.mxu0 %v9722_v13 }
0x14d3   :  { %9693 = vmatpush3.bf16.msra.mxu1 %v9692_v19  ;;  %9725 = vmatpush3.bf16.msra.mxu0 %v9724_v62 }
0x14d6   :  { %6882 = vmatmul.mubr.f32.vlgmr.msra.gmra.mrb[96].mxu1 %v6082_v44  ;;  %6957 = vmatmul.mubr.f32.vlgmr.msra.gmra.mrb[98].mxu0 %v6084_v45 }
0x14d7   :  { %6886 = vmatprep.mubr.f32.mxu1 %v6099_v58  ;;  %6961 = vmatprep.mubr.f32.mxu0 %v6101_v53 }
0x14da   :  { %6887 = vmatmul.mubr.f32.gmra.mrb[98].mxu1 %v6098_v21  ;;  %6962 = vmatmul.mubr.f32.gmra.mrb[100].mxu0 %v6100_v52 }
0x14db   :  { %9021 = vmatprep.mubr.msk.f32.mxu0 %vm10425_vm3, %v10424_v14 }
0x1547   :  { %v8478_v22 = vpop.f32.mrb[84].mxu1  ;;  %v8516_v61 = vpop.f32.mrb[86].mxu0 }
0x1548   :  { %v8479_v63 = vpop.f32.mrb[85].mxu1  ;;  %v8517_v55 = vpop.f32.mrb[87].mxu0 }
0x1549   :  { %v8480_v39 = vadd.f32 %v8479_v63, %v8478_v22  ;;  %v8518_v60 = vadd.f32 %v8517_v55, %v8516_v61 }
0x154b   :  { %v6434_v37 = vadd.f32 %v8480_v39, %v8002_v12  ;;  %v8481_v0 = vpop.f32.mrb[86].mxu1  ;;  %v8519_v57 = vpop.f32.mrb[88].mxu0 }
0x154c   :  { %v8482_v3 = vpop.f32.mrb[87].mxu1  ;;  %v8520_v43 = vpop.f32.mrb[89].mxu0 }
0x154d   :  { %v6509_v51 = vadd.f32 %v8518_v60, %v6434_v37  ;;  %v8483_v31 = vadd.f32 %v8482_v3, %v8481_v0  ;;  %v8521_v17 = vadd.f32 %v8520_v43, %v8519_v57 }
0x154f   :  { %v6439_v59 = vadd.f32 %v8483_v31, %v8002_v12 }
0x1551   :  { %v6514_v41 = vadd.f32 %v8521_v17, %v6439_v59 }
0x1567   :  { %v8554_v24 = vpop.f32.mrb[88].mxu1  ;;  %v8592_v20 = vpop.f32.mrb[90].mxu0 }
0x1568   :  { %v8555_v28 = vpop.f32.mrb[89].mxu1  ;;  %v8593_v8 = vpop.f32.mrb[91].mxu0 }
0x1569   :  { %v8556_v35 = vadd.f32 %v8555_v28, %v8554_v24  ;;  %v8594_v50 = vadd.f32 %v8593_v8, %v8592_v20  ;;  %v7023_v24 = vld [vmem:[#allocation26] sm:$0xff]  ;;  %v7024_v20 = vld [vmem:[#allocation26 + $0x8] sm:$0xff]  ;;  %v7025_v28 = vld [vmem:[#allocation26 + $0x10] sm:$0xff] }
0x156a   :  { %v9759_v8 = vpack.c.bf16 %v7024_v20, %v7023_v24 }
0x156b   :  { %v6584_v29 = vadd.f32 %v8556_v35, %v6509_v51  ;;  %v8557_v7 = vpop.f32.mrb[90].mxu1  ;;  %v8595_v36 = vpop.f32.mrb[92].mxu0  ;;  %v7026_v35 = vld [vmem:[#allocation26 + $0x18] sm:$0xff] }
0x156c   :  { %v8558_v5 = vpop.f32.mrb[91].mxu1  ;;  %v8596_v30 = vpop.f32.mrb[93].mxu0 }
0x156d   :  { %v6659_v18 = vadd.f32 %v8594_v50, %v6584_v29  ;;  %v8559_v6 = vadd.f32 %v8558_v5, %v8557_v7  ;;  %v8597_v42 = vadd.f32 %v8596_v30, %v8595_v36  ;;  %v9762_v50 = vpack.c.bf16 %v7026_v35, %v7025_v28  ;;  %v7043_v29 = vld [vmem:[#allocation28 + $0x80] sm:$0xff]  ;;  %v7044_v7 = vld [vmem:[#allocation28 + $0x88] sm:$0xff] }
0x156e   :  { %v7027_v36 = vld [vmem:[#allocation28] sm:$0xff]  ;;  %v9726_v5 = vpack.c.bf16 %v7044_v7, %v7043_v29  ;;  %v7028_v30 = vld [vmem:[#allocation28 + $0x8] sm:$0xff] }
0x156f   :  { %v6589_v11 = vadd.f32 %v8559_v6, %v6514_v41  ;;  %v10438_v41 = vmov 0.0|0.0   ;;  %v7046_v6 = vld [vmem:[#allocation28 + $0x98] sm:$0xff] }
0x1570   :  { %9758 = vmatprep.subr.bf16.mxu0 %v10438_v41  ;;  %9727 = vmatprep.subr.bf16.mxu1 %v9726_v5 }
0x1571   :  { %v6664_v15 = vadd.f32 %v8597_v42, %v6589_v11  ;;  %9760 = vmatpush3.bf16.msra.mxu0 %v9759_v8  ;;  %v9728_v42 = vpack.c.bf16 %v7028_v30, %v7027_v36 }
0x1572   :  { %9761 = vmatprep.subr.bf16.mxu0 %v10438_v41 }
0x1573   :  { %9729 = vmatpush3.bf16.msra.mxu1 %v9728_v42 }
0x1575   :  { %9763 = vmatpush3.bf16.msra.mxu0 %v9762_v50 }
0x1576   :  { %9764 = vmatprep.subr.bf16.mxu0 %v10438_v41 }
0x1588   :  { %v8630_v34 = vpop.f32.mrb[92].mxu1  ;;  %v8668_v16 = vpop.f32.mrb[94].mxu0 }
0x1589   :  { %v8631_v38 = vpop.f32.mrb[93].mxu1  ;;  %v8669_v25 = vpop.f32.mrb[95].mxu0 }
0x158a   :  { %v8632_v32 = vadd.f32 %v8631_v38, %v8630_v34  ;;  %v8670_v23 = vadd.f32 %v8669_v25, %v8668_v16  ;;  %v7030_v34 = vld [vmem:[#allocation28 + $0x18] sm:$0xff]  ;;  %v7047_v16 = vld [vmem:[#allocation28 + $0xa0] sm:$0xff]  ;;  %v7048_v38 = vld [vmem:[#allocation28 + $0xa8] sm:$0xff] }
0x158c   :  { %v6734_v2 = vadd.f32 %v8632_v32, %v6659_v18  ;;  %v8633_v27 = vpop.f32.mrb[94].mxu1  ;;  %v8671_v46 = vpop.f32.mrb[96].mxu0  ;;  %v7045_v18 = vld [vmem:[#allocation28 + $0x90] sm:$0xff]  ;;  %v9734_v32 = vpack.c.bf16 %v7048_v38, %v7047_v16 }
0x158d   :  { %v8634_v47 = vpop.f32.mrb[95].mxu1  ;;  %v8672_v13 = vpop.f32.mrb[97].mxu0  ;;  %v9730_v11 = vpack.c.bf16 %v7046_v6, %v7045_v18 }
0x158e   :  { %v6809_v40 = vadd.f32 %v8670_v23, %v6734_v2  ;;  %v8635_v33 = vadd.f32 %v8634_v47, %v8633_v27  ;;  %v8673_v9 = vadd.f32 %v8672_v13, %v8671_v46  ;;  %v7031_v23 = vld [vmem:[#allocation28 + $0x20] sm:$0xff]  ;;  %v7032_v2 = vld [vmem:[#allocation28 + $0x28] sm:$0xff]  ;;  %v7049_v27 = vld [vmem:[#allocation28 + $0xb0] sm:$0xff] }
0x158f   :  { %9731 = vmatprep.subr.bf16.mxu1 %v9730_v11  ;;  %v7050_v46 = vld [vmem:[#allocation28 + $0xb8] sm:$0xff]  ;;  %v9736_v47 = vpack.c.bf16 %v7032_v2, %v7031_v23 }
0x1590   :  { %v6739_v19 = vadd.f32 %v8635_v33, %v6664_v15  ;;  %v7029_v15 = vld [vmem:[#allocation28 + $0x10] sm:$0xff]  ;;  %v9738_v13 = vpack.c.bf16 %v7050_v46, %v7049_v27  ;;  %v7034_v33 = vld [vmem:[#allocation28 + $0x38] sm:$0xff] }
0x1591   :  { %v9732_v25 = vpack.c.bf16 %v7030_v34, %v7029_v15 }
0x1592   :  { %v6814_v62 = vadd.f32 %v8673_v9, %v6739_v19  ;;  %v7051_v9 = vld [vmem:[#allocation28 + $0xc0] sm:$0xff]  ;;  %v7052_v19 = vld [vmem:[#allocation28 + $0xc8] sm:$0xff] }
0x1593   :  { %9733 = vmatpush3.bf16.msra.mxu1 %v9732_v25 }
0x1594   :  { %9735 = vmatprep.subr.bf16.mxu1 %v9734_v32 }
0x1597   :  { %9737 = vmatpush3.bf16.msra.mxu1 %v9736_v47 }
0x1598   :  { %9739 = vmatprep.subr.bf16.mxu1 %v9738_v13 }
0x15a9   :  { %v8706_v54 = vpop.f32.mrb[96].mxu1  ;;  %v8744_v48 = vpop.f32.mrb[98].mxu0 }
0x15aa   :  { %v8707_v1 = vpop.f32.mrb[97].mxu1  ;;  %v8745_v10 = vpop.f32.mrb[99].mxu0 }
0x15ab   :  { %v8708_v44 = vadd.f32 %v8707_v1, %v8706_v54  ;;  %v8746_v45 = vadd.f32 %v8745_v10, %v8744_v48  ;;  %v9742_v54 = vpack.c.bf16 %v7052_v19, %v7051_v9  ;;  %v7035_v48 = vld [vmem:[#allocation28 + $0x40] sm:$0xff]  ;;  %v7036_v1 = vld [vmem:[#allocation28 + $0x48] sm:$0xff]  ;;  %v7053_v10 = vld [vmem:[#allocation28 + $0xd0] sm:$0xff] }
0x15ad   :  { %v6884_v26 = vadd.f32 %v8708_v44, %v6809_v40  ;;  %v8709_v49 = vpop.f32.mrb[98].mxu1  ;;  %v8747_v58 = vpop.f32.mrb[100].mxu0  ;;  %v7033_v40 = vld [vmem:[#allocation28 + $0x30] sm:$0xff]  ;;  %v7054_v44 = vld [vmem:[#allocation28 + $0xd8] sm:$0xff] }
0x15ae   :  { %v8710_v53 = vpop.f32.mrb[99].mxu1  ;;  %v8748_v21 = vpop.f32.mrb[101].mxu0 }
0x15af   :  { %v6959_v52 = vadd.f32 %v8746_v45, %v6884_v26  ;;  %v8711_v22 = vadd.f32 %v8710_v53, %v8709_v49  ;;  %v8749_v61 = vadd.f32 %v8748_v21, %v8747_v58  ;;  %v9744_v45 = vpack.c.bf16 %v7036_v1, %v7035_v48  ;;  %v7037_v49 = vld [vmem:[#allocation28 + $0x50] sm:$0xff]  ;;  %v7038_v58 = vld [vmem:[#allocation28 + $0x58] sm:$0xff] }
0x15b0   :  { %v9746_v26 = vpack.c.bf16 %v7054_v44, %v7053_v10  ;;  %v9748_v53 = vpack.c.bf16 %v7038_v58, %v7037_v49 }
0x15b1   :  { %v6889_v12 = vadd.f32 %v8711_v22, %v6814_v62  ;;  %v6967_v63 = vadd.f32 %v6959_v52, %v11430_v56  ;;  %v9740_v62 = vpack.c.bf16 %v7034_v33, %v7033_v40 }
0x15b3   :  { %v6964_v55 = vadd.f32 %v8749_v61, %v6889_v12  ;;  %v6973_v39 = vsel %vm423_vm2, %v6967_v63, 0.0  ;;  %9741 = vmatpush3.bf16.msra.mxu1 %v9740_v62 }
0x15b4   :  { %6974 = vadd.xlane.f32.xlu1 %v6973_v39  ;;  %9743 = vmatprep.subr.bf16.mxu1 %v9742_v54  ;;  %v8003_v39 = vld [vmem:[#allocation23 + $0x1] ss:$0 sm:$0xff] }
0x15b5   :  { %v6968_v60 = vadd.f32 %v6964_v55, %v11437_v4 }
0x15b7   :  { %v6976_v37 = vsel %vm423_vm2, %v6968_v60, 0.0  ;;  %9745 = vmatpush3.bf16.msra.mxu1 %v9744_v45 }
0x15b8   :  { %6977 = vadd.xlane.f32.xlu0 %v6976_v37  ;;  %9747 = vmatprep.subr.bf16.mxu1 %v9746_v26 }
0x15bb   :  { %9749 = vmatpush3.bf16.msra.mxu1 %v9748_v53 }
0x1641   :  { %v6975_v0 = vpop.xlane.xlu1 %6974 }
0x1642   :  { %v6979_v57 = vmul.f32 0.03125, %v6975_v0 }
0x1644   :  { %v11613_v3 = vsub.f32 %v6967_v63, %v6979_v57  ;;  %v8004_v57 = vld [vmem:[#allocation25 + $0x1] ss:$0 sm:$0xff] }
0x1645   :  { %v6978_v43 = vpop.xlane.xlu0 %6977 }
0x1646   :  { %v6980_v51 = vmul.f32 0.03125, %v6978_v43  ;;  %v6983_v31 = vmul.f32 %v11613_v3, %v11613_v3 }
0x1648   :  { %v11617_v17 = vsub.f32 %v6968_v60, %v6980_v51  ;;  %v6985_v56 = vsel %vm423_vm2, %v6983_v31, 0.0 }
0x1649   :  { %6986 = vadd.xlane.f32.xlu1 %v6985_v56 }
0x164a   :  { %v6984_v4 = vmul.f32 %v11617_v17, %v11617_v17 }
0x164c   :  { %v6988_v59 = vsel %vm423_vm2, %v6984_v4, 0.0 }
0x164d   :  { %6989 = vadd.xlane.f32.xlu0 %v6988_v59 }
0x16d6   :  { %v6987_v21 = vpop.xlane.xlu1 %6986 }
0x16d7   :  { %v6991_v52 = vmul.f32 0.03125, %v6987_v21 }
0x16d9   :  { %v6993_v22 = vadd.f32 1e-05, %v6991_v52 }
0x16da   :  { %v6990_v61 = vpop.xlane.xlu0 %6989 }
0x16db   :  { %9925 = vrsqrt.f32 %v6993_v22  ;;  %v6992_v12 = vmul.f32 0.03125, %v6990_v61 }
0x16dd   :  { %v6994_v63 = vadd.f32 1e-05, %v6992_v12 }
0x16df   :  { %9927 = vrsqrt.f32 %v6994_v63 }
0x16e5   :  { %v9926_v55 = vpop.eup %9925 }
0x16e6   :  { %v6997_v60 = vmul.f32 %v9926_v55, %v11613_v3 }
0x16e8   :  { %v7005_v37 = vmul.f32 %v8003_v39, %v6997_v60 }
0x16e9   :  { %v9928_v0 = vpop.eup %9927 }
0x16ea   :  { %v6998_v43 = vmul.f32 %v9928_v0, %v11617_v17  ;;  %v7013_v51 = vadd.f32 %v8004_v57, %v7005_v37 }
0x16ec   :  { %v7006_v31 = vmul.f32 %v8003_v39, %v6998_v43  ;;  %v7016_v4 = vrot.slane %v7013_v51, 7 }
0x16ee   :  { %v7014_v56 = vadd.f32 %v8004_v57, %v7006_v31 }
0x16f0   :  { %v7019_v59 = vrot.slane %v7014_v56, 6 }
0x16f2   :  { %v11628_v24 = vsel %vm7021_vm7, %v7016_v4, %v7019_v59 }
0x16f3   :  { %vm7076_vm8 = vcmp.ge.f32.partialorder %v11628_v24, -1.4  ;;  %vm7077_vm9 = vcmp.lt.f32.partialorder %v11628_v24, -1.0  ;;  %vm7081_vm10 = vcmp.ge.f32.partialorder %v11628_v24, -1.0  ;;  %vm7082_vm11 = vcmp.lt.f32.partialorder %v11628_v24, -0.6 }
0x16f4   :  { %vm7078_vm12 = vmand %vm7076_vm8, %vm7077_vm9  ;;  %vm7086_vm13 = vcmp.ge.f32.partialorder %v11628_v24, -0.6  ;;  %vm7087_vm14 = vcmp.lt.f32.partialorder %v11628_v24, -0.2  ;;  %vm7091_vm15 = vcmp.ge.f32.partialorder %v11628_v24, -0.2 }
0x16f5   :  { %v11638_v3 = vsel %vm7078_vm12, 1.0, %v10424_v14  ;;  %vm7083_vm0 = vmand %vm7081_vm10, %vm7082_vm11  ;;  %vm7092_vm1 = vcmp.lt.f32.partialorder %v11628_v24, 0.2  ;;  %vm7096_vm4 = vcmp.ge.f32.partialorder %v11628_v24, 0.2  ;;  %vm7102_vm5 = vcmp.lt.f32.partialorder %v11628_v24, 1.0 }
0x16f6   :  { %v8008_v17 = vsel %vm7083_vm0, 1.0, %v10424_v14  ;;  %vm7088_vm6 = vmand %vm7086_vm13, %vm7087_vm14  ;;  %vm7097_vm7 = vcmp.lt.f32.partialorder %v11628_v24, 0.6  ;;  %vm7101_vm8 = vcmp.ge.f32.partialorder %v11628_v24, 0.6  ;;  %vm7106_vm9 = vcmp.ge.f32.partialorder %v11628_v24, 1.0 }
0x16f7   :  { %v8009_v20 = vsel %vm7088_vm6, 1.0, %v10424_v14  ;;  %vm7093_vm12 = vmand %vm7091_vm15, %vm7092_vm1  ;;  %vm7107_vm10 = vcmp.lt.f32.partialorder %v11628_v24, 1.4  ;;  %vm7111_vm11 = vcmp.ge.f32.partialorder %v11628_v24, 1.4  ;;  %v11651_v28 = vadd.f32 1.0, %v11628_v24 }
0x16f8   :  { %v11654_v8 = vsel %vm7093_vm12, 1.0, %v10424_v14  ;;  %vm7098_vm13 = vmand %vm7096_vm4, %vm7097_vm7  ;;  %vm7112_vm14 = vcmp.lt.f32.partialorder %v11628_v24, 1.8  ;;  %v8018_v35 = vadd.f32 1.4, %v11628_v24  ;;  %v11659_v50 = vsub.f32 1.0, %v11628_v24 }
0x16f9   :  { %v11662_v29 = vsel %vm7098_vm13, 1.0, %v10424_v14  ;;  %vm7103_vm15 = vmand %vm7101_vm8, %vm7102_vm5  ;;  %v11667_v7 = vsub.f32 -0.6, %v11628_v24  ;;  %v7143_v36 = vmul.f32 2.5, %v11651_v28  ;;  %v11671_v5 = vsub.f32 -0.2, %v11628_v24 }
0x16fa   :  { %v8012_v30 = vsel %vm7103_vm15, 1.0, %v10424_v14  ;;  %vm7108_vm0 = vmand %vm7106_vm9, %vm7107_vm10  ;;  %v7136_v18 = vmul.f32 2.5, %v8018_v35  ;;  %v11677_v6 = vadd.f32 0.6, %v11628_v24  ;;  %v7152_v42 = vsub.f32 0.2, %v11628_v24 }
0x16fb   :  { %v8013_v11 = vsel %vm7108_vm0, 1.0, %v10424_v14  ;;  %vm7113_vm1 = vmand %vm7111_vm11, %vm7112_vm14  ;;  %v7139_v15 = vmul.f32 2.5, %v11667_v7  ;;  %v7144_v34 = vmul.f32 %v8008_v17, %v7143_v36  ;;  %v7146_v16 = vmul.f32 2.5, %v11671_v5 }
0x16fc   :  { %v11686_v38 = vsel %vm7113_vm1, 1.0, %v10424_v14  ;;  %v7137_v25 = vmul.f32 %v11638_v3, %v7136_v18  ;;  %v7150_v32 = vmul.f32 2.5, %v11677_v6  ;;  %v7153_v23 = vmul.f32 2.5, %v7152_v42 }
0x16fd   :  { %v7140_v2 = vmul.f32 %v8008_v17, %v7139_v15  ;;  %v7147_v27 = vmul.f32 %v8009_v20, %v7146_v16  ;;  %v8022_v46 = vadd.f32 -0.2, %v11628_v24  ;;  %v7167_v47 = vmul.f32 2.5, %v11659_v50 }
0x16fe   :  { %v7151_v13 = vmul.f32 %v8009_v20, %v7150_v32  ;;  %v7154_v40 = vmul.f32 %v11654_v8, %v7153_v23  ;;  %v11694_v33 = vadd.f32 -0.6, %v11628_v24  ;;  %v11697_v9 = vsub.f32 1.4, %v11628_v24 }
0x16ff   :  { %v11699_v19 = vadd.f32 %v7140_v2, %v7137_v25  ;;  %v7148_v62 = vadd.f32 %v7147_v27, %v7144_v34  ;;  %v7164_v54 = vmul.f32 2.5, %v8022_v46  ;;  %v7168_v48 = vmul.f32 %v8012_v30, %v7167_v47 }
0x1700   :  { %v11701_v1 = vadd.f32 %v7154_v40, %v7151_v13  ;;  %v7171_v10 = vmul.f32 2.5, %v11694_v33  ;;  %v7174_v44 = vmul.f32 2.5, %v11697_v9  ;;  %v11706_v45 = vadd.f32 -1.0, %v11628_v24 }
0x1701   :  { %v7165_v26 = vmul.f32 %v11662_v29, %v7164_v54  ;;  %v7180_v49 = vsub.f32 1.8, %v11628_v24  ;;  %v7201_v58 = vmul.f32 1.25, %v8018_v35  ;;  %v7203_v53 = vmul.f32 1.25, %v11671_v5 }
0x1702   :  { %v7172_v21 = vmul.f32 %v8012_v30, %v7171_v10  ;;  %v7175_v52 = vmul.f32 %v8013_v11, %v7174_v44  ;;  %v7178_v22 = vmul.f32 2.5, %v11706_v45  ;;  %v7206_v61 = vmul.f32 1.25, %v11651_v28 }
0x1703   :  { %v7169_v12 = vadd.f32 %v7168_v48, %v7165_v26  ;;  %v7181_v63 = vmul.f32 2.5, %v7180_v49  ;;  %v7202_v55 = vmul.f32 %v7201_v58, %v11699_v19  ;;  %v7204_v39 = vmul.f32 %v7203_v53, %v7148_v62 }
0x1704   :  { %v7176_v60 = vadd.f32 %v7175_v52, %v7172_v21  ;;  %v7179_v37 = vmul.f32 %v8013_v11, %v7178_v22  ;;  %v7207_v0 = vmul.f32 %v7206_v61, %v7148_v62  ;;  %v7208_v57 = vmul.f32 1.25, %v7152_v42 }
0x1705   :  { %v7182_v43 = vmul.f32 %v11686_v38, %v7181_v63  ;;  %v7205_v51 = vadd.f32 %v7204_v39, %v7202_v55  ;;  %v7221_v31 = vmul.f32 1.25, %v8022_v46  ;;  %v7223_v56 = vmul.f32 1.25, %v11697_v9 }
0x1706   :  { %v7209_v4 = vmul.f32 %v7208_v57, %v11701_v1  ;;  %v7226_v59 = vmul.f32 1.25, %v11694_v33  ;;  %v7228_v17 = vmul.f32 1.25, %v7180_v49  ;;  %v7246_v20 = vmul.f32 0.8333333, %v8018_v35 }
0x1707   :  { %v11718_v36 = vadd.f32 %v7182_v43, %v7179_v37  ;;  %v7222_v30 = vmul.f32 %v7221_v31, %v7169_v12  ;;  %v7224_v18 = vmul.f32 %v7223_v56, %v7176_v60  ;;  %v7248_v15 = vmul.f32 0.8333333, %v7152_v42 }
0x1708   :  { %v11720_v11 = vadd.f32 %v7209_v4, %v7207_v0  ;;  %v7227_v34 = vmul.f32 %v7226_v59, %v7176_v60  ;;  %v7247_v16 = vmul.f32 %v7246_v20, %v7205_v51  ;;  %v7266_v25 = vmul.f32 0.8333333, %v8022_v46 }
0x1709   :  { %v7225_v32 = vadd.f32 %v7224_v18, %v7222_v30  ;;  %v7229_v23 = vmul.f32 %v7228_v17, %v11718_v36  ;;  %v7268_v2 = vmul.f32 0.8333333, %v7180_v49  ;;  %vm7071_vm4 = vcmp.ge.f32.partialorder %v11628_v24, -1.8 }
0x170a   :  { %v7249_v27 = vmul.f32 %v7248_v15, %v11720_v11  ;;  %vm7072_vm5 = vcmp.lt.f32.partialorder %v11628_v24, -1.4  ;;  %v8017_v35 = vadd.f32 1.8, %v11628_v24  ;;  %v7131_v47 = vsub.f32 -1.0, %v11628_v24 }
0x170b   :  { %v11728_v42 = vadd.f32 %v7229_v23, %v7227_v34  ;;  %v7267_v13 = vmul.f32 %v7266_v25, %v7225_v32  ;;  %vm7073_vm6 = vmand %vm7071_vm4, %vm7072_vm5  ;;  %v8021_v46 = vadd.f32 0.2, %v11628_v24  ;;  %v7159_v40 = vsub.f32 0.6, %v11628_v24 }
0x170c   :  { %v7250_v62 = vadd.f32 %v7249_v27, %v7247_v16  ;;  %v11733_v54 = vsel %vm7073_vm6, 1.0, %v10424_v14  ;;  %v7129_v48 = vmul.f32 2.5, %v8017_v35  ;;  %v7132_v10 = vmul.f32 2.5, %v7131_v47 }
0x170d   :  { %v7269_v44 = vmul.f32 %v7268_v2, %v11728_v42  ;;  %v7157_v26 = vmul.f32 2.5, %v8021_v46  ;;  %v7160_v49 = vmul.f32 2.5, %v7159_v40  ;;  %v7196_v58 = vmul.f32 1.25, %v8017_v35 }
0x170e   :  { %v7130_v53 = vmul.f32 %v11733_v54, %v7129_v48  ;;  %v7133_v21 = vmul.f32 %v11638_v3, %v7132_v10  ;;  %v7198_v52 = vmul.f32 1.25, %v11667_v7  ;;  %v7216_v22 = vmul.f32 1.25, %v8021_v46 }
0x170f   :  { %v7270_v61 = vadd.f32 %v7269_v44, %v7267_v13  ;;  %v7158_v63 = vmul.f32 %v11654_v8, %v7157_v26  ;;  %v7161_v55 = vmul.f32 %v11662_v29, %v7160_v49  ;;  %v7218_v39 = vmul.f32 1.25, %v11659_v50 }
0x1710   :  { %v11744_v60 = vadd.f32 %v7133_v21, %v7130_v53  ;;  %v7199_v37 = vmul.f32 %v7198_v52, %v11699_v19  ;;  %v7241_v0 = vmul.f32 0.8333333, %v8017_v35  ;;  %v7243_v57 = vmul.f32 0.8333333, %v11671_v5  ;;  %v7055_v52 = vld [vmem:[#allocation28 + $0xe0] sm:$0xff] }
0x1711   :  { %v9839_v43 = vpack.i.bf16 %v7250_v62, %v7270_v61  ;;  %v7162_v31 = vadd.f32 %v7161_v55, %v7158_v63  ;;  %v7219_v3 = vmul.f32 %v7218_v39, %v7169_v12  ;;  %v7261_v56 = vmul.f32 0.8333333, %v8021_v46  ;;  %v7039_v61 = vld [vmem:[#allocation28 + $0x60] sm:$0xff] }
0x1712   :  { %v7197_v4 = vmul.f32 %v7196_v58, %v11744_v60  ;;  %v7244_v59 = vmul.f32 %v7243_v57, %v7205_v51  ;;  %v7263_v8 = vmul.f32 0.8333333, %v11697_v9  ;;  %vm7116_vm7 = vcmp.ge.f32.partialorder %v11628_v24, 1.8  ;;  %v7058_v57 = vld [vmem:[#allocation28 + $0xf8] sm:$0xff] }
0x1713   :  { %9840 = vrot.lane.b32.xlu0 %v9839_v43, %s10433_s21  ;;  %v7217_v29 = vmul.f32 %v7216_v22, %v7162_v31  ;;  %vm7117_vm8 = vcmp.lt.f32.partialorder %v11628_v24, 2.2  ;;  %v8025_v19 = vadd.f32 -1.4, %v11628_v24  ;;  %v7187_v5 = vsub.f32 2.2, %v11628_v24 }
0x1714   :  { %v7200_v17 = vadd.f32 %v7199_v37, %v7197_v4  ;;  %v7264_v20 = vmul.f32 %v7263_v8, %v7225_v32  ;;  %vm7118_vm9 = vmand %vm7116_vm7, %vm7117_vm8  ;;  %v7211_v12 = vmul.f32 1.25, %v11677_v6  ;;  %v7213_v30 = vmul.f32 1.25, %v7159_v40  ;;  %v7056_v22 = vld [vmem:[#allocation28 + $0xe8] sm:$0xff]  ;;  %v7041_v4 = vld [vmem:[#allocation28 + $0x70] sm:$0xff] }
0x1715   :  { %v11756_v51 = vadd.f32 %v7219_v3, %v7217_v29  ;;  %v8015_v9 = vsel %vm7118_vm9, 1.0, %v10424_v14  ;;  %v7185_v18 = vmul.f32 2.5, %v8025_v19  ;;  %v7188_v15 = vmul.f32 2.5, %v7187_v5  ;;  %v7040_v37 = vld [vmem:[#allocation28 + $0x68] sm:$0xff] }
0x1716   :  { %v7242_v34 = vmul.f32 %v7241_v0, %v7200_v17  ;;  %v7212_v16 = vmul.f32 %v7211_v12, %v11701_v1  ;;  %v7214_v25 = vmul.f32 %v7213_v30, %v7162_v31  ;;  %v7231_v32 = vmul.f32 1.25, %v11706_v45  ;;  %v7057_v0 = vld [vmem:[#allocation28 + $0xf0] sm:$0xff] }
0x1717   :  { %v7262_v23 = vmul.f32 %v7261_v56, %v11756_v51  ;;  %v7186_v2 = vmul.f32 %v11686_v38, %v7185_v18  ;;  %v7189_v27 = vmul.f32 %v8015_v9, %v7188_v15  ;;  %v7233_v46 = vmul.f32 1.25, %v7187_v5 }
0x1718   :  { %v7245_v35 = vadd.f32 %v7244_v59, %v7242_v34  ;;  %v7215_v13 = vadd.f32 %v7214_v25, %v7212_v16  ;;  %v7251_v62 = vmul.f32 0.8333333, %v11651_v28  ;;  %v7232_v44 = vmul.f32 %v7231_v32, %v11718_v36  ;;  %v7042_v59 = vld [vmem:[#allocation28 + $0x78] sm:$0xff] }
0x1719   :  { %v7265_v48 = vadd.f32 %v7264_v20, %v7262_v23  ;;  %v7190_v10 = vadd.f32 %v7189_v27, %v7186_v2  ;;  %v7253_v26 = vmul.f32 0.8333333, %v7159_v40  ;;  %v7271_v49 = vmul.f32 0.8333333, %v11694_v33 }
0x171a   :  { %v7252_v1 = vmul.f32 %v7251_v62, %v11720_v11  ;;  %v7059_v58 = vsub.f32 0.0, %v11628_v24  ;;  %v8016_v38 = vadd.f32 2.2, %v11628_v24  ;;  %v7273_v63 = vmul.f32 0.8333333, %v7187_v5 }
0x171b   :  { %v9834_v53 = vpack.i.bf16 %v7245_v35, %v7265_v48  ;;  %v7234_v45 = vmul.f32 %v7233_v46, %v7190_v10  ;;  %v7254_v21 = vmul.f32 %v7253_v26, %v7215_v13  ;;  %v7272_v28 = vmul.f32 %v7271_v49, %v11728_v42 }
0x171c   :  { %v7060_v55 = vmul.f32 1.442695, %v7059_v58  ;;  %v7124_v36 = vsub.f32 -1.4, %v11628_v24  ;;  %v7122_v40 = vmul.f32 2.5, %v8016_v38  ;;  %v7193_v39 = vmul.f32 1.25, %v7131_v47 }
0x171d   :  { %9835 = vrot.lane.b32.xlu1 %v9834_v53, %s10439_s26  ;;  %v7235_v11 = vadd.f32 %v7234_v45, %v7232_v44  ;;  %v7255_v33 = vadd.f32 %v7254_v21, %v7252_v1  ;;  %v7238_v31 = vmul.f32 0.8333333, %v11667_v7  ;;  %vm7066_vm12 = vcmp.ge.f32.partialorder %v11628_v24, -2.2 }
0x171e   :  { %9929 = vpow2.f32 %v7060_v55  ;;  %v7125_v43 = vmul.f32 2.5, %v7124_v36  ;;  %vm7067_vm10 = vcmp.lt.f32.partialorder %v11628_v24, -1.8  ;;  %v7194_v3 = vmul.f32 %v7193_v39, %v11744_v60  ;;  %v7456_v55 = vld [vmem:[#allocation31 + $0x18] sm:$0xff] }
0x171f   :  { %v7274_v42 = vmul.f32 %v7273_v63, %v7235_v11  ;;  %v9750_v56 = vpack.c.bf16 %v7056_v22, %v7055_v52  ;;  %vm7068_vm11 = vmand %vm7066_vm12, %vm7067_vm10  ;;  %v7239_v8 = vmul.f32 %v7238_v31, %v7200_v17  ;;  %v9752_v29 = vpack.c.bf16 %v7040_v37, %v7039_v61  ;;  %v7453_v22 = vld [vmem:[#allocation31] sm:$0xff]  ;;  %v7454_v61 = vld [vmem:[#allocation31 + $0x8] sm:$0xff] }
0x1720   :  { %v7126_v47 = vmul.f32 %v11733_v54, %v7125_v43  ;;  %v9754_v19 = vpack.c.bf16 %v7058_v57, %v7057_v0  ;;  %v8005_v20 = vsel %vm7068_vm11, 1.0, %v10424_v14  ;;  %v7256_v7 = vmul.f32 0.8333333, %v11677_v6 }
0x1721   :  { %v7275_v5 = vadd.f32 %v7274_v42, %v7272_v28  ;;  %9751 = vmatprep.subr.bf16.mxu1 %v9750_v56  ;;  %v7123_v12 = vmul.f32 %v8005_v20, %v7122_v40  ;;  %v9756_v30 = vpack.c.bf16 %v7042_v59, %v7041_v4  ;;  %v7258_v60 = vmul.f32 0.8333333, %v11659_v50  ;;  %v7455_v28 = vld [vmem:[#allocation31 + $0x10] sm:$0xff] }
0x1722   :  { %9753 = vmatpush3.bf16.msra.mxu1 %v9752_v29  ;;  %v7257_v18 = vmul.f32 %v7256_v7, %v7215_v13  ;;  %v7191_v15 = vmul.f32 1.25, %v8016_v38  ;;  %v7236_v23 = vmul.f32 0.8333333, %v8016_v38  ;;  %vm7301_vm13 = vcmask 523264  }
0x1723   :  { %v9844_v9 = vpack.i.bf16 %v7255_v33, %v7275_v5  ;;  %9755 = vmatprep.subr.bf16.mxu1 %v9754_v19  ;;  %v7127_v34 = vadd.f32 %v7126_v47, %v7123_v12  ;;  %v7259_v54 = vmul.f32 %v7258_v60, %v11756_v51  ;;  %vm7303_vm14 = vcmask 785408  }
0x1724   :  { %v9765_v63 = vpack.c.bf16 %v7454_v61, %v7453_v22  ;;  %v9768_v36 = vpack.c.bf16 %v7456_v55, %v7455_v28 }
0x1725   :  { %9845 = vrot.lane.b32.xlu1 %v9844_v9, %s10426_s18  ;;  %v7192_v17 = vmul.f32 %v7191_v15, %v7127_v34  ;;  %v7260_v16 = vadd.f32 %v7259_v54, %v7257_v18 }
0x1726   :  { %9757 = vmatpush3.bf16.msra.mxu1 %v9756_v30 }
0x1727   :  { %v7195_v6 = vadd.f32 %v7194_v3, %v7192_v17 }
0x1728   :  { %v9930_v25 = vpop.eup %9929 }
0x1729   :  { %v7062_v2 = vadd.f32 1.0, %v9930_v25  ;;  %v7237_v27 = vmul.f32 %v7236_v23, %v7195_v6 }
0x172b   :  { %9931 = vrcp.f32 %v7062_v2  ;;  %v7240_v32 = vadd.f32 %v7239_v8, %v7237_v27 }
0x1735   :  { %v9932_v50 = vpop.eup %9931 }
0x1736   :  { %v7065_v35 = vmul.f32 %v9932_v50, %v11628_v24 }
0x1738   :  { %9022 = vmatmul.mubr.msk.f32.vlgmr.msra.gmra.mrb[102].mxu0 %vm423_vm2, %v7065_v35 }
0x1739   :  { %9044 = vmatprep.mubr.msk.f32.mxu0 %vm10425_vm3, %v10424_v14  ;;  %9766 = vmatpush3.bf16.msra.mxu0 %v9765_v63 }
0x173a   :  { %9767 = vmatprep.subr.bf16.mxu0 %v10438_v41 }
0x173d   :  { %9769 = vmatpush3.bf16.msra.mxu0 %v9768_v36 }
0x173e   :  { %9770 = vmatprep.subr.bf16.mxu0 %v10438_v41 }
0x1785   :  { %v9841_v13 = vpop.permute.xlu0 %9840 }
0x1786   :  { %v9843_v48 = vunpack.i.h.bf16 %v9841_v13  ;;  %v9842_v10 = vunpack.i.l.bf16 %v9841_v13 }
0x178f   :  { %v9836_v51 = vpop.permute.xlu1 %9835 }
0x1790   :  { %v9838_v46 = vunpack.i.h.bf16 %v9836_v51  ;;  %v9837_v62 = vunpack.i.l.bf16 %v9836_v51 }
0x1792   :  { %v7300_v44 = vsel %vm423_vm2, %v7240_v32, %v9838_v46  ;;  %v7305_v26 = vsel %vm423_vm2, %v7260_v16, %v9837_v62 }
0x1793   :  { %v7306_v58 = vsel %vm7301_vm13, %v7305_v26, %v9842_v10  ;;  %v7302_v38 = vsel %vm7301_vm13, %v7300_v44, %v9843_v48 }
0x1797   :  { %v9846_v1 = vpop.permute.xlu1 %9845 }
0x1798   :  { %v9848_v49 = vunpack.i.h.bf16 %v9846_v1  ;;  %v9847_v24 = vunpack.i.l.bf16 %v9846_v1 }
0x179a   :  { %v7307_v53 = vsel %vm7303_vm14, %v7306_v58, %v9847_v24  ;;  %v7304_v45 = vsel %vm7303_vm14, %v7302_v38, %v9848_v49 }
0x179b   :  { %7372 = vmatprep.mubr.f32.mxu1 %v7307_v53 }
0x179c   :  { %7373 = vmatmul.mubr.f32.vlgmr.msra.gmra.mrb[100].mxu1 %v7304_v45 }
0x180b   :  { %v7447_v21 = vpop.f32.mrb[102].mxu0 }
0x180c   :  { %v9023_v52 = vpop.f32.mrb[103].mxu0 }
0x186f   :  { %v8782_v11 = vpop.f32.mrb[100].mxu1 }
0x1870   :  { %v8783_v33 = vpop.f32.mrb[101].mxu1 }
0x1871   :  { %v8784_v40 = vadd.f32 %v8783_v33, %v8782_v11 }
0x1873   :  { %v11791_v39 = vadd.f32 %v8784_v40, %v7447_v21 }
0x1875   :  { %vm7480_vm2 = vcmp.ge.f32.partialorder %v11791_v39, -1.4  ;;  %vm7481_vm15 = vcmp.lt.f32.partialorder %v11791_v39, -1.0  ;;  %vm7485_vm0 = vcmp.ge.f32.partialorder %v11791_v39, -1.0  ;;  %vm7486_vm1 = vcmp.lt.f32.partialorder %v11791_v39, -0.6 }
0x1876   :  { %vm7482_vm4 = vmand %vm7480_vm2, %vm7481_vm15  ;;  %vm7490_vm5 = vcmp.ge.f32.partialorder %v11791_v39, -0.6  ;;  %vm7491_vm6 = vcmp.lt.f32.partialorder %v11791_v39, -0.2  ;;  %vm7495_vm7 = vcmp.ge.f32.partialorder %v11791_v39, -0.2 }
0x1877   :  { %v8029_v37 = vsel %vm7482_vm4, 1.0, %v10424_v14  ;;  %vm7487_vm8 = vmand %vm7485_vm0, %vm7486_vm1  ;;  %vm7496_vm9 = vcmp.lt.f32.partialorder %v11791_v39, 0.2  ;;  %v8040_v0 = vadd.f32 1.4, %v11791_v39  ;;  %v11804_v57 = vadd.f32 1.0, %v11791_v39 }
0x1878   :  { %v8030_v43 = vsel %vm7487_vm8, 1.0, %v10424_v14  ;;  %vm7492_vm12 = vmand %vm7490_vm5, %vm7491_vm6  ;;  %v11808_v31 = vsub.f32 -0.6, %v11791_v39  ;;  %v7549_v42 = vsub.f32 -0.2, %v11791_v39  ;;  %v7535_v3 = vsub.f32 -1.0, %v11791_v39 }
0x1879   :  { %v8031_v56 = vsel %vm7492_vm12, 1.0, %v10424_v14  ;;  %vm7497_vm10 = vmand %vm7495_vm7, %vm7496_vm9  ;;  %v7540_v4 = vmul.f32 2.5, %v8040_v0  ;;  %v7547_v59 = vmul.f32 2.5, %v11804_v57  ;;  %v11815_v47 = vadd.f32 0.6, %v11791_v39 }
0x187a   :  { %v11818_v8 = vsel %vm7497_vm10, 1.0, %v10424_v14  ;;  %v7543_v29 = vmul.f32 2.5, %v11808_v31  ;;  %v7550_v19 = vmul.f32 2.5, %v7549_v42  ;;  %v7556_v5 = vsub.f32 0.2, %v11791_v39 }
0x187b   :  { %v7541_v20 = vmul.f32 %v8029_v37, %v7540_v4  ;;  %v7548_v7 = vmul.f32 %v8030_v43, %v7547_v59  ;;  %v7554_v12 = vmul.f32 2.5, %v11815_v47  ;;  %v7605_v30 = vmul.f32 1.25, %v8040_v0 }
0x187c   :  { %v7544_v60 = vmul.f32 %v8030_v43, %v7543_v29  ;;  %v7551_v9 = vmul.f32 %v8031_v56, %v7550_v19  ;;  %v7557_v18 = vmul.f32 2.5, %v7556_v5  ;;  %v7607_v15 = vmul.f32 1.25, %v7549_v42 }
0x187d   :  { %v7555_v34 = vmul.f32 %v8031_v56, %v7554_v12  ;;  %v7610_v54 = vmul.f32 1.25, %v11804_v57  ;;  %v7612_v17 = vmul.f32 1.25, %v7556_v5  ;;  %v7650_v16 = vmul.f32 0.8333333, %v8040_v0 }
0x187e   :  { %v7545_v25 = vadd.f32 %v7544_v60, %v7541_v20  ;;  %v7552_v23 = vadd.f32 %v7551_v9, %v7548_v7  ;;  %v7558_v6 = vmul.f32 %v11818_v8, %v7557_v18  ;;  %v7652_v2 = vmul.f32 0.8333333, %v7556_v5 }
0x187f   :  { %vm7475_vm11 = vcmp.ge.f32.partialorder %v11791_v39, -1.8  ;;  %vm7476_vm13 = vcmp.lt.f32.partialorder %v11791_v39, -1.4  ;;  %v8039_v27 = vadd.f32 1.8, %v11791_v39 }
0x1880   :  { %v7559_v32 = vadd.f32 %v7558_v6, %v7555_v34  ;;  %v7606_v50 = vmul.f32 %v7605_v30, %v7545_v25  ;;  %v7608_v35 = vmul.f32 %v7607_v15, %v7552_v23  ;;  %v7611_v51 = vmul.f32 %v7610_v54, %v7552_v23  ;;  %vm7477_vm14 = vmand %vm7475_vm11, %vm7476_vm13 }
0x1881   :  { %v11829_v13 = vsel %vm7477_vm14, 1.0, %v10424_v14  ;;  %v7533_v46 = vmul.f32 2.5, %v8039_v27  ;;  %v7536_v62 = vmul.f32 2.5, %v7535_v3  ;;  %v7600_v48 = vmul.f32 1.25, %v8039_v27 }
0x1882   :  { %v7609_v10 = vadd.f32 %v7608_v35, %v7606_v50  ;;  %v7613_v44 = vmul.f32 %v7612_v17, %v7559_v32  ;;  %v7602_v26 = vmul.f32 1.25, %v11808_v31  ;;  %v7645_v1 = vmul.f32 0.8333333, %v8039_v27 }
0x1883   :  { %v7534_v49 = vmul.f32 %v11829_v13, %v7533_v46  ;;  %v7537_v24 = vmul.f32 %v8029_v37, %v7536_v62  ;;  %v7647_v58 = vmul.f32 0.8333333, %v7549_v42  ;;  %vm7500_vm2 = vcmp.ge.f32.partialorder %v11791_v39, 0.2 }
0x1884   :  { %v7614_v38 = vadd.f32 %v7613_v44, %v7611_v51  ;;  %v7651_v53 = vmul.f32 %v7650_v16, %v7609_v10  ;;  %v7603_v45 = vmul.f32 %v7602_v26, %v7545_v25  ;;  %vm7501_vm15 = vcmp.lt.f32.partialorder %v11791_v39, 0.6 }
0x1885   :  { %v11837_v21 = vadd.f32 %v7537_v24, %v7534_v49  ;;  %v7648_v52 = vmul.f32 %v7647_v58, %v7609_v10  ;;  %vm7502_vm0 = vmand %vm7500_vm2, %vm7501_vm15  ;;  %vm7505_vm1 = vcmp.ge.f32.partialorder %v11791_v39, 0.6  ;;  %vm7506_vm4 = vcmp.lt.f32.partialorder %v11791_v39, 1.0 }
0x1886   :  { %v7653_v22 = vmul.f32 %v7652_v2, %v7614_v38  ;;  %v8033_v61 = vsel %vm7502_vm0, 1.0, %v10424_v14  ;;  %vm7507_vm5 = vmand %vm7505_vm1, %vm7506_vm4  ;;  %v11843_v28 = vadd.f32 0.2, %v11791_v39  ;;  %v7563_v63 = vsub.f32 0.6, %v11791_v39 }
0x1887   :  { %v7601_v55 = vmul.f32 %v7600_v48, %v11837_v21  ;;  %v8034_v36 = vsel %vm7507_vm5, 1.0, %v10424_v14  ;;  %v11849_v11 = vadd.f32 -0.2, %v11791_v39  ;;  %v7570_v33 = vsub.f32 1.0, %v11791_v39 }
0x1888   :  { %v7654_v40 = vadd.f32 %v7653_v22, %v7651_v53  ;;  %v7561_v37 = vmul.f32 2.5, %v11843_v28  ;;  %v7564_v0 = vmul.f32 2.5, %v7563_v63  ;;  %v7615_v43 = vmul.f32 1.25, %v11815_v47 }
0x1889   :  { %v11854_v42 = vadd.f32 %v7603_v45, %v7601_v55  ;;  %v7568_v56 = vmul.f32 2.5, %v11849_v11  ;;  %v7571_v4 = vmul.f32 2.5, %v7570_v33  ;;  %v7617_v59 = vmul.f32 1.25, %v7563_v63 }
0x188a   :  { %7685 = vrot.lane.b32.xlu0 %v7654_v40, %s10440_s11  ;;  %v7562_v29 = vmul.f32 %v11818_v8, %v7561_v37  ;;  %v7565_v19 = vmul.f32 %v8033_v61, %v7564_v0  ;;  %v7616_v5 = vmul.f32 %v7615_v43, %v7559_v32  ;;  %v7620_v20 = vmul.f32 1.25, %v11843_v28 }
0x188b   :  { %v7646_v7 = vmul.f32 %v7645_v1, %v11854_v42  ;;  %v7569_v12 = vmul.f32 %v8033_v61, %v7568_v56  ;;  %v7572_v30 = vmul.f32 %v8034_v36, %v7571_v4  ;;  %v7622_v60 = vmul.f32 1.25, %v7570_v33 }
0x188c   :  { %v7566_v9 = vadd.f32 %v7565_v19, %v7562_v29  ;;  %v7660_v18 = vmul.f32 0.8333333, %v11815_v47  ;;  %v7662_v15 = vmul.f32 0.8333333, %v7570_v33  ;;  %v7655_v34 = vmul.f32 0.8333333, %v11804_v57 }
0x188d   :  { %v7649_v54 = vadd.f32 %v7648_v52, %v7646_v7  ;;  %v7573_v17 = vadd.f32 %v7572_v30, %v7569_v12  ;;  %v7657_v16 = vmul.f32 0.8333333, %v7563_v63  ;;  %vm7510_vm6 = vcmp.ge.f32.partialorder %v11791_v39, 1.0 }
0x188e   :  { %v7618_v8 = vmul.f32 %v7617_v59, %v7566_v9  ;;  %v7621_v25 = vmul.f32 %v7620_v20, %v7566_v9  ;;  %v7656_v23 = vmul.f32 %v7655_v34, %v7614_v38  ;;  %vm7511_vm7 = vcmp.lt.f32.partialorder %v11791_v39, 1.4 }
0x188f   :  { %7681 = vrot.lane.b32.xlu1 %v7649_v54, %s10441_s17  ;;  %v7623_v6 = vmul.f32 %v7622_v60, %v7573_v17  ;;  %vm7512_vm8 = vmand %vm7510_vm6, %vm7511_vm7  ;;  %vm7515_vm9 = vcmp.ge.f32.partialorder %v11791_v39, 1.4  ;;  %vm7516_vm12 = vcmp.lt.f32.partialorder %v11791_v39, 1.8  ;;  %v11867_v57 = vadd.f32 -0.6, %v11791_v39 }
0x1890   :  { %v7619_v47 = vadd.f32 %v7618_v8, %v7616_v5  ;;  %v8035_v2 = vsel %vm7512_vm8, 1.0, %v10424_v14  ;;  %vm7517_vm10 = vmand %vm7515_vm9, %vm7516_vm12  ;;  %v7577_v27 = vsub.f32 1.4, %v11791_v39  ;;  %v8046_v32 = vadd.f32 -1.0, %v11791_v39 }
0x1891   :  { %v7624_v50 = vadd.f32 %v7623_v6, %v7621_v25  ;;  %v8036_v35 = vsel %vm7517_vm10, 1.0, %v10424_v14  ;;  %v7575_v51 = vmul.f32 2.5, %v11867_v57  ;;  %v7584_v46 = vsub.f32 1.8, %v11791_v39 }
0x1892   :  { %v7661_v62 = vmul.f32 %v7660_v18, %v7619_v47  ;;  %v7658_v48 = vmul.f32 %v7657_v16, %v7619_v47  ;;  %v7578_v10 = vmul.f32 2.5, %v7577_v27  ;;  %v7582_v44 = vmul.f32 2.5, %v8046_v32 }
0x1893   :  { %v7663_v26 = vmul.f32 %v7662_v15, %v7624_v50  ;;  %v7576_v1 = vmul.f32 %v8034_v36, %v7575_v51  ;;  %v7585_v49 = vmul.f32 2.5, %v7584_v46  ;;  %v7625_v53 = vmul.f32 1.25, %v11849_v11 }
0x1894   :  { %v7659_v24 = vadd.f32 %v7658_v48, %v7656_v23  ;;  %v7579_v58 = vmul.f32 %v8035_v2, %v7578_v10  ;;  %v7583_v38 = vmul.f32 %v8035_v2, %v7582_v44  ;;  %v7627_v63 = vmul.f32 1.25, %v7577_v27  ;;  %v7460_v48 = vld [vmem:[#allocation31 + $0x38] sm:$0xff] }
0x1895   :  { %v7664_v45 = vadd.f32 %v7663_v26, %v7661_v62  ;;  %v7586_v52 = vmul.f32 %v8036_v35, %v7585_v49  ;;  %v7626_v61 = vmul.f32 %v7625_v53, %v7573_v17  ;;  %v7630_v55 = vmul.f32 1.25, %v11867_v57  ;;  %v7462_v53 = vld [vmem:[#allocation31 + $0x48] sm:$0xff] }
0x1896   :  { %7689 = vrot.lane.b32.xlu1 %v7659_v24, %s10442_s30  ;;  %v7580_v22 = vadd.f32 %v7579_v58, %v7576_v1  ;;  %v7632_v40 = vmul.f32 1.25, %v7584_v46  ;;  %v7665_v36 = vmul.f32 0.8333333, %v11843_v28  ;;  %vm7520_vm11 = vcmp.ge.f32.partialorder %v11791_v39, 1.8 }
0x1897   :  { %7693 = vrot.lane.b32.xlu0 %v7664_v45, %s10435_s0  ;;  %v7587_v33 = vadd.f32 %v7586_v52, %v7583_v38  ;;  %vm7521_vm13 = vcmp.lt.f32.partialorder %v11791_v39, 2.2  ;;  %v8047_v43 = vadd.f32 -1.4, %v11791_v39  ;;  %v7670_v4 = vmul.f32 0.8333333, %v11849_v11 }
0x1898   :  { %v7628_v37 = vmul.f32 %v7627_v63, %v7580_v22  ;;  %v7631_v0 = vmul.f32 %v7630_v55, %v7580_v22  ;;  %v7667_v59 = vmul.f32 0.8333333, %v7577_v27  ;;  %vm7522_vm14 = vmand %vm7520_vm11, %vm7521_vm13  ;;  %v7591_v29 = vsub.f32 2.2, %v11791_v39  ;;  %v7457_v27 = vld [vmem:[#allocation31 + $0x20] sm:$0xff] }
0x1899   :  { %v7633_v56 = vmul.f32 %v7632_v40, %v7587_v33  ;;  %v7666_v5 = vmul.f32 %v7665_v36, %v7624_v50  ;;  %v8037_v20 = vsel %vm7522_vm14, 1.0, %v10424_v14  ;;  %v7589_v28 = vmul.f32 2.5, %v8047_v43  ;;  %v7458_v50 = vld [vmem:[#allocation31 + $0x28] sm:$0xff] }
0x189a   :  { %v7629_v19 = vadd.f32 %v7628_v37, %v7626_v61  ;;  %v7672_v12 = vmul.f32 0.8333333, %v7584_v46  ;;  %v7592_v30 = vmul.f32 2.5, %v7591_v29  ;;  %v7635_v15 = vmul.f32 1.25, %v8046_v32 }
0x189b   :  { %v7634_v7 = vadd.f32 %v7633_v56, %v7631_v0  ;;  %v7590_v18 = vmul.f32 %v8036_v35, %v7589_v28  ;;  %v8038_v11 = vadd.f32 2.2, %v11791_v39  ;;  %v7637_v8 = vmul.f32 1.25, %v7591_v29  ;;  %v7451_v28 = vld [vmem:[#allocation29] sm:$0xff] }
0x189c   :  { %v7671_v60 = vmul.f32 %v7670_v4, %v7629_v19  ;;  %v7668_v9 = vmul.f32 %v7667_v59, %v7629_v19  ;;  %v7593_v54 = vmul.f32 %v8037_v20, %v7592_v30  ;;  %v7636_v16 = vmul.f32 %v7635_v15, %v7587_v33 }
0x189d   :  { %v7673_v34 = vmul.f32 %v7672_v12, %v7634_v7  ;;  %v7528_v25 = vsub.f32 -1.4, %v11791_v39  ;;  %v7597_v47 = vmul.f32 1.25, %v7535_v3  ;;  %v7642_v2 = vmul.f32 0.8333333, %v11808_v31  ;;  %v7459_v31 = vld [vmem:[#allocation31 + $0x30] sm:$0xff] }
0x189e   :  { %v7669_v17 = vadd.f32 %v7668_v9, %v7666_v5  ;;  %v7594_v6 = vadd.f32 %v7593_v54, %v7590_v18  ;;  %v7675_v32 = vmul.f32 0.8333333, %v11867_v57  ;;  %v7526_v35 = vmul.f32 2.5, %v8038_v11 }
0x189f   :  { %v7674_v23 = vadd.f32 %v7673_v34, %v7671_v60  ;;  %v7529_v51 = vmul.f32 2.5, %v7528_v25  ;;  %vm7470_vm2 = vcmp.ge.f32.partialorder %v11791_v39, -2.2  ;;  %vm7471_vm15 = vcmp.lt.f32.partialorder %v11791_v39, -1.8 }
0x18a0   :  { %7697 = vrot.lane.b32.xlu1 %v7669_v17, %s10443_s2  ;;  %v7638_v46 = vmul.f32 %v7637_v8, %v7594_v6  ;;  %v7598_v62 = vmul.f32 %v7597_v47, %v11837_v21  ;;  %v7643_v3 = vmul.f32 %v7642_v2, %v11854_v42  ;;  %vm7472_vm0 = vmand %vm7470_vm2, %vm7471_vm15  ;;  %v9771_v44 = vpack.c.bf16 %v7458_v50, %v7457_v27  ;;  %v7461_v21 = vld [vmem:[#allocation31 + $0x40] sm:$0xff] }
0x18a1   :  { %7701 = vrot.lane.b32.xlu0 %v7674_v23, %s10444_s10  ;;  %v7530_v10 = vmul.f32 %v11829_v13, %v7529_v51  ;;  %v7676_v26 = vmul.f32 %v7675_v32, %v7634_v7  ;;  %v7677_v1 = vmul.f32 0.8333333, %v7591_v29  ;;  %v8027_v49 = vsel %vm7472_vm0, 1.0, %v10424_v14  ;;  %v7452_v7 = vld [vmem:[#allocation29 + $0x8] sm:$0x3] }
0x18a2   :  { %v7639_v57 = vadd.f32 %v7638_v46, %v7636_v16  ;;  %v7527_v24 = vmul.f32 %v8027_v49, %v7526_v35  ;;  %9772 = vmatpush3.bf16.msra.mxu0 %v9771_v44  ;;  %v9774_v58 = vpack.c.bf16 %v7460_v48, %v7459_v31  ;;  %v7595_v42 = vmul.f32 1.25, %v8038_v11 }
0x18a3   :  { %9773 = vmatprep.subr.bf16.mxu0 %v10438_v41  ;;  %v9777_v13 = vpack.c.bf16 %v7462_v53, %v7461_v21  ;;  %v7640_v61 = vmul.f32 0.8333333, %v8038_v11  ;;  %v7463_v40 = vsub.f32 0.0, %v11791_v39  ;;  %vm7708_vm1 = vcmask 80896  }
0x18a4   :  { %v7678_v38 = vmul.f32 %v7677_v1, %v7639_v57  ;;  %v7531_v45 = vadd.f32 %v7530_v10, %v7527_v24  ;;  %vm7710_vm4 = vcmask 162816   ;;  %vm7712_vm5 = vcmask 244736  }
0x18a5   :  { %v7464_v36 = vmul.f32 1.442695, %v7463_v40  ;;  %vm7714_vm6 = vcmask 326656   ;;  %vm7716_vm7 = vcmask 408576   ;;  %vm7718_vm8 = vcmask 490496  }
0x18a6   :  { %v7679_v52 = vadd.f32 %v7678_v38, %v7676_v26  ;;  %v7596_v22 = vmul.f32 %v7595_v42, %v7531_v45  ;;  %9775 = vmatpush3.bf16.msra.mxu0 %v9774_v58  ;;  %vm7799_vm9 = vcmask 1041408   ;;  %vm7720_vm12 = vcmask 572416  }
0x18a7   :  { %9776 = vmatprep.subr.bf16.mxu0 %v10438_v41  ;;  %9933 = vpow2.f32 %v7464_v36  ;;  %vm7722_vm10 = vcmask 654336   ;;  %v9780_v60 = vpack.c.bf16 %v7452_v7, %v7451_v28  ;;  %vm10446_vm11 = vmmov 1  }
0x18a8   :  { %7705 = vrot.lane.b32.xlu1 %v7679_v52, %s10445_s14  ;;  %v7599_v63 = vadd.f32 %v7598_v62, %v7596_v22  ;;  %vm9781_vm13 = vmpackc.low %vm7799_vm9, %vm10446_vm11  ;;  %vm7873_vm14 = vcmask 17408  }
0x18aa   :  { %v7641_v55 = vmul.f32 %v7640_v61, %v7599_v63  ;;  %9778 = vmatpush3.bf16.msra.mxu0 %v9777_v13 }
0x18ab   :  { %9779 = vmatprep.subr.bf16.mxu0 %v10438_v41 }
0x18ac   :  { %v7644_v33 = vadd.f32 %v7643_v3, %v7641_v55 }
0x18b1   :  { %v9934_v43 = vpop.eup %9933 }
0x18b2   :  { %v7466_v29 = vadd.f32 1.0, %v9934_v43 }
0x18b4   :  { %9935 = vrcp.f32 %v7466_v29 }
0x18be   :  { %v9936_v34 = vpop.eup %9935 }
0x18bf   :  { %v7469_v54 = vmul.f32 %v9936_v34, %v11791_v39 }
0x18fc   :  { %v7686_v0 = vpop.permute.xlu0 %7685 }
0x1901   :  { %v7682_v37 = vpop.permute.xlu1 %7681 }
0x1902   :  { %v7709_v4 = vsel %vm7708_vm1, %v7644_v33, %v7682_v37 }
0x1903   :  { %v7711_v19 = vsel %vm7710_vm4, %v7709_v4, %v7686_v0 }
0x1908   :  { %v7690_v56 = vpop.permute.xlu1 %7689 }
0x1909   :  { %v7694_v59 = vpop.permute.xlu0 %7693  ;;  %v7713_v5 = vsel %vm7712_vm5, %v7711_v19, %v7690_v56 }
0x190a   :  { %v7715_v20 = vsel %vm7714_vm6, %v7713_v5, %v7694_v59 }
0x1912   :  { %v7698_v41 = vpop.permute.xlu1 %7697 }
0x1913   :  { %v7702_v12 = vpop.permute.xlu0 %7701  ;;  %v7717_v30 = vsel %vm7716_vm7, %v7715_v20, %v7698_v41 }
0x1914   :  { %v7719_v18 = vsel %vm7718_vm8, %v7717_v30, %v7702_v12 }
0x191a   :  { %v7706_v9 = vpop.permute.xlu1 %7705 }
0x191b   :  { %v7721_v15 = vsel %vm7720_vm12, %v7719_v18, %v7706_v9 }
0x191c   :  { %9045 = vmatmul.mubr.msk.f32.vlgmr.msra.gmra.mrb[104].mxu0 %vm7722_vm10, %v7721_v15 }
0x191d   :  { %9782 = vmatpush3.bf16.msk.msra.mxu0 %vm9781_vm13, %v9780_v60  ;;  %9051 = vmatprep.mubr.msk.f32.mxu0 %vm10425_vm3, %v10424_v14 }
0x1924   :  { %9052 = vmatmul.mubr.msk.f32.vlgmr.msra.gmra.mrb[104].mxu0 %vm7708_vm1, %v7469_v54 }
0x19f7   :  { %v7869_v11 = vpop.f32.mrb[104].mxu0 }
0x19f8   :  { %v9053_v17 = vpop.f32.mrb[105].mxu0  ;;  %7874 = vst.msk [vmem:[#allocation32] sm:$0x3] %vm7873_vm14, %v7869_v11 }
0x19f9   :  { %10366 = shalt.err (!%p10363_p2)
}
0x19fa   :  { %s11955_s9 = sld [smem:[#allocation48_spill]] }
0x1a00   :  { %s10367_s19 = scalar_lea.hbm %s11955_s9, 32 }
0x1a01   :  { %p10368_p3 = scmp.ne.s32.totalorder %s11955_s9, %s10367_s19  ;;  %p10371_p4 = scmp.lt.u32.totalorder %s10367_s19, %s11955_s9 }
0x1a03   :  { %p10373_p5 = pnand %p10371_p4, %p10368_p3 }
0x1a05   :  { %10376 = shalt.err (!%p10373_p5)
}
0x1a06   :  { %7884 = dma.vmem_to_hbm [thread:$0]  %s7882_s15, 32, %s11955_s9, [#allocation4]  }
0x1a07   :  { %10397 = dma.done.wait [#allocation4], 32  }
0x1a08   :  { %10398 = vsyncadd [#allocation4], 4294967264 }
0x1a09   :  { %7888 = vsyncpa [#allocation3], 1 }
0x1a0a   :  { %7889 = vsyncpa [#allocation6], 1 }
0x1a0b   :  { %7890 = vsyncpa [#allocation9], 1 }
0x1a0c   :  { %7891 = vsyncpa [#allocation12], 1 }
0x1a0d   :  { %7892 = vsyncpa [#allocation15], 1 }
0x1a0e   :  { %7893 = vsyncpa [#allocation18], 1 }
0x1a0f   :  { %7894 = vsyncpa [#allocation21], 1 }
0x1a10   :  { %7895 = vsyncpa [#allocation24], 1 }
0x1a11   :  { %7896 = vsyncpa [#allocation27], 1 }
0x1a12   :  { %7897 = vsyncpa [#allocation30], 1 }
0x1a13   :  { %7898 = vsyncpa [#allocation4], 1 }

</bundles_post_ra>
